<compile_context>
chip_gen: v7x
topology: tpu7x:2x2x1
jax: 0.10.0
libtpu: 0.0.40
codegen_flags: <defaults>
</compile_context>

<pallas_src>
import functools
import math

import jax
import jax.numpy as jnp
from jax.experimental import pallas as pl
from jax.experimental.pallas import tpu as pltpu


def _round_up(x, m):
    return (x + m - 1) // m * m


_VMEM_LIMIT = 32 * 1024 * 1024


# --------------------------------------------------------------------------
# Kernel 1: single-K matmul with fused bias + ReLU, tiled over M only.
# Used for the 7x7 first conv whose im2col K (= 49*Cin) fits in one block.
# --------------------------------------------------------------------------
def _mm_bias_relu_kernel(a_ref, w_ref, b_ref, o_ref):
    acc = jnp.dot(a_ref[...], w_ref[...], preferred_element_type=jnp.float32)
    acc = acc + b_ref[...]                                   # (tm, n) + (1, n)
    o_ref[...] = jnp.maximum(acc, 0.0).astype(o_ref.dtype)


def matmul_bias_relu(a, w, b, *, out_dtype=jnp.bfloat16, tm_target=1024):
    """relu(a:(M,K) @ w:(K,N) + b), bf16 operands, f32 accumulation."""
    M, K = a.shape
    K2, N = w.shape
    assert K == K2
    # Zero-pad K to a lane-aligned multiple of 128 so no uninitialized VMEM
    # padding can enter the contraction (only matters for layer-1's K=49*Cin).
    Kp = _round_up(K, 128)
    if Kp != K:
        a = jnp.pad(a, ((0, 0), (0, Kp - K)))
        w = jnp.pad(w, ((0, Kp - K), (0, 0)))
    tm = min(tm_target, _round_up(M, 8))
    Mp = _round_up(M, tm)
    if Mp != M:
        a = jnp.pad(a, ((0, Mp - M), (0, 0)))

    out = pl.pallas_call(
        _mm_bias_relu_kernel,
        out_shape=jax.ShapeDtypeStruct((Mp, N), out_dtype),
        grid=(Mp // tm,),
        in_specs=[
            pl.BlockSpec((tm, Kp), lambda i: (i, 0)),
            pl.BlockSpec((Kp, N), lambda i: (0, 0)),
            pl.BlockSpec((1, N), lambda i: (0, 0)),
        ],
        out_specs=pl.BlockSpec((tm, N), lambda i: (i, 0)),
        compiler_params=pltpu.CompilerParams(
            dimension_semantics=("parallel",),
            vmem_limit_bytes=_VMEM_LIMIT),
    )(a.astype(jnp.bfloat16), w.astype(jnp.bfloat16),
      b.reshape(1, N).astype(jnp.float32))
    return out[:M]


# --------------------------------------------------------------------------
# Kernel 2: fused 2x2 / stride-1 conv (the space-to-depth form of the 4x4 /
# stride-2 convs) with bias + ReLU.  One grid step = one (image, row-block);
# the 4 kernel offsets are accumulated in VMEM/registers, so no im2col
# matrix is ever materialized in HBM.
# --------------------------------------------------------------------------
def _conv2x2_kernel(x_ref, w_ref, b_ref, o_ref, *, toh, wp8, ow):
    # x_ref: (1, (toh+1)*wp8, 4*Cin)  bf16, row-major (row, col) flattened
    # w_ref: (4, 4*Cin, Cout)         bf16, offset index = 2*dy + dx
    # b_ref: (1, Cout)                f32
    # o_ref: (1, toh, ow, Cout)
    cout = o_ref.shape[-1]
    x = x_ref[0]                                             # ((toh+1)*wp8, 4Cin)
    acc = jnp.zeros((toh, ow, cout), jnp.float32)
    for dy in range(2):
        x_rows = x[dy * wp8:(dy + toh) * wp8, :]             # (toh*wp8, 4Cin)
        for dx in range(2):
            p = jnp.dot(x_rows, w_ref[2 * dy + dx],
                        preferred_element_type=jnp.float32)  # (toh*wp8, Cout)
            p = p.reshape(toh, wp8, cout)
            acc = acc + p[:, dx:dx + ow, :]
    acc = acc + jnp.reshape(b_ref[...], (1, 1, cout))
    o_ref[0] = jnp.maximum(acc, 0.0).astype(o_ref.dtype)


def _pick_row_block(oh, ws8, c4, budget_bytes=1 << 21):
    """Largest divisor of `oh` whose bf16 input slab fits the VMEM budget."""
    for d in range(oh, 0, -1):
        if oh % d == 0 and (d + 1) * ws8 * c4 * 2 <= budget_bytes:
            return d
    return 1


def conv4x4_s2_relu(x, w, b, *, out_dtype=jnp.bfloat16):
    """ReflectionPad2d(1) + Conv2d(Cin, Cout, 4, stride=2) + ReLU, NHWC."""
    n, h, wdt, cin = x.shape
    cout = w.shape[0]
    oh, ow = h // 2, wdt // 2

    # Reflection pad (+1 each side); zero-pad H/W up to even so the
    # space-to-depth split is exact (extra rows/cols are never read).
    xp = jnp.pad(x, ((0, 0), (1, 1), (1, 1), (0, 0)), mode="reflect")
    hp, wp = xp.shape[1], xp.shape[2]
    hp2, wp2 = _round_up(hp, 2), _round_up(wp, 2)
    if (hp2, wp2) != (hp, wp):
        xp = jnp.pad(xp, ((0, 0), (0, hp2 - hp), (0, wp2 - wp), (0, 0)))
    hs, ws = hp2 // 2, wp2 // 2

    # Space-to-depth(2): the 4x4/s2 conv becomes a 2x2/s1 conv over 4*Cin.
    xs = xp.reshape(n, hs, 2, ws, 2, cin).transpose(0, 1, 3, 2, 4, 5)
    xs = xs.reshape(n, hs, ws, 4 * cin)

    # Zero-pad width to a multiple of 8 (sublane-aligned reshapes in-kernel).
    ws8 = _round_up(ws, 8)
    if ws8 != ws:
        xs = jnp.pad(xs, ((0, 0), (0, 0), (0, ws8 - ws), (0, 0)))

    # Row blocks of `toh` output rows + 1 halo row, flattened to 2-D slabs.
    toh = _pick_row_block(oh, ws8, 4 * cin)
    r = oh // toh
    slabs = [xs[:, i * toh:i * toh + toh + 1] for i in range(r)]
    xb = jnp.stack(slabs, axis=1)                            # (n, r, toh+1, ws8, 4C)
    xb = xb.reshape(n * r, (toh + 1) * ws8, 4 * cin).astype(jnp.bfloat16)

    # Repack weights: w[co, ci, 2a+p, 2b+q] -> w2[2a+b, p*2C + q*C + ci, co].
    w2 = w.transpose(2, 3, 1, 0).reshape(2, 2, 2, 2, cin, cout)
    w2 = w2.transpose(0, 2, 1, 3, 4, 5).reshape(4, 4 * cin, cout)
    w2 = w2.astype(jnp.bfloat16)
    b2 = b.reshape(1, cout).astype(jnp.float32)

    out = pl.pallas_call(
        functools.partial(_conv2x2_kernel, toh=toh, wp8=ws8, ow=ow),
        out_shape=jax.ShapeDtypeStruct((n * r, toh, ow, cout), out_dtype),
        grid=(n * r,),
        in_specs=[
            pl.BlockSpec((1, (toh + 1) * ws8, 4 * cin), lambda i: (i, 0, 0)),
            pl.BlockSpec((4, 4 * cin, cout), lambda i: (0, 0, 0)),
            pl.BlockSpec((1, cout), lambda i: (0, 0)),
        ],
        out_specs=pl.BlockSpec((1, toh, ow, cout), lambda i: (i, 0, 0, 0)),
        compiler_params=pltpu.CompilerParams(
            dimension_semantics=("parallel",),
            vmem_limit_bytes=_VMEM_LIMIT),
    )(xb, w2, b2)
    return out.reshape(n, oh, ow, cout)


def conv7x7_s1_relu(x, w, b, *, out_dtype=jnp.bfloat16):
    """ReflectionPad2d(3) + Conv2d(Cin, 64, 7, 1) + ReLU via lean NHWC im2col.

    Cin is tiny (1-3), so a per-offset decomposition would starve the MXU at
    K=Cin; an NHWC im2col (K = 49*Cin, ~2x the layer output in bytes) keeps
    the MXU fed while the patch extraction fuses into the jitted producer.
    """
    n, h, wdt, cin = x.shape
    cout, _, kh, kw = w.shape
    oh, ow = h, wdt
    xp = jnp.pad(x, ((0, 0), (3, 3), (3, 3), (0, 0)), mode="reflect")
    cols = [xp[:, di:di + oh, dj:dj + ow, :]
            for di in range(kh) for dj in range(kw)]
    patches = jnp.concatenate(cols, axis=-1)                 # (n, oh, ow, 49*cin)
    patches = patches.reshape(n * oh * ow, kh * kw * cin)
    wm = w.transpose(2, 3, 1, 0).reshape(kh * kw * cin, cout)
    out = matmul_bias_relu(patches, wm, b, out_dtype=out_dtype)
    return out.reshape(n, oh, ow, cout)


# --------------------------------------------------------------------------
# E_attr forward.
# --------------------------------------------------------------------------
def e_attr_branch(x_nchw, p):
    x = jnp.transpose(x_nchw, (0, 2, 3, 1)).astype(jnp.bfloat16)   # NHWC, bf16
    x = conv7x7_s1_relu(x, p["w1"], p["b1"])
    x = conv4x4_s2_relu(x, p["w2"], p["b2"])
    x = conv4x4_s2_relu(x, p["w3"], p["b3"])
    x = conv4x4_s2_relu(x, p["w4"], p["b4"])
    x = conv4x4_s2_relu(x, p["w5"], p["b5"])
    # AdaptiveAvgPool2d(1) + final 1x1 conv: M=batch, K=256, N=8.  Left in
    # jnp inside the jit per the perf review (a pallas_call here would be
    # >95% MXU padding plus launch overhead).
    x = jnp.mean(x.astype(jnp.float32), axis=(1, 2))               # (n, 256)
    w6 = p["w6"].reshape(p["w6"].shape[0], -1)                     # (8, 256)
    return x @ w6.T + p["b6"]                                      # (n, 8)


def e_attr_forward(xa, xb, params_a, params_b):
    return e_attr_branch(xa, params_a), e_attr_branch(xb, params_b)


def init_branch_params(key, in_dim, dim=64, output_nc=8):
    shapes = [
        (dim, in_dim, 7, 7),
        (dim * 2, dim, 4, 4),
        (dim * 4, dim * 2, 4, 4),
        (dim * 4, dim * 4, 4, 4),
        (dim * 4, dim * 4, 4, 4),
        (output_nc, dim * 4, 1, 1),
    ]
    keys = jax.random.split(key, 2 * len(shapes))
    p = {}
    for idx, (co, ci, kh, kw) in enumerate(shapes, start=1):
        scale = 1.0 / math.sqrt(ci * kh * kw)
        p[f"w{idx}"] = jax.random.normal(
            keys[2 * (idx - 1)], (co, ci, kh, kw), jnp.float32) * scale
        p[f"b{idx}"] = jax.random.normal(
            keys[2 * (idx - 1) + 1], (co,), jnp.float32) * 0.01
    return p


# --------------------------------------------------------------------------
# Pure-JAX reference (correctness check only).
# --------------------------------------------------------------------------
def _ref_branch(x, p):
    def conv(x, w, b, stride, pad):
        xp = jnp.pad(x, ((0, 0), (0, 0), (pad, pad), (pad, pad)),
                     mode="reflect")
        y = jax.lax.conv_general_dilated(
            xp, w, window_strides=(stride, stride), padding="VALID",
            dimension_numbers=("NCHW", "OIHW", "NCHW"),
            precision=jax.lax.Precision.HIGHEST)
        return y + b[None, :, None, None]

    x = jax.nn.relu(conv(x, p["w1"], p["b1"], 1, 3))
    for i in (2, 3, 4, 5):
        x = jax.nn.relu(conv(x, p[f"w{i}"], p[f"b{i}"], 2, 1))
    x = jnp.mean(x, axis=(2, 3))
    w6 = p["w6"].reshape(p["w6"].shape[0], -1)
    return x @ w6.T + p["b6"]


if __name__ == "__main__":
    key = jax.random.PRNGKey(0)
    k_xa, k_xb, k_pa, k_pb = jax.random.split(key, 4)

    batch, in_dim_a, in_dim_b, spatial = 2, 3, 3, 16
    xa = jax.random.normal(k_xa, (batch, in_dim_a, spatial, spatial), jnp.float32)
    xb = jax.random.normal(k_xb, (batch, in_dim_b, spatial, spatial), jnp.float32)
    params_a = init_branch_params(k_pa, in_dim_a)
    params_b = init_branch_params(k_pb, in_dim_b)

    fwd = jax.jit(e_attr_forward)
    out_a, out_b = fwd(xa, xb, params_a, params_b)
    out_a, out_b = jax.block_until_ready((out_a, out_b))

    assert out_a.shape == (batch, 8) and out_b.shape == (batch, 8)
    assert out_a.dtype == jnp.float32 and out_b.dtype == jnp.float32

    # Cross-check against a full-precision reference (bf16-grade tolerance,
    # per the perf review's accepted accuracy trade-off).
    ref_a = _ref_branch(xa, params_a)
    ref_b = _ref_branch(xb, params_b)
    err_a = float(jnp.max(jnp.abs(out_a - ref_a)))
    err_b = float(jnp.max(jnp.abs(out_b - ref_b)))
    assert jnp.allclose(out_a, ref_a, rtol=5e-2, atol=5e-2), err_a
    assert jnp.allclose(out_b, ref_b, rtol=5e-2, atol=5e-2), err_b

    print("KERNEL_OK")
</pallas_src>

<mosaic_0001>
module attributes {stable_mosaic.version = 11 : i64} {
  func.func @_mm_bias_relu_kernel(%arg0: i32, %arg1: memref<512x256xbf16, #tpu.memory_space<vmem>>, %arg2: memref<256x64xbf16, #tpu.memory_space<vmem>>, %arg3: memref<1x64xf32, #tpu.memory_space<vmem>>, %arg4: memref<512x64xbf16, #tpu.memory_space<vmem>>) attributes {dimension_semantics = [#tpu.dimension_semantics<parallel>], iteration_bounds = array<i64: 1>, scalar_prefetch = 0 : i64, scratch_operands = 0 : i64, tpu.core_type = #tpu.core_type<tc>, window_params = [{transform_indices = @transform_0, window_bounds = array<i64: 512, 256>}, {pipeline_mode = #tpu.pipeline_mode<synchronous>, transform_indices = @transform_1, window_bounds = array<i64: 256, 64>}, {pipeline_mode = #tpu.pipeline_mode<synchronous>, transform_indices = @transform_2, window_bounds = array<i64: 1, 64>}, {transform_indices = @transform_3, window_bounds = array<i64: 512, 64>}]} {
    %c0 = arith.constant 0 : index
    %c0_0 = arith.constant 0 : index
    %0 = vector.load %arg1[%c0, %c0_0] : memref<512x256xbf16, #tpu.memory_space<vmem>>, vector<512x256xbf16>
    %c0_1 = arith.constant 0 : index
    %c0_2 = arith.constant 0 : index
    %1 = vector.load %arg2[%c0_1, %c0_2] : memref<256x64xbf16, #tpu.memory_space<vmem>>, vector<256x64xbf16>
    %cst = arith.constant dense<0.000000e+00> : vector<512x64xf32>
    %2 = tpu.matmul %0, %1, %cst {dimension_numbers = #tpu.dot_dimension_numbers<[1], [0], [0], [1], [0, 0, 1, 1], [], []>} : vector<512x256xbf16>, vector<256x64xbf16>, vector<512x64xf32> -> vector<512x64xf32>
    %c0_3 = arith.constant 0 : index
    %c0_4 = arith.constant 0 : index
    %3 = vector.load %arg3[%c0_3, %c0_4] : memref<1x64xf32, #tpu.memory_space<vmem>>, vector<1x64xf32>
    %4 = vector.broadcast %3 : vector<1x64xf32> to vector<512x64xf32>
    %5 = arith.addf %2, %4 : vector<512x64xf32>
    %cst_5 = arith.constant 0.000000e+00 : f32
    %6 = vector.broadcast %cst_5 : f32 to vector<512x64xf32>
    %7 = arith.maximumf %5, %6 : vector<512x64xf32>
    %8 = arith.truncf %7 : vector<512x64xf32> to vector<512x64xbf16>
    %c0_6 = arith.constant 0 : index
    %c0_7 = arith.constant 0 : index
    %9 = vector.load %arg4[%c0_6, %c0_7] : memref<512x64xbf16, #tpu.memory_space<vmem>>, vector<512x64xbf16>
    tpu.vector_store %arg4[%c0_6, %c0_7], %8 {strides = array<i32>} : memref<512x64xbf16, #tpu.memory_space<vmem>>, vector<512x64xbf16>,
    return
  }
  func.func @transform_0(%arg0: i32) -> (i32, i32) {
    %c0_i32 = arith.constant 0 : i32
    %c0_i32_0 = arith.constant 0 : i32
    return %arg0, %c0_i32 : i32, i32
  }
  func.func @transform_1(%arg0: i32) -> (i32, i32) {
    %c0_i32 = arith.constant 0 : i32
    %c0_i32_0 = arith.constant 0 : i32
    %c0_i32_1 = arith.constant 0 : i32
    return %c0_i32, %c0_i32_0 : i32, i32
  }
  func.func @transform_2(%arg0: i32) -> (i32, i32) {
    %c0_i32 = arith.constant 0 : i32
    %c0_i32_0 = arith.constant 0 : i32
    %c0_i32_1 = arith.constant 0 : i32
    return %c0_i32, %c0_i32_0 : i32, i32
  }
  func.func @transform_3(%arg0: i32) -> (i32, i32) {
    %c0_i32 = arith.constant 0 : i32
    %c0_i32_0 = arith.constant 0 : i32
    return %arg0, %c0_i32 : i32, i32
  }
}

module attributes {stable_mosaic.version = 11 : i64} {
  func.func @_conv2x2_kernel(%arg0: i32, %arg1: memref<1x144x256xbf16, #tpu.memory_space<vmem>>, %arg2: memref<4x256x128xbf16, #tpu.memory_space<vmem>>, %arg3: memref<1x128xf32, #tpu.memory_space<vmem>>, %arg4: memref<1x8x8x128xbf16, #tpu.memory_space<vmem>>) attributes {dimension_semantics = [#tpu.dimension_semantics<parallel>], iteration_bounds = array<i64: 2>, scalar_prefetch = 0 : i64, scratch_operands = 0 : i64, tpu.core_type = #tpu.core_type<tc>, window_params = [{transform_indices = @transform_0, window_bounds = array<i64: 1, 144, 256>}, {pipeline_mode = #tpu.pipeline_mode<synchronous>, transform_indices = @transform_1, window_bounds = array<i64: 4, 256, 128>}, {pipeline_mode = #tpu.pipeline_mode<synchronous>, transform_indices = @transform_2, window_bounds = array<i64: 1, 128>}, {transform_indices = @transform_3, window_bounds = array<i64: 1, 8, 8, 128>}]} {
    %c0 = arith.constant 0 : index
    %c0_0 = arith.constant 0 : index
    %c0_1 = arith.constant 0 : index
    %0 = vector.load %arg1[%c0, %c0_0, %c0_1] : memref<1x144x256xbf16, #tpu.memory_space<vmem>>, vector<1x144x256xbf16>
    %1 = vector.shape_cast %0 : vector<1x144x256xbf16> to vector<144x256xbf16>
    %cst = arith.constant 0.000000e+00 : f32
    %2 = vector.broadcast %cst : f32 to vector<8x8x128xf32>
    %3 = vector.extract_strided_slice %1 {offsets = [0, 0], sizes = [128, 256], strides = [1, 1]} : vector<144x256xbf16> to vector<128x256xbf16>
    %c0_2 = arith.constant 0 : index
    %c0_3 = arith.constant 0 : index
    %c0_4 = arith.constant 0 : index
    %4 = vector.load %arg2[%c0_2, %c0_3, %c0_4] : memref<4x256x128xbf16, #tpu.memory_space<vmem>>, vector<1x256x128xbf16>
    %5 = vector.shape_cast %4 : vector<1x256x128xbf16> to vector<256x128xbf16>
    %cst_5 = arith.constant dense<0.000000e+00> : vector<128x128xf32>
    %6 = tpu.matmul %3, %5, %cst_5 {dimension_numbers = #tpu.dot_dimension_numbers<[1], [0], [0], [1], [0, 0, 1, 1], [], []>} : vector<128x256xbf16>, vector<256x128xbf16>, vector<128x128xf32> -> vector<128x128xf32>
    %7 = vector.shape_cast %6 : vector<128x128xf32> to vector<8x16x128xf32>
    %8 = vector.extract_strided_slice %7 {offsets = [0, 0, 0], sizes = [8, 8, 128], strides = [1, 1, 1]} : vector<8x16x128xf32> to vector<8x8x128xf32>
    %9 = arith.addf %2, %8 : vector<8x8x128xf32>
    %c1 = arith.constant 1 : index
    %c0_6 = arith.constant 0 : index
    %c0_7 = arith.constant 0 : index
    %10 = vector.load %arg2[%c1, %c0_6, %c0_7] : memref<4x256x128xbf16, #tpu.memory_space<vmem>>, vector<1x256x128xbf16>
    %11 = vector.shape_cast %10 : vector<1x256x128xbf16> to vector<256x128xbf16>
    %cst_8 = arith.constant dense<0.000000e+00> : vector<128x128xf32>
    %12 = tpu.matmul %3, %11, %cst_8 {dimension_numbers = #tpu.dot_dimension_numbers<[1], [0], [0], [1], [0, 0, 1, 1], [], []>} : vector<128x256xbf16>, vector<256x128xbf16>, vector<128x128xf32> -> vector<128x128xf32>
    %13 = vector.shape_cast %12 : vector<128x128xf32> to vector<8x16x128xf32>
    %14 = vector.extract_strided_slice %13 {offsets = [0, 1, 0], sizes = [8, 8, 128], strides = [1, 1, 1]} : vector<8x16x128xf32> to vector<8x8x128xf32>
    %15 = arith.addf %9, %14 : vector<8x8x128xf32>
    %16 = vector.extract_strided_slice %1 {offsets = [16, 0], sizes = [128, 256], strides = [1, 1]} : vector<144x256xbf16> to vector<128x256xbf16>
    %c2 = arith.constant 2 : index
    %c0_9 = arith.constant 0 : index
    %c0_10 = arith.constant 0 : index
    %17 = vector.load %arg2[%c2, %c0_9, %c0_10] : memref<4x256x128xbf16, #tpu.memory_space<vmem>>, vector<1x256x128xbf16>
    %18 = vector.shape_cast %17 : vector<1x256x128xbf16> to vector<256x128xbf16>
    %cst_11 = arith.constant dense<0.000000e+00> : vector<128x128xf32>
    %19 = tpu.matmul %16, %18, %cst_11 {dimension_numbers = #tpu.dot_dimension_numbers<[1], [0], [0], [1], [0, 0, 1, 1], [], []>} : vector<128x256xbf16>, vector<256x128xbf16>, vector<128x128xf32> -> vector<128x128xf32>
    %20 = vector.shape_cast %19 : vector<128x128xf32> to vector<8x16x128xf32>
    %21 = vector.extract_strided_slice %20 {offsets = [0, 0, 0], sizes = [8, 8, 128], strides = [1, 1, 1]} : vector<8x16x128xf32> to vector<8x8x128xf32>
    %22 = arith.addf %15, %21 : vector<8x8x128xf32>
    %c3 = arith.constant 3 : index
    %c0_12 = arith.constant 0 : index
    %c0_13 = arith.constant 0 : index
    %23 = vector.load %arg2[%c3, %c0_12, %c0_13] : memref<4x256x128xbf16, #tpu.memory_space<vmem>>, vector<1x256x128xbf16>
    %24 = vector.shape_cast %23 : vector<1x256x128xbf16> to vector<256x128xbf16>
    %cst_14 = arith.constant dense<0.000000e+00> : vector<128x128xf32>
    %25 = tpu.matmul %16, %24, %cst_14 {dimension_numbers = #tpu.dot_dimension_numbers<[1], [0], [0], [1], [0, 0, 1, 1], [], []>} : vector<128x256xbf16>, vector<256x128xbf16>, vector<128x128xf32> -> vector<128x128xf32>
    %26 = vector.shape_cast %25 : vector<128x128xf32> to vector<8x16x128xf32>
    %27 = vector.extract_strided_slice %26 {offsets = [0, 1, 0], sizes = [8, 8, 128], strides = [1, 1, 1]} : vector<8x16x128xf32> to vector<8x8x128xf32>
    %28 = arith.addf %22, %27 : vector<8x8x128xf32>
    %c0_15 = arith.constant 0 : index
    %c0_16 = arith.constant 0 : index
    %29 = vector.load %arg3[%c0_15, %c0_16] : memref<1x128xf32, #tpu.memory_space<vmem>>, vector<1x128xf32>
    %30 = vector.shape_cast %29 : vector<1x128xf32> to vector<1x1x128xf32>
    %31 = vector.broadcast %30 : vector<1x1x128xf32> to vector<8x8x128xf32>
    %32 = arith.addf %28, %31 : vector<8x8x128xf32>
    %cst_17 = arith.constant 0.000000e+00 : f32
    %33 = vector.broadcast %cst_17 : f32 to vector<8x8x128xf32>
    %34 = arith.maximumf %32, %33 : vector<8x8x128xf32>
    %35 = arith.truncf %34 : vector<8x8x128xf32> to vector<8x8x128xbf16>
    %c0_18 = arith.constant 0 : index
    %c0_19 = arith.constant 0 : index
    %c0_20 = arith.constant 0 : index
    %c0_21 = arith.constant 0 : index
    %36 = vector.load %arg4[%c0_18, %c0_19, %c0_20, %c0_21] : memref<1x8x8x128xbf16, #tpu.memory_space<vmem>>, vector<1x8x8x128xbf16>
    %37 = vector.shape_cast %36 : vector<1x8x8x128xbf16> to vector<8x8x128xbf16>
    %38 = vector.shape_cast %35 : vector<8x8x128xbf16> to vector<1x8x8x128xbf16>
    tpu.vector_store %arg4[%c0_18, %c0_19, %c0_20, %c0_21], %38 {strides = array<i32>} : memref<1x8x8x128xbf16, #tpu.memory_space<vmem>>, vector<1x8x8x128xbf16>,
    return
  }
  func.func @transform_0(%arg0: i32) -> (i32, i32, i32) {
    %c0_i32 = arith.constant 0 : i32
    %c0_i32_0 = arith.constant 0 : i32
    %c0_i32_1 = arith.constant 0 : i32
    return %arg0, %c0_i32, %c0_i32_0 : i32, i32, i32
  }
  func.func @transform_1(%arg0: i32) -> (i32, i32, i32) {
    %c0_i32 = arith.constant 0 : i32
    %c0_i32_0 = arith.constant 0 : i32
    %c0_i32_1 = arith.constant 0 : i32
    %c0_i32_2 = arith.constant 0 : i32
    return %c0_i32, %c0_i32_0, %c0_i32_1 : i32, i32, i32
  }
  func.func @transform_2(%arg0: i32) -> (i32, i32) {
    %c0_i32 = arith.constant 0 : i32
    %c0_i32_0 = arith.constant 0 : i32
    %c0_i32_1 = arith.constant 0 : i32
    return %c0_i32, %c0_i32_0 : i32, i32
  }
  func.func @transform_3(%arg0: i32) -> (i32, i32, i32, i32) {
    %c0_i32 = arith.constant 0 : i32
    %c0_i32_0 = arith.constant 0 : i32
    %c0_i32_1 = arith.constant 0 : i32
    %c0_i32_2 = arith.constant 0 : i32
    return %arg0, %c0_i32, %c0_i32_0, %c0_i32_1 : i32, i32, i32, i32
  }
}

module attributes {stable_mosaic.version = 11 : i64} {
  func.func @_conv2x2_kernel(%arg0: i32, %arg1: memref<1x40x512xbf16, #tpu.memory_space<vmem>>, %arg2: memref<4x512x256xbf16, #tpu.memory_space<vmem>>, %arg3: memref<1x256xf32, #tpu.memory_space<vmem>>, %arg4: memref<1x4x4x256xbf16, #tpu.memory_space<vmem>>) attributes {dimension_semantics = [#tpu.dimension_semantics<parallel>], iteration_bounds = array<i64: 2>, scalar_prefetch = 0 : i64, scratch_operands = 0 : i64, tpu.core_type = #tpu.core_type<tc>, window_params = [{transform_indices = @transform_0, window_bounds = array<i64: 1, 40, 512>}, {pipeline_mode = #tpu.pipeline_mode<synchronous>, transform_indices = @transform_1, window_bounds = array<i64: 4, 512, 256>}, {pipeline_mode = #tpu.pipeline_mode<synchronous>, transform_indices = @transform_2, window_bounds = array<i64: 1, 256>}, {transform_indices = @transform_3, window_bounds = array<i64: 1, 4, 4, 256>}]} {
    %c0 = arith.constant 0 : index
    %c0_0 = arith.constant 0 : index
    %c0_1 = arith.constant 0 : index
    %0 = vector.load %arg1[%c0, %c0_0, %c0_1] : memref<1x40x512xbf16, #tpu.memory_space<vmem>>, vector<1x40x512xbf16>
    %1 = vector.shape_cast %0 : vector<1x40x512xbf16> to vector<40x512xbf16>
    %cst = arith.constant 0.000000e+00 : f32
    %2 = vector.broadcast %cst : f32 to vector<4x4x256xf32>
    %3 = vector.extract_strided_slice %1 {offsets = [0, 0], sizes = [32, 512], strides = [1, 1]} : vector<40x512xbf16> to vector<32x512xbf16>
    %c0_2 = arith.constant 0 : index
    %c0_3 = arith.constant 0 : index
    %c0_4 = arith.constant 0 : index
    %4 = vector.load %arg2[%c0_2, %c0_3, %c0_4] : memref<4x512x256xbf16, #tpu.memory_space<vmem>>, vector<1x512x256xbf16>
    %5 = vector.shape_cast %4 : vector<1x512x256xbf16> to vector<512x256xbf16>
    %cst_5 = arith.constant dense<0.000000e+00> : vector<32x256xf32>
    %6 = tpu.matmul %3, %5, %cst_5 {dimension_numbers = #tpu.dot_dimension_numbers<[1], [0], [0], [1], [0, 0, 1, 1], [], []>} : vector<32x512xbf16>, vector<512x256xbf16>, vector<32x256xf32> -> vector<32x256xf32>
    %7 = vector.shape_cast %6 : vector<32x256xf32> to vector<4x8x256xf32>
    %8 = vector.extract_strided_slice %7 {offsets = [0, 0, 0], sizes = [4, 4, 256], strides = [1, 1, 1]} : vector<4x8x256xf32> to vector<4x4x256xf32>
    %9 = arith.addf %2, %8 : vector<4x4x256xf32>
    %c1 = arith.constant 1 : index
    %c0_6 = arith.constant 0 : index
    %c0_7 = arith.constant 0 : index
    %10 = vector.load %arg2[%c1, %c0_6, %c0_7] : memref<4x512x256xbf16, #tpu.memory_space<vmem>>, vector<1x512x256xbf16>
    %11 = vector.shape_cast %10 : vector<1x512x256xbf16> to vector<512x256xbf16>
    %cst_8 = arith.constant dense<0.000000e+00> : vector<32x256xf32>
    %12 = tpu.matmul %3, %11, %cst_8 {dimension_numbers = #tpu.dot_dimension_numbers<[1], [0], [0], [1], [0, 0, 1, 1], [], []>} : vector<32x512xbf16>, vector<512x256xbf16>, vector<32x256xf32> -> vector<32x256xf32>
    %13 = vector.shape_cast %12 : vector<32x256xf32> to vector<4x8x256xf32>
    %14 = vector.extract_strided_slice %13 {offsets = [0, 1, 0], sizes = [4, 4, 256], strides = [1, 1, 1]} : vector<4x8x256xf32> to vector<4x4x256xf32>
    %15 = arith.addf %9, %14 : vector<4x4x256xf32>
    %16 = vector.extract_strided_slice %1 {offsets = [8, 0], sizes = [32, 512], strides = [1, 1]} : vector<40x512xbf16> to vector<32x512xbf16>
    %c2 = arith.constant 2 : index
    %c0_9 = arith.constant 0 : index
    %c0_10 = arith.constant 0 : index
    %17 = vector.load %arg2[%c2, %c0_9, %c0_10] : memref<4x512x256xbf16, #tpu.memory_space<vmem>>, vector<1x512x256xbf16>
    %18 = vector.shape_cast %17 : vector<1x512x256xbf16> to vector<512x256xbf16>
    %cst_11 = arith.constant dense<0.000000e+00> : vector<32x256xf32>
    %19 = tpu.matmul %16, %18, %cst_11 {dimension_numbers = #tpu.dot_dimension_numbers<[1], [0], [0], [1], [0, 0, 1, 1], [], []>} : vector<32x512xbf16>, vector<512x256xbf16>, vector<32x256xf32> -> vector<32x256xf32>
    %20 = vector.shape_cast %19 : vector<32x256xf32> to vector<4x8x256xf32>
    %21 = vector.extract_strided_slice %20 {offsets = [0, 0, 0], sizes = [4, 4, 256], strides = [1, 1, 1]} : vector<4x8x256xf32> to vector<4x4x256xf32>
    %22 = arith.addf %15, %21 : vector<4x4x256xf32>
    %c3 = arith.constant 3 : index
    %c0_12 = arith.constant 0 : index
    %c0_13 = arith.constant 0 : index
    %23 = vector.load %arg2[%c3, %c0_12, %c0_13] : memref<4x512x256xbf16, #tpu.memory_space<vmem>>, vector<1x512x256xbf16>
    %24 = vector.shape_cast %23 : vector<1x512x256xbf16> to vector<512x256xbf16>
    %cst_14 = arith.constant dense<0.000000e+00> : vector<32x256xf32>
    %25 = tpu.matmul %16, %24, %cst_14 {dimension_numbers = #tpu.dot_dimension_numbers<[1], [0], [0], [1], [0, 0, 1, 1], [], []>} : vector<32x512xbf16>, vector<512x256xbf16>, vector<32x256xf32> -> vector<32x256xf32>
    %26 = vector.shape_cast %25 : vector<32x256xf32> to vector<4x8x256xf32>
    %27 = vector.extract_strided_slice %26 {offsets = [0, 1, 0], sizes = [4, 4, 256], strides = [1, 1, 1]} : vector<4x8x256xf32> to vector<4x4x256xf32>
    %28 = arith.addf %22, %27 : vector<4x4x256xf32>
    %c0_15 = arith.constant 0 : index
    %c0_16 = arith.constant 0 : index
    %29 = vector.load %arg3[%c0_15, %c0_16] : memref<1x256xf32, #tpu.memory_space<vmem>>, vector<1x256xf32>
    %30 = vector.shape_cast %29 : vector<1x256xf32> to vector<1x1x256xf32>
    %31 = vector.broadcast %30 : vector<1x1x256xf32> to vector<4x4x256xf32>
    %32 = arith.addf %28, %31 : vector<4x4x256xf32>
    %cst_17 = arith.constant 0.000000e+00 : f32
    %33 = vector.broadcast %cst_17 : f32 to vector<4x4x256xf32>
    %34 = arith.maximumf %32, %33 : vector<4x4x256xf32>
    %35 = arith.truncf %34 : vector<4x4x256xf32> to vector<4x4x256xbf16>
    %c0_18 = arith.constant 0 : index
    %c0_19 = arith.constant 0 : index
    %c0_20 = arith.constant 0 : index
    %c0_21 = arith.constant 0 : index
    %36 = vector.load %arg4[%c0_18, %c0_19, %c0_20, %c0_21] : memref<1x4x4x256xbf16, #tpu.memory_space<vmem>>, vector<1x4x4x256xbf16>
    %37 = vector.shape_cast %36 : vector<1x4x4x256xbf16> to vector<4x4x256xbf16>
    %38 = vector.shape_cast %35 : vector<4x4x256xbf16> to vector<1x4x4x256xbf16>
    tpu.vector_store %arg4[%c0_18, %c0_19, %c0_20, %c0_21], %38 {strides = array<i32>} : memref<1x4x4x256xbf16, #tpu.memory_space<vmem>>, vector<1x4x4x256xbf16>,
    return
  }
  func.func @transform_0(%arg0: i32) -> (i32, i32, i32) {
    %c0_i32 = arith.constant 0 : i32
    %c0_i32_0 = arith.constant 0 : i32
    %c0_i32_1 = arith.constant 0 : i32
    return %arg0, %c0_i32, %c0_i32_0 : i32, i32, i32
  }
  func.func @transform_1(%arg0: i32) -> (i32, i32, i32) {
    %c0_i32 = arith.constant 0 : i32
    %c0_i32_0 = arith.constant 0 : i32
    %c0_i32_1 = arith.constant 0 : i32
    %c0_i32_2 = arith.constant 0 : i32
    return %c0_i32, %c0_i32_0, %c0_i32_1 : i32, i32, i32
  }
  func.func @transform_2(%arg0: i32) -> (i32, i32) {
    %c0_i32 = arith.constant 0 : i32
    %c0_i32_0 = arith.constant 0 : i32
    %c0_i32_1 = arith.constant 0 : i32
    return %c0_i32, %c0_i32_0 : i32, i32
  }
  func.func @transform_3(%arg0: i32) -> (i32, i32, i32, i32) {
    %c0_i32 = arith.constant 0 : i32
    %c0_i32_0 = arith.constant 0 : i32
    %c0_i32_1 = arith.constant 0 : i32
    %c0_i32_2 = arith.constant 0 : i32
    return %arg0, %c0_i32, %c0_i32_0, %c0_i32_1 : i32, i32, i32, i32
  }
}

module attributes {stable_mosaic.version = 11 : i64} {
  func.func @_conv2x2_kernel(%arg0: i32, %arg1: memref<1x24x1024xbf16, #tpu.memory_space<vmem>>, %arg2: memref<4x1024x256xbf16, #tpu.memory_space<vmem>>, %arg3: memref<1x256xf32, #tpu.memory_space<vmem>>, %arg4: memref<1x2x2x256xbf16, #tpu.memory_space<vmem>>) attributes {dimension_semantics = [#tpu.dimension_semantics<parallel>], iteration_bounds = array<i64: 2>, scalar_prefetch = 0 : i64, scratch_operands = 0 : i64, tpu.core_type = #tpu.core_type<tc>, window_params = [{transform_indices = @transform_0, window_bounds = array<i64: 1, 24, 1024>}, {pipeline_mode = #tpu.pipeline_mode<synchronous>, transform_indices = @transform_1, window_bounds = array<i64: 4, 1024, 256>}, {pipeline_mode = #tpu.pipeline_mode<synchronous>, transform_indices = @transform_2, window_bounds = array<i64: 1, 256>}, {transform_indices = @transform_3, window_bounds = array<i64: 1, 2, 2, 256>}]} {
    %c0 = arith.constant 0 : index
    %c0_0 = arith.constant 0 : index
    %c0_1 = arith.constant 0 : index
    %0 = vector.load %arg1[%c0, %c0_0, %c0_1] : memref<1x24x1024xbf16, #tpu.memory_space<vmem>>, vector<1x24x1024xbf16>
    %1 = vector.shape_cast %0 : vector<1x24x1024xbf16> to vector<24x1024xbf16>
    %cst = arith.constant 0.000000e+00 : f32
    %2 = vector.broadcast %cst : f32 to vector<2x2x256xf32>
    %3 = vector.extract_strided_slice %1 {offsets = [0, 0], sizes = [16, 1024], strides = [1, 1]} : vector<24x1024xbf16> to vector<16x1024xbf16>
    %c0_2 = arith.constant 0 : index
    %c0_3 = arith.constant 0 : index
    %c0_4 = arith.constant 0 : index
    %4 = vector.load %arg2[%c0_2, %c0_3, %c0_4] : memref<4x1024x256xbf16, #tpu.memory_space<vmem>>, vector<1x1024x256xbf16>
    %5 = vector.shape_cast %4 : vector<1x1024x256xbf16> to vector<1024x256xbf16>
    %cst_5 = arith.constant dense<0.000000e+00> : vector<16x256xf32>
    %6 = tpu.matmul %3, %5, %cst_5 {dimension_numbers = #tpu.dot_dimension_numbers<[1], [0], [0], [1], [0, 0, 1, 1], [], []>} : vector<16x1024xbf16>, vector<1024x256xbf16>, vector<16x256xf32> -> vector<16x256xf32>
    %7 = vector.shape_cast %6 : vector<16x256xf32> to vector<2x8x256xf32>
    %8 = vector.extract_strided_slice %7 {offsets = [0, 0, 0], sizes = [2, 2, 256], strides = [1, 1, 1]} : vector<2x8x256xf32> to vector<2x2x256xf32>
    %9 = arith.addf %2, %8 : vector<2x2x256xf32>
    %c1 = arith.constant 1 : index
    %c0_6 = arith.constant 0 : index
    %c0_7 = arith.constant 0 : index
    %10 = vector.load %arg2[%c1, %c0_6, %c0_7] : memref<4x1024x256xbf16, #tpu.memory_space<vmem>>, vector<1x1024x256xbf16>
    %11 = vector.shape_cast %10 : vector<1x1024x256xbf16> to vector<1024x256xbf16>
    %cst_8 = arith.constant dense<0.000000e+00> : vector<16x256xf32>
    %12 = tpu.matmul %3, %11, %cst_8 {dimension_numbers = #tpu.dot_dimension_numbers<[1], [0], [0], [1], [0, 0, 1, 1], [], []>} : vector<16x1024xbf16>, vector<1024x256xbf16>, vector<16x256xf32> -> vector<16x256xf32>
    %13 = vector.shape_cast %12 : vector<16x256xf32> to vector<2x8x256xf32>
    %14 = vector.extract_strided_slice %13 {offsets = [0, 1, 0], sizes = [2, 2, 256], strides = [1, 1, 1]} : vector<2x8x256xf32> to vector<2x2x256xf32>
    %15 = arith.addf %9, %14 : vector<2x2x256xf32>
    %16 = vector.extract_strided_slice %1 {offsets = [8, 0], sizes = [16, 1024], strides = [1, 1]} : vector<24x1024xbf16> to vector<16x1024xbf16>
    %c2 = arith.constant 2 : index
    %c0_9 = arith.constant 0 : index
    %c0_10 = arith.constant 0 : index
    %17 = vector.load %arg2[%c2, %c0_9, %c0_10] : memref<4x1024x256xbf16, #tpu.memory_space<vmem>>, vector<1x1024x256xbf16>
    %18 = vector.shape_cast %17 : vector<1x1024x256xbf16> to vector<1024x256xbf16>
    %cst_11 = arith.constant dense<0.000000e+00> : vector<16x256xf32>
    %19 = tpu.matmul %16, %18, %cst_11 {dimension_numbers = #tpu.dot_dimension_numbers<[1], [0], [0], [1], [0, 0, 1, 1], [], []>} : vector<16x1024xbf16>, vector<1024x256xbf16>, vector<16x256xf32> -> vector<16x256xf32>
    %20 = vector.shape_cast %19 : vector<16x256xf32> to vector<2x8x256xf32>
    %21 = vector.extract_strided_slice %20 {offsets = [0, 0, 0], sizes = [2, 2, 256], strides = [1, 1, 1]} : vector<2x8x256xf32> to vector<2x2x256xf32>
    %22 = arith.addf %15, %21 : vector<2x2x256xf32>
    %c3 = arith.constant 3 : index
    %c0_12 = arith.constant 0 : index
    %c0_13 = arith.constant 0 : index
    %23 = vector.load %arg2[%c3, %c0_12, %c0_13] : memref<4x1024x256xbf16, #tpu.memory_space<vmem>>, vector<1x1024x256xbf16>
    %24 = vector.shape_cast %23 : vector<1x1024x256xbf16> to vector<1024x256xbf16>
    %cst_14 = arith.constant dense<0.000000e+00> : vector<16x256xf32>
    %25 = tpu.matmul %16, %24, %cst_14 {dimension_numbers = #tpu.dot_dimension_numbers<[1], [0], [0], [1], [0, 0, 1, 1], [], []>} : vector<16x1024xbf16>, vector<1024x256xbf16>, vector<16x256xf32> -> vector<16x256xf32>
    %26 = vector.shape_cast %25 : vector<16x256xf32> to vector<2x8x256xf32>
    %27 = vector.extract_strided_slice %26 {offsets = [0, 1, 0], sizes = [2, 2, 256], strides = [1, 1, 1]} : vector<2x8x256xf32> to vector<2x2x256xf32>
    %28 = arith.addf %22, %27 : vector<2x2x256xf32>
    %c0_15 = arith.constant 0 : index
    %c0_16 = arith.constant 0 : index
    %29 = vector.load %arg3[%c0_15, %c0_16] : memref<1x256xf32, #tpu.memory_space<vmem>>, vector<1x256xf32>
    %30 = vector.shape_cast %29 : vector<1x256xf32> to vector<1x1x256xf32>
    %31 = vector.broadcast %30 : vector<1x1x256xf32> to vector<2x2x256xf32>
    %32 = arith.addf %28, %31 : vector<2x2x256xf32>
    %cst_17 = arith.constant 0.000000e+00 : f32
    %33 = vector.broadcast %cst_17 : f32 to vector<2x2x256xf32>
    %34 = arith.maximumf %32, %33 : vector<2x2x256xf32>
    %35 = arith.truncf %34 : vector<2x2x256xf32> to vector<2x2x256xbf16>
    %c0_18 = arith.constant 0 : index
    %c0_19 = arith.constant 0 : index
    %c0_20 = arith.constant 0 : index
    %c0_21 = arith.constant 0 : index
    %36 = vector.load %arg4[%c0_18, %c0_19, %c0_20, %c0_21] : memref<1x2x2x256xbf16, #tpu.memory_space<vmem>>, vector<1x2x2x256xbf16>
    %37 = vector.shape_cast %36 : vector<1x2x2x256xbf16> to vector<2x2x256xbf16>
    %38 = vector.shape_cast %35 : vector<2x2x256xbf16> to vector<1x2x2x256xbf16>
    tpu.vector_store %arg4[%c0_18, %c0_19, %c0_20, %c0_21], %38 {strides = array<i32>} : memref<1x2x2x256xbf16, #tpu.memory_space<vmem>>, vector<1x2x2x256xbf16>,
    return
  }
  func.func @transform_0(%arg0: i32) -> (i32, i32, i32) {
    %c0_i32 = arith.constant 0 : i32
    %c0_i32_0 = arith.constant 0 : i32
    %c0_i32_1 = arith.constant 0 : i32
    return %arg0, %c0_i32, %c0_i32_0 : i32, i32, i32
  }
  func.func @transform_1(%arg0: i32) -> (i32, i32, i32) {
    %c0_i32 = arith.constant 0 : i32
    %c0_i32_0 = arith.constant 0 : i32
    %c0_i32_1 = arith.constant 0 : i32
    %c0_i32_2 = arith.constant 0 : i32
    return %c0_i32, %c0_i32_0, %c0_i32_1 : i32, i32, i32
  }
  func.func @transform_2(%arg0: i32) -> (i32, i32) {
    %c0_i32 = arith.constant 0 : i32
    %c0_i32_0 = arith.constant 0 : i32
    %c0_i32_1 = arith.constant 0 : i32
    return %c0_i32, %c0_i32_0 : i32, i32
  }
  func.func @transform_3(%arg0: i32) -> (i32, i32, i32, i32) {
    %c0_i32 = arith.constant 0 : i32
    %c0_i32_0 = arith.constant 0 : i32
    %c0_i32_1 = arith.constant 0 : i32
    %c0_i32_2 = arith.constant 0 : i32
    return %arg0, %c0_i32, %c0_i32_0, %c0_i32_1 : i32, i32, i32, i32
  }
}

module attributes {stable_mosaic.version = 11 : i64} {
  func.func @_conv2x2_kernel(%arg0: i32, %arg1: memref<1x16x1024xbf16, #tpu.memory_space<vmem>>, %arg2: memref<4x1024x256xbf16, #tpu.memory_space<vmem>>, %arg3: memref<1x256xf32, #tpu.memory_space<vmem>>, %arg4: memref<1x1x1x256xbf16, #tpu.memory_space<vmem>>) attributes {dimension_semantics = [#tpu.dimension_semantics<parallel>], iteration_bounds = array<i64: 2>, scalar_prefetch = 0 : i64, scratch_operands = 0 : i64, tpu.core_type = #tpu.core_type<tc>, window_params = [{transform_indices = @transform_0, window_bounds = array<i64: 1, 16, 1024>}, {pipeline_mode = #tpu.pipeline_mode<synchronous>, transform_indices = @transform_1, window_bounds = array<i64: 4, 1024, 256>}, {pipeline_mode = #tpu.pipeline_mode<synchronous>, transform_indices = @transform_2, window_bounds = array<i64: 1, 256>}, {transform_indices = @transform_3, window_bounds = array<i64: 1, 1, 1, 256>}]} {
    %c0 = arith.constant 0 : index
    %c0_0 = arith.constant 0 : index
    %c0_1 = arith.constant 0 : index
    %0 = vector.load %arg1[%c0, %c0_0, %c0_1] : memref<1x16x1024xbf16, #tpu.memory_space<vmem>>, vector<1x16x1024xbf16>
    %1 = vector.shape_cast %0 : vector<1x16x1024xbf16> to vector<16x1024xbf16>
    %cst = arith.constant 0.000000e+00 : f32
    %2 = vector.broadcast %cst : f32 to vector<1x1x256xf32>
    %3 = vector.extract_strided_slice %1 {offsets = [0, 0], sizes = [8, 1024], strides = [1, 1]} : vector<16x1024xbf16> to vector<8x1024xbf16>
    %c0_2 = arith.constant 0 : index
    %c0_3 = arith.constant 0 : index
    %c0_4 = arith.constant 0 : index
    %4 = vector.load %arg2[%c0_2, %c0_3, %c0_4] : memref<4x1024x256xbf16, #tpu.memory_space<vmem>>, vector<1x1024x256xbf16>
    %5 = vector.shape_cast %4 : vector<1x1024x256xbf16> to vector<1024x256xbf16>
    %cst_5 = arith.constant dense<0.000000e+00> : vector<8x256xf32>
    %6 = tpu.matmul %3, %5, %cst_5 {dimension_numbers = #tpu.dot_dimension_numbers<[1], [0], [0], [1], [0, 0, 1, 1], [], []>} : vector<8x1024xbf16>, vector<1024x256xbf16>, vector<8x256xf32> -> vector<8x256xf32>
    %7 = vector.shape_cast %6 : vector<8x256xf32> to vector<1x8x256xf32>
    %8 = vector.extract_strided_slice %7 {offsets = [0, 0, 0], sizes = [1, 1, 256], strides = [1, 1, 1]} : vector<1x8x256xf32> to vector<1x1x256xf32>
    %9 = arith.addf %2, %8 : vector<1x1x256xf32>
    %c1 = arith.constant 1 : index
    %c0_6 = arith.constant 0 : index
    %c0_7 = arith.constant 0 : index
    %10 = vector.load %arg2[%c1, %c0_6, %c0_7] : memref<4x1024x256xbf16, #tpu.memory_space<vmem>>, vector<1x1024x256xbf16>
    %11 = vector.shape_cast %10 : vector<1x1024x256xbf16> to vector<1024x256xbf16>
    %cst_8 = arith.constant dense<0.000000e+00> : vector<8x256xf32>
    %12 = tpu.matmul %3, %11, %cst_8 {dimension_numbers = #tpu.dot_dimension_numbers<[1], [0], [0], [1], [0, 0, 1, 1], [], []>} : vector<8x1024xbf16>, vector<1024x256xbf16>, vector<8x256xf32> -> vector<8x256xf32>
    %13 = vector.shape_cast %12 : vector<8x256xf32> to vector<1x8x256xf32>
    %14 = vector.extract_strided_slice %13 {offsets = [0, 1, 0], sizes = [1, 1, 256], strides = [1, 1, 1]} : vector<1x8x256xf32> to vector<1x1x256xf32>
    %15 = arith.addf %9, %14 : vector<1x1x256xf32>
    %16 = vector.extract_strided_slice %1 {offsets = [8, 0], sizes = [8, 1024], strides = [1, 1]} : vector<16x1024xbf16> to vector<8x1024xbf16>
    %c2 = arith.constant 2 : index
    %c0_9 = arith.constant 0 : index
    %c0_10 = arith.constant 0 : index
    %17 = vector.load %arg2[%c2, %c0_9, %c0_10] : memref<4x1024x256xbf16, #tpu.memory_space<vmem>>, vector<1x1024x256xbf16>
    %18 = vector.shape_cast %17 : vector<1x1024x256xbf16> to vector<1024x256xbf16>
    %cst_11 = arith.constant dense<0.000000e+00> : vector<8x256xf32>
    %19 = tpu.matmul %16, %18, %cst_11 {dimension_numbers = #tpu.dot_dimension_numbers<[1], [0], [0], [1], [0, 0, 1, 1], [], []>} : vector<8x1024xbf16>, vector<1024x256xbf16>, vector<8x256xf32> -> vector<8x256xf32>
    %20 = vector.shape_cast %19 : vector<8x256xf32> to vector<1x8x256xf32>
    %21 = vector.extract_strided_slice %20 {offsets = [0, 0, 0], sizes = [1, 1, 256], strides = [1, 1, 1]} : vector<1x8x256xf32> to vector<1x1x256xf32>
    %22 = arith.addf %15, %21 : vector<1x1x256xf32>
    %c3 = arith.constant 3 : index
    %c0_12 = arith.constant 0 : index
    %c0_13 = arith.constant 0 : index
    %23 = vector.load %arg2[%c3, %c0_12, %c0_13] : memref<4x1024x256xbf16, #tpu.memory_space<vmem>>, vector<1x1024x256xbf16>
    %24 = vector.shape_cast %23 : vector<1x1024x256xbf16> to vector<1024x256xbf16>
    %cst_14 = arith.constant dense<0.000000e+00> : vector<8x256xf32>
    %25 = tpu.matmul %16, %24, %cst_14 {dimension_numbers = #tpu.dot_dimension_numbers<[1], [0], [0], [1], [0, 0, 1, 1], [], []>} : vector<8x1024xbf16>, vector<1024x256xbf16>, vector<8x256xf32> -> vector<8x256xf32>
    %26 = vector.shape_cast %25 : vector<8x256xf32> to vector<1x8x256xf32>
    %27 = vector.extract_strided_slice %26 {offsets = [0, 1, 0], sizes = [1, 1, 256], strides = [1, 1, 1]} : vector<1x8x256xf32> to vector<1x1x256xf32>
    %28 = arith.addf %22, %27 : vector<1x1x256xf32>
    %c0_15 = arith.constant 0 : index
    %c0_16 = arith.constant 0 : index
    %29 = vector.load %arg3[%c0_15, %c0_16] : memref<1x256xf32, #tpu.memory_space<vmem>>, vector<1x256xf32>
    %30 = vector.shape_cast %29 : vector<1x256xf32> to vector<1x1x256xf32>
    %31 = arith.addf %28, %30 : vector<1x1x256xf32>
    %cst_17 = arith.constant 0.000000e+00 : f32
    %32 = vector.broadcast %cst_17 : f32 to vector<1x1x256xf32>
    %33 = arith.maximumf %31, %32 : vector<1x1x256xf32>
    %34 = arith.truncf %33 : vector<1x1x256xf32> to vector<1x1x256xbf16>
    %c0_18 = arith.constant 0 : index
    %c0_19 = arith.constant 0 : index
    %c0_20 = arith.constant 0 : index
    %c0_21 = arith.constant 0 : index
    %35 = vector.load %arg4[%c0_18, %c0_19, %c0_20, %c0_21] : memref<1x1x1x256xbf16, #tpu.memory_space<vmem>>, vector<1x1x1x256xbf16>
    %36 = vector.shape_cast %35 : vector<1x1x1x256xbf16> to vector<1x1x256xbf16>
    %37 = vector.shape_cast %34 : vector<1x1x256xbf16> to vector<1x1x1x256xbf16>
    tpu.vector_store %arg4[%c0_18, %c0_19, %c0_20, %c0_21], %37 {strides = array<i32>} : memref<1x1x1x256xbf16, #tpu.memory_space<vmem>>, vector<1x1x1x256xbf16>,
    return
  }
  func.func @transform_0(%arg0: i32) -> (i32, i32, i32) {
    %c0_i32 = arith.constant 0 : i32
    %c0_i32_0 = arith.constant 0 : i32
    %c0_i32_1 = arith.constant 0 : i32
    return %arg0, %c0_i32, %c0_i32_0 : i32, i32, i32
  }
  func.func @transform_1(%arg0: i32) -> (i32, i32, i32) {
    %c0_i32 = arith.constant 0 : i32
    %c0_i32_0 = arith.constant 0 : i32
    %c0_i32_1 = arith.constant 0 : i32
    %c0_i32_2 = arith.constant 0 : i32
    return %c0_i32, %c0_i32_0, %c0_i32_1 : i32, i32, i32
  }
  func.func @transform_2(%arg0: i32) -> (i32, i32) {
    %c0_i32 = arith.constant 0 : i32
    %c0_i32_0 = arith.constant 0 : i32
    %c0_i32_1 = arith.constant 0 : i32
    return %c0_i32, %c0_i32_0 : i32, i32
  }
  func.func @transform_3(%arg0: i32) -> (i32, i32, i32, i32) {
    %c0_i32 = arith.constant 0 : i32
    %c0_i32_0 = arith.constant 0 : i32
    %c0_i32_1 = arith.constant 0 : i32
    %c0_i32_2 = arith.constant 0 : i32
    return %arg0, %c0_i32, %c0_i32_0, %c0_i32_1 : i32, i32, i32, i32
  }
}

</mosaic_0001>

<bundles_post_ra>
// kernel: e_attr_forward.15
= control target key start
LH: loop header
LB: loop body
LE: loop exit
PB: predicated region body
PF: predicated region fallthrough
CT: control target
= control target key end

     0   :  { %v1566_v0 = vmov 0   ;;  %vm1143_vm0 = vcmask 519168   ;;  %s2184_s1 = inlined_call_operand.vmem [shape: bf16[256,64], index: 1, kind: input, shape index: {}]   ;;  %s2185_s0 = inlined_call_operand.vmem [shape: bf16[512,256], index: 0, kind: input, shape index: {}]   ;;  %s2186_s2 = inlined_call_operand.vmem [shape: f32[1,64], index: 2, kind: input, shape index: {}]   ;;  %s2187_s3 = inlined_call_operand.vmem [shape: bf16[512,64], index: 3, kind: output, shape index: {}]  }
   0x1   :  { %534 = vmatprep.subr.bf16.mxu0 %v1566_v0  ;;  %1421 = vmatprep.subr.bf16.mxu1 %v1566_v0  ;;  %v1454_v1 = vld [vmem:[%s2184_s1] sm:$0xff]   ;;  %v1455_v2 = vld [vmem:[%s2184_s1 + $0x8] sm:$0xff]   ;;  %v1456_v3 = vld [vmem:[%s2184_s1 + $0x10] sm:$0xff]  }
   0x2   :  { %535 = vmatpush1.bf16.msra.mxu0 %v1454_v1  ;;  %1437 = vmatpush1.bf16.msra.mxu1 %v1454_v1  ;;  %v1457_v4 = vld [vmem:[%s2184_s1 + $0x18] sm:$0xff]   ;;  %v1458_v5 = vld [vmem:[%s2184_s1 + $0x20] sm:$0xff]   ;;  %v1459_v7 = vld [vmem:[%s2184_s1 + $0x28] sm:$0xff]  }
   0x3   :  { %536 = vmatprep.subr.bf16.mxu0 %v1566_v0  ;;  %1422 = vmatprep.subr.bf16.mxu1 %v1566_v0  ;;  %v1472_v6 = vld [vmem:[%s2185_s0 + $0x4] ss:$8 sps:$4 sm:$0xff]   ;;  %v1460_v9 = vld [vmem:[%s2184_s1 + $0x30] sm:$0xff]   ;;  %v1461_v10 = vld [vmem:[%s2184_s1 + $0x38] sm:$0xff]  }
   0x4   :  { %v1475_v8 = vld [vmem:[%s2185_s0 + $0x104] ss:$8 sps:$4 sm:$0xff]   ;;  %566 = vmatprep.mubr.bf16.mxu0 %v1472_v6  ;;  %v1464_v13 = vld [vmem:[%s2184_s1 + $0x50] sm:$0xff]   ;;  %v1465_v14 = vld [vmem:[%s2184_s1 + $0x58] sm:$0xff]  }
   0x5   :  { %694 = vmatprep.mubr.bf16.mxu1 %v1475_v8  ;;  %v1462_v11 = vld [vmem:[%s2184_s1 + $0x40] sm:$0xff]   ;;  %v1463_v12 = vld [vmem:[%s2184_s1 + $0x48] sm:$0xff]   ;;  %v1468_v17 = vld [vmem:[%s2184_s1 + $0x70] sm:$0xff]  }
   0x6   :  { %537 = vmatpush1.bf16.msra.mxu0 %v1455_v2  ;;  %1438 = vmatpush1.bf16.msra.mxu1 %v1455_v2  ;;  %v1466_v15 = vld [vmem:[%s2184_s1 + $0x60] sm:$0xff]   ;;  %v1467_v16 = vld [vmem:[%s2184_s1 + $0x68] sm:$0xff]   ;;  %v1469_v18 = vld [vmem:[%s2184_s1 + $0x78] sm:$0xff]  }
   0x7   :  { %538 = vmatprep.subr.bf16.mxu0 %v1566_v0  ;;  %1423 = vmatprep.subr.bf16.mxu1 %v1566_v0  ;;  %v1470_v19 = vld [vmem:[%s2185_s0] ss:$8 sps:$4 sm:$0xff]   ;;  %v1476_v21 = vld [vmem:[%s2185_s0 + $0x14] ss:$8 sps:$4 sm:$0xff]   ;;  %v1480_v23 = vld [vmem:[%s2185_s0 + $0x10] ss:$8 sps:$4 sm:$0xff]  }
   0x8   :  { %v1473_v20 = vld [vmem:[%s2185_s0 + $0x100] ss:$8 sps:$4 sm:$0xff]   ;;  %v1478_v22 = vld [vmem:[%s2185_s0 + $0x114] ss:$8 sps:$4 sm:$0xff]   ;;  %v1481_v24 = vld [vmem:[%s2185_s0 + $0x110] ss:$8 sps:$4 sm:$0xff]  }
   0x9   :  { %v1482_v25 = vld [vmem:[%s2185_s0 + $0x24] ss:$8 sps:$4 sm:$0xff]   ;;  %v1486_v27 = vld [vmem:[%s2185_s0 + $0x20] ss:$8 sps:$4 sm:$0xff]   ;;  %v1488_v29 = vld [vmem:[%s2185_s0 + $0x34] ss:$8 sps:$4 sm:$0xff]  }
   0xa   :  { %539 = vmatpush1.bf16.msra.mxu0 %v1456_v3  ;;  %1439 = vmatpush1.bf16.msra.mxu1 %v1456_v3  ;;  %v1484_v26 = vld [vmem:[%s2185_s0 + $0x124] ss:$8 sps:$4 sm:$0xff]   ;;  %v1487_v28 = vld [vmem:[%s2185_s0 + $0x120] ss:$8 sps:$4 sm:$0xff]   ;;  %v1490_v30 = vld [vmem:[%s2185_s0 + $0x134] ss:$8 sps:$4 sm:$0xff]  }
   0xb   :  { %540 = vmatprep.subr.bf16.mxu0 %v1566_v0  ;;  %1424 = vmatprep.subr.bf16.mxu1 %v1566_v0  ;;  %v1492_v31 = vld [vmem:[%s2185_s0 + $0x30] ss:$8 sps:$4 sm:$0xff]   ;;  %v1494_v33 = vld [vmem:[%s2185_s0 + $0x44] ss:$8 sps:$4 sm:$0xff]   ;;  %v1498_v35 = vld [vmem:[%s2185_s0 + $0x40] ss:$8 sps:$4 sm:$0xff]  }
   0xc   :  { %v1493_v32 = vld [vmem:[%s2185_s0 + $0x130] ss:$8 sps:$4 sm:$0xff]   ;;  %v1496_v34 = vld [vmem:[%s2185_s0 + $0x144] ss:$8 sps:$4 sm:$0xff]   ;;  %v1499_v36 = vld [vmem:[%s2185_s0 + $0x140] ss:$8 sps:$4 sm:$0xff]  }
   0xd   :  { %v1500_v37 = vld [vmem:[%s2185_s0 + $0x54] ss:$8 sps:$4 sm:$0xff]   ;;  %v1504_v39 = vld [vmem:[%s2185_s0 + $0x50] ss:$8 sps:$4 sm:$0xff]   ;;  %v1506_v41 = vld [vmem:[%s2185_s0 + $0x64] ss:$8 sps:$4 sm:$0xff]  }
   0xe   :  { %541 = vmatpush1.bf16.msra.mxu0 %v1457_v4  ;;  %1440 = vmatpush1.bf16.msra.mxu1 %v1457_v4  ;;  %v1502_v38 = vld [vmem:[%s2185_s0 + $0x154] ss:$8 sps:$4 sm:$0xff]   ;;  %v1505_v40 = vld [vmem:[%s2185_s0 + $0x150] ss:$8 sps:$4 sm:$0xff]   ;;  %v1508_v42 = vld [vmem:[%s2185_s0 + $0x164] ss:$8 sps:$4 sm:$0xff]  }
   0xf   :  { %542 = vmatprep.subr.bf16.mxu0 %v1566_v0  ;;  %1425 = vmatprep.subr.bf16.mxu1 %v1566_v0  ;;  %v1510_v43 = vld [vmem:[%s2185_s0 + $0x60] ss:$8 sps:$4 sm:$0xff]   ;;  %v1512_v45 = vld [vmem:[%s2185_s0 + $0x74] ss:$8 sps:$4 sm:$0xff]   ;;  %v1516_v47 = vld [vmem:[%s2185_s0 + $0x70] ss:$8 sps:$4 sm:$0xff]  }
  0x10   :  { %v1511_v44 = vld [vmem:[%s2185_s0 + $0x160] ss:$8 sps:$4 sm:$0xff]   ;;  %v1514_v46 = vld [vmem:[%s2185_s0 + $0x174] ss:$8 sps:$4 sm:$0xff]   ;;  %v1517_v48 = vld [vmem:[%s2185_s0 + $0x170] ss:$8 sps:$4 sm:$0xff]  }
  0x11   :  { %v1518_v49 = vld [vmem:[%s2185_s0 + $0x84] ss:$8 sps:$4 sm:$0xff]   ;;  %v1522_v51 = vld [vmem:[%s2185_s0 + $0x80] ss:$8 sps:$4 sm:$0xff]   ;;  %v1524_v53 = vld [vmem:[%s2185_s0 + $0x94] ss:$8 sps:$4 sm:$0xff]  }
  0x12   :  { %543 = vmatpush1.bf16.msra.mxu0 %v1458_v5  ;;  %1441 = vmatpush1.bf16.msra.mxu1 %v1458_v5  ;;  %v1520_v50 = vld [vmem:[%s2185_s0 + $0x184] ss:$8 sps:$4 sm:$0xff]   ;;  %v1523_v52 = vld [vmem:[%s2185_s0 + $0x180] ss:$8 sps:$4 sm:$0xff]   ;;  %v1526_v54 = vld [vmem:[%s2185_s0 + $0x194] ss:$8 sps:$4 sm:$0xff]  }
  0x13   :  { %544 = vmatprep.subr.bf16.mxu0 %v1566_v0  ;;  %1426 = vmatprep.subr.bf16.mxu1 %v1566_v0  ;;  %v1528_v55 = vld [vmem:[%s2185_s0 + $0x90] ss:$8 sps:$4 sm:$0xff]   ;;  %v1530_v57 = vld [vmem:[%s2185_s0 + $0xa4] ss:$8 sps:$4 sm:$0xff]   ;;  %v1534_v59 = vld [vmem:[%s2185_s0 + $0xa0] ss:$8 sps:$4 sm:$0xff]  }
  0x14   :  { %v1529_v56 = vld [vmem:[%s2185_s0 + $0x190] ss:$8 sps:$4 sm:$0xff]   ;;  %v1532_v58 = vld [vmem:[%s2185_s0 + $0x1a4] ss:$8 sps:$4 sm:$0xff]   ;;  %v1535_v60 = vld [vmem:[%s2185_s0 + $0x1a0] ss:$8 sps:$4 sm:$0xff]  }
  0x15   :  { %v1536_v61 = vld [vmem:[%s2185_s0 + $0xb4] ss:$8 sps:$4 sm:$0xff]   ;;  %v1540_v63 = vld [vmem:[%s2185_s0 + $0xb0] ss:$8 sps:$4 sm:$0xff]   ;;  %v1542_v1 = vld [vmem:[%s2185_s0 + $0xc4] ss:$8 sps:$4 sm:$0xff]  }
  0x16   :  { %545 = vmatpush1.bf16.msra.mxu0 %v1459_v7  ;;  %1442 = vmatpush1.bf16.msra.mxu1 %v1459_v7  ;;  %v1538_v62 = vld [vmem:[%s2185_s0 + $0x1b4] ss:$8 sps:$4 sm:$0xff]   ;;  %v1544_v2 = vld [vmem:[%s2185_s0 + $0x1c4] ss:$8 sps:$4 sm:$0xff]   ;;  %v1546_v3 = vld [vmem:[%s2185_s0 + $0xc0] ss:$8 sps:$4 sm:$0xff]  }
  0x17   :  { %546 = vmatprep.subr.bf16.mxu0 %v1566_v0  ;;  %1427 = vmatprep.subr.bf16.mxu1 %v1566_v0  ;;  %v1547_v4 = vld [vmem:[%s2185_s0 + $0x1c0] ss:$8 sps:$4 sm:$0xff]   ;;  %v1548_v5 = vld [vmem:[%s2185_s0 + $0xd4] ss:$8 sps:$4 sm:$0xff]   ;;  %v1552_v7 = vld [vmem:[%s2185_s0 + $0xd0] ss:$8 sps:$4 sm:$0xff]  }
  0x18   :  { %v1550_v6 = vld [vmem:[%s2185_s0 + $0x1d4] ss:$8 sps:$4 sm:$0xff]   ;;  %v1553_v8 = vld [vmem:[%s2185_s0 + $0x1d0] ss:$8 sps:$4 sm:$0xff]  }
  0x1a   :  { %547 = vmatpush1.bf16.msra.mxu0 %v1460_v9  ;;  %1443 = vmatpush1.bf16.msra.mxu1 %v1460_v9  ;;  %v1554_v9 = vld [vmem:[%s2185_s0 + $0xe4] ss:$8 sps:$4 sm:$0xff]  }
  0x1b   :  { %548 = vmatprep.subr.bf16.mxu0 %v1566_v0  ;;  %1428 = vmatprep.subr.bf16.mxu1 %v1566_v0 }
  0x1e   :  { %549 = vmatpush1.bf16.msra.mxu0 %v1461_v10  ;;  %1444 = vmatpush1.bf16.msra.mxu1 %v1461_v10  ;;  %v1556_v10 = vld [vmem:[%s2185_s0 + $0x1e4] ss:$8 sps:$4 sm:$0xff]  }
  0x1f   :  { %550 = vmatprep.subr.bf16.mxu0 %v1566_v0  ;;  %1429 = vmatprep.subr.bf16.mxu1 %v1566_v0 }
  0x22   :  { %551 = vmatpush1.bf16.msra.mxu0 %v1462_v11  ;;  %1445 = vmatpush1.bf16.msra.mxu1 %v1462_v11  ;;  %v1558_v11 = vld [vmem:[%s2185_s0 + $0xe0] ss:$8 sps:$4 sm:$0xff]  }
  0x23   :  { %552 = vmatprep.subr.bf16.mxu0 %v1566_v0  ;;  %1430 = vmatprep.subr.bf16.mxu1 %v1566_v0 }
  0x26   :  { %553 = vmatpush1.bf16.msra.mxu0 %v1463_v12  ;;  %1446 = vmatpush1.bf16.msra.mxu1 %v1463_v12  ;;  %v1559_v12 = vld [vmem:[%s2185_s0 + $0x1e0] ss:$8 sps:$4 sm:$0xff]  }
  0x27   :  { %554 = vmatprep.subr.bf16.mxu0 %v1566_v0  ;;  %1431 = vmatprep.subr.bf16.mxu1 %v1566_v0 }
  0x2a   :  { %555 = vmatpush1.bf16.msra.mxu0 %v1464_v13  ;;  %1447 = vmatpush1.bf16.msra.mxu1 %v1464_v13  ;;  %v1560_v13 = vld [vmem:[%s2185_s0 + $0xf4] ss:$8 sps:$4 sm:$0xff]  }
  0x2b   :  { %556 = vmatprep.subr.bf16.mxu0 %v1566_v0  ;;  %1432 = vmatprep.subr.bf16.mxu1 %v1566_v0 }
  0x2e   :  { %557 = vmatpush1.bf16.msra.mxu0 %v1465_v14  ;;  %1448 = vmatpush1.bf16.msra.mxu1 %v1465_v14  ;;  %v1562_v14 = vld [vmem:[%s2185_s0 + $0x1f4] ss:$8 sps:$4 sm:$0xff]  }
  0x2f   :  { %558 = vmatprep.subr.bf16.mxu0 %v1566_v0  ;;  %1433 = vmatprep.subr.bf16.mxu1 %v1566_v0 }
  0x32   :  { %559 = vmatpush1.bf16.msra.mxu0 %v1466_v15  ;;  %1449 = vmatpush1.bf16.msra.mxu1 %v1466_v15  ;;  %v1564_v15 = vld [vmem:[%s2185_s0 + $0xf0] ss:$8 sps:$4 sm:$0xff]  }
  0x33   :  { %560 = vmatprep.subr.bf16.mxu0 %v1566_v0  ;;  %1434 = vmatprep.subr.bf16.mxu1 %v1566_v0 }
  0x36   :  { %561 = vmatpush1.bf16.msra.mxu0 %v1467_v16  ;;  %1450 = vmatpush1.bf16.msra.mxu1 %v1467_v16  ;;  %v1565_v16 = vld [vmem:[%s2185_s0 + $0x1f0] ss:$8 sps:$4 sm:$0xff]  }
  0x37   :  { %562 = vmatprep.subr.bf16.mxu0 %v1566_v0  ;;  %1435 = vmatprep.subr.bf16.mxu1 %v1566_v0 }
  0x3a   :  { %563 = vmatpush1.bf16.msra.mxu0 %v1468_v17  ;;  %1451 = vmatpush1.bf16.msra.mxu1 %v1468_v17  ;;  %v1862_v17 = vld [vmem:[%s2186_s2] ss:$0 sm:$0xff] }
  0x3b   :  { %564 = vmatprep.subr.bf16.mxu0 %v1566_v0  ;;  %1436 = vmatprep.subr.bf16.mxu1 %v1566_v0  ;;  %v1541_v0 = vld [vmem:[%s2185_s0 + $0x1b0] ss:$8 sps:$4 sm:$0xff]  }
  0x3e   :  { %565 = vmatpush1.bf16.msra.mxu0 %v1469_v18  ;;  %1452 = vmatpush1.bf16.msra.mxu1 %v1469_v18 }
  0x41   :  { %567 = vmatmul.mubr.bf16.vlgmr.msra.gmra.mrb[0].mxu0 %v1470_v19  ;;  %695 = vmatmul.mubr.bf16.vlgmr.msra.gmra.mrb[0].mxu1 %v1473_v20 }
  0x42   :  { %574 = vmatprep.mubr.bf16.mxu0 %v1476_v21  ;;  %702 = vmatprep.mubr.bf16.mxu1 %v1478_v22 }
  0x49   :  { %575 = vmatmul.mubr.bf16.gmra.mrb[4].mxu0 %v1480_v23  ;;  %703 = vmatmul.mubr.bf16.gmra.mrb[4].mxu1 %v1481_v24 }
  0x4a   :  { %582 = vmatprep.mubr.bf16.mxu0 %v1482_v25  ;;  %710 = vmatprep.mubr.bf16.mxu1 %v1484_v26 }
  0x51   :  { %583 = vmatmul.mubr.bf16.gmra.mrb[8].mxu0 %v1486_v27  ;;  %711 = vmatmul.mubr.bf16.gmra.mrb[8].mxu1 %v1487_v28 }
  0x52   :  { %590 = vmatprep.mubr.bf16.mxu0 %v1488_v29  ;;  %718 = vmatprep.mubr.bf16.mxu1 %v1490_v30 }
  0x59   :  { %591 = vmatmul.mubr.bf16.gmra.mrb[12].mxu0 %v1492_v31  ;;  %719 = vmatmul.mubr.bf16.gmra.mrb[12].mxu1 %v1493_v32 }
  0x5a   :  { %598 = vmatprep.mubr.bf16.mxu0 %v1494_v33  ;;  %726 = vmatprep.mubr.bf16.mxu1 %v1496_v34 }
  0x61   :  { %599 = vmatmul.mubr.bf16.gmra.mrb[16].mxu0 %v1498_v35  ;;  %727 = vmatmul.mubr.bf16.gmra.mrb[16].mxu1 %v1499_v36 }
  0x62   :  { %606 = vmatprep.mubr.bf16.mxu0 %v1500_v37  ;;  %734 = vmatprep.mubr.bf16.mxu1 %v1502_v38 }
  0x69   :  { %607 = vmatmul.mubr.bf16.gmra.mrb[20].mxu0 %v1504_v39  ;;  %735 = vmatmul.mubr.bf16.gmra.mrb[20].mxu1 %v1505_v40 }
  0x6a   :  { %614 = vmatprep.mubr.bf16.mxu0 %v1506_v41  ;;  %742 = vmatprep.mubr.bf16.mxu1 %v1508_v42 }
  0x71   :  { %615 = vmatmul.mubr.bf16.gmra.mrb[24].mxu0 %v1510_v43  ;;  %743 = vmatmul.mubr.bf16.gmra.mrb[24].mxu1 %v1511_v44 }
  0x72   :  { %622 = vmatprep.mubr.bf16.mxu0 %v1512_v45  ;;  %750 = vmatprep.mubr.bf16.mxu1 %v1514_v46 }
  0x79   :  { %623 = vmatmul.mubr.bf16.gmra.mrb[28].mxu0 %v1516_v47  ;;  %751 = vmatmul.mubr.bf16.gmra.mrb[28].mxu1 %v1517_v48 }
  0x7a   :  { %630 = vmatprep.mubr.bf16.mxu0 %v1518_v49  ;;  %758 = vmatprep.mubr.bf16.mxu1 %v1520_v50 }
  0x81   :  { %631 = vmatmul.mubr.bf16.gmra.mrb[32].mxu0 %v1522_v51  ;;  %759 = vmatmul.mubr.bf16.gmra.mrb[32].mxu1 %v1523_v52 }
  0x82   :  { %638 = vmatprep.mubr.bf16.mxu0 %v1524_v53  ;;  %766 = vmatprep.mubr.bf16.mxu1 %v1526_v54 }
  0x89   :  { %639 = vmatmul.mubr.bf16.gmra.mrb[36].mxu0 %v1528_v55  ;;  %767 = vmatmul.mubr.bf16.gmra.mrb[36].mxu1 %v1529_v56 }
  0x8a   :  { %646 = vmatprep.mubr.bf16.mxu0 %v1530_v57  ;;  %774 = vmatprep.mubr.bf16.mxu1 %v1532_v58 }
  0x91   :  { %647 = vmatmul.mubr.bf16.gmra.mrb[40].mxu0 %v1534_v59  ;;  %775 = vmatmul.mubr.bf16.gmra.mrb[40].mxu1 %v1535_v60 }
  0x92   :  { %654 = vmatprep.mubr.bf16.mxu0 %v1536_v61  ;;  %782 = vmatprep.mubr.bf16.mxu1 %v1538_v62 }
  0x99   :  { %655 = vmatmul.mubr.bf16.gmra.mrb[44].mxu0 %v1540_v63  ;;  %783 = vmatmul.mubr.bf16.gmra.mrb[44].mxu1 %v1541_v0 }
  0x9a   :  { %662 = vmatprep.mubr.bf16.mxu0 %v1542_v1  ;;  %790 = vmatprep.mubr.bf16.mxu1 %v1544_v2 }
  0xa1   :  { %663 = vmatmul.mubr.bf16.gmra.mrb[48].mxu0 %v1546_v3  ;;  %791 = vmatmul.mubr.bf16.gmra.mrb[48].mxu1 %v1547_v4 }
  0xa2   :  { %670 = vmatprep.mubr.bf16.mxu0 %v1548_v5  ;;  %798 = vmatprep.mubr.bf16.mxu1 %v1550_v6 }
  0xa9   :  { %671 = vmatmul.mubr.bf16.gmra.mrb[52].mxu0 %v1552_v7  ;;  %799 = vmatmul.mubr.bf16.gmra.mrb[52].mxu1 %v1553_v8 }
  0xaa   :  { %678 = vmatprep.mubr.bf16.mxu0 %v1554_v9  ;;  %806 = vmatprep.mubr.bf16.mxu1 %v1556_v10 }
  0xb1   :  { %679 = vmatmul.mubr.bf16.gmra.mrb[56].mxu0 %v1558_v11  ;;  %807 = vmatmul.mubr.bf16.gmra.mrb[56].mxu1 %v1559_v12 }
  0xb2   :  { %686 = vmatprep.mubr.bf16.mxu0 %v1560_v13  ;;  %814 = vmatprep.mubr.bf16.mxu1 %v1562_v14 }
  0xb9   :  { %687 = vmatmul.mubr.bf16.gmra.mrb[60].mxu0 %v1564_v15  ;;  %815 = vmatmul.mubr.bf16.gmra.mrb[60].mxu1 %v1565_v16 }
 0x114   :  { %v568_v18 = vpop.f32.mrb[0].mxu0  ;;  %v696_v19 = vpop.f32.mrb[0].mxu1 }
 0x115   :  { %v569_v20 = vadd.f32 %v1862_v17, %v568_v18  ;;  %v697_v21 = vadd.f32 %v1862_v17, %v696_v19  ;;  %v570_v22 = vpop.f32.mrb[1].mxu0  ;;  %v698_v23 = vpop.f32.mrb[1].mxu1 }
 0x116   :  { %v571_v24 = vpop.f32.mrb[2].mxu0  ;;  %v699_v25 = vpop.f32.mrb[2].mxu1 }
 0x117   :  { %v823_v26 = vmax.f32 %v569_v20, 0.0  ;;  %v855_v27 = vmax.f32 %v697_v21, 0.0  ;;  %v572_v28 = vadd.f32 %v1862_v17, %v571_v24  ;;  %v700_v29 = vadd.f32 %v1862_v17, %v699_v25  ;;  %v573_v30 = vpop.f32.mrb[3].mxu0  ;;  %v701_v31 = vpop.f32.mrb[3].mxu1 }
 0x119   :  { %v1357_v32 = vpack.c.bf16 %v823_v26, %v823_v26  ;;  %v1389_v33 = vpack.c.bf16 %v855_v27, %v855_v27  ;;  %v824_v34 = vmax.f32 %v572_v28, 0.0  ;;  %v856_v35 = vmax.f32 %v700_v29, 0.0 }
 0x11b   :  { %1144 = vst.msk [vmem:[%s2187_s3] sm:$0xf] %vm1143_vm0, %v1357_v32  ;;  %1176 = vst.msk [vmem:[%s2187_s3 + $0x80] sm:$0xf] %vm1143_vm0, %v1389_v33  ;;  %v1358_v36 = vpack.c.bf16 %v824_v34, %v824_v34  ;;  %v1390_v37 = vpack.c.bf16 %v856_v35, %v856_v35 }
 0x11c   :  { %v576_v38 = vpop.f32.mrb[4].mxu0  ;;  %v704_v39 = vpop.f32.mrb[4].mxu1 }
 0x11d   :  { %1145 = vst.msk [vmem:[%s2187_s3 + $0x4] sm:$0xf] %vm1143_vm0, %v1358_v36  ;;  %1177 = vst.msk [vmem:[%s2187_s3 + $0x84] sm:$0xf] %vm1143_vm0, %v1390_v37  ;;  %v577_v40 = vadd.f32 %v1862_v17, %v576_v38  ;;  %v705_v41 = vadd.f32 %v1862_v17, %v704_v39  ;;  %v578_v42 = vpop.f32.mrb[5].mxu0  ;;  %v706_v43 = vpop.f32.mrb[5].mxu1 }
 0x11e   :  { %v579_v44 = vpop.f32.mrb[6].mxu0  ;;  %v707_v45 = vpop.f32.mrb[6].mxu1 }
 0x11f   :  { %v825_v46 = vmax.f32 %v577_v40, 0.0  ;;  %v857_v47 = vmax.f32 %v705_v41, 0.0  ;;  %v580_v48 = vadd.f32 %v1862_v17, %v579_v44  ;;  %v708_v49 = vadd.f32 %v1862_v17, %v707_v45  ;;  %v581_v50 = vpop.f32.mrb[7].mxu0  ;;  %v709_v51 = vpop.f32.mrb[7].mxu1 }
 0x121   :  { %v1359_v52 = vpack.c.bf16 %v825_v46, %v825_v46  ;;  %v1391_v53 = vpack.c.bf16 %v857_v47, %v857_v47  ;;  %v826_v54 = vmax.f32 %v580_v48, 0.0  ;;  %v858_v55 = vmax.f32 %v708_v49, 0.0 }
 0x123   :  { %1146 = vst.msk [vmem:[%s2187_s3 + $0x8] sm:$0xf] %vm1143_vm0, %v1359_v52  ;;  %1178 = vst.msk [vmem:[%s2187_s3 + $0x88] sm:$0xf] %vm1143_vm0, %v1391_v53  ;;  %v1360_v56 = vpack.c.bf16 %v826_v54, %v826_v54  ;;  %v1392_v57 = vpack.c.bf16 %v858_v55, %v858_v55 }
 0x124   :  { %v584_v58 = vpop.f32.mrb[8].mxu0  ;;  %v712_v59 = vpop.f32.mrb[8].mxu1 }
 0x125   :  { %1147 = vst.msk [vmem:[%s2187_s3 + $0xc] sm:$0xf] %vm1143_vm0, %v1360_v56  ;;  %1179 = vst.msk [vmem:[%s2187_s3 + $0x8c] sm:$0xf] %vm1143_vm0, %v1392_v57  ;;  %v585_v60 = vadd.f32 %v1862_v17, %v584_v58  ;;  %v713_v61 = vadd.f32 %v1862_v17, %v712_v59  ;;  %v586_v62 = vpop.f32.mrb[9].mxu0  ;;  %v714_v63 = vpop.f32.mrb[9].mxu1 }
 0x126   :  { %v587_v0 = vpop.f32.mrb[10].mxu0  ;;  %v715_v1 = vpop.f32.mrb[10].mxu1 }
 0x127   :  { %v827_v2 = vmax.f32 %v585_v60, 0.0  ;;  %v859_v3 = vmax.f32 %v713_v61, 0.0  ;;  %v588_v4 = vadd.f32 %v1862_v17, %v587_v0  ;;  %v716_v5 = vadd.f32 %v1862_v17, %v715_v1  ;;  %v589_v6 = vpop.f32.mrb[11].mxu0  ;;  %v717_v7 = vpop.f32.mrb[11].mxu1 }
 0x129   :  { %v1361_v8 = vpack.c.bf16 %v827_v2, %v827_v2  ;;  %v1393_v9 = vpack.c.bf16 %v859_v3, %v859_v3  ;;  %v828_v10 = vmax.f32 %v588_v4, 0.0  ;;  %v860_v11 = vmax.f32 %v716_v5, 0.0 }
 0x12b   :  { %1148 = vst.msk [vmem:[%s2187_s3 + $0x10] sm:$0xf] %vm1143_vm0, %v1361_v8  ;;  %1180 = vst.msk [vmem:[%s2187_s3 + $0x90] sm:$0xf] %vm1143_vm0, %v1393_v9  ;;  %v1362_v12 = vpack.c.bf16 %v828_v10, %v828_v10  ;;  %v1394_v13 = vpack.c.bf16 %v860_v11, %v860_v11 }
 0x12c   :  { %v592_v14 = vpop.f32.mrb[12].mxu0  ;;  %v720_v15 = vpop.f32.mrb[12].mxu1 }
 0x12d   :  { %1149 = vst.msk [vmem:[%s2187_s3 + $0x14] sm:$0xf] %vm1143_vm0, %v1362_v12  ;;  %1181 = vst.msk [vmem:[%s2187_s3 + $0x94] sm:$0xf] %vm1143_vm0, %v1394_v13  ;;  %v593_v16 = vadd.f32 %v1862_v17, %v592_v14  ;;  %v721_v18 = vadd.f32 %v1862_v17, %v720_v15  ;;  %v594_v19 = vpop.f32.mrb[13].mxu0  ;;  %v722_v20 = vpop.f32.mrb[13].mxu1 }
 0x12e   :  { %v595_v21 = vpop.f32.mrb[14].mxu0  ;;  %v723_v22 = vpop.f32.mrb[14].mxu1 }
 0x12f   :  { %v829_v23 = vmax.f32 %v593_v16, 0.0  ;;  %v861_v24 = vmax.f32 %v721_v18, 0.0  ;;  %v596_v25 = vadd.f32 %v1862_v17, %v595_v21  ;;  %v724_v26 = vadd.f32 %v1862_v17, %v723_v22  ;;  %v597_v27 = vpop.f32.mrb[15].mxu0  ;;  %v725_v28 = vpop.f32.mrb[15].mxu1 }
 0x131   :  { %v1363_v29 = vpack.c.bf16 %v829_v23, %v829_v23  ;;  %v1395_v30 = vpack.c.bf16 %v861_v24, %v861_v24  ;;  %v830_v31 = vmax.f32 %v596_v25, 0.0  ;;  %v862_v32 = vmax.f32 %v724_v26, 0.0 }
 0x133   :  { %1150 = vst.msk [vmem:[%s2187_s3 + $0x18] sm:$0xf] %vm1143_vm0, %v1363_v29  ;;  %1182 = vst.msk [vmem:[%s2187_s3 + $0x98] sm:$0xf] %vm1143_vm0, %v1395_v30  ;;  %v1364_v33 = vpack.c.bf16 %v830_v31, %v830_v31  ;;  %v1396_v34 = vpack.c.bf16 %v862_v32, %v862_v32 }
 0x134   :  { %v600_v35 = vpop.f32.mrb[16].mxu0  ;;  %v728_v36 = vpop.f32.mrb[16].mxu1 }
 0x135   :  { %1151 = vst.msk [vmem:[%s2187_s3 + $0x1c] sm:$0xf] %vm1143_vm0, %v1364_v33  ;;  %1183 = vst.msk [vmem:[%s2187_s3 + $0x9c] sm:$0xf] %vm1143_vm0, %v1396_v34  ;;  %v601_v37 = vadd.f32 %v1862_v17, %v600_v35  ;;  %v729_v38 = vadd.f32 %v1862_v17, %v728_v36  ;;  %v602_v39 = vpop.f32.mrb[17].mxu0  ;;  %v730_v40 = vpop.f32.mrb[17].mxu1 }
 0x136   :  { %v603_v41 = vpop.f32.mrb[18].mxu0  ;;  %v731_v42 = vpop.f32.mrb[18].mxu1 }
 0x137   :  { %v831_v43 = vmax.f32 %v601_v37, 0.0  ;;  %v863_v44 = vmax.f32 %v729_v38, 0.0  ;;  %v604_v45 = vadd.f32 %v1862_v17, %v603_v41  ;;  %v732_v46 = vadd.f32 %v1862_v17, %v731_v42  ;;  %v605_v47 = vpop.f32.mrb[19].mxu0  ;;  %v733_v48 = vpop.f32.mrb[19].mxu1 }
 0x139   :  { %v1365_v49 = vpack.c.bf16 %v831_v43, %v831_v43  ;;  %v1397_v50 = vpack.c.bf16 %v863_v44, %v863_v44  ;;  %v832_v51 = vmax.f32 %v604_v45, 0.0  ;;  %v864_v52 = vmax.f32 %v732_v46, 0.0 }
 0x13b   :  { %1152 = vst.msk [vmem:[%s2187_s3 + $0x20] sm:$0xf] %vm1143_vm0, %v1365_v49  ;;  %1184 = vst.msk [vmem:[%s2187_s3 + $0xa0] sm:$0xf] %vm1143_vm0, %v1397_v50  ;;  %v1366_v53 = vpack.c.bf16 %v832_v51, %v832_v51  ;;  %v1398_v54 = vpack.c.bf16 %v864_v52, %v864_v52 }
 0x13c   :  { %v608_v55 = vpop.f32.mrb[20].mxu0  ;;  %v736_v56 = vpop.f32.mrb[20].mxu1 }
 0x13d   :  { %1153 = vst.msk [vmem:[%s2187_s3 + $0x24] sm:$0xf] %vm1143_vm0, %v1366_v53  ;;  %1185 = vst.msk [vmem:[%s2187_s3 + $0xa4] sm:$0xf] %vm1143_vm0, %v1398_v54  ;;  %v609_v57 = vadd.f32 %v1862_v17, %v608_v55  ;;  %v737_v58 = vadd.f32 %v1862_v17, %v736_v56  ;;  %v610_v59 = vpop.f32.mrb[21].mxu0  ;;  %v738_v60 = vpop.f32.mrb[21].mxu1 }
 0x13e   :  { %v611_v61 = vpop.f32.mrb[22].mxu0  ;;  %v739_v62 = vpop.f32.mrb[22].mxu1 }
 0x13f   :  { %v833_v63 = vmax.f32 %v609_v57, 0.0  ;;  %v865_v0 = vmax.f32 %v737_v58, 0.0  ;;  %v612_v1 = vadd.f32 %v1862_v17, %v611_v61  ;;  %v740_v2 = vadd.f32 %v1862_v17, %v739_v62  ;;  %v613_v3 = vpop.f32.mrb[23].mxu0  ;;  %v741_v4 = vpop.f32.mrb[23].mxu1 }
 0x141   :  { %v1367_v5 = vpack.c.bf16 %v833_v63, %v833_v63  ;;  %v1399_v6 = vpack.c.bf16 %v865_v0, %v865_v0  ;;  %v834_v7 = vmax.f32 %v612_v1, 0.0  ;;  %v866_v8 = vmax.f32 %v740_v2, 0.0 }
 0x143   :  { %1154 = vst.msk [vmem:[%s2187_s3 + $0x28] sm:$0xf] %vm1143_vm0, %v1367_v5  ;;  %1186 = vst.msk [vmem:[%s2187_s3 + $0xa8] sm:$0xf] %vm1143_vm0, %v1399_v6  ;;  %v1368_v9 = vpack.c.bf16 %v834_v7, %v834_v7  ;;  %v1400_v10 = vpack.c.bf16 %v866_v8, %v866_v8 }
 0x144   :  { %v616_v11 = vpop.f32.mrb[24].mxu0  ;;  %v744_v12 = vpop.f32.mrb[24].mxu1 }
 0x145   :  { %1155 = vst.msk [vmem:[%s2187_s3 + $0x2c] sm:$0xf] %vm1143_vm0, %v1368_v9  ;;  %1187 = vst.msk [vmem:[%s2187_s3 + $0xac] sm:$0xf] %vm1143_vm0, %v1400_v10  ;;  %v617_v13 = vadd.f32 %v1862_v17, %v616_v11  ;;  %v745_v14 = vadd.f32 %v1862_v17, %v744_v12  ;;  %v618_v15 = vpop.f32.mrb[25].mxu0  ;;  %v746_v16 = vpop.f32.mrb[25].mxu1 }
 0x146   :  { %v619_v18 = vpop.f32.mrb[26].mxu0  ;;  %v747_v19 = vpop.f32.mrb[26].mxu1 }
 0x147   :  { %v835_v20 = vmax.f32 %v617_v13, 0.0  ;;  %v867_v21 = vmax.f32 %v745_v14, 0.0  ;;  %v620_v22 = vadd.f32 %v1862_v17, %v619_v18  ;;  %v748_v23 = vadd.f32 %v1862_v17, %v747_v19  ;;  %v621_v24 = vpop.f32.mrb[27].mxu0  ;;  %v749_v25 = vpop.f32.mrb[27].mxu1 }
 0x149   :  { %v1369_v26 = vpack.c.bf16 %v835_v20, %v835_v20  ;;  %v1401_v27 = vpack.c.bf16 %v867_v21, %v867_v21  ;;  %v836_v28 = vmax.f32 %v620_v22, 0.0  ;;  %v868_v29 = vmax.f32 %v748_v23, 0.0 }
 0x14b   :  { %1156 = vst.msk [vmem:[%s2187_s3 + $0x30] sm:$0xf] %vm1143_vm0, %v1369_v26  ;;  %1188 = vst.msk [vmem:[%s2187_s3 + $0xb0] sm:$0xf] %vm1143_vm0, %v1401_v27  ;;  %v1370_v30 = vpack.c.bf16 %v836_v28, %v836_v28  ;;  %v1402_v31 = vpack.c.bf16 %v868_v29, %v868_v29 }
 0x14c   :  { %v624_v32 = vpop.f32.mrb[28].mxu0  ;;  %v752_v33 = vpop.f32.mrb[28].mxu1 }
 0x14d   :  { %1157 = vst.msk [vmem:[%s2187_s3 + $0x34] sm:$0xf] %vm1143_vm0, %v1370_v30  ;;  %1189 = vst.msk [vmem:[%s2187_s3 + $0xb4] sm:$0xf] %vm1143_vm0, %v1402_v31  ;;  %v625_v34 = vadd.f32 %v1862_v17, %v624_v32  ;;  %v753_v35 = vadd.f32 %v1862_v17, %v752_v33  ;;  %v626_v36 = vpop.f32.mrb[29].mxu0  ;;  %v754_v37 = vpop.f32.mrb[29].mxu1 }
 0x14e   :  { %v627_v38 = vpop.f32.mrb[30].mxu0  ;;  %v755_v39 = vpop.f32.mrb[30].mxu1 }
 0x14f   :  { %v837_v40 = vmax.f32 %v625_v34, 0.0  ;;  %v869_v41 = vmax.f32 %v753_v35, 0.0  ;;  %v628_v42 = vadd.f32 %v1862_v17, %v627_v38  ;;  %v756_v43 = vadd.f32 %v1862_v17, %v755_v39  ;;  %v629_v44 = vpop.f32.mrb[31].mxu0  ;;  %v757_v45 = vpop.f32.mrb[31].mxu1 }
 0x151   :  { %v1371_v46 = vpack.c.bf16 %v837_v40, %v837_v40  ;;  %v1403_v47 = vpack.c.bf16 %v869_v41, %v869_v41  ;;  %v838_v48 = vmax.f32 %v628_v42, 0.0  ;;  %v870_v49 = vmax.f32 %v756_v43, 0.0 }
 0x153   :  { %1158 = vst.msk [vmem:[%s2187_s3 + $0x38] sm:$0xf] %vm1143_vm0, %v1371_v46  ;;  %1190 = vst.msk [vmem:[%s2187_s3 + $0xb8] sm:$0xf] %vm1143_vm0, %v1403_v47  ;;  %v1372_v50 = vpack.c.bf16 %v838_v48, %v838_v48  ;;  %v1404_v51 = vpack.c.bf16 %v870_v49, %v870_v49 }
 0x154   :  { %v632_v52 = vpop.f32.mrb[32].mxu0  ;;  %v760_v53 = vpop.f32.mrb[32].mxu1 }
 0x155   :  { %1159 = vst.msk [vmem:[%s2187_s3 + $0x3c] sm:$0xf] %vm1143_vm0, %v1372_v50  ;;  %1191 = vst.msk [vmem:[%s2187_s3 + $0xbc] sm:$0xf] %vm1143_vm0, %v1404_v51  ;;  %v633_v54 = vadd.f32 %v1862_v17, %v632_v52  ;;  %v761_v55 = vadd.f32 %v1862_v17, %v760_v53  ;;  %v634_v56 = vpop.f32.mrb[33].mxu0  ;;  %v762_v57 = vpop.f32.mrb[33].mxu1 }
 0x156   :  { %v635_v58 = vpop.f32.mrb[34].mxu0  ;;  %v763_v59 = vpop.f32.mrb[34].mxu1 }
 0x157   :  { %v839_v60 = vmax.f32 %v633_v54, 0.0  ;;  %v871_v61 = vmax.f32 %v761_v55, 0.0  ;;  %v636_v62 = vadd.f32 %v1862_v17, %v635_v58  ;;  %v764_v63 = vadd.f32 %v1862_v17, %v763_v59  ;;  %v637_v0 = vpop.f32.mrb[35].mxu0  ;;  %v765_v1 = vpop.f32.mrb[35].mxu1 }
 0x159   :  { %v1373_v2 = vpack.c.bf16 %v839_v60, %v839_v60  ;;  %v1405_v3 = vpack.c.bf16 %v871_v61, %v871_v61  ;;  %v840_v4 = vmax.f32 %v636_v62, 0.0  ;;  %v872_v5 = vmax.f32 %v764_v63, 0.0 }
 0x15b   :  { %1160 = vst.msk [vmem:[%s2187_s3 + $0x40] sm:$0xf] %vm1143_vm0, %v1373_v2  ;;  %1192 = vst.msk [vmem:[%s2187_s3 + $0xc0] sm:$0xf] %vm1143_vm0, %v1405_v3  ;;  %v1374_v6 = vpack.c.bf16 %v840_v4, %v840_v4  ;;  %v1406_v7 = vpack.c.bf16 %v872_v5, %v872_v5 }
 0x15c   :  { %v640_v8 = vpop.f32.mrb[36].mxu0  ;;  %v768_v9 = vpop.f32.mrb[36].mxu1 }
 0x15d   :  { %1161 = vst.msk [vmem:[%s2187_s3 + $0x44] sm:$0xf] %vm1143_vm0, %v1374_v6  ;;  %1193 = vst.msk [vmem:[%s2187_s3 + $0xc4] sm:$0xf] %vm1143_vm0, %v1406_v7  ;;  %v641_v10 = vadd.f32 %v1862_v17, %v640_v8  ;;  %v769_v11 = vadd.f32 %v1862_v17, %v768_v9  ;;  %v642_v12 = vpop.f32.mrb[37].mxu0  ;;  %v770_v13 = vpop.f32.mrb[37].mxu1 }
 0x15e   :  { %v643_v14 = vpop.f32.mrb[38].mxu0  ;;  %v771_v15 = vpop.f32.mrb[38].mxu1 }
 0x15f   :  { %v841_v16 = vmax.f32 %v641_v10, 0.0  ;;  %v873_v18 = vmax.f32 %v769_v11, 0.0  ;;  %v644_v19 = vadd.f32 %v1862_v17, %v643_v14  ;;  %v772_v20 = vadd.f32 %v1862_v17, %v771_v15  ;;  %v645_v21 = vpop.f32.mrb[39].mxu0  ;;  %v773_v22 = vpop.f32.mrb[39].mxu1 }
 0x161   :  { %v1375_v23 = vpack.c.bf16 %v841_v16, %v841_v16  ;;  %v1407_v24 = vpack.c.bf16 %v873_v18, %v873_v18  ;;  %v842_v25 = vmax.f32 %v644_v19, 0.0  ;;  %v874_v26 = vmax.f32 %v772_v20, 0.0 }
 0x163   :  { %1162 = vst.msk [vmem:[%s2187_s3 + $0x48] sm:$0xf] %vm1143_vm0, %v1375_v23  ;;  %1194 = vst.msk [vmem:[%s2187_s3 + $0xc8] sm:$0xf] %vm1143_vm0, %v1407_v24  ;;  %v1376_v27 = vpack.c.bf16 %v842_v25, %v842_v25  ;;  %v1408_v28 = vpack.c.bf16 %v874_v26, %v874_v26 }
 0x164   :  { %v648_v29 = vpop.f32.mrb[40].mxu0  ;;  %v776_v30 = vpop.f32.mrb[40].mxu1 }
 0x165   :  { %1163 = vst.msk [vmem:[%s2187_s3 + $0x4c] sm:$0xf] %vm1143_vm0, %v1376_v27  ;;  %1195 = vst.msk [vmem:[%s2187_s3 + $0xcc] sm:$0xf] %vm1143_vm0, %v1408_v28  ;;  %v649_v31 = vadd.f32 %v1862_v17, %v648_v29  ;;  %v777_v32 = vadd.f32 %v1862_v17, %v776_v30  ;;  %v650_v33 = vpop.f32.mrb[41].mxu0  ;;  %v778_v34 = vpop.f32.mrb[41].mxu1 }
 0x166   :  { %v651_v35 = vpop.f32.mrb[42].mxu0  ;;  %v779_v36 = vpop.f32.mrb[42].mxu1 }
 0x167   :  { %v843_v37 = vmax.f32 %v649_v31, 0.0  ;;  %v875_v38 = vmax.f32 %v777_v32, 0.0  ;;  %v652_v39 = vadd.f32 %v1862_v17, %v651_v35  ;;  %v780_v40 = vadd.f32 %v1862_v17, %v779_v36  ;;  %v653_v41 = vpop.f32.mrb[43].mxu0  ;;  %v781_v42 = vpop.f32.mrb[43].mxu1 }
 0x169   :  { %v1377_v43 = vpack.c.bf16 %v843_v37, %v843_v37  ;;  %v1409_v44 = vpack.c.bf16 %v875_v38, %v875_v38  ;;  %v844_v45 = vmax.f32 %v652_v39, 0.0  ;;  %v876_v46 = vmax.f32 %v780_v40, 0.0 }
 0x16b   :  { %1164 = vst.msk [vmem:[%s2187_s3 + $0x50] sm:$0xf] %vm1143_vm0, %v1377_v43  ;;  %1196 = vst.msk [vmem:[%s2187_s3 + $0xd0] sm:$0xf] %vm1143_vm0, %v1409_v44  ;;  %v1378_v47 = vpack.c.bf16 %v844_v45, %v844_v45  ;;  %v1410_v48 = vpack.c.bf16 %v876_v46, %v876_v46 }
 0x16c   :  { %v656_v49 = vpop.f32.mrb[44].mxu0  ;;  %v784_v50 = vpop.f32.mrb[44].mxu1 }
 0x16d   :  { %1165 = vst.msk [vmem:[%s2187_s3 + $0x54] sm:$0xf] %vm1143_vm0, %v1378_v47  ;;  %1197 = vst.msk [vmem:[%s2187_s3 + $0xd4] sm:$0xf] %vm1143_vm0, %v1410_v48  ;;  %v657_v51 = vadd.f32 %v1862_v17, %v656_v49  ;;  %v785_v52 = vadd.f32 %v1862_v17, %v784_v50  ;;  %v658_v53 = vpop.f32.mrb[45].mxu0  ;;  %v786_v54 = vpop.f32.mrb[45].mxu1 }
 0x16e   :  { %v659_v55 = vpop.f32.mrb[46].mxu0  ;;  %v787_v56 = vpop.f32.mrb[46].mxu1 }
 0x16f   :  { %v845_v57 = vmax.f32 %v657_v51, 0.0  ;;  %v877_v58 = vmax.f32 %v785_v52, 0.0  ;;  %v660_v59 = vadd.f32 %v1862_v17, %v659_v55  ;;  %v788_v60 = vadd.f32 %v1862_v17, %v787_v56  ;;  %v661_v61 = vpop.f32.mrb[47].mxu0  ;;  %v789_v62 = vpop.f32.mrb[47].mxu1 }
 0x171   :  { %v1379_v63 = vpack.c.bf16 %v845_v57, %v845_v57  ;;  %v1411_v0 = vpack.c.bf16 %v877_v58, %v877_v58  ;;  %v846_v1 = vmax.f32 %v660_v59, 0.0  ;;  %v878_v2 = vmax.f32 %v788_v60, 0.0 }
 0x173   :  { %1166 = vst.msk [vmem:[%s2187_s3 + $0x58] sm:$0xf] %vm1143_vm0, %v1379_v63  ;;  %1198 = vst.msk [vmem:[%s2187_s3 + $0xd8] sm:$0xf] %vm1143_vm0, %v1411_v0  ;;  %v1380_v3 = vpack.c.bf16 %v846_v1, %v846_v1  ;;  %v1412_v4 = vpack.c.bf16 %v878_v2, %v878_v2 }
 0x174   :  { %v664_v5 = vpop.f32.mrb[48].mxu0  ;;  %v792_v6 = vpop.f32.mrb[48].mxu1 }
 0x175   :  { %1167 = vst.msk [vmem:[%s2187_s3 + $0x5c] sm:$0xf] %vm1143_vm0, %v1380_v3  ;;  %1199 = vst.msk [vmem:[%s2187_s3 + $0xdc] sm:$0xf] %vm1143_vm0, %v1412_v4  ;;  %v665_v7 = vadd.f32 %v1862_v17, %v664_v5  ;;  %v793_v8 = vadd.f32 %v1862_v17, %v792_v6  ;;  %v666_v9 = vpop.f32.mrb[49].mxu0  ;;  %v794_v10 = vpop.f32.mrb[49].mxu1 }
 0x176   :  { %v667_v11 = vpop.f32.mrb[50].mxu0  ;;  %v795_v12 = vpop.f32.mrb[50].mxu1 }
 0x177   :  { %v847_v13 = vmax.f32 %v665_v7, 0.0  ;;  %v879_v14 = vmax.f32 %v793_v8, 0.0  ;;  %v668_v15 = vadd.f32 %v1862_v17, %v667_v11  ;;  %v796_v16 = vadd.f32 %v1862_v17, %v795_v12  ;;  %v669_v18 = vpop.f32.mrb[51].mxu0  ;;  %v797_v19 = vpop.f32.mrb[51].mxu1 }
 0x179   :  { %v1381_v20 = vpack.c.bf16 %v847_v13, %v847_v13  ;;  %v1413_v21 = vpack.c.bf16 %v879_v14, %v879_v14  ;;  %v848_v22 = vmax.f32 %v668_v15, 0.0  ;;  %v880_v23 = vmax.f32 %v796_v16, 0.0 }
 0x17b   :  { %1168 = vst.msk [vmem:[%s2187_s3 + $0x60] sm:$0xf] %vm1143_vm0, %v1381_v20  ;;  %1200 = vst.msk [vmem:[%s2187_s3 + $0xe0] sm:$0xf] %vm1143_vm0, %v1413_v21  ;;  %v1382_v24 = vpack.c.bf16 %v848_v22, %v848_v22  ;;  %v1414_v25 = vpack.c.bf16 %v880_v23, %v880_v23 }
 0x17c   :  { %v672_v26 = vpop.f32.mrb[52].mxu0  ;;  %v800_v27 = vpop.f32.mrb[52].mxu1 }
 0x17d   :  { %1169 = vst.msk [vmem:[%s2187_s3 + $0x64] sm:$0xf] %vm1143_vm0, %v1382_v24  ;;  %1201 = vst.msk [vmem:[%s2187_s3 + $0xe4] sm:$0xf] %vm1143_vm0, %v1414_v25  ;;  %v673_v28 = vadd.f32 %v1862_v17, %v672_v26  ;;  %v801_v29 = vadd.f32 %v1862_v17, %v800_v27  ;;  %v674_v30 = vpop.f32.mrb[53].mxu0  ;;  %v802_v31 = vpop.f32.mrb[53].mxu1 }
 0x17e   :  { %v675_v32 = vpop.f32.mrb[54].mxu0  ;;  %v803_v33 = vpop.f32.mrb[54].mxu1 }
 0x17f   :  { %v849_v34 = vmax.f32 %v673_v28, 0.0  ;;  %v881_v35 = vmax.f32 %v801_v29, 0.0  ;;  %v676_v36 = vadd.f32 %v1862_v17, %v675_v32  ;;  %v804_v37 = vadd.f32 %v1862_v17, %v803_v33  ;;  %v677_v38 = vpop.f32.mrb[55].mxu0  ;;  %v805_v39 = vpop.f32.mrb[55].mxu1 }
 0x181   :  { %v1383_v40 = vpack.c.bf16 %v849_v34, %v849_v34  ;;  %v1415_v41 = vpack.c.bf16 %v881_v35, %v881_v35  ;;  %v850_v42 = vmax.f32 %v676_v36, 0.0  ;;  %v882_v43 = vmax.f32 %v804_v37, 0.0 }
 0x183   :  { %1170 = vst.msk [vmem:[%s2187_s3 + $0x68] sm:$0xf] %vm1143_vm0, %v1383_v40  ;;  %1202 = vst.msk [vmem:[%s2187_s3 + $0xe8] sm:$0xf] %vm1143_vm0, %v1415_v41  ;;  %v1384_v44 = vpack.c.bf16 %v850_v42, %v850_v42  ;;  %v1416_v45 = vpack.c.bf16 %v882_v43, %v882_v43 }
 0x184   :  { %v680_v46 = vpop.f32.mrb[56].mxu0  ;;  %v808_v47 = vpop.f32.mrb[56].mxu1 }
 0x185   :  { %1171 = vst.msk [vmem:[%s2187_s3 + $0x6c] sm:$0xf] %vm1143_vm0, %v1384_v44  ;;  %1203 = vst.msk [vmem:[%s2187_s3 + $0xec] sm:$0xf] %vm1143_vm0, %v1416_v45  ;;  %v681_v48 = vadd.f32 %v1862_v17, %v680_v46  ;;  %v809_v49 = vadd.f32 %v1862_v17, %v808_v47  ;;  %v682_v50 = vpop.f32.mrb[57].mxu0  ;;  %v810_v51 = vpop.f32.mrb[57].mxu1 }
 0x186   :  { %v683_v52 = vpop.f32.mrb[58].mxu0  ;;  %v811_v53 = vpop.f32.mrb[58].mxu1 }
 0x187   :  { %v851_v54 = vmax.f32 %v681_v48, 0.0  ;;  %v883_v55 = vmax.f32 %v809_v49, 0.0  ;;  %v684_v56 = vadd.f32 %v1862_v17, %v683_v52  ;;  %v812_v57 = vadd.f32 %v1862_v17, %v811_v53  ;;  %v685_v58 = vpop.f32.mrb[59].mxu0  ;;  %v813_v59 = vpop.f32.mrb[59].mxu1 }
 0x189   :  { %v1385_v60 = vpack.c.bf16 %v851_v54, %v851_v54  ;;  %v1417_v61 = vpack.c.bf16 %v883_v55, %v883_v55  ;;  %v852_v62 = vmax.f32 %v684_v56, 0.0  ;;  %v884_v63 = vmax.f32 %v812_v57, 0.0 }
 0x18b   :  { %1172 = vst.msk [vmem:[%s2187_s3 + $0x70] sm:$0xf] %vm1143_vm0, %v1385_v60  ;;  %1204 = vst.msk [vmem:[%s2187_s3 + $0xf0] sm:$0xf] %vm1143_vm0, %v1417_v61  ;;  %v1386_v0 = vpack.c.bf16 %v852_v62, %v852_v62  ;;  %v1418_v1 = vpack.c.bf16 %v884_v63, %v884_v63 }
 0x18c   :  { %v688_v2 = vpop.f32.mrb[60].mxu0  ;;  %v816_v3 = vpop.f32.mrb[60].mxu1 }
 0x18d   :  { %1173 = vst.msk [vmem:[%s2187_s3 + $0x74] sm:$0xf] %vm1143_vm0, %v1386_v0  ;;  %1205 = vst.msk [vmem:[%s2187_s3 + $0xf4] sm:$0xf] %vm1143_vm0, %v1418_v1  ;;  %v689_v4 = vadd.f32 %v1862_v17, %v688_v2  ;;  %v817_v5 = vadd.f32 %v1862_v17, %v816_v3  ;;  %v690_v6 = vpop.f32.mrb[61].mxu0  ;;  %v818_v7 = vpop.f32.mrb[61].mxu1 }
 0x18e   :  { %v691_v8 = vpop.f32.mrb[62].mxu0  ;;  %v819_v9 = vpop.f32.mrb[62].mxu1 }
 0x18f   :  { %v853_v10 = vmax.f32 %v689_v4, 0.0  ;;  %v885_v11 = vmax.f32 %v817_v5, 0.0  ;;  %v692_v12 = vadd.f32 %v1862_v17, %v691_v8  ;;  %v820_v13 = vadd.f32 %v1862_v17, %v819_v9  ;;  %v693_v14 = vpop.f32.mrb[63].mxu0  ;;  %v821_v15 = vpop.f32.mrb[63].mxu1 }
 0x191   :  { %v1387_v16 = vpack.c.bf16 %v853_v10, %v853_v10  ;;  %v1419_v18 = vpack.c.bf16 %v885_v11, %v885_v11  ;;  %v854_v19 = vmax.f32 %v692_v12, 0.0  ;;  %v886_v20 = vmax.f32 %v820_v13, 0.0 }
 0x193   :  { %1174 = vst.msk [vmem:[%s2187_s3 + $0x78] sm:$0xf] %vm1143_vm0, %v1387_v16  ;;  %1206 = vst.msk [vmem:[%s2187_s3 + $0xf8] sm:$0xf] %vm1143_vm0, %v1419_v18  ;;  %v1388_v21 = vpack.c.bf16 %v854_v19, %v854_v19  ;;  %v1420_v22 = vpack.c.bf16 %v886_v20, %v886_v20 }
 0x195   :  { %1175 = vst.msk [vmem:[%s2187_s3 + $0x7c] sm:$0xf] %vm1143_vm0, %v1388_v21  ;;  %1207 = vst.msk [vmem:[%s2187_s3 + $0xfc] sm:$0xf] %vm1143_vm0, %v1420_v22 }

// kernel: e_attr_forward.16
= control target key start
LH: loop header
LB: loop body
LE: loop exit
PB: predicated region body
PF: predicated region fallthrough
CT: control target
= control target key end

     0   :  { %s1987_s12 = smov 0   ;;  %s2325_s0 = inlined_call_operand.vmem [shape: bf16[2,144,256], index: 0, kind: input, shape index: {}]   ;;  %s2326_s1 = inlined_call_operand.vmem [shape: bf16[4,256,128], index: 1, kind: input, shape index: {}]   ;;  %s2327_s2 = inlined_call_operand.vmem [shape: f32[1,128], index: 2, kind: input, shape index: {}]   ;;  %s2328_s3 = inlined_call_operand.vmem [shape: bf16[2,8,8,128], index: 3, kind: output, shape index: {}]  }
   0x1 LB: > { %s1390_s13 = sadd.s32 4294967295, %s1965_s12   ;;  %p1394_p0 = scmp.ge.s32.totalorder %s1965_s12, 1  ;;  %s1965_s12 = sphi %s1987_s12, %s13_s12  }
   0x2   : > { %p137_p1 = scmp.lt.s32.totalorder %s1965_s12, 3 }
   0x4   : > { %p138_p2 = pnand %p1394_p0, %p137_p1 }
   0x5   : > { %v1868_v0 = vld [vmem:[%s2326_s1 + $0x40] sm:$0xff] (!%p138_p2)   ;;  %v1872_v4 = vld [vmem:[%s2326_s1 + $0x48] sm:$0xff] (!%p138_p2)   ;;  %v1876_v8 = vld [vmem:[%s2326_s1 + $0x50] sm:$0xff] (!%p138_p2)   ;;  %p161_p3 = scmp.lt.s32.totalorder (!%p138_p2), %s1390_s13, 1  ;;  %vm737_vm0 = vcmask (!%p138_p2), 1046528  }
   0x6   : > { %141 = sbr.rel (%p138_p2) target bundleno = 389 (0x185), region = 32  ;;  %v1869_v1 = vld [vmem:[%s2326_s1 + $0xc0] sm:$0xff] (!%p138_p2)   ;;  %1603 = vmatprep.subr.bf16.mxu0 (!%p138_p2), %v1868_v0  ;;  %v1873_v5 = vld [vmem:[%s2326_s1 + $0xc8] sm:$0xff] (!%p138_p2)   ;;  %v1877_v9 = vld [vmem:[%s2326_s1 + $0xd0] sm:$0xff] (!%p138_p2)  }
   0x7   : > { %v1870_v2 = vld [vmem:[%s2326_s1] sm:$0xff] (!%p138_p2)   ;;  %1667 = vmatprep.subr.bf16.mxu1 (!%p138_p2), %v1869_v1  ;;  %v1874_v6 = vld [vmem:[%s2326_s1 + $0x8] sm:$0xff] (!%p138_p2)   ;;  %v1878_v10 = vld [vmem:[%s2326_s1 + $0x10] sm:$0xff] (!%p138_p2)  }
   0x8   : > { %v1871_v3 = vld [vmem:[%s2326_s1 + $0x80] sm:$0xff] (!%p138_p2)   ;;  %1604 = vmatpush3.bf16.msra.mxu0 (!%p138_p2), %v1870_v2  ;;  %v1875_v7 = vld [vmem:[%s2326_s1 + $0x88] sm:$0xff] (!%p138_p2)   ;;  %v1879_v11 = vld [vmem:[%s2326_s1 + $0x90] sm:$0xff] (!%p138_p2)  }
   0x9   : > { %1668 = vmatpush3.bf16.msra.mxu1 (!%p138_p2), %v1871_v3  ;;  %1605 = vmatprep.subr.bf16.mxu0 (!%p138_p2), %v1872_v4  ;;  %v1880_v12 = vld [vmem:[%s2326_s1 + $0x58] sm:$0xff] (!%p138_p2)   ;;  %v1884_v16 = vld [vmem:[%s2326_s1 + $0x60] sm:$0xff] (!%p138_p2)   ;;  %v1888_v20 = vld [vmem:[%s2326_s1 + $0x68] sm:$0xff] (!%p138_p2)  }
   0xa   : > { %1669 = vmatprep.subr.bf16.mxu1 (!%p138_p2), %v1873_v5  ;;  %v1881_v13 = vld [vmem:[%s2326_s1 + $0xd8] sm:$0xff] (!%p138_p2)   ;;  %v1885_v17 = vld [vmem:[%s2326_s1 + $0xe0] sm:$0xff] (!%p138_p2)   ;;  %v1889_v21 = vld [vmem:[%s2326_s1 + $0xe8] sm:$0xff] (!%p138_p2)  }
   0xb   : > { %v1882_v14 = vld [vmem:[%s2326_s1 + $0x18] sm:$0xff] (!%p138_p2)   ;;  %v1886_v18 = vld [vmem:[%s2326_s1 + $0x20] sm:$0xff] (!%p138_p2)   ;;  %v1890_v22 = vld [vmem:[%s2326_s1 + $0x28] sm:$0xff] (!%p138_p2)  }
   0xc   : > { %1606 = vmatpush3.bf16.msra.mxu0 (!%p138_p2), %v1874_v6  ;;  %v1883_v15 = vld [vmem:[%s2326_s1 + $0x98] sm:$0xff] (!%p138_p2)   ;;  %v1887_v19 = vld [vmem:[%s2326_s1 + $0xa0] sm:$0xff] (!%p138_p2)   ;;  %v1891_v23 = vld [vmem:[%s2326_s1 + $0xa8] sm:$0xff] (!%p138_p2)  }
   0xd   : > { %1670 = vmatpush3.bf16.msra.mxu1 %v1875_v7  ;;  %1607 = vmatprep.subr.bf16.mxu0 %v1876_v8  ;;  %s2330_s13 = smov (!%p161_p3, %s1390_s13), 1  ;;  %v1892_v24 = vld [vmem:[%s2326_s1 + $0x70] sm:$0xff]   ;;  %v1896_v28 = vld [vmem:[%s2326_s1 + $0x78] sm:$0xff]   ;;  %v1903_v34 = vld [vmem:[%s2326_s1 + $0x1c0] sm:$0xff]  }
   0xe   : > { %1671 = vmatprep.subr.bf16.mxu1 %v1877_v9  ;;  %v1893_v25 = vld [vmem:[%s2326_s1 + $0xf0] sm:$0xff]   ;;  %s1859_s16 = smul.u32 144, %s2330_s13  ;;  %v1897_v29 = vld [vmem:[%s2326_s1 + $0xf8] sm:$0xff]   ;;  %v1904_v35 = vld [vmem:[%s2326_s1 + $0x180] sm:$0xff]   ;;  %s1579_s24 = sshll.u32 %s2330_s13, 5 }
   0xf   : > { %v1894_v26 = vld [vmem:[%s2326_s1 + $0x30] sm:$0xff]   ;;  %v1898_v30 = vld [vmem:[%s2326_s1 + $0x38] sm:$0xff]   ;;  %v1905_v36 = vld [vmem:[%s2326_s1 + $0x140] sm:$0xff]   ;;  %s2299_s28 = scalar_lea.vmem %s2328_s3, %s1579_s24 }
  0x10   : > { %1608 = vmatpush3.bf16.msra.mxu0 %v1878_v10  ;;  %v1895_v27 = vld [vmem:[%s2326_s1 + $0xb0] sm:$0xff]   ;;  %s2095_s27 = scalar_lea.vmem %s2325_s0, %s1859_s16  ;;  %v1899_v31 = vld [vmem:[%s2326_s1 + $0xb8] sm:$0xff]   ;;  %v1906_v37 = vld [vmem:[%s2326_s1 + $0x100] sm:$0xff]  }
  0x11   : > { %1672 = vmatpush3.bf16.msra.mxu1 %v1879_v11  ;;  %1609 = vmatprep.subr.bf16.mxu0 %v1880_v12  ;;  %v1900_v32 = vld [vmem:[%s2095_s27] ss:$8 sps:$4 sm:$0xff]   ;;  %v1902_v33 = vld [vmem:[%s2095_s27 + $0x4] ss:$8 sps:$4 sm:$0xff]   ;;  %v2118_v38 = vld [vmem:[%s2095_s27 + $0x14] ss:$8 sps:$4 sm:$0xff]  }
  0x12   : > { %1673 = vmatprep.subr.bf16.mxu1 %v1881_v13  ;;  %430 = vmatprep.mubr.bf16.mxu0 %v1902_v33  ;;  %v2121_v39 = vld [vmem:[%s2095_s27 + $0x10] ss:$8 sps:$4 sm:$0xff]   ;;  %v1910_v40 = vld [vmem:[%s2326_s1 + $0x1c8] sm:$0xff]   ;;  %v2160_v50 = vld [vmem:[%s2095_s27 + $0x34] ss:$8 sps:$4 sm:$0xff]  }
  0x13   : > { %656 = vmatprep.mubr.bf16.mxu1 %v1902_v33  ;;  %v1911_v41 = vld [vmem:[%s2326_s1 + $0x188] sm:$0xff]   ;;  %v1917_v45 = vld [vmem:[%s2326_s1 + $0x1d0] sm:$0xff]   ;;  %v1924_v51 = vld [vmem:[%s2326_s1 + $0x1d8] sm:$0xff]  }
  0x14   : > { %1610 = vmatpush3.bf16.msra.mxu0 %v1882_v14  ;;  %v1912_v42 = vld [vmem:[%s2326_s1 + $0x148] sm:$0xff]   ;;  %v1918_v46 = vld [vmem:[%s2326_s1 + $0x190] sm:$0xff]   ;;  %v1925_v52 = vld [vmem:[%s2326_s1 + $0x198] sm:$0xff]  }
  0x15   : > { %1674 = vmatpush3.bf16.msra.mxu1 %v1883_v15  ;;  %1611 = vmatprep.subr.bf16.mxu0 %v1884_v16  ;;  %v1913_v43 = vld [vmem:[%s2326_s1 + $0x108] sm:$0xff]   ;;  %v1919_v47 = vld [vmem:[%s2326_s1 + $0x150] sm:$0xff]   ;;  %v1926_v53 = vld [vmem:[%s2326_s1 + $0x158] sm:$0xff]  }
  0x16   : > { %1675 = vmatprep.subr.bf16.mxu1 %v1885_v17  ;;  %v2138_v44 = vld [vmem:[%s2095_s27 + $0x24] ss:$8 sps:$4 sm:$0xff]   ;;  %v1920_v48 = vld [vmem:[%s2326_s1 + $0x110] sm:$0xff]   ;;  %v2157_v49 = vld [vmem:[%s2095_s27 + $0x20] ss:$8 sps:$4 sm:$0xff]  }
  0x17   : > { %v1927_v54 = vld [vmem:[%s2326_s1 + $0x118] sm:$0xff]   ;;  %v2182_v56 = vld [vmem:[%s2095_s27 + $0x44] ss:$8 sps:$4 sm:$0xff]   ;;  %v1930_v1 = vld [vmem:[%s2095_s27 + $0x40] ss:$8 sps:$4 sm:$0xff]  }
  0x18   : > { %1612 = vmatpush3.bf16.msra.mxu0 %v1886_v18  ;;  %v2179_v55 = vld [vmem:[%s2095_s27 + $0x30] ss:$8 sps:$4 sm:$0xff]   ;;  %v1931_v57 = vld [vmem:[%s2326_s1 + $0x1e0] sm:$0xff]   ;;  %v1938_v61 = vld [vmem:[%s2326_s1 + $0x1e8] sm:$0xff]  }
  0x19   : > { %1676 = vmatpush3.bf16.msra.mxu1 %v1887_v19  ;;  %1613 = vmatprep.subr.bf16.mxu0 %v1888_v20  ;;  %v1932_v58 = vld [vmem:[%s2326_s1 + $0x1a0] sm:$0xff]   ;;  %v1939_v62 = vld [vmem:[%s2326_s1 + $0x1a8] sm:$0xff]   ;;  %v1935_v2 = vld [vmem:[%s2095_s27 + $0x54] ss:$8 sps:$4 sm:$0xff]  }
  0x1a   : > { %1677 = vmatprep.subr.bf16.mxu1 %v1889_v21  ;;  %v1933_v59 = vld [vmem:[%s2326_s1 + $0x160] sm:$0xff]   ;;  %v1940_v63 = vld [vmem:[%s2326_s1 + $0x168] sm:$0xff]   ;;  %v1945_v3 = vld [vmem:[%s2326_s1 + $0x1f0] sm:$0xff]  }
  0x1b   : > { %v1934_v60 = vld [vmem:[%s2326_s1 + $0x120] sm:$0xff]   ;;  %v1941_v0 = vld [vmem:[%s2326_s1 + $0x128] sm:$0xff]   ;;  %v1946_v4 = vld [vmem:[%s2326_s1 + $0x1b0] sm:$0xff]  }
  0x1c   : > { %1614 = vmatpush3.bf16.msra.mxu0 %v1890_v22  ;;  %v1947_v5 = vld [vmem:[%s2326_s1 + $0x170] sm:$0xff]   ;;  %v1942_v8 = vld [vmem:[%s2095_s27 + $0x64] ss:$8 sps:$4 sm:$0xff]   ;;  %v1952_v9 = vld [vmem:[%s2326_s1 + $0x1f8] sm:$0xff]  }
  0x1d   : > { %1678 = vmatpush3.bf16.msra.mxu1 %v1891_v23  ;;  %1615 = vmatprep.subr.bf16.mxu0 %v1892_v24  ;;  %v1948_v6 = vld [vmem:[%s2326_s1 + $0x130] sm:$0xff]   ;;  %v1953_v10 = vld [vmem:[%s2326_s1 + $0x1b8] sm:$0xff]   ;;  %v1944_v13 = vld [vmem:[%s2095_s27 + $0x60] ss:$8 sps:$4 sm:$0xff]  }
  0x1e   : > { %1679 = vmatprep.subr.bf16.mxu1 %v1893_v25  ;;  %v1937_v7 = vld [vmem:[%s2095_s27 + $0x50] ss:$8 sps:$4 sm:$0xff]   ;;  %v1949_v14 = vld [vmem:[%s2095_s27 + $0x74] ss:$8 sps:$4 sm:$0xff]   ;;  %v1956_v16 = vld [vmem:[%s2095_s27 + $0x84] ss:$8 sps:$4 sm:$0xff]  }
  0x1f   : > { %v1954_v11 = vld [vmem:[%s2326_s1 + $0x178] sm:$0xff]   ;;  %v1958_v17 = vld [vmem:[%s2095_s27 + $0x80] ss:$8 sps:$4 sm:$0xff]  }
  0x20   : > { %1616 = vmatpush3.bf16.msra.mxu0 %v1894_v26  ;;  %v1955_v12 = vld [vmem:[%s2326_s1 + $0x138] sm:$0xff]  }
  0x21   : > { %1680 = vmatpush3.bf16.msra.mxu1 %v1895_v27  ;;  %1617 = vmatprep.subr.bf16.mxu0 %v1896_v28  ;;  %v1951_v15 = vld [vmem:[%s2095_s27 + $0x70] ss:$8 sps:$4 sm:$0xff]  }
  0x22   : > { %1681 = vmatprep.subr.bf16.mxu1 %v1897_v29 }
  0x24   : > { %1618 = vmatpush3.bf16.msra.mxu0 %v1898_v30 }
  0x25   : > { %1682 = vmatpush3.bf16.msra.mxu1 %v1899_v31  ;;  %1731 = vmatprep.subr.bf16.mxu0 %v1905_v36 }
  0x26   : > { %1795 = vmatprep.subr.bf16.mxu1 %v1903_v34 }
  0x27   : > { %431 = vmatmul.mubr.bf16.vlgmr.msra.gmra.mrb[0].mxu0 %v1900_v32 }
  0x28   : > { %657 = vmatmul.mubr.bf16.vlgmr.msra.gmra.mrb[0].mxu1 %v1900_v32  ;;  %1732 = vmatpush3.bf16.msra.mxu0 %v1906_v37 }
  0x29   : > { %1796 = vmatpush3.bf16.msra.mxu1 %v1904_v35  ;;  %437 = vmatprep.mubr.bf16.mxu0 %v2118_v38 }
  0x2a   : > { %664 = vmatprep.mubr.bf16.mxu1 %v2118_v38  ;;  %1797 = vmatprep.subr.bf16.mxu1 %v1910_v40 }
  0x2b   : > { %1733 = vmatprep.subr.bf16.mxu0 %v1912_v42 }
  0x2c   : > { %1734 = vmatpush3.bf16.msra.mxu0 %v1913_v43 }
  0x2d   : > { %1798 = vmatpush3.bf16.msra.mxu1 %v1911_v41  ;;  %1735 = vmatprep.subr.bf16.mxu0 %v1919_v47 }
  0x2e   : > { %1799 = vmatprep.subr.bf16.mxu1 %v1917_v45 }
  0x2f   : > { %438 = vmatmul.mubr.bf16.gmra.mrb[4].mxu0 %v2121_v39 }
  0x30   : > { %665 = vmatmul.mubr.bf16.gmra.mrb[4].mxu1 %v2121_v39  ;;  %444 = vmatprep.mubr.bf16.mxu0 %v2138_v44 }
  0x31   : > { %672 = vmatprep.mubr.bf16.mxu1 %v2138_v44  ;;  %1800 = vmatpush3.bf16.msra.mxu1 %v1918_v46 }
  0x32   : > { %1736 = vmatpush3.bf16.msra.mxu0 %v1920_v48  ;;  %1801 = vmatprep.subr.bf16.mxu1 %v1924_v51 }
  0x33   : > { %1737 = vmatprep.subr.bf16.mxu0 %v1926_v53 }
  0x35   : > { %1802 = vmatpush3.bf16.msra.mxu1 %v1925_v52 }
  0x36   : > { %1738 = vmatpush3.bf16.msra.mxu0 %v1927_v54  ;;  %1803 = vmatprep.subr.bf16.mxu1 %v1931_v57 }
  0x37   : > { %445 = vmatmul.mubr.bf16.gmra.mrb[8].mxu0 %v2157_v49  ;;  %1739 = vmatprep.subr.bf16.mxu0 %v1933_v59 }
  0x38   : > { %673 = vmatmul.mubr.bf16.gmra.mrb[8].mxu1 %v2157_v49  ;;  %451 = vmatprep.mubr.bf16.mxu0 %v2160_v50 }
  0x39   : > { %680 = vmatprep.mubr.bf16.mxu1 %v2160_v50  ;;  %1804 = vmatpush3.bf16.msra.mxu1 %v1932_v58 }
  0x3a   : > { %1740 = vmatpush3.bf16.msra.mxu0 %v1934_v60  ;;  %1805 = vmatprep.subr.bf16.mxu1 %v1938_v61 }
  0x3b   : > { %1741 = vmatprep.subr.bf16.mxu0 %v1940_v63 }
  0x3d   : > { %1806 = vmatpush3.bf16.msra.mxu1 %v1939_v62 }
  0x3e   : > { %1742 = vmatpush3.bf16.msra.mxu0 %v1941_v0  ;;  %1807 = vmatprep.subr.bf16.mxu1 %v1945_v3 }
  0x3f   : > { %452 = vmatmul.mubr.bf16.gmra.mrb[12].mxu0 %v2179_v55  ;;  %1743 = vmatprep.subr.bf16.mxu0 %v1947_v5 }
  0x40   : > { %681 = vmatmul.mubr.bf16.gmra.mrb[12].mxu1 %v2179_v55  ;;  %458 = vmatprep.mubr.bf16.mxu0 %v2182_v56 }
  0x41   : > { %688 = vmatprep.mubr.bf16.mxu1 %v2182_v56  ;;  %1808 = vmatpush3.bf16.msra.mxu1 %v1946_v4 }
  0x42   : > { %1744 = vmatpush3.bf16.msra.mxu0 %v1948_v6  ;;  %1809 = vmatprep.subr.bf16.mxu1 %v1952_v9 }
  0x43   : > { %1745 = vmatprep.subr.bf16.mxu0 %v1954_v11 }
  0x45   : > { %1810 = vmatpush3.bf16.msra.mxu1 %v1953_v10 }
  0x46   : > { %1746 = vmatpush3.bf16.msra.mxu0 %v1955_v12 }
  0x47   : > { %459 = vmatmul.mubr.bf16.gmra.mrb[16].mxu0 %v1930_v1 }
  0x48   : > { %689 = vmatmul.mubr.bf16.gmra.mrb[16].mxu1 %v1930_v1  ;;  %465 = vmatprep.mubr.bf16.mxu0 %v1935_v2 }
  0x49   : > { %696 = vmatprep.mubr.bf16.mxu1 %v1935_v2 }
  0x4f   : > { %466 = vmatmul.mubr.bf16.gmra.mrb[20].mxu0 %v1937_v7 }
  0x50   : > { %697 = vmatmul.mubr.bf16.gmra.mrb[20].mxu1 %v1937_v7  ;;  %472 = vmatprep.mubr.bf16.mxu0 %v1942_v8 }
  0x51   : > { %704 = vmatprep.mubr.bf16.mxu1 %v1942_v8 }
  0x57   : > { %473 = vmatmul.mubr.bf16.gmra.mrb[24].mxu0 %v1944_v13 }
  0x58   : > { %705 = vmatmul.mubr.bf16.gmra.mrb[24].mxu1 %v1944_v13  ;;  %479 = vmatprep.mubr.bf16.mxu0 %v1949_v14 }
  0x59   : > { %712 = vmatprep.mubr.bf16.mxu1 %v1949_v14 }
  0x5f   : > { %480 = vmatmul.mubr.bf16.gmra.mrb[28].mxu0 %v1951_v15 }
  0x60   : > { %713 = vmatmul.mubr.bf16.gmra.mrb[28].mxu1 %v1951_v15  ;;  %949 = vmatprep.mubr.bf16.mxu0 %v2118_v38 }
  0x61   : > { %1175 = vmatprep.mubr.bf16.mxu1 %v2118_v38 }
  0x67   : > { %950 = vmatmul.mubr.bf16.vlgmr.msra.gmra.mrb[32].mxu0 %v2121_v39 }
  0x68   : > { %1176 = vmatmul.mubr.bf16.vlgmr.msra.gmra.mrb[32].mxu1 %v2121_v39  ;;  %956 = vmatprep.mubr.bf16.mxu0 %v2138_v44 }
  0x69   : > { %1183 = vmatprep.mubr.bf16.mxu1 %v2138_v44 }
  0x6f   : > { %957 = vmatmul.mubr.bf16.gmra.mrb[36].mxu0 %v2157_v49 }
  0x70   : > { %1184 = vmatmul.mubr.bf16.gmra.mrb[36].mxu1 %v2157_v49  ;;  %963 = vmatprep.mubr.bf16.mxu0 %v2160_v50 }
  0x71   : > { %1191 = vmatprep.mubr.bf16.mxu1 %v2160_v50 }
  0x77   : > { %964 = vmatmul.mubr.bf16.gmra.mrb[40].mxu0 %v2179_v55 }
  0x78   : > { %1192 = vmatmul.mubr.bf16.gmra.mrb[40].mxu1 %v2179_v55  ;;  %970 = vmatprep.mubr.bf16.mxu0 %v2182_v56 }
  0x79   : > { %1199 = vmatprep.mubr.bf16.mxu1 %v2182_v56 }
  0x7f   : > { %971 = vmatmul.mubr.bf16.gmra.mrb[44].mxu0 %v1930_v1 }
  0x80   : > { %1200 = vmatmul.mubr.bf16.gmra.mrb[44].mxu1 %v1930_v1  ;;  %977 = vmatprep.mubr.bf16.mxu0 %v1935_v2 }
  0x81   : > { %1207 = vmatprep.mubr.bf16.mxu1 %v1935_v2 }
  0x87   : > { %978 = vmatmul.mubr.bf16.gmra.mrb[48].mxu0 %v1937_v7 }
  0x88   : > { %1208 = vmatmul.mubr.bf16.gmra.mrb[48].mxu1 %v1937_v7  ;;  %984 = vmatprep.mubr.bf16.mxu0 %v1942_v8 }
  0x89   : > { %1215 = vmatprep.mubr.bf16.mxu1 %v1942_v8 }
  0x8f   : > { %985 = vmatmul.mubr.bf16.gmra.mrb[52].mxu0 %v1944_v13 }
  0x90   : > { %1216 = vmatmul.mubr.bf16.gmra.mrb[52].mxu1 %v1944_v13  ;;  %991 = vmatprep.mubr.bf16.mxu0 %v1949_v14 }
  0x91   : > { %1223 = vmatprep.mubr.bf16.mxu1 %v1949_v14 }
  0x97   : > { %992 = vmatmul.mubr.bf16.gmra.mrb[56].mxu0 %v1951_v15 }
  0x98   : > { %1224 = vmatmul.mubr.bf16.gmra.mrb[56].mxu1 %v1951_v15  ;;  %998 = vmatprep.mubr.bf16.mxu0 %v1956_v16 }
  0x99   : > { %1231 = vmatprep.mubr.bf16.mxu1 %v1956_v16 }
  0x9f   : > { %999 = vmatmul.mubr.bf16.gmra.mrb[60].mxu0 %v1958_v17 }
  0xa0   : > { %1232 = vmatmul.mubr.bf16.gmra.mrb[60].mxu1 %v1958_v17 }
  0xfa   : > { %v1619_v19 = vpop.f32.mrb[0].mxu0 }
  0xfb   : > { %v1683_v18 = vpop.f32.mrb[0].mxu1  ;;  %v1620_v21 = vpop.f32.mrb[1].mxu0 }
  0xfc   : > { %v1684_v20 = vpop.f32.mrb[1].mxu1  ;;  %v1621_v23 = vadd.f32 %v1620_v21, %v1619_v19  ;;  %v1622_v25 = vpop.f32.mrb[2].mxu0 }
  0xfd   : > { %v1685_v22 = vadd.f32 %v1684_v20, %v1683_v18  ;;  %v1686_v24 = vpop.f32.mrb[2].mxu1  ;;  %v1623_v27 = vpop.f32.mrb[3].mxu0 }
  0xfe   : > { %v1687_v26 = vpop.f32.mrb[3].mxu1 }
  0xff   : > { %v1688_v28 = vadd.f32 %v1687_v26, %v1686_v24  ;;  %v738_v29 = vrot.slane %v1685_v22, 1 }
 0x101   : > { %v739_v30 = vrot.slane %v1688_v28, 1 }
 0x102   : > { %v1625_v32 = vpop.f32.mrb[4].mxu0 }
 0x103   : > { %v1689_v31 = vpop.f32.mrb[4].mxu1  ;;  %v740_v33 = vsel %vm737_vm0, %v738_v29, %v739_v30  ;;  %v1626_v35 = vpop.f32.mrb[5].mxu0 }
 0x104   : > { %v1690_v34 = vpop.f32.mrb[5].mxu1  ;;  %v2260_v36 = vadd.f32 %v1621_v23, %v740_v33  ;;  %v1627_v38 = vadd.f32 %v1626_v35, %v1625_v32  ;;  %v1628_v40 = vpop.f32.mrb[6].mxu0 }
 0x105   : > { %v1691_v37 = vadd.f32 %v1690_v34, %v1689_v31  ;;  %v1692_v39 = vpop.f32.mrb[6].mxu1  ;;  %v1629_v42 = vpop.f32.mrb[7].mxu0 }
 0x106   : > { %v1693_v41 = vpop.f32.mrb[7].mxu1 }
 0x107   : > { %v1694_v43 = vadd.f32 %v1693_v41, %v1692_v39  ;;  %v741_v44 = vrot.slane %v1691_v37, 1 }
 0x109   : > { %v742_v45 = vrot.slane %v1694_v43, 1 }
 0x10a   : > { %v1631_v47 = vpop.f32.mrb[8].mxu0 }
 0x10b   : > { %v1695_v46 = vpop.f32.mrb[8].mxu1  ;;  %v743_v48 = vsel %vm737_vm0, %v741_v44, %v742_v45  ;;  %v1632_v50 = vpop.f32.mrb[9].mxu0 }
 0x10c   : > { %v1696_v49 = vpop.f32.mrb[9].mxu1  ;;  %v2263_v51 = vadd.f32 %v1627_v38, %v743_v48  ;;  %v1633_v53 = vadd.f32 %v1632_v50, %v1631_v47  ;;  %v1634_v55 = vpop.f32.mrb[10].mxu0 }
 0x10d   : > { %v1697_v52 = vadd.f32 %v1696_v49, %v1695_v46  ;;  %v1698_v54 = vpop.f32.mrb[10].mxu1  ;;  %v1635_v57 = vpop.f32.mrb[11].mxu0 }
 0x10e   : > { %v1699_v56 = vpop.f32.mrb[11].mxu1 }
 0x10f   : > { %v1700_v58 = vadd.f32 %v1699_v56, %v1698_v54  ;;  %v744_v59 = vrot.slane %v1697_v52, 1 }
 0x111   : > { %v745_v60 = vrot.slane %v1700_v58, 1 }
 0x112   : > { %v1637_v62 = vpop.f32.mrb[12].mxu0 }
 0x113   : > { %v1701_v61 = vpop.f32.mrb[12].mxu1  ;;  %v746_v63 = vsel %vm737_vm0, %v744_v59, %v745_v60  ;;  %v1638_v1 = vpop.f32.mrb[13].mxu0 }
 0x114   : > { %v1702_v0 = vpop.f32.mrb[13].mxu1  ;;  %v2266_v2 = vadd.f32 %v1633_v53, %v746_v63  ;;  %v1639_v4 = vadd.f32 %v1638_v1, %v1637_v62  ;;  %v1640_v6 = vpop.f32.mrb[14].mxu0 }
 0x115   : > { %v1703_v3 = vadd.f32 %v1702_v0, %v1701_v61  ;;  %v1704_v5 = vpop.f32.mrb[14].mxu1  ;;  %v1641_v8 = vpop.f32.mrb[15].mxu0 }
 0x116   : > { %v1705_v7 = vpop.f32.mrb[15].mxu1 }
 0x117   : > { %v1706_v9 = vadd.f32 %v1705_v7, %v1704_v5  ;;  %v747_v10 = vrot.slane %v1703_v3, 1 }
 0x119   : > { %v748_v11 = vrot.slane %v1706_v9, 1 }
 0x11a   : > { %v1643_v13 = vpop.f32.mrb[16].mxu0 }
 0x11b   : > { %v1707_v12 = vpop.f32.mrb[16].mxu1  ;;  %v749_v14 = vsel %vm737_vm0, %v747_v10, %v748_v11  ;;  %v1644_v16 = vpop.f32.mrb[17].mxu0 }
 0x11c   : > { %v1708_v15 = vpop.f32.mrb[17].mxu1  ;;  %v2269_v17 = vadd.f32 %v1639_v4, %v749_v14  ;;  %v1645_v19 = vadd.f32 %v1644_v16, %v1643_v13  ;;  %v1646_v21 = vpop.f32.mrb[18].mxu0 }
 0x11d   : > { %v1709_v18 = vadd.f32 %v1708_v15, %v1707_v12  ;;  %v1710_v20 = vpop.f32.mrb[18].mxu1  ;;  %v1647_v23 = vpop.f32.mrb[19].mxu0 }
 0x11e   : > { %v1711_v22 = vpop.f32.mrb[19].mxu1 }
 0x11f   : > { %v1712_v24 = vadd.f32 %v1711_v22, %v1710_v20  ;;  %v750_v25 = vrot.slane %v1709_v18, 1 }
 0x121   : > { %v751_v26 = vrot.slane %v1712_v24, 1 }
 0x122   : > { %v1649_v28 = vpop.f32.mrb[20].mxu0 }
 0x123   : > { %v1713_v27 = vpop.f32.mrb[20].mxu1  ;;  %v752_v29 = vsel %vm737_vm0, %v750_v25, %v751_v26  ;;  %v1650_v31 = vpop.f32.mrb[21].mxu0 }
 0x124   : > { %v1714_v30 = vpop.f32.mrb[21].mxu1  ;;  %v2272_v32 = vadd.f32 %v1645_v19, %v752_v29  ;;  %v1651_v34 = vadd.f32 %v1650_v31, %v1649_v28  ;;  %v1652_v37 = vpop.f32.mrb[22].mxu0 }
 0x125   : > { %v1715_v33 = vadd.f32 %v1714_v30, %v1713_v27  ;;  %v1716_v35 = vpop.f32.mrb[22].mxu1  ;;  %v1653_v39 = vpop.f32.mrb[23].mxu0 }
 0x126   : > { %v1717_v38 = vpop.f32.mrb[23].mxu1 }
 0x127   : > { %v1718_v40 = vadd.f32 %v1717_v38, %v1716_v35  ;;  %v753_v41 = vrot.slane %v1715_v33, 1 }
 0x129   : > { %v754_v42 = vrot.slane %v1718_v40, 1 }
 0x12a   : > { %v1655_v44 = vpop.f32.mrb[24].mxu0 }
 0x12b   : > { %v1719_v43 = vpop.f32.mrb[24].mxu1  ;;  %v755_v45 = vsel %vm737_vm0, %v753_v41, %v754_v42  ;;  %v1656_v47 = vpop.f32.mrb[25].mxu0 }
 0x12c   : > { %v1720_v46 = vpop.f32.mrb[25].mxu1  ;;  %v2275_v48 = vadd.f32 %v1651_v34, %v755_v45  ;;  %v1657_v50 = vadd.f32 %v1656_v47, %v1655_v44  ;;  %v1658_v53 = vpop.f32.mrb[26].mxu0 }
 0x12d   : > { %v1721_v49 = vadd.f32 %v1720_v46, %v1719_v43  ;;  %v1722_v52 = vpop.f32.mrb[26].mxu1  ;;  %v1659_v55 = vpop.f32.mrb[27].mxu0  ;;  %v2289_v43 = vld [vmem:[%s2327_s2] ss:$0 sm:$0xff] }
 0x12e   : > { %v1723_v54 = vpop.f32.mrb[27].mxu1 }
 0x12f   : > { %v1724_v56 = vadd.f32 %v1723_v54, %v1722_v52  ;;  %v756_v57 = vrot.slane %v1721_v49, 1 }
 0x131   : > { %v757_v58 = vrot.slane %v1724_v56, 1 }
 0x132   : > { %v1661_v60 = vpop.f32.mrb[28].mxu0 }
 0x133   : > { %v1725_v59 = vpop.f32.mrb[28].mxu1  ;;  %v758_v61 = vsel %vm737_vm0, %v756_v57, %v757_v58  ;;  %v1662_v63 = vpop.f32.mrb[29].mxu0 }
 0x134   : > { %v1726_v62 = vpop.f32.mrb[29].mxu1  ;;  %v2278_v0 = vadd.f32 %v1657_v50, %v758_v61  ;;  %v1663_v3 = vadd.f32 %v1662_v63, %v1661_v60  ;;  %v1664_v5 = vpop.f32.mrb[30].mxu0 }
 0x135   : > { %v1727_v1 = vadd.f32 %v1726_v62, %v1725_v59  ;;  %v1728_v4 = vpop.f32.mrb[30].mxu1  ;;  %v1665_v7 = vpop.f32.mrb[31].mxu0 }
 0x136   : > { %v1729_v6 = vpop.f32.mrb[31].mxu1 }
 0x137   : > { %v1730_v8 = vadd.f32 %v1729_v6, %v1728_v4  ;;  %v759_v9 = vrot.slane %v1727_v1, 1 }
 0x139   : > { %v760_v10 = vrot.slane %v1730_v8, 1 }
 0x13a   : > { %v1747_v11 = vpop.f32.mrb[32].mxu0 }
 0x13b   : > { %v1811_v12 = vpop.f32.mrb[32].mxu1  ;;  %v761_v13 = vsel %vm737_vm0, %v759_v9, %v760_v10  ;;  %v1748_v14 = vpop.f32.mrb[33].mxu0 }
 0x13c   : > { %v1812_v15 = vpop.f32.mrb[33].mxu1  ;;  %v2281_v16 = vadd.f32 %v1663_v3, %v761_v13  ;;  %v1749_v18 = vadd.f32 %v1748_v14, %v1747_v11  ;;  %v1750_v21 = vpop.f32.mrb[34].mxu0 }
 0x13d   : > { %v1813_v19 = vadd.f32 %v1812_v15, %v1811_v12  ;;  %v1814_v20 = vpop.f32.mrb[34].mxu1  ;;  %v1751_v23 = vpop.f32.mrb[35].mxu0 }
 0x13e   : > { %v1815_v22 = vpop.f32.mrb[35].mxu1  ;;  %v1006_v24 = vadd.f32 %v1749_v18, %v2260_v36 }
 0x13f   : > { %v1816_v25 = vadd.f32 %v1815_v22, %v1814_v20  ;;  %v1256_v26 = vrot.slane %v1813_v19, 1 }
 0x141   : > { %v1257_v27 = vrot.slane %v1816_v25, 1 }
 0x142   : > { %v1753_v29 = vpop.f32.mrb[36].mxu0 }
 0x143   : > { %v1258_v28 = vsel %vm737_vm0, %v1256_v26, %v1257_v27  ;;  %v1817_v30 = vpop.f32.mrb[36].mxu1  ;;  %v1754_v33 = vpop.f32.mrb[37].mxu0 }
 0x144   : > { %v1288_v31 = vadd.f32 %v1258_v28, %v1006_v24  ;;  %v1818_v34 = vpop.f32.mrb[37].mxu1  ;;  %v1755_v35 = vadd.f32 %v1754_v33, %v1753_v29  ;;  %v1756_v39 = vpop.f32.mrb[38].mxu0 }
 0x145   : > { %v1819_v37 = vadd.f32 %v1818_v34, %v1817_v30  ;;  %v1820_v38 = vpop.f32.mrb[38].mxu1  ;;  %v1757_v41 = vpop.f32.mrb[39].mxu0 }
 0x146   : > { %v1821_v40 = vpop.f32.mrb[39].mxu1  ;;  %v1007_v42 = vadd.f32 %v1755_v35, %v2263_v51  ;;  %v1303_v50 = vadd.f32 %v2289_v43, %v1288_v31 }
 0x147   : > { %v1822_v36 = vadd.f32 %v1821_v40, %v1820_v38  ;;  %v1259_v44 = vrot.slane %v1819_v37, 1 }
 0x148   : > { %v1311_v63 = vmax.f32 %v1303_v50, 0.0 }
 0x149   : > { %v1260_v45 = vrot.slane %v1822_v36, 1 }
 0x14a   : > { %v1759_v47 = vpop.f32.mrb[40].mxu0 }
 0x14b   : > { %v1261_v46 = vsel %vm737_vm0, %v1259_v44, %v1260_v45  ;;  %v1823_v49 = vpop.f32.mrb[40].mxu1  ;;  %v1760_v53 = vpop.f32.mrb[41].mxu0 }
 0x14c   : > { %v1289_v52 = vadd.f32 %v1261_v46, %v1007_v42  ;;  %v1824_v54 = vpop.f32.mrb[41].mxu1  ;;  %v1761_v55 = vadd.f32 %v1760_v53, %v1759_v47  ;;  %v1762_v57 = vpop.f32.mrb[42].mxu0 }
 0x14d   : > { %v1825_v51 = vadd.f32 %v1824_v54, %v1823_v49  ;;  %v1826_v56 = vpop.f32.mrb[42].mxu1  ;;  %v1763_v60 = vpop.f32.mrb[43].mxu0 }
 0x14e   : > { %v1304_v58 = vadd.f32 %v2289_v43, %v1289_v52  ;;  %v1827_v59 = vpop.f32.mrb[43].mxu1  ;;  %v1008_v61 = vadd.f32 %v1761_v55, %v2266_v2 }
 0x14f   : > { %v1828_v62 = vadd.f32 %v1827_v59, %v1826_v56  ;;  %v1262_v3 = vrot.slane %v1825_v51, 1 }
 0x150   : > { %v1312_v1 = vmax.f32 %v1304_v58, 0.0 }
 0x151   : > { %v1263_v4 = vrot.slane %v1828_v62, 1 }
 0x152   : > { %v1583_v5 = vpack.c.bf16 %v1312_v1, %v1311_v63  ;;  %v1765_v7 = vpop.f32.mrb[44].mxu0 }
 0x153   : > { %v1264_v6 = vsel %vm737_vm0, %v1262_v3, %v1263_v4  ;;  %v1829_v8 = vpop.f32.mrb[44].mxu1  ;;  %v1766_v10 = vpop.f32.mrb[45].mxu0 }
 0x154   : > { %1584 = vst [vmem:[%s2299_s28] sm:$0xff] %v1583_v5   ;;  %v1290_v9 = vadd.f32 %v1264_v6, %v1008_v61  ;;  %v1830_v2 = vpop.f32.mrb[45].mxu1  ;;  %v1767_v11 = vadd.f32 %v1766_v10, %v1765_v7  ;;  %v1768_v14 = vpop.f32.mrb[46].mxu0 }
 0x155   : > { %v1831_v12 = vadd.f32 %v1830_v2, %v1829_v8  ;;  %v1832_v13 = vpop.f32.mrb[46].mxu1  ;;  %v1769_v18 = vpop.f32.mrb[47].mxu0 }
 0x156   : > { %v1833_v15 = vpop.f32.mrb[47].mxu1  ;;  %v1009_v19 = vadd.f32 %v1767_v11, %v2269_v17  ;;  %v1305_v26 = vadd.f32 %v2289_v43, %v1290_v9 }
 0x157   : > { %v1834_v20 = vadd.f32 %v1833_v15, %v1832_v13  ;;  %v1265_v21 = vrot.slane %v1831_v12, 1 }
 0x158   : > { %v1313_v40 = vmax.f32 %v1305_v26, 0.0 }
 0x159   : > { %v1266_v22 = vrot.slane %v1834_v20, 1 }
 0x15a   : > { %v1771_v24 = vpop.f32.mrb[48].mxu0 }
 0x15b   : > { %v1267_v23 = vsel %vm737_vm0, %v1265_v21, %v1266_v22  ;;  %v1835_v25 = vpop.f32.mrb[48].mxu1  ;;  %v1772_v28 = vpop.f32.mrb[49].mxu0 }
 0x15c   : > { %v1291_v27 = vadd.f32 %v1267_v23, %v1009_v19  ;;  %v1836_v29 = vpop.f32.mrb[49].mxu1  ;;  %v1773_v30 = vadd.f32 %v1772_v28, %v1771_v24  ;;  %v1774_v34 = vpop.f32.mrb[50].mxu0 }
 0x15d   : > { %v1837_v31 = vadd.f32 %v1836_v29, %v1835_v25  ;;  %v1838_v33 = vpop.f32.mrb[50].mxu1  ;;  %v1775_v37 = vpop.f32.mrb[51].mxu0 }
 0x15e   : > { %v1306_v35 = vadd.f32 %v2289_v43, %v1291_v27  ;;  %v1839_v17 = vpop.f32.mrb[51].mxu1  ;;  %v1010_v38 = vadd.f32 %v1773_v30, %v2272_v32 }
 0x15f   : > { %v1840_v39 = vadd.f32 %v1839_v17, %v1838_v33  ;;  %v1268_v42 = vrot.slane %v1837_v31, 1 }
 0x160   : > { %v1314_v41 = vmax.f32 %v1306_v35, 0.0 }
 0x161   : > { %v1269_v36 = vrot.slane %v1840_v39, 1 }
 0x162   : > { %v1588_v44 = vpack.c.bf16 %v1314_v41, %v1313_v40  ;;  %v1777_v46 = vpop.f32.mrb[52].mxu0 }
 0x163   : > { %v1270_v45 = vsel %vm737_vm0, %v1268_v42, %v1269_v36  ;;  %v1841_v47 = vpop.f32.mrb[52].mxu1  ;;  %v1778_v50 = vpop.f32.mrb[53].mxu0 }
 0x164   : > { %1600 = vst [vmem:[%s2299_s28 + $0x8] sm:$0xff] %v1588_v44   ;;  %v1292_v49 = vadd.f32 %v1270_v45, %v1010_v38  ;;  %v1842_v52 = vpop.f32.mrb[53].mxu1  ;;  %v1779_v53 = vadd.f32 %v1778_v50, %v1777_v46  ;;  %v1780_v51 = vpop.f32.mrb[54].mxu0 }
 0x165   : > { %v1843_v54 = vadd.f32 %v1842_v52, %v1841_v47  ;;  %v1844_v55 = vpop.f32.mrb[54].mxu1  ;;  %v1781_v32 = vpop.f32.mrb[55].mxu0 }
 0x166   : > { %v1845_v56 = vpop.f32.mrb[55].mxu1  ;;  %v1011_v57 = vadd.f32 %v1779_v53, %v2275_v48  ;;  %v1307_v1 = vadd.f32 %v2289_v43, %v1292_v49 }
 0x167   : > { %v1846_v58 = vadd.f32 %v1845_v56, %v1844_v55  ;;  %v1271_v59 = vrot.slane %v1843_v54, 1 }
 0x168   : > { %v1315_v13 = vmax.f32 %v1307_v1, 0.0 }
 0x169   : > { %v1272_v60 = vrot.slane %v1846_v58, 1 }
 0x16a   : > { %v1783_v62 = vpop.f32.mrb[56].mxu0 }
 0x16b   : > { %v1273_v61 = vsel %vm737_vm0, %v1271_v59, %v1272_v60  ;;  %v1847_v63 = vpop.f32.mrb[56].mxu1  ;;  %v1784_v4 = vpop.f32.mrb[57].mxu0 }
 0x16c   : > { %v1293_v3 = vadd.f32 %v1273_v61, %v1011_v57  ;;  %v1848_v5 = vpop.f32.mrb[57].mxu1  ;;  %v1785_v6 = vadd.f32 %v1784_v4, %v1783_v62  ;;  %v1786_v9 = vpop.f32.mrb[58].mxu0 }
 0x16d   : > { %v1849_v7 = vadd.f32 %v1848_v5, %v1847_v63  ;;  %v1850_v8 = vpop.f32.mrb[58].mxu1  ;;  %v1787_v2 = vpop.f32.mrb[59].mxu0 }
 0x16e   : > { %v1308_v10 = vadd.f32 %v2289_v43, %v1293_v3  ;;  %v1851_v48 = vpop.f32.mrb[59].mxu1  ;;  %v1012_v11 = vadd.f32 %v1785_v6, %v2278_v0 }
 0x16f   : > { %v1852_v12 = vadd.f32 %v1851_v48, %v1850_v8  ;;  %v1274_v15 = vrot.slane %v1849_v7, 1 }
 0x170   : > { %v1316_v14 = vmax.f32 %v1308_v10, 0.0 }
 0x171   : > { %v1275_v18 = vrot.slane %v1852_v12, 1 }
 0x172   : > { %v1593_v19 = vpack.c.bf16 %v1316_v14, %v1315_v13  ;;  %v1789_v21 = vpop.f32.mrb[60].mxu0 }
 0x173   : > { %v1276_v20 = vsel %vm737_vm0, %v1274_v15, %v1275_v18  ;;  %v1853_v22 = vpop.f32.mrb[60].mxu1  ;;  %v1790_v24 = vpop.f32.mrb[61].mxu0 }
 0x174   : > { %1601 = vst [vmem:[%s2299_s28 + $0x10] sm:$0xff] %v1593_v19   ;;  %v1294_v23 = vadd.f32 %v1276_v20, %v1012_v11  ;;  %v1854_v25 = vpop.f32.mrb[61].mxu1  ;;  %v1791_v26 = vadd.f32 %v1790_v24, %v1789_v21  ;;  %v1792_v29 = vpop.f32.mrb[62].mxu0 }
 0x175   : > { %v1855_v27 = vadd.f32 %v1854_v25, %v1853_v22  ;;  %v1856_v28 = vpop.f32.mrb[62].mxu1  ;;  %v1793_v30 = vpop.f32.mrb[63].mxu0 }
 0x176   : > { %v1857_v0 = vpop.f32.mrb[63].mxu1  ;;  %v1013_v31 = vadd.f32 %v1791_v26, %v2281_v16  ;;  %v1309_v37 = vadd.f32 %v2289_v43, %v1294_v23 }
 0x177   : > { %v1858_v33 = vadd.f32 %v1857_v0, %v1856_v28  ;;  %v1277_v34 = vrot.slane %v1855_v27, 1 }
 0x178   : > { %v1317_v40 = vmax.f32 %v1309_v37, 0.0 }
 0x179   : > { %v1278_v35 = vrot.slane %v1858_v33, 1 }
 0x17b   : > { %v1279_v17 = vsel %vm737_vm0, %v1277_v34, %v1278_v35 }
 0x17c   : > { %v1295_v38 = vadd.f32 %v1279_v17, %v1013_v31 }
 0x17e   : > { %v1310_v39 = vadd.f32 %v2289_v43, %v1295_v38 }
 0x180   : > { %v1318_v41 = vmax.f32 %v1310_v39, 0.0 }
 0x182   : > { %v1598_v42 = vpack.c.bf16 %v1318_v41, %v1317_v40 }
 0x184   : > { %1602 = vst [vmem:[%s2299_s28 + $0x18] sm:$0xff] %v1598_v42  }
 0x185 PF: > { %s13_s12 = sadd.s32 1, %s1965_s12  }
 0x186   : > { %p10_p4 = scmp.ge.s32.totalorder %s13_s12, 4  }
 0x188   :  { %12 = sbr.rel (!%p10_p4) target bundleno = 1 (0x1), region = 65 }

// kernel: e_attr_forward.17
= control target key start
LH: loop header
LB: loop body
LE: loop exit
PB: predicated region body
PF: predicated region fallthrough
CT: control target
= control target key end

     0   :  { %s3393_s12 = smov 0   ;;  %s4256_s0 = inlined_call_operand.vmem [shape: bf16[2,40,512], index: 0, kind: input, shape index: {}]   ;;  %s4257_s1 = inlined_call_operand.vmem [shape: bf16[4,512,256], index: 1, kind: input, shape index: {}]   ;;  %s4258_s2 = inlined_call_operand.vmem [shape: f32[1,256], index: 2, kind: input, shape index: {}]   ;;  %s4259_s3 = inlined_call_operand.vmem [shape: bf16[2,4,4,256], index: 3, kind: output, shape index: {}]  }
   0x1 LB: > { %s2425_s13 = sadd.s32 4294967295, %s3371_s12   ;;  %p2429_p0 = scmp.ge.s32.totalorder %s3371_s12, 1  ;;  %s3371_s12 = sphi %s3393_s12, %s13_s12  }
   0x2   : > { %p137_p1 = scmp.lt.s32.totalorder %s3371_s12, 3 }
   0x4   : > { %p138_p2 = pnand %p2429_p0, %p137_p1 }
   0x5   : > { %v2965_v0 = vld [vmem:[%s4257_s1 + $0x4] ss:$8 sps:$4 sm:$0xff] (!%p138_p2)   ;;  %v2969_v2 = vld [vmem:[%s4257_s1] ss:$8 sps:$4 sm:$0xff] (!%p138_p2)   ;;  %v2971_v4 = vld [vmem:[%s4257_s1 + $0x14] ss:$8 sps:$4 sm:$0xff] (!%p138_p2)  }
   0x6   : > { %141 = sbr.rel (%p138_p2) target bundleno = 497 (0x1f1), region = 32  ;;  %v2967_v1 = vld [vmem:[%s4257_s1 + $0x204] ss:$8 sps:$4 sm:$0xff] (!%p138_p2)   ;;  %605 = vmatprep.subr.bf16.mxu0 (!%p138_p2), %v2965_v0  ;;  %v2970_v3 = vld [vmem:[%s4257_s1 + $0x200] ss:$8 sps:$4 sm:$0xff] (!%p138_p2)   ;;  %p161_p3 = scmp.lt.s32.totalorder (!%p138_p2), %s2425_s13, 1 }
   0x7   : > { %1104 = vmatprep.subr.bf16.mxu1 (!%p138_p2), %v2967_v1  ;;  %606 = vmatpush1.bf16.msra.mxu0 (!%p138_p2), %v2969_v2  ;;  %v2973_v5 = vld [vmem:[%s4257_s1 + $0x214] ss:$8 sps:$4 sm:$0xff] (!%p138_p2)   ;;  %v2975_v6 = vld [vmem:[%s4257_s1 + $0x10] ss:$8 sps:$4 sm:$0xff] (!%p138_p2)   ;;  %v2977_v8 = vld [vmem:[%s4257_s1 + $0x24] ss:$8 sps:$4 sm:$0xff] (!%p138_p2)  }
   0x8   : > { %1105 = vmatpush1.bf16.msra.mxu1 (!%p138_p2), %v2970_v3  ;;  %607 = vmatprep.subr.bf16.mxu0 (!%p138_p2), %v2971_v4  ;;  %v2976_v7 = vld [vmem:[%s4257_s1 + $0x210] ss:$8 sps:$4 sm:$0xff] (!%p138_p2)   ;;  %v2979_v9 = vld [vmem:[%s4257_s1 + $0x224] ss:$8 sps:$4 sm:$0xff] (!%p138_p2)   ;;  %v2981_v10 = vld [vmem:[%s4257_s1 + $0x20] ss:$8 sps:$4 sm:$0xff] (!%p138_p2)  }
   0x9   : > { %1106 = vmatprep.subr.bf16.mxu1 (!%p138_p2), %v2973_v5  ;;  %v2982_v11 = vld [vmem:[%s4257_s1 + $0x220] ss:$8 sps:$4 sm:$0xff] (!%p138_p2)   ;;  %v2983_v12 = vld [vmem:[%s4257_s1 + $0x34] ss:$8 sps:$4 sm:$0xff] (!%p138_p2)   ;;  %v2987_v14 = vld [vmem:[%s4257_s1 + $0x30] ss:$8 sps:$4 sm:$0xff] (!%p138_p2)  }
   0xa   : > { %v2985_v13 = vld [vmem:[%s4257_s1 + $0x234] ss:$8 sps:$4 sm:$0xff] (!%p138_p2)   ;;  %v2988_v15 = vld [vmem:[%s4257_s1 + $0x230] ss:$8 sps:$4 sm:$0xff] (!%p138_p2)   ;;  %v2989_v16 = vld [vmem:[%s4257_s1 + $0x44] ss:$8 sps:$4 sm:$0xff] (!%p138_p2)  }
   0xb   : > { %608 = vmatpush1.bf16.msra.mxu0 (!%p138_p2), %v2975_v6  ;;  %v2991_v17 = vld [vmem:[%s4257_s1 + $0x244] ss:$8 sps:$4 sm:$0xff] (!%p138_p2)   ;;  %v2993_v18 = vld [vmem:[%s4257_s1 + $0x40] ss:$8 sps:$4 sm:$0xff] (!%p138_p2)   ;;  %v2995_v20 = vld [vmem:[%s4257_s1 + $0x54] ss:$8 sps:$4 sm:$0xff] (!%p138_p2)  }
   0xc   : > { %1107 = vmatpush1.bf16.msra.mxu1 (!%p138_p2), %v2976_v7  ;;  %609 = vmatprep.subr.bf16.mxu0 (!%p138_p2), %v2977_v8  ;;  %v2994_v19 = vld [vmem:[%s4257_s1 + $0x240] ss:$8 sps:$4 sm:$0xff] (!%p138_p2)   ;;  %v2997_v21 = vld [vmem:[%s4257_s1 + $0x254] ss:$8 sps:$4 sm:$0xff] (!%p138_p2)   ;;  %v2999_v22 = vld [vmem:[%s4257_s1 + $0x50] ss:$8 sps:$4 sm:$0xff] (!%p138_p2)  }
   0xd   : > { %1108 = vmatprep.subr.bf16.mxu1 %v2979_v9  ;;  %v3000_v23 = vld [vmem:[%s4257_s1 + $0x250] ss:$8 sps:$4 sm:$0xff]   ;;  %v3001_v24 = vld [vmem:[%s4257_s1 + $0x64] ss:$8 sps:$4 sm:$0xff]   ;;  %v3005_v26 = vld [vmem:[%s4257_s1 + $0x60] ss:$8 sps:$4 sm:$0xff]  }
   0xe   : > { %v3003_v25 = vld [vmem:[%s4257_s1 + $0x264] ss:$8 sps:$4 sm:$0xff]   ;;  %v3006_v27 = vld [vmem:[%s4257_s1 + $0x260] ss:$8 sps:$4 sm:$0xff]   ;;  %v3007_v28 = vld [vmem:[%s4257_s1 + $0x74] ss:$8 sps:$4 sm:$0xff]  }
   0xf   : > { %610 = vmatpush1.bf16.msra.mxu0 %v2981_v10  ;;  %v3009_v29 = vld [vmem:[%s4257_s1 + $0x274] ss:$8 sps:$4 sm:$0xff]   ;;  %v3011_v30 = vld [vmem:[%s4257_s1 + $0x70] ss:$8 sps:$4 sm:$0xff]   ;;  %v3013_v32 = vld [vmem:[%s4257_s1 + $0x84] ss:$8 sps:$4 sm:$0xff]  }
  0x10   : > { %1109 = vmatpush1.bf16.msra.mxu1 %v2982_v11  ;;  %611 = vmatprep.subr.bf16.mxu0 %v2983_v12  ;;  %v3012_v31 = vld [vmem:[%s4257_s1 + $0x270] ss:$8 sps:$4 sm:$0xff]   ;;  %v3015_v33 = vld [vmem:[%s4257_s1 + $0x284] ss:$8 sps:$4 sm:$0xff]   ;;  %v3017_v34 = vld [vmem:[%s4257_s1 + $0x80] ss:$8 sps:$4 sm:$0xff]  }
  0x11   : > { %1110 = vmatprep.subr.bf16.mxu1 %v2985_v13  ;;  %v3018_v35 = vld [vmem:[%s4257_s1 + $0x280] ss:$8 sps:$4 sm:$0xff]   ;;  %s4261_s13 = smov (!%p161_p3, %s2425_s13), 1  ;;  %v3019_v36 = vld [vmem:[%s4257_s1 + $0x94] ss:$8 sps:$4 sm:$0xff]  }
  0x12   : > { %v3021_v37 = vld [vmem:[%s4257_s1 + $0x294] ss:$8 sps:$4 sm:$0xff]   ;;  %v3023_v38 = vld [vmem:[%s4257_s1 + $0x90] ss:$8 sps:$4 sm:$0xff]   ;;  %s2956_s17 = smul.u32 80, %s4261_s13  ;;  %s2907_s23 = sshll.u32 %s4261_s13, 4 }
  0x13   : > { %612 = vmatpush1.bf16.msra.mxu0 %v2987_v14  ;;  %v3024_v39 = vld [vmem:[%s4257_s1 + $0x290] ss:$8 sps:$4 sm:$0xff]   ;;  %v3025_v40 = vld [vmem:[%s4257_s1 + $0xa4] ss:$8 sps:$4 sm:$0xff]   ;;  %v3029_v42 = vld [vmem:[%s4257_s1 + $0xa0] ss:$8 sps:$4 sm:$0xff]   ;;  %s4247_s26 = scalar_lea.vmem %s4259_s3, %s2907_s23 }
  0x14   : > { %1111 = vmatpush1.bf16.msra.mxu1 %v2988_v15  ;;  %613 = vmatprep.subr.bf16.mxu0 %v2989_v16  ;;  %v3027_v41 = vld [vmem:[%s4257_s1 + $0x2a4] ss:$8 sps:$4 sm:$0xff]   ;;  %v3030_v43 = vld [vmem:[%s4257_s1 + $0x2a0] ss:$8 sps:$4 sm:$0xff]   ;;  %s3543_s30 = scalar_lea.vmem %s4256_s0, %s2956_s17  ;;  %v3031_v44 = vld [vmem:[%s4257_s1 + $0xb4] ss:$8 sps:$4 sm:$0xff]  }
  0x15   : > { %1112 = vmatprep.subr.bf16.mxu1 %v2991_v17  ;;  %v3033_v45 = vld [vmem:[%s4257_s1 + $0x2b4] ss:$8 sps:$4 sm:$0xff]   ;;  %v171_v46 = vld [vmem:[%s3543_s30] sm:$0xff]  ;;  %v3035_v48 = vld [vmem:[%s4257_s1 + $0xb0] ss:$8 sps:$4 sm:$0xff]  }
  0x16   : > { %v3553_v47 = vld [vmem:[%s3543_s30 + $0x10] sm:$0xff]  ;;  %v3037_v51 = vld [vmem:[%s4257_s1 + $0xc4] ss:$8 sps:$4 sm:$0xff]   ;;  %v3041_v53 = vld [vmem:[%s4257_s1 + $0xc0] ss:$8 sps:$4 sm:$0xff]  }
  0x17   : > { %614 = vmatpush1.bf16.msra.mxu0 %v2993_v18  ;;  %v3036_v49 = vld [vmem:[%s4257_s1 + $0x2b0] ss:$8 sps:$4 sm:$0xff]   ;;  %v2434_v50 = vcombine.high %v171_v46, %v3553_v47  ;;  %v3039_v52 = vld [vmem:[%s4257_s1 + $0x2c4] ss:$8 sps:$4 sm:$0xff]   ;;  %v3042_v54 = vld [vmem:[%s4257_s1 + $0x2c0] ss:$8 sps:$4 sm:$0xff]   ;;  %v2433_v5 = vcombine.low %v171_v46, %v3553_v47 }
  0x18   : > { %1113 = vmatpush1.bf16.msra.mxu1 %v2994_v19  ;;  %615 = vmatprep.subr.bf16.mxu0 %v2995_v20  ;;  %v3043_v55 = vld [vmem:[%s4257_s1 + $0xd4] ss:$8 sps:$4 sm:$0xff]   ;;  %v3047_v57 = vld [vmem:[%s4257_s1 + $0xd0] ss:$8 sps:$4 sm:$0xff]   ;;  %v3049_v59 = vld [vmem:[%s4257_s1 + $0xe4] ss:$8 sps:$4 sm:$0xff]  }
  0x19   : > { %1114 = vmatprep.subr.bf16.mxu1 %v2997_v21  ;;  %637 = vmatprep.mubr.bf16.mxu0 %v2434_v50  ;;  %v3045_v56 = vld [vmem:[%s4257_s1 + $0x2d4] ss:$8 sps:$4 sm:$0xff]   ;;  %v3048_v58 = vld [vmem:[%s4257_s1 + $0x2d0] ss:$8 sps:$4 sm:$0xff]   ;;  %v3051_v60 = vld [vmem:[%s4257_s1 + $0x2e4] ss:$8 sps:$4 sm:$0xff]  }
  0x1a   : > { %1136 = vmatprep.mubr.bf16.mxu1 %v2434_v50  ;;  %v3053_v61 = vld [vmem:[%s4257_s1 + $0xe0] ss:$8 sps:$4 sm:$0xff]   ;;  %v3055_v63 = vld [vmem:[%s4257_s1 + $0xf4] ss:$8 sps:$4 sm:$0xff]   ;;  %v3059_v1 = vld [vmem:[%s4257_s1 + $0xf0] ss:$8 sps:$4 sm:$0xff]  }
  0x1b   : > { %616 = vmatpush1.bf16.msra.mxu0 %v2999_v22  ;;  %v3054_v62 = vld [vmem:[%s4257_s1 + $0x2e0] ss:$8 sps:$4 sm:$0xff]   ;;  %v3057_v0 = vld [vmem:[%s4257_s1 + $0x2f4] ss:$8 sps:$4 sm:$0xff]   ;;  %v3060_v2 = vld [vmem:[%s4257_s1 + $0x2f0] ss:$8 sps:$4 sm:$0xff]  }
  0x1c   : > { %1115 = vmatpush1.bf16.msra.mxu1 %v3000_v23  ;;  %617 = vmatprep.subr.bf16.mxu0 %v3001_v24  ;;  %v3065_v3 = vld [vmem:[%s4257_s1 + $0x104] ss:$8 sps:$4 sm:$0xff]   ;;  %v3063_v6 = vld [vmem:[%s4257_s1 + $0x100] ss:$8 sps:$4 sm:$0xff]   ;;  %v3071_v8 = vld [vmem:[%s4257_s1 + $0x114] ss:$8 sps:$4 sm:$0xff]  }
  0x1d   : > { %1116 = vmatprep.subr.bf16.mxu1 %v3003_v25  ;;  %v3068_v4 = vld [vmem:[%s4257_s1 + $0x304] ss:$8 sps:$4 sm:$0xff]   ;;  %v3066_v7 = vld [vmem:[%s4257_s1 + $0x300] ss:$8 sps:$4 sm:$0xff]   ;;  %v3074_v9 = vld [vmem:[%s4257_s1 + $0x314] ss:$8 sps:$4 sm:$0xff]  }
  0x1e   : > { %v3069_v10 = vld [vmem:[%s4257_s1 + $0x110] ss:$8 sps:$4 sm:$0xff]   ;;  %v3077_v12 = vld [vmem:[%s4257_s1 + $0x124] ss:$8 sps:$4 sm:$0xff]   ;;  %v3075_v14 = vld [vmem:[%s4257_s1 + $0x120] ss:$8 sps:$4 sm:$0xff]  }
  0x1f   : > { %618 = vmatpush1.bf16.msra.mxu0 %v3005_v26  ;;  %v3072_v11 = vld [vmem:[%s4257_s1 + $0x310] ss:$8 sps:$4 sm:$0xff]   ;;  %v3080_v13 = vld [vmem:[%s4257_s1 + $0x324] ss:$8 sps:$4 sm:$0xff]   ;;  %v3078_v15 = vld [vmem:[%s4257_s1 + $0x320] ss:$8 sps:$4 sm:$0xff]  }
  0x20   : > { %1117 = vmatpush1.bf16.msra.mxu1 %v3006_v27  ;;  %619 = vmatprep.subr.bf16.mxu0 %v3007_v28  ;;  %v3083_v16 = vld [vmem:[%s4257_s1 + $0x134] ss:$8 sps:$4 sm:$0xff]   ;;  %v3081_v18 = vld [vmem:[%s4257_s1 + $0x130] ss:$8 sps:$4 sm:$0xff]   ;;  %v3089_v20 = vld [vmem:[%s4257_s1 + $0x144] ss:$8 sps:$4 sm:$0xff]  }
  0x21   : > { %1118 = vmatprep.subr.bf16.mxu1 %v3009_v29  ;;  %v3086_v17 = vld [vmem:[%s4257_s1 + $0x334] ss:$8 sps:$4 sm:$0xff]   ;;  %v3084_v19 = vld [vmem:[%s4257_s1 + $0x330] ss:$8 sps:$4 sm:$0xff]   ;;  %v3092_v21 = vld [vmem:[%s4257_s1 + $0x344] ss:$8 sps:$4 sm:$0xff]  }
  0x22   : > { %v3087_v22 = vld [vmem:[%s4257_s1 + $0x140] ss:$8 sps:$4 sm:$0xff]   ;;  %v3095_v24 = vld [vmem:[%s4257_s1 + $0x154] ss:$8 sps:$4 sm:$0xff]  }
  0x23   : > { %620 = vmatpush1.bf16.msra.mxu0 %v3011_v30  ;;  %v3090_v23 = vld [vmem:[%s4257_s1 + $0x340] ss:$8 sps:$4 sm:$0xff]   ;;  %v3098_v25 = vld [vmem:[%s4257_s1 + $0x354] ss:$8 sps:$4 sm:$0xff]   ;;  %v3093_v30 = vld [vmem:[%s4257_s1 + $0x150] ss:$8 sps:$4 sm:$0xff]  }
  0x24   : > { %1119 = vmatpush1.bf16.msra.mxu1 %v3012_v31  ;;  %621 = vmatprep.subr.bf16.mxu0 %v3013_v32  ;;  %v3678_v26 = vld [vmem:[%s3543_s30 + $0x20] sm:$0xff]  ;;  %v3681_v27 = vld [vmem:[%s3543_s30 + $0x30] sm:$0xff] }
  0x25   : > { %1120 = vmatprep.subr.bf16.mxu1 %v3015_v33  ;;  %v3685_v28 = vcombine.low %v3553_v47, %v3678_v26  ;;  %v2438_v29 = vcombine.high %v3678_v26, %v3681_v27  ;;  %v3096_v31 = vld [vmem:[%s4257_s1 + $0x350] ss:$8 sps:$4 sm:$0xff]   ;;  %v2437_v32 = vcombine.low %v3678_v26, %v3681_v27  ;;  %v3101_v33 = vld [vmem:[%s4257_s1 + $0x164] ss:$8 sps:$4 sm:$0xff]   ;;  %v3111_v46 = vld [vmem:[%s4257_s1 + $0x180] ss:$8 sps:$4 sm:$0xff]  }
  0x26   : > { %v3122_v50 = vld [vmem:[%s4257_s1 + $0x394] ss:$8 sps:$4 sm:$0xff]  }
  0x27   : > { %622 = vmatpush1.bf16.msra.mxu0 %v3017_v34  ;;  %v3104_v34 = vld [vmem:[%s4257_s1 + $0x364] ss:$8 sps:$4 sm:$0xff]  }
  0x28   : > { %1121 = vmatpush1.bf16.msra.mxu1 %v3018_v35  ;;  %623 = vmatprep.subr.bf16.mxu0 %v3019_v36  ;;  %v3704_v35 = vld [vmem:[%s3543_s30 + $0x8] sm:$0xff]  ;;  %v3707_v36 = vld [vmem:[%s3543_s30 + $0x18] sm:$0xff] }
  0x29   : > { %1122 = vmatprep.subr.bf16.mxu1 %v3021_v37  ;;  %v3099_v37 = vld [vmem:[%s4257_s1 + $0x160] ss:$8 sps:$4 sm:$0xff]  }
  0x2b   : > { %624 = vmatpush1.bf16.msra.mxu0 %v3023_v38  ;;  %v3102_v38 = vld [vmem:[%s4257_s1 + $0x360] ss:$8 sps:$4 sm:$0xff]  }
  0x2c   : > { %1123 = vmatpush1.bf16.msra.mxu1 %v3024_v39  ;;  %625 = vmatprep.subr.bf16.mxu0 %v3025_v40  ;;  %v2436_v39 = vcombine.high %v3704_v35, %v3707_v36  ;;  %v3107_v40 = vld [vmem:[%s4257_s1 + $0x174] ss:$8 sps:$4 sm:$0xff]  }
  0x2d   : > { %1124 = vmatprep.subr.bf16.mxu1 %v3027_v41  ;;  %v3110_v41 = vld [vmem:[%s4257_s1 + $0x374] ss:$8 sps:$4 sm:$0xff]  }
  0x2f   : > { %626 = vmatpush1.bf16.msra.mxu0 %v3029_v42  ;;  %v3105_v42 = vld [vmem:[%s4257_s1 + $0x170] ss:$8 sps:$4 sm:$0xff]  }
  0x30   : > { %1125 = vmatpush1.bf16.msra.mxu1 %v3030_v43  ;;  %627 = vmatprep.subr.bf16.mxu0 %v3031_v44  ;;  %v3108_v43 = vld [vmem:[%s4257_s1 + $0x370] ss:$8 sps:$4 sm:$0xff]   ;;  %v3113_v44 = vld [vmem:[%s4257_s1 + $0x184] ss:$8 sps:$4 sm:$0xff]  }
  0x31   : > { %1126 = vmatprep.subr.bf16.mxu1 %v3033_v45  ;;  %v3116_v45 = vld [vmem:[%s4257_s1 + $0x384] ss:$8 sps:$4 sm:$0xff]  }
  0x33   : > { %628 = vmatpush1.bf16.msra.mxu0 %v3035_v48  ;;  %v3114_v48 = vld [vmem:[%s4257_s1 + $0x380] ss:$8 sps:$4 sm:$0xff]  }
  0x34   : > { %1127 = vmatpush1.bf16.msra.mxu1 %v3036_v49  ;;  %629 = vmatprep.subr.bf16.mxu0 %v3037_v51  ;;  %v3119_v49 = vld [vmem:[%s4257_s1 + $0x194] ss:$8 sps:$4 sm:$0xff]   ;;  %v3117_v51 = vld [vmem:[%s4257_s1 + $0x190] ss:$8 sps:$4 sm:$0xff]  }
  0x35   : > { %1128 = vmatprep.subr.bf16.mxu1 %v3039_v52  ;;  %v3120_v52 = vld [vmem:[%s4257_s1 + $0x390] ss:$8 sps:$4 sm:$0xff]  }
  0x37   : > { %630 = vmatpush1.bf16.msra.mxu0 %v3041_v53  ;;  %v3125_v53 = vld [vmem:[%s4257_s1 + $0x1a4] ss:$8 sps:$4 sm:$0xff]  }
  0x38   : > { %1129 = vmatpush1.bf16.msra.mxu1 %v3042_v54  ;;  %631 = vmatprep.subr.bf16.mxu0 %v3043_v55  ;;  %v3128_v54 = vld [vmem:[%s4257_s1 + $0x3a4] ss:$8 sps:$4 sm:$0xff]   ;;  %v3123_v55 = vld [vmem:[%s4257_s1 + $0x1a0] ss:$8 sps:$4 sm:$0xff]  }
  0x39   : > { %1130 = vmatprep.subr.bf16.mxu1 %v3045_v56  ;;  %v3126_v56 = vld [vmem:[%s4257_s1 + $0x3a0] ss:$8 sps:$4 sm:$0xff]  }
  0x3b   : > { %632 = vmatpush1.bf16.msra.mxu0 %v3047_v57  ;;  %v3131_v57 = vld [vmem:[%s4257_s1 + $0x1b4] ss:$8 sps:$4 sm:$0xff]  }
  0x3c   : > { %1131 = vmatpush1.bf16.msra.mxu1 %v3048_v58  ;;  %633 = vmatprep.subr.bf16.mxu0 %v3049_v59  ;;  %v3134_v58 = vld [vmem:[%s4257_s1 + $0x3b4] ss:$8 sps:$4 sm:$0xff]   ;;  %v3129_v59 = vld [vmem:[%s4257_s1 + $0x1b0] ss:$8 sps:$4 sm:$0xff]  }
  0x3d   : > { %1132 = vmatprep.subr.bf16.mxu1 %v3051_v60  ;;  %v3132_v60 = vld [vmem:[%s4257_s1 + $0x3b0] ss:$8 sps:$4 sm:$0xff]  }
  0x3f   : > { %634 = vmatpush1.bf16.msra.mxu0 %v3053_v61  ;;  %v3137_v61 = vld [vmem:[%s4257_s1 + $0x1c4] ss:$8 sps:$4 sm:$0xff]  }
  0x40   : > { %1133 = vmatpush1.bf16.msra.mxu1 %v3054_v62  ;;  %635 = vmatprep.subr.bf16.mxu0 %v3055_v63  ;;  %v3140_v62 = vld [vmem:[%s4257_s1 + $0x3c4] ss:$8 sps:$4 sm:$0xff]   ;;  %v3135_v63 = vld [vmem:[%s4257_s1 + $0x1c0] ss:$8 sps:$4 sm:$0xff]  }
  0x41   : > { %1134 = vmatprep.subr.bf16.mxu1 %v3057_v0  ;;  %v3138_v0 = vld [vmem:[%s4257_s1 + $0x3c0] ss:$8 sps:$4 sm:$0xff]  }
  0x43   : > { %636 = vmatpush1.bf16.msra.mxu0 %v3059_v1  ;;  %v3143_v1 = vld [vmem:[%s4257_s1 + $0x1d4] ss:$8 sps:$4 sm:$0xff]  }
  0x44   : > { %1135 = vmatpush1.bf16.msra.mxu1 %v3060_v2  ;;  %658 = vmatprep.subr.bf16.mxu0 %v3065_v3  ;;  %v3146_v2 = vld [vmem:[%s4257_s1 + $0x3d4] ss:$8 sps:$4 sm:$0xff]   ;;  %v3141_v3 = vld [vmem:[%s4257_s1 + $0x1d0] ss:$8 sps:$4 sm:$0xff]  }
  0x45   : > { %1157 = vmatprep.subr.bf16.mxu1 %v3068_v4  ;;  %v3144_v4 = vld [vmem:[%s4257_s1 + $0x3d0] ss:$8 sps:$4 sm:$0xff]  }
  0x46   : > { %638 = vmatmul.mubr.bf16.vlgmr.msra.gmra.mrb[0].mxu0 %v2433_v5 }
  0x47   : > { %1137 = vmatmul.mubr.bf16.vlgmr.msra.gmra.mrb[0].mxu1 %v2433_v5  ;;  %659 = vmatpush1.bf16.msra.mxu0 %v3063_v6  ;;  %v3150_v5 = vld [vmem:[%s4257_s1 + $0x1e4] ss:$8 sps:$4 sm:$0xff]  }
  0x48   : > { %1158 = vmatpush1.bf16.msra.mxu1 %v3066_v7  ;;  %660 = vmatprep.subr.bf16.mxu0 %v3071_v8  ;;  %v3154_v6 = vld [vmem:[%s4257_s1 + $0x3e4] ss:$8 sps:$4 sm:$0xff]   ;;  %v3148_v7 = vld [vmem:[%s4257_s1 + $0x1e0] ss:$8 sps:$4 sm:$0xff]  }
  0x49   : > { %1159 = vmatprep.subr.bf16.mxu1 %v3074_v9  ;;  %1146 = vmatprep.mubr.bf16.mxu1 %v2438_v29  ;;  %v3152_v8 = vld [vmem:[%s4257_s1 + $0x3e0] ss:$8 sps:$4 sm:$0xff]   ;;  %v3157_v9 = vld [vmem:[%s4257_s1 + $0x1f4] ss:$8 sps:$4 sm:$0xff]  }
  0x4a   : > { %647 = vmatprep.mubr.bf16.mxu0 %v2438_v29  ;;  %v3172_v29 = vld [vmem:[%s4257_s1 + $0x610] ss:$8 sps:$4 sm:$0xff]  }
  0x4b   : > { %661 = vmatpush1.bf16.msra.mxu0 %v3069_v10  ;;  %v3160_v10 = vld [vmem:[%s4257_s1 + $0x3f4] ss:$8 sps:$4 sm:$0xff]  }
  0x4c   : > { %1160 = vmatpush1.bf16.msra.mxu1 %v3072_v11  ;;  %662 = vmatprep.subr.bf16.mxu0 %v3077_v12  ;;  %v3155_v11 = vld [vmem:[%s4257_s1 + $0x1f0] ss:$8 sps:$4 sm:$0xff]  }
  0x4d   : > { %1161 = vmatprep.subr.bf16.mxu1 %v3080_v13  ;;  %v3158_v12 = vld [vmem:[%s4257_s1 + $0x3f0] ss:$8 sps:$4 sm:$0xff]   ;;  %v3165_v13 = vld [vmem:[%s4257_s1 + $0x404] ss:$8 sps:$4 sm:$0xff]  }
  0x4e   : > { %648 = vmatmul.mubr.bf16.gmra.mrb[4].mxu0 %v2437_v32 }
  0x4f   : > { %663 = vmatpush1.bf16.msra.mxu0 %v3075_v14  ;;  %1147 = vmatmul.mubr.bf16.gmra.mrb[4].mxu1 %v2437_v32  ;;  %v3168_v14 = vld [vmem:[%s4257_s1 + $0x604] ss:$8 sps:$4 sm:$0xff]  }
  0x50   : > { %1162 = vmatpush1.bf16.msra.mxu1 %v3078_v15  ;;  %664 = vmatprep.subr.bf16.mxu0 %v3083_v16  ;;  %v3163_v15 = vld [vmem:[%s4257_s1 + $0x400] ss:$8 sps:$4 sm:$0xff]  }
  0x51   : > { %1163 = vmatprep.subr.bf16.mxu1 %v3086_v17  ;;  %1189 = vmatprep.mubr.bf16.mxu1 %v2436_v39  ;;  %v3166_v16 = vld [vmem:[%s4257_s1 + $0x600] ss:$8 sps:$4 sm:$0xff]   ;;  %v2435_v17 = vcombine.low %v3704_v35, %v3707_v36  ;;  %v3185_v35 = vld [vmem:[%s4257_s1 + $0x434] ss:$8 sps:$4 sm:$0xff]  }
  0x52   : > { %690 = vmatprep.mubr.bf16.mxu0 %v2436_v39  ;;  %v3186_v39 = vld [vmem:[%s4257_s1 + $0x630] ss:$8 sps:$4 sm:$0xff]  }
  0x53   : > { %665 = vmatpush1.bf16.msra.mxu0 %v3081_v18  ;;  %v176_v18 = vld [vmem:[%s3543_s30 + $0x28] sm:$0xff] }
  0x54   : > { %1164 = vmatpush1.bf16.msra.mxu1 %v3084_v19  ;;  %666 = vmatprep.subr.bf16.mxu0 %v3089_v20  ;;  %v3841_v19 = vld [vmem:[%s3543_s30 + $0x38] sm:$0xff] }
  0x55   : > { %1165 = vmatprep.subr.bf16.mxu1 %v3092_v21  ;;  %v3171_v20 = vld [vmem:[%s4257_s1 + $0x414] ss:$8 sps:$4 sm:$0xff]   ;;  %v3847_v21 = vcombine.high %v3707_v36, %v176_v18  ;;  %v2439_v32 = vcombine.low %v176_v18, %v3841_v19 }
  0x57   : > { %667 = vmatpush1.bf16.msra.mxu0 %v3087_v22  ;;  %v3850_v22 = vcombine.low %v3707_v36, %v176_v18  ;;  %v3188_v36 = vld [vmem:[%s4257_s1 + $0x634] ss:$8 sps:$4 sm:$0xff]  }
  0x58   : > { %1166 = vmatpush1.bf16.msra.mxu1 %v3090_v23  ;;  %668 = vmatprep.subr.bf16.mxu0 %v3095_v24  ;;  %v3174_v23 = vld [vmem:[%s4257_s1 + $0x614] ss:$8 sps:$4 sm:$0xff]   ;;  %v2440_v24 = vcombine.high %v176_v18, %v3841_v19  ;;  %v3252_v18 = vld [vmem:[%s4257_s1 + $0x6e0] ss:$8 sps:$4 sm:$0xff]  }
  0x59   : > { %1167 = vmatprep.subr.bf16.mxu1 %v3098_v25  ;;  %v3169_v25 = vld [vmem:[%s4257_s1 + $0x410] ss:$8 sps:$4 sm:$0xff]  }
  0x5b   : > { %669 = vmatpush1.bf16.msra.mxu0 %v3093_v30  ;;  %v3179_v30 = vld [vmem:[%s4257_s1 + $0x424] ss:$8 sps:$4 sm:$0xff]  }
  0x5c   : > { %1168 = vmatpush1.bf16.msra.mxu1 %v3096_v31  ;;  %670 = vmatprep.subr.bf16.mxu0 %v3101_v33  ;;  %v3182_v31 = vld [vmem:[%s4257_s1 + $0x624] ss:$8 sps:$4 sm:$0xff]   ;;  %v3177_v33 = vld [vmem:[%s4257_s1 + $0x420] ss:$8 sps:$4 sm:$0xff]  }
  0x5d   : > { %1169 = vmatprep.subr.bf16.mxu1 %v3104_v34  ;;  %v3180_v34 = vld [vmem:[%s4257_s1 + $0x620] ss:$8 sps:$4 sm:$0xff]  }
  0x5f   : > { %671 = vmatpush1.bf16.msra.mxu0 %v3099_v37  ;;  %v2698_v37 = vcombine.high %v3553_v47, %v3678_v26  ;;  %v3194_v47 = vld [vmem:[%s4257_s1 + $0x644] ss:$8 sps:$4 sm:$0xff]   ;;  %v3189_v26 = vld [vmem:[%s4257_s1 + $0x440] ss:$8 sps:$4 sm:$0xff]  }
  0x60   : > { %1170 = vmatpush1.bf16.msra.mxu1 %v3102_v38  ;;  %672 = vmatprep.subr.bf16.mxu0 %v3107_v40  ;;  %v3183_v38 = vld [vmem:[%s4257_s1 + $0x430] ss:$8 sps:$4 sm:$0xff]   ;;  %v3191_v40 = vld [vmem:[%s4257_s1 + $0x444] ss:$8 sps:$4 sm:$0xff]  }
  0x61   : > { %1171 = vmatprep.subr.bf16.mxu1 %v3110_v41  ;;  %v3192_v41 = vld [vmem:[%s4257_s1 + $0x640] ss:$8 sps:$4 sm:$0xff]  }
  0x63   : > { %673 = vmatpush1.bf16.msra.mxu0 %v3105_v42  ;;  %v3197_v42 = vld [vmem:[%s4257_s1 + $0x454] ss:$8 sps:$4 sm:$0xff]  }
  0x64   : > { %1172 = vmatpush1.bf16.msra.mxu1 %v3108_v43  ;;  %674 = vmatprep.subr.bf16.mxu0 %v3113_v44  ;;  %v3200_v43 = vld [vmem:[%s4257_s1 + $0x654] ss:$8 sps:$4 sm:$0xff]   ;;  %v3195_v44 = vld [vmem:[%s4257_s1 + $0x450] ss:$8 sps:$4 sm:$0xff]  }
  0x65   : > { %1173 = vmatprep.subr.bf16.mxu1 %v3116_v45  ;;  %v3198_v45 = vld [vmem:[%s4257_s1 + $0x650] ss:$8 sps:$4 sm:$0xff]  }
  0x67   : > { %675 = vmatpush1.bf16.msra.mxu0 %v3111_v46  ;;  %v3203_v46 = vld [vmem:[%s4257_s1 + $0x464] ss:$8 sps:$4 sm:$0xff]  }
  0x68   : > { %1174 = vmatpush1.bf16.msra.mxu1 %v3114_v48  ;;  %676 = vmatprep.subr.bf16.mxu0 %v3119_v49  ;;  %v3206_v48 = vld [vmem:[%s4257_s1 + $0x664] ss:$8 sps:$4 sm:$0xff]   ;;  %v3201_v49 = vld [vmem:[%s4257_s1 + $0x460] ss:$8 sps:$4 sm:$0xff]  }
  0x69   : > { %1175 = vmatprep.subr.bf16.mxu1 %v3122_v50  ;;  %v3204_v50 = vld [vmem:[%s4257_s1 + $0x660] ss:$8 sps:$4 sm:$0xff]  }
  0x6b   : > { %677 = vmatpush1.bf16.msra.mxu0 %v3117_v51  ;;  %v3209_v51 = vld [vmem:[%s4257_s1 + $0x474] ss:$8 sps:$4 sm:$0xff]  }
  0x6c   : > { %1176 = vmatpush1.bf16.msra.mxu1 %v3120_v52  ;;  %678 = vmatprep.subr.bf16.mxu0 %v3125_v53  ;;  %v3212_v52 = vld [vmem:[%s4257_s1 + $0x674] ss:$8 sps:$4 sm:$0xff]   ;;  %v3207_v53 = vld [vmem:[%s4257_s1 + $0x470] ss:$8 sps:$4 sm:$0xff]  }
  0x6d   : > { %1177 = vmatprep.subr.bf16.mxu1 %v3128_v54  ;;  %v3210_v54 = vld [vmem:[%s4257_s1 + $0x670] ss:$8 sps:$4 sm:$0xff]  }
  0x6f   : > { %679 = vmatpush1.bf16.msra.mxu0 %v3123_v55  ;;  %v3215_v55 = vld [vmem:[%s4257_s1 + $0x484] ss:$8 sps:$4 sm:$0xff]  }
  0x70   : > { %1178 = vmatpush1.bf16.msra.mxu1 %v3126_v56  ;;  %680 = vmatprep.subr.bf16.mxu0 %v3131_v57  ;;  %v3218_v56 = vld [vmem:[%s4257_s1 + $0x684] ss:$8 sps:$4 sm:$0xff]   ;;  %v3213_v57 = vld [vmem:[%s4257_s1 + $0x480] ss:$8 sps:$4 sm:$0xff]  }
  0x71   : > { %1179 = vmatprep.subr.bf16.mxu1 %v3134_v58  ;;  %v3216_v58 = vld [vmem:[%s4257_s1 + $0x680] ss:$8 sps:$4 sm:$0xff]  }
  0x73   : > { %681 = vmatpush1.bf16.msra.mxu0 %v3129_v59  ;;  %v3221_v59 = vld [vmem:[%s4257_s1 + $0x494] ss:$8 sps:$4 sm:$0xff]  }
  0x74   : > { %1180 = vmatpush1.bf16.msra.mxu1 %v3132_v60  ;;  %682 = vmatprep.subr.bf16.mxu0 %v3137_v61  ;;  %v3224_v60 = vld [vmem:[%s4257_s1 + $0x694] ss:$8 sps:$4 sm:$0xff]   ;;  %v3219_v61 = vld [vmem:[%s4257_s1 + $0x490] ss:$8 sps:$4 sm:$0xff]  }
  0x75   : > { %1181 = vmatprep.subr.bf16.mxu1 %v3140_v62  ;;  %v3222_v62 = vld [vmem:[%s4257_s1 + $0x690] ss:$8 sps:$4 sm:$0xff]  }
  0x77   : > { %683 = vmatpush1.bf16.msra.mxu0 %v3135_v63  ;;  %v3227_v63 = vld [vmem:[%s4257_s1 + $0x4a4] ss:$8 sps:$4 sm:$0xff]  }
  0x78   : > { %1182 = vmatpush1.bf16.msra.mxu1 %v3138_v0  ;;  %684 = vmatprep.subr.bf16.mxu0 %v3143_v1  ;;  %v3230_v0 = vld [vmem:[%s4257_s1 + $0x6a4] ss:$8 sps:$4 sm:$0xff]   ;;  %v3225_v1 = vld [vmem:[%s4257_s1 + $0x4a0] ss:$8 sps:$4 sm:$0xff]  }
  0x79   : > { %1183 = vmatprep.subr.bf16.mxu1 %v3146_v2  ;;  %v3228_v2 = vld [vmem:[%s4257_s1 + $0x6a0] ss:$8 sps:$4 sm:$0xff]  }
  0x7b   : > { %685 = vmatpush1.bf16.msra.mxu0 %v3141_v3  ;;  %v3233_v3 = vld [vmem:[%s4257_s1 + $0x4b4] ss:$8 sps:$4 sm:$0xff]  }
  0x7c   : > { %1184 = vmatpush1.bf16.msra.mxu1 %v3144_v4  ;;  %686 = vmatprep.subr.bf16.mxu0 %v3150_v5  ;;  %v3236_v4 = vld [vmem:[%s4257_s1 + $0x6b4] ss:$8 sps:$4 sm:$0xff]   ;;  %v3231_v5 = vld [vmem:[%s4257_s1 + $0x4b0] ss:$8 sps:$4 sm:$0xff]  }
  0x7d   : > { %1185 = vmatprep.subr.bf16.mxu1 %v3154_v6  ;;  %v3234_v6 = vld [vmem:[%s4257_s1 + $0x6b0] ss:$8 sps:$4 sm:$0xff]  }
  0x7f   : > { %687 = vmatpush1.bf16.msra.mxu0 %v3148_v7  ;;  %v3239_v7 = vld [vmem:[%s4257_s1 + $0x4c4] ss:$8 sps:$4 sm:$0xff]  }
  0x80   : > { %1186 = vmatpush1.bf16.msra.mxu1 %v3152_v8  ;;  %688 = vmatprep.subr.bf16.mxu0 %v3157_v9  ;;  %v3242_v8 = vld [vmem:[%s4257_s1 + $0x6c4] ss:$8 sps:$4 sm:$0xff]   ;;  %v3237_v9 = vld [vmem:[%s4257_s1 + $0x4c0] ss:$8 sps:$4 sm:$0xff]  }
  0x81   : > { %1187 = vmatprep.subr.bf16.mxu1 %v3160_v10  ;;  %v3240_v10 = vld [vmem:[%s4257_s1 + $0x6c0] ss:$8 sps:$4 sm:$0xff]  }
  0x83   : > { %689 = vmatpush1.bf16.msra.mxu0 %v3155_v11  ;;  %v3245_v11 = vld [vmem:[%s4257_s1 + $0x4d4] ss:$8 sps:$4 sm:$0xff]  }
  0x84   : > { %1188 = vmatpush1.bf16.msra.mxu1 %v3158_v12  ;;  %1649 = vmatprep.subr.bf16.mxu0 %v3165_v13  ;;  %v3248_v12 = vld [vmem:[%s4257_s1 + $0x6d4] ss:$8 sps:$4 sm:$0xff]   ;;  %v3243_v13 = vld [vmem:[%s4257_s1 + $0x4d0] ss:$8 sps:$4 sm:$0xff]  }
  0x85   : > { %2148 = vmatprep.subr.bf16.mxu1 %v3168_v14  ;;  %v3246_v14 = vld [vmem:[%s4257_s1 + $0x6d0] ss:$8 sps:$4 sm:$0xff]  }
  0x86   : > { %691 = vmatmul.mubr.bf16.vlgmr.msra.gmra.mrb[0].mxu0 %v2435_v17 }
  0x87   : > { %1190 = vmatmul.mubr.bf16.vlgmr.msra.gmra.mrb[0].mxu1 %v2435_v17  ;;  %1650 = vmatpush1.bf16.msra.mxu0 %v3163_v15  ;;  %v3251_v15 = vld [vmem:[%s4257_s1 + $0x4e4] ss:$8 sps:$4 sm:$0xff]   ;;  %v3249_v17 = vld [vmem:[%s4257_s1 + $0x4e0] ss:$8 sps:$4 sm:$0xff]  }
  0x88   : > { %2149 = vmatpush1.bf16.msra.mxu1 %v3166_v16  ;;  %1651 = vmatprep.subr.bf16.mxu0 %v3171_v20  ;;  %v3254_v16 = vld [vmem:[%s4257_s1 + $0x6e4] ss:$8 sps:$4 sm:$0xff]   ;;  %v3257_v20 = vld [vmem:[%s4257_s1 + $0x4f4] ss:$8 sps:$4 sm:$0xff]  }
  0x89   : > { %2150 = vmatprep.subr.bf16.mxu1 %v3174_v23  ;;  %1199 = vmatprep.mubr.bf16.mxu1 %v2440_v24  ;;  %v3260_v23 = vld [vmem:[%s4257_s1 + $0x6f4] ss:$8 sps:$4 sm:$0xff]  }
  0x8a   : > { %700 = vmatprep.mubr.bf16.mxu0 %v2440_v24  ;;  %v3255_v24 = vld [vmem:[%s4257_s1 + $0x4f0] ss:$8 sps:$4 sm:$0xff]  }
  0x8b   : > { %1652 = vmatpush1.bf16.msra.mxu0 %v3169_v25  ;;  %v3258_v25 = vld [vmem:[%s4257_s1 + $0x6f0] ss:$8 sps:$4 sm:$0xff]  }
  0x8c   : > { %2151 = vmatpush1.bf16.msra.mxu1 %v3172_v29  ;;  %1653 = vmatprep.subr.bf16.mxu0 %v3179_v30  ;;  %v3264_v29 = vld [vmem:[%s4257_s1 + $0x504] ss:$8 sps:$4 sm:$0xff]  }
  0x8d   : > { %2152 = vmatprep.subr.bf16.mxu1 %v3182_v31  ;;  %v3267_v30 = vld [vmem:[%s4257_s1 + $0x704] ss:$8 sps:$4 sm:$0xff]  }
  0x8e   : > { %701 = vmatmul.mubr.bf16.gmra.mrb[4].mxu0 %v2439_v32  ;;  %v179_v31 = vld [vmem:[%s3543_s30 + $0x40] sm:$0xff] }
  0x8f   : > { %1200 = vmatmul.mubr.bf16.gmra.mrb[4].mxu1 %v2439_v32  ;;  %1654 = vmatpush1.bf16.msra.mxu0 %v3177_v33  ;;  %v3262_v32 = vld [vmem:[%s4257_s1 + $0x500] ss:$8 sps:$4 sm:$0xff]  }
  0x90   : > { %2153 = vmatpush1.bf16.msra.mxu1 %v3180_v34  ;;  %1655 = vmatprep.subr.bf16.mxu0 %v3185_v35  ;;  %v3265_v33 = vld [vmem:[%s4257_s1 + $0x700] ss:$8 sps:$4 sm:$0xff]   ;;  %v3271_v34 = vld [vmem:[%s4257_s1 + $0x514] ss:$8 sps:$4 sm:$0xff]  }
  0x91   : > { %2154 = vmatprep.subr.bf16.mxu1 %v3188_v36  ;;  %1681 = vmatprep.mubr.bf16.mxu0 %v2698_v37  ;;  %v3274_v35 = vld [vmem:[%s4257_s1 + $0x714] ss:$8 sps:$4 sm:$0xff]   ;;  %v2702_v36 = vcombine.high %v3681_v27, %v179_v31 }
  0x92   : > { %2180 = vmatprep.mubr.bf16.mxu1 %v2698_v37  ;;  %v3269_v37 = vld [vmem:[%s4257_s1 + $0x510] ss:$8 sps:$4 sm:$0xff]  }
  0x93   : > { %1656 = vmatpush1.bf16.msra.mxu0 %v3183_v38  ;;  %v3272_v38 = vld [vmem:[%s4257_s1 + $0x710] ss:$8 sps:$4 sm:$0xff]  }
  0x94   : > { %2155 = vmatpush1.bf16.msra.mxu1 %v3186_v39  ;;  %1657 = vmatprep.subr.bf16.mxu0 %v3191_v40  ;;  %v3277_v39 = vld [vmem:[%s4257_s1 + $0x524] ss:$8 sps:$4 sm:$0xff]   ;;  %v2701_v40 = vcombine.low %v3681_v27, %v179_v31  ;;  %v3286_v27 = vld [vmem:[%s4257_s1 + $0x734] ss:$8 sps:$4 sm:$0xff]  }
  0x95   : > { %2156 = vmatprep.subr.bf16.mxu1 %v3194_v47  ;;  %v3275_v47 = vld [vmem:[%s4257_s1 + $0x520] ss:$8 sps:$4 sm:$0xff]   ;;  %v3360_v31 = vld [vmem:[%s4257_s1 + $0x7f4] ss:$8 sps:$4 sm:$0xff]  }
  0x97   : > { %1658 = vmatpush1.bf16.msra.mxu0 %v3189_v26  ;;  %v3278_v26 = vld [vmem:[%s4257_s1 + $0x720] ss:$8 sps:$4 sm:$0xff]  }
  0x98   : > { %2157 = vmatpush1.bf16.msra.mxu1 %v3192_v41  ;;  %1659 = vmatprep.subr.bf16.mxu0 %v3197_v42  ;;  %v3283_v41 = vld [vmem:[%s4257_s1 + $0x534] ss:$8 sps:$4 sm:$0xff]   ;;  %v3281_v42 = vld [vmem:[%s4257_s1 + $0x530] ss:$8 sps:$4 sm:$0xff]  }
  0x99   : > { %2158 = vmatprep.subr.bf16.mxu1 %v3200_v43  ;;  %v3284_v43 = vld [vmem:[%s4257_s1 + $0x730] ss:$8 sps:$4 sm:$0xff]  }
  0x9b   : > { %1660 = vmatpush1.bf16.msra.mxu0 %v3195_v44  ;;  %v3289_v44 = vld [vmem:[%s4257_s1 + $0x544] ss:$8 sps:$4 sm:$0xff]  }
  0x9c   : > { %2159 = vmatpush1.bf16.msra.mxu1 %v3198_v45  ;;  %1661 = vmatprep.subr.bf16.mxu0 %v3203_v46  ;;  %v3292_v45 = vld [vmem:[%s4257_s1 + $0x744] ss:$8 sps:$4 sm:$0xff]   ;;  %v3287_v46 = vld [vmem:[%s4257_s1 + $0x540] ss:$8 sps:$4 sm:$0xff]  }
  0x9d   : > { %2160 = vmatprep.subr.bf16.mxu1 %v3206_v48  ;;  %v3290_v48 = vld [vmem:[%s4257_s1 + $0x740] ss:$8 sps:$4 sm:$0xff]  }
  0x9f   : > { %1662 = vmatpush1.bf16.msra.mxu0 %v3201_v49  ;;  %v3295_v49 = vld [vmem:[%s4257_s1 + $0x554] ss:$8 sps:$4 sm:$0xff]  }
  0xa0   : > { %2161 = vmatpush1.bf16.msra.mxu1 %v3204_v50  ;;  %1663 = vmatprep.subr.bf16.mxu0 %v3209_v51  ;;  %v3293_v50 = vld [vmem:[%s4257_s1 + $0x550] ss:$8 sps:$4 sm:$0xff]  }
  0xa1   : > { %2162 = vmatprep.subr.bf16.mxu1 %v3212_v52  ;;  %v3296_v51 = vld [vmem:[%s4257_s1 + $0x750] ss:$8 sps:$4 sm:$0xff]   ;;  %v3301_v52 = vld [vmem:[%s4257_s1 + $0x564] ss:$8 sps:$4 sm:$0xff]  }
  0xa3   : > { %1664 = vmatpush1.bf16.msra.mxu0 %v3207_v53  ;;  %v3304_v53 = vld [vmem:[%s4257_s1 + $0x764] ss:$8 sps:$4 sm:$0xff]  }
  0xa4   : > { %2163 = vmatpush1.bf16.msra.mxu1 %v3210_v54  ;;  %1665 = vmatprep.subr.bf16.mxu0 %v3215_v55  ;;  %v3299_v54 = vld [vmem:[%s4257_s1 + $0x560] ss:$8 sps:$4 sm:$0xff]  }
  0xa5   : > { %2164 = vmatprep.subr.bf16.mxu1 %v3218_v56  ;;  %v3302_v55 = vld [vmem:[%s4257_s1 + $0x760] ss:$8 sps:$4 sm:$0xff]   ;;  %v3307_v56 = vld [vmem:[%s4257_s1 + $0x574] ss:$8 sps:$4 sm:$0xff]  }
  0xa7   : > { %1666 = vmatpush1.bf16.msra.mxu0 %v3213_v57  ;;  %v3310_v57 = vld [vmem:[%s4257_s1 + $0x774] ss:$8 sps:$4 sm:$0xff]  }
  0xa8   : > { %2165 = vmatpush1.bf16.msra.mxu1 %v3216_v58  ;;  %1667 = vmatprep.subr.bf16.mxu0 %v3221_v59  ;;  %v3305_v58 = vld [vmem:[%s4257_s1 + $0x570] ss:$8 sps:$4 sm:$0xff]  }
  0xa9   : > { %2166 = vmatprep.subr.bf16.mxu1 %v3224_v60  ;;  %v3308_v59 = vld [vmem:[%s4257_s1 + $0x770] ss:$8 sps:$4 sm:$0xff]   ;;  %v3313_v60 = vld [vmem:[%s4257_s1 + $0x584] ss:$8 sps:$4 sm:$0xff]  }
  0xab   : > { %1668 = vmatpush1.bf16.msra.mxu0 %v3219_v61  ;;  %v3316_v61 = vld [vmem:[%s4257_s1 + $0x784] ss:$8 sps:$4 sm:$0xff]  }
  0xac   : > { %2167 = vmatpush1.bf16.msra.mxu1 %v3222_v62  ;;  %1669 = vmatprep.subr.bf16.mxu0 %v3227_v63  ;;  %v3311_v62 = vld [vmem:[%s4257_s1 + $0x580] ss:$8 sps:$4 sm:$0xff]  }
  0xad   : > { %2168 = vmatprep.subr.bf16.mxu1 %v3230_v0  ;;  %v3314_v63 = vld [vmem:[%s4257_s1 + $0x780] ss:$8 sps:$4 sm:$0xff]   ;;  %v3319_v0 = vld [vmem:[%s4257_s1 + $0x594] ss:$8 sps:$4 sm:$0xff]  }
  0xaf   : > { %1670 = vmatpush1.bf16.msra.mxu0 %v3225_v1  ;;  %v3322_v1 = vld [vmem:[%s4257_s1 + $0x794] ss:$8 sps:$4 sm:$0xff]  }
  0xb0   : > { %2169 = vmatpush1.bf16.msra.mxu1 %v3228_v2  ;;  %1671 = vmatprep.subr.bf16.mxu0 %v3233_v3  ;;  %v3317_v2 = vld [vmem:[%s4257_s1 + $0x590] ss:$8 sps:$4 sm:$0xff]  }
  0xb1   : > { %2170 = vmatprep.subr.bf16.mxu1 %v3236_v4  ;;  %v3320_v3 = vld [vmem:[%s4257_s1 + $0x790] ss:$8 sps:$4 sm:$0xff]   ;;  %v3325_v4 = vld [vmem:[%s4257_s1 + $0x5a4] ss:$8 sps:$4 sm:$0xff]  }
  0xb3   : > { %1672 = vmatpush1.bf16.msra.mxu0 %v3231_v5  ;;  %v3328_v5 = vld [vmem:[%s4257_s1 + $0x7a4] ss:$8 sps:$4 sm:$0xff]  }
  0xb4   : > { %2171 = vmatpush1.bf16.msra.mxu1 %v3234_v6  ;;  %1673 = vmatprep.subr.bf16.mxu0 %v3239_v7  ;;  %v3323_v6 = vld [vmem:[%s4257_s1 + $0x5a0] ss:$8 sps:$4 sm:$0xff]  }
  0xb5   : > { %2172 = vmatprep.subr.bf16.mxu1 %v3242_v8  ;;  %v3326_v7 = vld [vmem:[%s4257_s1 + $0x7a0] ss:$8 sps:$4 sm:$0xff]   ;;  %v3331_v8 = vld [vmem:[%s4257_s1 + $0x5b4] ss:$8 sps:$4 sm:$0xff]  }
  0xb7   : > { %1674 = vmatpush1.bf16.msra.mxu0 %v3237_v9  ;;  %v3334_v9 = vld [vmem:[%s4257_s1 + $0x7b4] ss:$8 sps:$4 sm:$0xff]  }
  0xb8   : > { %2173 = vmatpush1.bf16.msra.mxu1 %v3240_v10  ;;  %1675 = vmatprep.subr.bf16.mxu0 %v3245_v11  ;;  %v3329_v10 = vld [vmem:[%s4257_s1 + $0x5b0] ss:$8 sps:$4 sm:$0xff]  }
  0xb9   : > { %2174 = vmatprep.subr.bf16.mxu1 %v3248_v12  ;;  %v3332_v11 = vld [vmem:[%s4257_s1 + $0x7b0] ss:$8 sps:$4 sm:$0xff]   ;;  %v3337_v12 = vld [vmem:[%s4257_s1 + $0x5c4] ss:$8 sps:$4 sm:$0xff]  }
  0xbb   : > { %1676 = vmatpush1.bf16.msra.mxu0 %v3243_v13  ;;  %v3340_v13 = vld [vmem:[%s4257_s1 + $0x7c4] ss:$8 sps:$4 sm:$0xff]  }
  0xbc   : > { %2175 = vmatpush1.bf16.msra.mxu1 %v3246_v14  ;;  %1677 = vmatprep.subr.bf16.mxu0 %v3251_v15  ;;  %v3335_v14 = vld [vmem:[%s4257_s1 + $0x5c0] ss:$8 sps:$4 sm:$0xff]  }
  0xbd   : > { %2176 = vmatprep.subr.bf16.mxu1 %v3254_v16  ;;  %v3338_v15 = vld [vmem:[%s4257_s1 + $0x7c0] ss:$8 sps:$4 sm:$0xff]   ;;  %v3343_v16 = vld [vmem:[%s4257_s1 + $0x5d4] ss:$8 sps:$4 sm:$0xff]  }
  0xbf   : > { %1678 = vmatpush1.bf16.msra.mxu0 %v3249_v17  ;;  %v3346_v17 = vld [vmem:[%s4257_s1 + $0x7d4] ss:$8 sps:$4 sm:$0xff]  }
  0xc0   : > { %2177 = vmatpush1.bf16.msra.mxu1 %v3252_v18  ;;  %1679 = vmatprep.subr.bf16.mxu0 %v3257_v20  ;;  %v3341_v18 = vld [vmem:[%s4257_s1 + $0x5d0] ss:$8 sps:$4 sm:$0xff]  }
  0xc1   : > { %2178 = vmatprep.subr.bf16.mxu1 %v3260_v23  ;;  %v3344_v20 = vld [vmem:[%s4257_s1 + $0x7d0] ss:$8 sps:$4 sm:$0xff]   ;;  %v3351_v23 = vld [vmem:[%s4257_s1 + $0x5e4] ss:$8 sps:$4 sm:$0xff]  }
  0xc3   : > { %1680 = vmatpush1.bf16.msra.mxu0 %v3255_v24  ;;  %v3354_v24 = vld [vmem:[%s4257_s1 + $0x7e4] ss:$8 sps:$4 sm:$0xff]  }
  0xc4   : > { %2179 = vmatpush1.bf16.msra.mxu1 %v3258_v25  ;;  %1702 = vmatprep.subr.bf16.mxu0 %v3264_v29  ;;  %v3349_v25 = vld [vmem:[%s4257_s1 + $0x5e0] ss:$8 sps:$4 sm:$0xff]  }
  0xc5   : > { %2201 = vmatprep.subr.bf16.mxu1 %v3267_v30  ;;  %v3352_v29 = vld [vmem:[%s4257_s1 + $0x7e0] ss:$8 sps:$4 sm:$0xff]   ;;  %v3357_v30 = vld [vmem:[%s4257_s1 + $0x5f4] ss:$8 sps:$4 sm:$0xff]  }
  0xc6   : > { %1682 = vmatmul.mubr.bf16.vlgmr.msra.gmra.mrb[0].mxu0 %v3685_v28 }
  0xc7   : > { %2181 = vmatmul.mubr.bf16.vlgmr.msra.gmra.mrb[8].mxu1 %v3685_v28  ;;  %1703 = vmatpush1.bf16.msra.mxu0 %v3262_v32  ;;  %v3280_v28 = vld [vmem:[%s4257_s1 + $0x724] ss:$8 sps:$4 sm:$0xff]   ;;  %v3355_v32 = vld [vmem:[%s4257_s1 + $0x5f0] ss:$8 sps:$4 sm:$0xff]  }
  0xc8   : > { %2202 = vmatpush1.bf16.msra.mxu1 %v3265_v33  ;;  %1704 = vmatprep.subr.bf16.mxu0 %v3271_v34  ;;  %v3358_v33 = vld [vmem:[%s4257_s1 + $0x7f0] ss:$8 sps:$4 sm:$0xff]   ;;  %v180_v34 = vld [vmem:[%s3543_s30 + $0x48] sm:$0xff] }
  0xc9   : > { %2203 = vmatprep.subr.bf16.mxu1 %v3274_v35  ;;  %1691 = vmatprep.mubr.bf16.mxu0 %v2702_v36  ;;  %v2704_v35 = vcombine.high %v3841_v19, %v180_v34 }
  0xca   : > { %2190 = vmatprep.mubr.bf16.mxu1 %v2702_v36  ;;  %v2703_v36 = vcombine.low %v3841_v19, %v180_v34 }
  0xcb   : > { %1705 = vmatpush1.bf16.msra.mxu0 %v3269_v37 }
  0xcc   : > { %2204 = vmatpush1.bf16.msra.mxu1 %v3272_v38  ;;  %1706 = vmatprep.subr.bf16.mxu0 %v3277_v39 }
  0xcd   : > { %2205 = vmatprep.subr.bf16.mxu1 %v3280_v28 }
  0xce   : > { %1692 = vmatmul.mubr.bf16.gmra.mrb[4].mxu0 %v2701_v40 }
  0xcf   : > { %2191 = vmatmul.mubr.bf16.gmra.mrb[12].mxu1 %v2701_v40  ;;  %1707 = vmatpush1.bf16.msra.mxu0 %v3275_v47 }
  0xd0   : > { %2206 = vmatpush1.bf16.msra.mxu1 %v3278_v26  ;;  %1708 = vmatprep.subr.bf16.mxu0 %v3283_v41 }
  0xd1   : > { %2207 = vmatprep.subr.bf16.mxu1 %v3286_v27  ;;  %1734 = vmatprep.mubr.bf16.mxu0 %v3847_v21  ;;  %v2288_v27 = vlaneseq }
  0xd2   : > { %2233 = vmatprep.mubr.bf16.mxu1 %v3847_v21  ;;  %v3298_v21 = vld [vmem:[%s4257_s1 + $0x754] ss:$8 sps:$4 sm:$0xff]  }
  0xd3   : > { %1709 = vmatpush1.bf16.msra.mxu0 %v3281_v42  ;;  %v2289_v42 = vshrl.u32 %v2288_v27, 7 }
  0xd4   : > { %2208 = vmatpush1.bf16.msra.mxu1 %v3284_v43  ;;  %1710 = vmatprep.subr.bf16.mxu0 %v3289_v44 }
  0xd5   : > { %2209 = vmatprep.subr.bf16.mxu1 %v3292_v45  ;;  %v2290_v43 = vsub.s32 0, %v2289_v42  ;;  %v2294_v44 = vsub.s32 1, %v2289_v42 }
  0xd7   : > { %1711 = vmatpush1.bf16.msra.mxu0 %v3287_v46 }
  0xd8   : > { %2210 = vmatpush1.bf16.msra.mxu1 %v3290_v48  ;;  %1712 = vmatprep.subr.bf16.mxu0 %v3295_v49 }
  0xd9   : > { %2211 = vmatprep.subr.bf16.mxu1 %v3298_v21 }
  0xdb   : > { %1713 = vmatpush1.bf16.msra.mxu0 %v3293_v50 }
  0xdc   : > { %2212 = vmatpush1.bf16.msra.mxu1 %v3296_v51  ;;  %1714 = vmatprep.subr.bf16.mxu0 %v3301_v52 }
  0xdd   : > { %2213 = vmatprep.subr.bf16.mxu1 %v3304_v53 }
  0xdf   : > { %1715 = vmatpush1.bf16.msra.mxu0 %v3299_v54 }
  0xe0   : > { %2214 = vmatpush1.bf16.msra.mxu1 %v3302_v55  ;;  %1716 = vmatprep.subr.bf16.mxu0 %v3307_v56 }
  0xe1   : > { %2215 = vmatprep.subr.bf16.mxu1 %v3310_v57 }
  0xe3   : > { %1717 = vmatpush1.bf16.msra.mxu0 %v3305_v58 }
  0xe4   : > { %2216 = vmatpush1.bf16.msra.mxu1 %v3308_v59  ;;  %1718 = vmatprep.subr.bf16.mxu0 %v3313_v60 }
  0xe5   : > { %2217 = vmatprep.subr.bf16.mxu1 %v3316_v61 }
  0xe7   : > { %1719 = vmatpush1.bf16.msra.mxu0 %v3311_v62 }
  0xe8   : > { %2218 = vmatpush1.bf16.msra.mxu1 %v3314_v63  ;;  %1720 = vmatprep.subr.bf16.mxu0 %v3319_v0 }
  0xe9   : > { %2219 = vmatprep.subr.bf16.mxu1 %v3322_v1 }
  0xeb   : > { %1721 = vmatpush1.bf16.msra.mxu0 %v3317_v2 }
  0xec   : > { %2220 = vmatpush1.bf16.msra.mxu1 %v3320_v3  ;;  %1722 = vmatprep.subr.bf16.mxu0 %v3325_v4 }
  0xed   : > { %2221 = vmatprep.subr.bf16.mxu1 %v3328_v5 }
  0xef   : > { %1723 = vmatpush1.bf16.msra.mxu0 %v3323_v6 }
  0xf0   : > { %2222 = vmatpush1.bf16.msra.mxu1 %v3326_v7  ;;  %1724 = vmatprep.subr.bf16.mxu0 %v3331_v8 }
  0xf1   : > { %2223 = vmatprep.subr.bf16.mxu1 %v3334_v9 }
  0xf3   : > { %1725 = vmatpush1.bf16.msra.mxu0 %v3329_v10 }
  0xf4   : > { %2224 = vmatpush1.bf16.msra.mxu1 %v3332_v11  ;;  %1726 = vmatprep.subr.bf16.mxu0 %v3337_v12 }
  0xf5   : > { %2225 = vmatprep.subr.bf16.mxu1 %v3340_v13 }
  0xf7   : > { %1727 = vmatpush1.bf16.msra.mxu0 %v3335_v14 }
  0xf8   : > { %2226 = vmatpush1.bf16.msra.mxu1 %v3338_v15  ;;  %1728 = vmatprep.subr.bf16.mxu0 %v3343_v16 }
  0xf9   : > { %2227 = vmatprep.subr.bf16.mxu1 %v3346_v17 }
  0xfb   : > { %1729 = vmatpush1.bf16.msra.mxu0 %v3341_v18 }
  0xfc   : > { %2228 = vmatpush1.bf16.msra.mxu1 %v3344_v20  ;;  %1730 = vmatprep.subr.bf16.mxu0 %v3351_v23 }
  0xfd   : > { %2229 = vmatprep.subr.bf16.mxu1 %v3354_v24 }
  0xff   : > { %1731 = vmatpush1.bf16.msra.mxu0 %v3349_v25 }
 0x100   : > { %2230 = vmatpush1.bf16.msra.mxu1 %v3352_v29  ;;  %1732 = vmatprep.subr.bf16.mxu0 %v3357_v30 }
 0x101   : > { %2231 = vmatprep.subr.bf16.mxu1 %v3360_v31 }
 0x103   : > { %1733 = vmatpush1.bf16.msra.mxu0 %v3355_v32 }
 0x104   : > { %2232 = vmatpush1.bf16.msra.mxu1 %v3358_v33 }
 0x106   : > { %1735 = vmatmul.mubr.bf16.vlgmr.msra.gmra.mrb[0].mxu0 %v3850_v22 }
 0x107   : > { %2234 = vmatmul.mubr.bf16.vlgmr.msra.gmra.mrb[8].mxu1 %v3850_v22  ;;  %1744 = vmatprep.mubr.bf16.mxu0 %v2704_v35  ;;  %v2286_v22 = vld [vmem:[%s4258_s2] sm:$0x3] }
 0x108   : > { %2243 = vmatprep.mubr.bf16.mxu1 %v2704_v35  ;;  %v2291_v51 = vrot.slane %v2286_v22, %v2290_v43  ;;  %v2295_v57 = vrot.slane %v2286_v22, %v2294_v44 }
 0x10e   : > { %1745 = vmatmul.mubr.bf16.gmra.mrb[4].mxu0 %v2703_v36 }
 0x10f   : > { %2244 = vmatmul.mubr.bf16.gmra.mrb[12].mxu1 %v2703_v36 }
 0x15a   : > { %v1191_v37 = vpop.f32.mrb[0].mxu1 }
 0x15b   : > { %v1193_v38 = vpop.f32.mrb[1].mxu1  ;;  %v1218_v19 = vrot.slane %v1191_v37, 1 }
 0x15c   : > { %v1195_v39 = vpop.f32.mrb[2].mxu1  ;;  %v1219_v45 = vrot.slane %v1193_v38, 1 }
 0x15d   : > { %v1197_v28 = vpop.f32.mrb[3].mxu1  ;;  %v1220_v49 = vrot.slane %v1195_v39, 1 }
 0x15e   : > { %v1221_v54 = vrot.slane %v1197_v28, 1 }
 0x162   : > { %v1201_v40 = vpop.f32.mrb[4].mxu1 }
 0x163   : > { %v1203_v47 = vpop.f32.mrb[5].mxu1  ;;  %v1222_v8 = vrot.slane %v1201_v40, 1 }
 0x164   : > { %v1205_v26 = vpop.f32.mrb[6].mxu1  ;;  %v1223_v11 = vrot.slane %v1203_v47, 1 }
 0x165   : > { %v4237_v41 = vpop.f32.mrb[7].mxu1  ;;  %v1224_v12 = vrot.slane %v1205_v26, 1 }
 0x166   : > { %v1225_v17 = vrot.slane %v4237_v41, 1 }
 0x1d9   : > { %v1736_v46 = vpop.f32.mrb[0].mxu0 }
 0x1da   : > { %v2235_v48 = vpop.f32.mrb[8].mxu1  ;;  %v2908_v21 = vadd.f32 %v1736_v46, %v1218_v19  ;;  %v1738_v52 = vpop.f32.mrb[1].mxu0 }
 0x1db   : > { %v2262_v50 = vrot.slane %v2235_v48, 1  ;;  %v2237_v53 = vpop.f32.mrb[9].mxu1  ;;  %v2909_v55 = vadd.f32 %v1738_v52, %v1219_v45  ;;  %v1740_v58 = vpop.f32.mrb[2].mxu0 }
 0x1dc   : > { %v2263_v56 = vrot.slane %v2237_v53, 1  ;;  %v2239_v59 = vpop.f32.mrb[10].mxu1  ;;  %v2910_v61 = vadd.f32 %v1740_v58, %v1220_v49  ;;  %v1742_v63 = vpop.f32.mrb[3].mxu0 }
 0x1dd   : > { %v2278_v60 = vadd.f32 %v2908_v21, %v2262_v50  ;;  %v2264_v62 = vrot.slane %v2239_v59, 1  ;;  %v2241_v0 = vpop.f32.mrb[11].mxu1  ;;  %v2911_v2 = vadd.f32 %v1742_v63, %v1221_v54 }
 0x1de   : > { %v2279_v1 = vadd.f32 %v2909_v55, %v2263_v56  ;;  %v2265_v3 = vrot.slane %v2241_v0, 1 }
 0x1df   : > { %v2298_v4 = vadd.f32 %v2291_v51, %v2278_v60  ;;  %v2280_v5 = vadd.f32 %v2910_v61, %v2264_v62 }
 0x1e0   : > { %v2299_v6 = vadd.f32 %v2295_v57, %v2279_v1  ;;  %v2281_v7 = vadd.f32 %v2911_v2, %v2265_v3 }
 0x1e1   : > { %v2306_v9 = vmax.f32 %v2298_v4, 0.0  ;;  %v2300_v10 = vadd.f32 %v2291_v51, %v2280_v5  ;;  %v1746_v15 = vpop.f32.mrb[4].mxu0 }
 0x1e2   : > { %v2307_v13 = vmax.f32 %v2299_v6, 0.0  ;;  %v2301_v14 = vadd.f32 %v2295_v57, %v2281_v7  ;;  %v2245_v16 = vpop.f32.mrb[12].mxu1  ;;  %v2912_v20 = vadd.f32 %v1746_v15, %v1222_v8  ;;  %v1748_v24 = vpop.f32.mrb[5].mxu0 }
 0x1e3   : > { %v2308_v18 = vmax.f32 %v2300_v10, 0.0  ;;  %v2266_v23 = vrot.slane %v2245_v16, 1  ;;  %v2247_v25 = vpop.f32.mrb[13].mxu1  ;;  %v2913_v31 = vadd.f32 %v1748_v24, %v1223_v11  ;;  %v1750_v33 = vpop.f32.mrb[6].mxu0 }
 0x1e4   : > { %v2897_v29 = vpack.c.bf16 %v2307_v13, %v2306_v9  ;;  %v2309_v30 = vmax.f32 %v2301_v14, 0.0  ;;  %v2267_v32 = vrot.slane %v2247_v25, 1  ;;  %v2249_v34 = vpop.f32.mrb[14].mxu1  ;;  %v2914_v36 = vadd.f32 %v1750_v33, %v1224_v12  ;;  %v1752_v38 = vpop.f32.mrb[7].mxu0 }
 0x1e5   : > { %v2282_v35 = vadd.f32 %v2912_v20, %v2266_v23  ;;  %v2268_v37 = vrot.slane %v2249_v34, 1  ;;  %v2251_v39 = vpop.f32.mrb[15].mxu1  ;;  %v2915_v47 = vadd.f32 %v1752_v38, %v1225_v17 }
 0x1e6   : > { %2901 = vst.sshfl [vmem:[%s4247_s26] sm:$0x33 pattern:$0x76325410] %v2897_v29  ;;  %v2898_v28 = vpack.c.bf16 %v2309_v30, %v2308_v18  ;;  %v2283_v40 = vadd.f32 %v2913_v31, %v2267_v32  ;;  %v2269_v26 = vrot.slane %v2251_v39, 1 }
 0x1e7   : > { %v2302_v41 = vadd.f32 %v2291_v51, %v2282_v35  ;;  %v2284_v27 = vadd.f32 %v2914_v36, %v2268_v37 }
 0x1e8   : > { %2902 = vst.sshfl [vmem:[%s4247_s26 + $0x4] sm:$0x33 pattern:$0x76325410] %v2898_v28  ;;  %v2303_v42 = vadd.f32 %v2295_v57, %v2283_v40  ;;  %v2285_v43 = vadd.f32 %v2915_v47, %v2269_v26 }
 0x1e9   : > { %v2310_v22 = vmax.f32 %v2302_v41, 0.0  ;;  %v2304_v44 = vadd.f32 %v2291_v51, %v2284_v27 }
 0x1ea   : > { %v2311_v19 = vmax.f32 %v2303_v42, 0.0  ;;  %v2305_v45 = vadd.f32 %v2295_v57, %v2285_v43 }
 0x1eb   : > { %v2312_v46 = vmax.f32 %v2304_v44, 0.0 }
 0x1ec   : > { %v2899_v48 = vpack.c.bf16 %v2311_v19, %v2310_v22  ;;  %v2313_v49 = vmax.f32 %v2305_v45, 0.0 }
 0x1ee   : > { %2903 = vst.sshfl [vmem:[%s4247_s26 + $0x8] sm:$0x33 pattern:$0x76325410] %v2899_v48  ;;  %v2900_v21 = vpack.c.bf16 %v2313_v49, %v2312_v46 }
 0x1f0   : > { %2904 = vst.sshfl [vmem:[%s4247_s26 + $0xc] sm:$0x33 pattern:$0x76325410] %v2900_v21 }
 0x1f1 PF: > { %s13_s12 = sadd.s32 1, %s3371_s12  }
 0x1f2   : > { %p10_p4 = scmp.ge.s32.totalorder %s13_s12, 4  }
 0x1f4   :  { %12 = sbr.rel (!%p10_p4) target bundleno = 1 (0x1), region = 65 }

// kernel: e_attr_forward.18
= control target key start
LH: loop header
LB: loop body
LE: loop exit
PB: predicated region body
PF: predicated region fallthrough
CT: control target
= control target key end

     0   :  { %s5959_s12 = smov 0   ;;  %s7609_s0 = inlined_call_operand.vmem [shape: bf16[2,24,1024], index: 0, kind: input, shape index: {}]   ;;  %s7610_s1 = inlined_call_operand.vmem [shape: bf16[4,1024,256], index: 1, kind: input, shape index: {}]   ;;  %s7611_s2 = inlined_call_operand.vmem [shape: f32[1,256], index: 2, kind: input, shape index: {}]   ;;  %s7612_s3 = inlined_call_operand.vmem [shape: bf16[2,2,2,256], index: 3, kind: output, shape index: {}]  }
   0x1 LB: > { %s4167_s13 = sadd.s32 4294967295, %s5936_s12   ;;  %p4171_p0 = scmp.ge.s32.totalorder %s5936_s12, 1  ;;  %s5936_s12 = sphi %s5959_s12, %s13_s12  }
   0x2   : > { %p137_p1 = scmp.lt.s32.totalorder %s5936_s12, 3 }
   0x4   : > { %p138_p2 = pnand %p4171_p0, %p137_p1 }
   0x5   : > { %v5158_v0 = vld [vmem:[%s7610_s1 + $0x4] ss:$8 sps:$4 sm:$0xff] (!%p138_p2)   ;;  %v5162_v2 = vld [vmem:[%s7610_s1] ss:$8 sps:$4 sm:$0xff] (!%p138_p2)   ;;  %v5164_v4 = vld [vmem:[%s7610_s1 + $0x14] ss:$8 sps:$4 sm:$0xff] (!%p138_p2)  }
   0x6   : > { %141 = sbr.rel (%p138_p2) target bundleno = 747 (0x2eb), region = 32  ;;  %v5160_v1 = vld [vmem:[%s7610_s1 + $0x404] ss:$8 sps:$4 sm:$0xff] (!%p138_p2)   ;;  %989 = vmatprep.subr.bf16.mxu0 (!%p138_p2), %v5158_v0  ;;  %v5163_v3 = vld [vmem:[%s7610_s1 + $0x400] ss:$8 sps:$4 sm:$0xff] (!%p138_p2)   ;;  %p160_p3 = scmp.lt.s32.totalorder (!%p138_p2), %s4167_s13, 1 }
   0x7   : > { %1934 = vmatprep.subr.bf16.mxu1 (!%p138_p2), %v5160_v1  ;;  %990 = vmatpush1.bf16.msra.mxu0 (!%p138_p2), %v5162_v2  ;;  %v5166_v5 = vld [vmem:[%s7610_s1 + $0x414] ss:$8 sps:$4 sm:$0xff] (!%p138_p2)   ;;  %v5168_v6 = vld [vmem:[%s7610_s1 + $0x10] ss:$8 sps:$4 sm:$0xff] (!%p138_p2)   ;;  %v5170_v8 = vld [vmem:[%s7610_s1 + $0x24] ss:$8 sps:$4 sm:$0xff] (!%p138_p2)  }
   0x8   : > { %1935 = vmatpush1.bf16.msra.mxu1 (!%p138_p2), %v5163_v3  ;;  %991 = vmatprep.subr.bf16.mxu0 (!%p138_p2), %v5164_v4  ;;  %v5169_v7 = vld [vmem:[%s7610_s1 + $0x410] ss:$8 sps:$4 sm:$0xff] (!%p138_p2)   ;;  %v5172_v9 = vld [vmem:[%s7610_s1 + $0x424] ss:$8 sps:$4 sm:$0xff] (!%p138_p2)   ;;  %v5174_v10 = vld [vmem:[%s7610_s1 + $0x20] ss:$8 sps:$4 sm:$0xff] (!%p138_p2)  }
   0x9   : > { %1936 = vmatprep.subr.bf16.mxu1 (!%p138_p2), %v5166_v5  ;;  %v5175_v11 = vld [vmem:[%s7610_s1 + $0x420] ss:$8 sps:$4 sm:$0xff] (!%p138_p2)   ;;  %v5176_v12 = vld [vmem:[%s7610_s1 + $0x34] ss:$8 sps:$4 sm:$0xff] (!%p138_p2)   ;;  %v5180_v14 = vld [vmem:[%s7610_s1 + $0x30] ss:$8 sps:$4 sm:$0xff] (!%p138_p2)  }
   0xa   : > { %v5178_v13 = vld [vmem:[%s7610_s1 + $0x434] ss:$8 sps:$4 sm:$0xff] (!%p138_p2)   ;;  %v5181_v15 = vld [vmem:[%s7610_s1 + $0x430] ss:$8 sps:$4 sm:$0xff] (!%p138_p2)   ;;  %v5182_v16 = vld [vmem:[%s7610_s1 + $0x44] ss:$8 sps:$4 sm:$0xff] (!%p138_p2)  }
   0xb   : > { %992 = vmatpush1.bf16.msra.mxu0 (!%p138_p2), %v5168_v6  ;;  %v5184_v17 = vld [vmem:[%s7610_s1 + $0x444] ss:$8 sps:$4 sm:$0xff] (!%p138_p2)   ;;  %v5186_v18 = vld [vmem:[%s7610_s1 + $0x40] ss:$8 sps:$4 sm:$0xff] (!%p138_p2)   ;;  %v5188_v20 = vld [vmem:[%s7610_s1 + $0x54] ss:$8 sps:$4 sm:$0xff] (!%p138_p2)  }
   0xc   : > { %1937 = vmatpush1.bf16.msra.mxu1 (!%p138_p2), %v5169_v7  ;;  %993 = vmatprep.subr.bf16.mxu0 (!%p138_p2), %v5170_v8  ;;  %v5187_v19 = vld [vmem:[%s7610_s1 + $0x440] ss:$8 sps:$4 sm:$0xff] (!%p138_p2)   ;;  %v5190_v21 = vld [vmem:[%s7610_s1 + $0x454] ss:$8 sps:$4 sm:$0xff] (!%p138_p2)   ;;  %v5192_v22 = vld [vmem:[%s7610_s1 + $0x50] ss:$8 sps:$4 sm:$0xff] (!%p138_p2)  }
   0xd   : > { %1938 = vmatprep.subr.bf16.mxu1 %v5172_v9  ;;  %v5193_v23 = vld [vmem:[%s7610_s1 + $0x450] ss:$8 sps:$4 sm:$0xff]   ;;  %v5194_v24 = vld [vmem:[%s7610_s1 + $0x64] ss:$8 sps:$4 sm:$0xff]   ;;  %v5198_v26 = vld [vmem:[%s7610_s1 + $0x60] ss:$8 sps:$4 sm:$0xff]  }
   0xe   : > { %v5196_v25 = vld [vmem:[%s7610_s1 + $0x464] ss:$8 sps:$4 sm:$0xff]   ;;  %v5199_v27 = vld [vmem:[%s7610_s1 + $0x460] ss:$8 sps:$4 sm:$0xff]   ;;  %v5200_v28 = vld [vmem:[%s7610_s1 + $0x74] ss:$8 sps:$4 sm:$0xff]  }
   0xf   : > { %994 = vmatpush1.bf16.msra.mxu0 %v5174_v10  ;;  %v5202_v29 = vld [vmem:[%s7610_s1 + $0x474] ss:$8 sps:$4 sm:$0xff]   ;;  %v5204_v30 = vld [vmem:[%s7610_s1 + $0x70] ss:$8 sps:$4 sm:$0xff]   ;;  %v5206_v32 = vld [vmem:[%s7610_s1 + $0x84] ss:$8 sps:$4 sm:$0xff]  }
  0x10   : > { %1939 = vmatpush1.bf16.msra.mxu1 %v5175_v11  ;;  %995 = vmatprep.subr.bf16.mxu0 %v5176_v12  ;;  %v5205_v31 = vld [vmem:[%s7610_s1 + $0x470] ss:$8 sps:$4 sm:$0xff]   ;;  %v5208_v33 = vld [vmem:[%s7610_s1 + $0x484] ss:$8 sps:$4 sm:$0xff]   ;;  %v5210_v34 = vld [vmem:[%s7610_s1 + $0x80] ss:$8 sps:$4 sm:$0xff]  }
  0x11   : > { %1940 = vmatprep.subr.bf16.mxu1 %v5178_v13  ;;  %v5211_v35 = vld [vmem:[%s7610_s1 + $0x480] ss:$8 sps:$4 sm:$0xff]   ;;  %s7614_s13 = smov (!%p160_p3, %s4167_s13), 1  ;;  %v5212_v36 = vld [vmem:[%s7610_s1 + $0x94] ss:$8 sps:$4 sm:$0xff]  }
  0x12   : > { %v5214_v37 = vld [vmem:[%s7610_s1 + $0x494] ss:$8 sps:$4 sm:$0xff]   ;;  %v5216_v38 = vld [vmem:[%s7610_s1 + $0x90] ss:$8 sps:$4 sm:$0xff]   ;;  %s5148_s17 = smul.u32 96, %s7614_s13  ;;  %s4173_s27 = sshll.u32 %s7614_s13, 2 }
  0x13   : > { %996 = vmatpush1.bf16.msra.mxu0 %v5180_v14  ;;  %v5217_v39 = vld [vmem:[%s7610_s1 + $0x490] ss:$8 sps:$4 sm:$0xff]   ;;  %v5218_v40 = vld [vmem:[%s7610_s1 + $0xa4] ss:$8 sps:$4 sm:$0xff]   ;;  %v5222_v42 = vld [vmem:[%s7610_s1 + $0xa0] ss:$8 sps:$4 sm:$0xff]   ;;  %s168_s4 = scalar_lea.vmem %s7612_s3, %s4173_s27 }
  0x14   : > { %1941 = vmatpush1.bf16.msra.mxu1 %v5181_v15  ;;  %997 = vmatprep.subr.bf16.mxu0 %v5182_v16  ;;  %v5220_v41 = vld [vmem:[%s7610_s1 + $0x4a4] ss:$8 sps:$4 sm:$0xff]   ;;  %v5223_v43 = vld [vmem:[%s7610_s1 + $0x4a0] ss:$8 sps:$4 sm:$0xff]   ;;  %s6109_s30 = scalar_lea.vmem %s7609_s0, %s5148_s17  ;;  %v5224_v44 = vld [vmem:[%s7610_s1 + $0xb4] ss:$8 sps:$4 sm:$0xff]  }
  0x15   : > { %1942 = vmatprep.subr.bf16.mxu1 %v5184_v17  ;;  %v5226_v45 = vld [vmem:[%s7610_s1 + $0x4b4] ss:$8 sps:$4 sm:$0xff]   ;;  %v169_v46 = vld [vmem:[%s6109_s30] sm:$0xff]  ;;  %v5228_v48 = vld [vmem:[%s7610_s1 + $0xb0] ss:$8 sps:$4 sm:$0xff]  }
  0x16   : > { %v173_v47 = vld [vmem:[%s6109_s30 + $0x20] sm:$0xff]  ;;  %v5229_v49 = vld [vmem:[%s7610_s1 + $0x4b0] ss:$8 sps:$4 sm:$0xff]   ;;  %v5236_v55 = vld [vmem:[%s7610_s1 + $0xd4] ss:$8 sps:$4 sm:$0xff]  }
  0x17   : > { %998 = vmatpush1.bf16.msra.mxu0 %v5186_v18  ;;  %v4175_v50 = vcombine.high %v169_v46, %v173_v47  ;;  %v5230_v51 = vld [vmem:[%s7610_s1 + $0xc4] ss:$8 sps:$4 sm:$0xff]   ;;  %v5234_v53 = vld [vmem:[%s7610_s1 + $0xc0] ss:$8 sps:$4 sm:$0xff]   ;;  %v5238_v56 = vld [vmem:[%s7610_s1 + $0x4d4] ss:$8 sps:$4 sm:$0xff]   ;;  %v4174_v5 = vcombine.low %v169_v46, %v173_v47 }
  0x18   : > { %1943 = vmatpush1.bf16.msra.mxu1 %v5187_v19  ;;  %999 = vmatprep.subr.bf16.mxu0 %v5188_v20  ;;  %v5232_v52 = vld [vmem:[%s7610_s1 + $0x4c4] ss:$8 sps:$4 sm:$0xff]   ;;  %v5235_v54 = vld [vmem:[%s7610_s1 + $0x4c0] ss:$8 sps:$4 sm:$0xff]   ;;  %v5240_v57 = vld [vmem:[%s7610_s1 + $0xd0] ss:$8 sps:$4 sm:$0xff]  }
  0x19   : > { %1944 = vmatprep.subr.bf16.mxu1 %v5190_v21  ;;  %1021 = vmatprep.mubr.bf16.mxu0 %v4175_v50  ;;  %v5241_v58 = vld [vmem:[%s7610_s1 + $0x4d0] ss:$8 sps:$4 sm:$0xff]   ;;  %v5242_v59 = vld [vmem:[%s7610_s1 + $0xe4] ss:$8 sps:$4 sm:$0xff]   ;;  %v5246_v61 = vld [vmem:[%s7610_s1 + $0xe0] ss:$8 sps:$4 sm:$0xff]  }
  0x1a   : > { %1966 = vmatprep.mubr.bf16.mxu1 %v4175_v50  ;;  %v5244_v60 = vld [vmem:[%s7610_s1 + $0x4e4] ss:$8 sps:$4 sm:$0xff]   ;;  %v5247_v62 = vld [vmem:[%s7610_s1 + $0x4e0] ss:$8 sps:$4 sm:$0xff]   ;;  %v5248_v63 = vld [vmem:[%s7610_s1 + $0xf4] ss:$8 sps:$4 sm:$0xff]  }
  0x1b   : > { %1000 = vmatpush1.bf16.msra.mxu0 %v5192_v22  ;;  %v5250_v0 = vld [vmem:[%s7610_s1 + $0x4f4] ss:$8 sps:$4 sm:$0xff]   ;;  %v5252_v1 = vld [vmem:[%s7610_s1 + $0xf0] ss:$8 sps:$4 sm:$0xff]   ;;  %v5256_v3 = vld [vmem:[%s7610_s1 + $0x104] ss:$8 sps:$4 sm:$0xff]  }
  0x1c   : > { %1945 = vmatpush1.bf16.msra.mxu1 %v5193_v23  ;;  %1001 = vmatprep.subr.bf16.mxu0 %v5194_v24  ;;  %v5253_v2 = vld [vmem:[%s7610_s1 + $0x4f0] ss:$8 sps:$4 sm:$0xff]   ;;  %v5259_v4 = vld [vmem:[%s7610_s1 + $0x504] ss:$8 sps:$4 sm:$0xff]   ;;  %v5254_v6 = vld [vmem:[%s7610_s1 + $0x100] ss:$8 sps:$4 sm:$0xff]  }
  0x1d   : > { %1946 = vmatprep.subr.bf16.mxu1 %v5196_v25  ;;  %v5257_v7 = vld [vmem:[%s7610_s1 + $0x500] ss:$8 sps:$4 sm:$0xff]   ;;  %v5262_v8 = vld [vmem:[%s7610_s1 + $0x114] ss:$8 sps:$4 sm:$0xff]   ;;  %v5260_v10 = vld [vmem:[%s7610_s1 + $0x110] ss:$8 sps:$4 sm:$0xff]  }
  0x1e   : > { %v5265_v9 = vld [vmem:[%s7610_s1 + $0x514] ss:$8 sps:$4 sm:$0xff]   ;;  %v5263_v11 = vld [vmem:[%s7610_s1 + $0x510] ss:$8 sps:$4 sm:$0xff]   ;;  %v5268_v12 = vld [vmem:[%s7610_s1 + $0x124] ss:$8 sps:$4 sm:$0xff]  }
  0x1f   : > { %1002 = vmatpush1.bf16.msra.mxu0 %v5198_v26  ;;  %v5271_v13 = vld [vmem:[%s7610_s1 + $0x524] ss:$8 sps:$4 sm:$0xff]   ;;  %v5266_v14 = vld [vmem:[%s7610_s1 + $0x120] ss:$8 sps:$4 sm:$0xff]   ;;  %v5274_v16 = vld [vmem:[%s7610_s1 + $0x134] ss:$8 sps:$4 sm:$0xff]  }
  0x20   : > { %1947 = vmatpush1.bf16.msra.mxu1 %v5199_v27  ;;  %1003 = vmatprep.subr.bf16.mxu0 %v5200_v28  ;;  %v5269_v15 = vld [vmem:[%s7610_s1 + $0x520] ss:$8 sps:$4 sm:$0xff]   ;;  %v5277_v17 = vld [vmem:[%s7610_s1 + $0x534] ss:$8 sps:$4 sm:$0xff]   ;;  %v5272_v18 = vld [vmem:[%s7610_s1 + $0x130] ss:$8 sps:$4 sm:$0xff]  }
  0x21   : > { %1948 = vmatprep.subr.bf16.mxu1 %v5202_v29  ;;  %v5275_v19 = vld [vmem:[%s7610_s1 + $0x530] ss:$8 sps:$4 sm:$0xff]   ;;  %v5280_v20 = vld [vmem:[%s7610_s1 + $0x144] ss:$8 sps:$4 sm:$0xff]   ;;  %v5278_v22 = vld [vmem:[%s7610_s1 + $0x140] ss:$8 sps:$4 sm:$0xff]  }
  0x22   : > { %v5283_v21 = vld [vmem:[%s7610_s1 + $0x544] ss:$8 sps:$4 sm:$0xff]   ;;  %v5281_v23 = vld [vmem:[%s7610_s1 + $0x540] ss:$8 sps:$4 sm:$0xff]   ;;  %v5286_v24 = vld [vmem:[%s7610_s1 + $0x154] ss:$8 sps:$4 sm:$0xff]  }
  0x23   : > { %1004 = vmatpush1.bf16.msra.mxu0 %v5204_v30  ;;  %v5289_v25 = vld [vmem:[%s7610_s1 + $0x554] ss:$8 sps:$4 sm:$0xff]   ;;  %v5284_v26 = vld [vmem:[%s7610_s1 + $0x150] ss:$8 sps:$4 sm:$0xff]   ;;  %v5292_v28 = vld [vmem:[%s7610_s1 + $0x164] ss:$8 sps:$4 sm:$0xff]  }
  0x24   : > { %1949 = vmatpush1.bf16.msra.mxu1 %v5205_v31  ;;  %1005 = vmatprep.subr.bf16.mxu0 %v5206_v32  ;;  %v5287_v27 = vld [vmem:[%s7610_s1 + $0x550] ss:$8 sps:$4 sm:$0xff]   ;;  %v5295_v29 = vld [vmem:[%s7610_s1 + $0x564] ss:$8 sps:$4 sm:$0xff]   ;;  %v5290_v32 = vld [vmem:[%s7610_s1 + $0x160] ss:$8 sps:$4 sm:$0xff]  }
  0x25   : > { %1950 = vmatprep.subr.bf16.mxu1 %v5208_v33  ;;  %v6252_v30 = vld [vmem:[%s6109_s30 + $0x8] sm:$0xff]  ;;  %v5311_v46 = vld [vmem:[%s7610_s1 + $0x590] ss:$8 sps:$4 sm:$0xff]  }
  0x26   : > { %v6255_v31 = vld [vmem:[%s6109_s30 + $0x28] sm:$0xff] }
  0x27   : > { %1006 = vmatpush1.bf16.msra.mxu0 %v5210_v34  ;;  %v5293_v33 = vld [vmem:[%s7610_s1 + $0x560] ss:$8 sps:$4 sm:$0xff]   ;;  %v4177_v34 = vcombine.high %v6252_v30, %v6255_v31  ;;  %v5316_v47 = vld [vmem:[%s7610_s1 + $0x1a4] ss:$8 sps:$4 sm:$0xff]  }
  0x28   : > { %1951 = vmatpush1.bf16.msra.mxu1 %v5211_v35  ;;  %1007 = vmatprep.subr.bf16.mxu0 %v5212_v36  ;;  %v5298_v35 = vld [vmem:[%s7610_s1 + $0x174] ss:$8 sps:$4 sm:$0xff]   ;;  %v5317_v50 = vld [vmem:[%s7610_s1 + $0x5a0] ss:$8 sps:$4 sm:$0xff]  }
  0x29   : > { %1952 = vmatprep.subr.bf16.mxu1 %v5214_v37  ;;  %v5301_v36 = vld [vmem:[%s7610_s1 + $0x574] ss:$8 sps:$4 sm:$0xff]   ;;  %v5296_v37 = vld [vmem:[%s7610_s1 + $0x170] ss:$8 sps:$4 sm:$0xff]  }
  0x2b   : > { %1008 = vmatpush1.bf16.msra.mxu0 %v5216_v38  ;;  %v5299_v38 = vld [vmem:[%s7610_s1 + $0x570] ss:$8 sps:$4 sm:$0xff]  }
  0x2c   : > { %1953 = vmatpush1.bf16.msra.mxu1 %v5217_v39  ;;  %1009 = vmatprep.subr.bf16.mxu0 %v5218_v40  ;;  %v5304_v39 = vld [vmem:[%s7610_s1 + $0x184] ss:$8 sps:$4 sm:$0xff]  }
  0x2d   : > { %1954 = vmatprep.subr.bf16.mxu1 %v5220_v41  ;;  %v5307_v40 = vld [vmem:[%s7610_s1 + $0x584] ss:$8 sps:$4 sm:$0xff]   ;;  %v5302_v41 = vld [vmem:[%s7610_s1 + $0x180] ss:$8 sps:$4 sm:$0xff]  }
  0x2f   : > { %1010 = vmatpush1.bf16.msra.mxu0 %v5222_v42  ;;  %v5305_v42 = vld [vmem:[%s7610_s1 + $0x580] ss:$8 sps:$4 sm:$0xff]  }
  0x30   : > { %1955 = vmatpush1.bf16.msra.mxu1 %v5223_v43  ;;  %1011 = vmatprep.subr.bf16.mxu0 %v5224_v44  ;;  %v5310_v43 = vld [vmem:[%s7610_s1 + $0x194] ss:$8 sps:$4 sm:$0xff]  }
  0x31   : > { %1956 = vmatprep.subr.bf16.mxu1 %v5226_v45  ;;  %v5313_v44 = vld [vmem:[%s7610_s1 + $0x594] ss:$8 sps:$4 sm:$0xff]   ;;  %v5308_v45 = vld [vmem:[%s7610_s1 + $0x190] ss:$8 sps:$4 sm:$0xff]  }
  0x33   : > { %1012 = vmatpush1.bf16.msra.mxu0 %v5228_v48  ;;  %v5319_v48 = vld [vmem:[%s7610_s1 + $0x5a4] ss:$8 sps:$4 sm:$0xff]  }
  0x34   : > { %1957 = vmatpush1.bf16.msra.mxu1 %v5229_v49  ;;  %1013 = vmatprep.subr.bf16.mxu0 %v5230_v51  ;;  %v5314_v49 = vld [vmem:[%s7610_s1 + $0x1a0] ss:$8 sps:$4 sm:$0xff]   ;;  %v5322_v51 = vld [vmem:[%s7610_s1 + $0x1b4] ss:$8 sps:$4 sm:$0xff]  }
  0x35   : > { %1958 = vmatprep.subr.bf16.mxu1 %v5232_v52  ;;  %v5325_v52 = vld [vmem:[%s7610_s1 + $0x5b4] ss:$8 sps:$4 sm:$0xff]  }
  0x37   : > { %1014 = vmatpush1.bf16.msra.mxu0 %v5234_v53  ;;  %v5320_v53 = vld [vmem:[%s7610_s1 + $0x1b0] ss:$8 sps:$4 sm:$0xff]  }
  0x38   : > { %1959 = vmatpush1.bf16.msra.mxu1 %v5235_v54  ;;  %1015 = vmatprep.subr.bf16.mxu0 %v5236_v55  ;;  %v5323_v54 = vld [vmem:[%s7610_s1 + $0x5b0] ss:$8 sps:$4 sm:$0xff]   ;;  %v5328_v55 = vld [vmem:[%s7610_s1 + $0x1c4] ss:$8 sps:$4 sm:$0xff]  }
  0x39   : > { %1960 = vmatprep.subr.bf16.mxu1 %v5238_v56  ;;  %v5331_v56 = vld [vmem:[%s7610_s1 + $0x5c4] ss:$8 sps:$4 sm:$0xff]  }
  0x3b   : > { %1016 = vmatpush1.bf16.msra.mxu0 %v5240_v57  ;;  %v5326_v57 = vld [vmem:[%s7610_s1 + $0x1c0] ss:$8 sps:$4 sm:$0xff]  }
  0x3c   : > { %1961 = vmatpush1.bf16.msra.mxu1 %v5241_v58  ;;  %1017 = vmatprep.subr.bf16.mxu0 %v5242_v59  ;;  %v5329_v58 = vld [vmem:[%s7610_s1 + $0x5c0] ss:$8 sps:$4 sm:$0xff]   ;;  %v5334_v59 = vld [vmem:[%s7610_s1 + $0x1d4] ss:$8 sps:$4 sm:$0xff]  }
  0x3d   : > { %1962 = vmatprep.subr.bf16.mxu1 %v5244_v60  ;;  %v5337_v60 = vld [vmem:[%s7610_s1 + $0x5d4] ss:$8 sps:$4 sm:$0xff]  }
  0x3f   : > { %1018 = vmatpush1.bf16.msra.mxu0 %v5246_v61  ;;  %v5332_v61 = vld [vmem:[%s7610_s1 + $0x1d0] ss:$8 sps:$4 sm:$0xff]  }
  0x40   : > { %1963 = vmatpush1.bf16.msra.mxu1 %v5247_v62  ;;  %1019 = vmatprep.subr.bf16.mxu0 %v5248_v63  ;;  %v5335_v62 = vld [vmem:[%s7610_s1 + $0x5d0] ss:$8 sps:$4 sm:$0xff]   ;;  %v5340_v63 = vld [vmem:[%s7610_s1 + $0x1e4] ss:$8 sps:$4 sm:$0xff]  }
  0x41   : > { %1964 = vmatprep.subr.bf16.mxu1 %v5250_v0  ;;  %v5343_v0 = vld [vmem:[%s7610_s1 + $0x5e4] ss:$8 sps:$4 sm:$0xff]  }
  0x43   : > { %1020 = vmatpush1.bf16.msra.mxu0 %v5252_v1  ;;  %v5338_v1 = vld [vmem:[%s7610_s1 + $0x1e0] ss:$8 sps:$4 sm:$0xff]  }
  0x44   : > { %1965 = vmatpush1.bf16.msra.mxu1 %v5253_v2  ;;  %1032 = vmatprep.subr.bf16.mxu0 %v5256_v3  ;;  %v5341_v2 = vld [vmem:[%s7610_s1 + $0x5e0] ss:$8 sps:$4 sm:$0xff]   ;;  %v5346_v3 = vld [vmem:[%s7610_s1 + $0x1f4] ss:$8 sps:$4 sm:$0xff]  }
  0x45   : > { %1977 = vmatprep.subr.bf16.mxu1 %v5259_v4  ;;  %v5349_v4 = vld [vmem:[%s7610_s1 + $0x5f4] ss:$8 sps:$4 sm:$0xff]  }
  0x46   : > { %1022 = vmatmul.mubr.bf16.vlgmr.msra.gmra.mrb[0].mxu0 %v4174_v5 }
  0x47   : > { %1967 = vmatmul.mubr.bf16.vlgmr.msra.gmra.mrb[0].mxu1 %v4174_v5  ;;  %1033 = vmatpush1.bf16.msra.mxu0 %v5254_v6  ;;  %v5344_v5 = vld [vmem:[%s7610_s1 + $0x1f0] ss:$8 sps:$4 sm:$0xff]  }
  0x48   : > { %1978 = vmatpush1.bf16.msra.mxu1 %v5257_v7  ;;  %1034 = vmatprep.subr.bf16.mxu0 %v5262_v8  ;;  %v5347_v6 = vld [vmem:[%s7610_s1 + $0x5f0] ss:$8 sps:$4 sm:$0xff]   ;;  %v5352_v7 = vld [vmem:[%s7610_s1 + $0x204] ss:$8 sps:$4 sm:$0xff]  }
  0x49   : > { %1979 = vmatprep.subr.bf16.mxu1 %v5265_v9  ;;  %1064 = vmatprep.mubr.bf16.mxu0 %v4177_v34  ;;  %v5355_v8 = vld [vmem:[%s7610_s1 + $0x604] ss:$8 sps:$4 sm:$0xff]   ;;  %v4176_v9 = vcombine.low %v6252_v30, %v6255_v31  ;;  %v5377_v30 = vld [vmem:[%s7610_s1 + $0x640] ss:$8 sps:$4 sm:$0xff]   ;;  %v5382_v31 = vld [vmem:[%s7610_s1 + $0x254] ss:$8 sps:$4 sm:$0xff]  }
  0x4a   : > { %2009 = vmatprep.mubr.bf16.mxu1 %v4177_v34  ;;  %v5383_v34 = vld [vmem:[%s7610_s1 + $0x650] ss:$8 sps:$4 sm:$0xff]  }
  0x4b   : > { %1035 = vmatpush1.bf16.msra.mxu0 %v5260_v10  ;;  %v5350_v10 = vld [vmem:[%s7610_s1 + $0x200] ss:$8 sps:$4 sm:$0xff]  }
  0x4c   : > { %1980 = vmatpush1.bf16.msra.mxu1 %v5263_v11  ;;  %1036 = vmatprep.subr.bf16.mxu0 %v5268_v12  ;;  %v5353_v11 = vld [vmem:[%s7610_s1 + $0x600] ss:$8 sps:$4 sm:$0xff]   ;;  %v5358_v12 = vld [vmem:[%s7610_s1 + $0x214] ss:$8 sps:$4 sm:$0xff]  }
  0x4d   : > { %1981 = vmatprep.subr.bf16.mxu1 %v5271_v13  ;;  %v5361_v13 = vld [vmem:[%s7610_s1 + $0x614] ss:$8 sps:$4 sm:$0xff]  }
  0x4f   : > { %1037 = vmatpush1.bf16.msra.mxu0 %v5266_v14  ;;  %v6394_v14 = vld [vmem:[%s6109_s30 + $0x10] sm:$0xff] }
  0x50   : > { %1982 = vmatpush1.bf16.msra.mxu1 %v5269_v15  ;;  %1038 = vmatprep.subr.bf16.mxu0 %v5274_v16  ;;  %v6397_v15 = vld [vmem:[%s6109_s30 + $0x30] sm:$0xff] }
  0x51   : > { %1983 = vmatprep.subr.bf16.mxu1 %v5277_v17  ;;  %v4179_v16 = vcombine.high %v6394_v14, %v6397_v15  ;;  %v5356_v17 = vld [vmem:[%s7610_s1 + $0x210] ss:$8 sps:$4 sm:$0xff]  }
  0x53   : > { %1039 = vmatpush1.bf16.msra.mxu0 %v5272_v18  ;;  %v5359_v18 = vld [vmem:[%s7610_s1 + $0x610] ss:$8 sps:$4 sm:$0xff]  }
  0x54   : > { %1984 = vmatpush1.bf16.msra.mxu1 %v5275_v19  ;;  %1040 = vmatprep.subr.bf16.mxu0 %v5280_v20  ;;  %v5364_v19 = vld [vmem:[%s7610_s1 + $0x224] ss:$8 sps:$4 sm:$0xff]  }
  0x55   : > { %1985 = vmatprep.subr.bf16.mxu1 %v5283_v21  ;;  %v5367_v20 = vld [vmem:[%s7610_s1 + $0x624] ss:$8 sps:$4 sm:$0xff]   ;;  %v5362_v21 = vld [vmem:[%s7610_s1 + $0x220] ss:$8 sps:$4 sm:$0xff]  }
  0x57   : > { %1041 = vmatpush1.bf16.msra.mxu0 %v5278_v22  ;;  %v5365_v22 = vld [vmem:[%s7610_s1 + $0x620] ss:$8 sps:$4 sm:$0xff]  }
  0x58   : > { %1986 = vmatpush1.bf16.msra.mxu1 %v5281_v23  ;;  %1042 = vmatprep.subr.bf16.mxu0 %v5286_v24  ;;  %v5370_v23 = vld [vmem:[%s7610_s1 + $0x234] ss:$8 sps:$4 sm:$0xff]  }
  0x59   : > { %1987 = vmatprep.subr.bf16.mxu1 %v5289_v25  ;;  %v5373_v24 = vld [vmem:[%s7610_s1 + $0x634] ss:$8 sps:$4 sm:$0xff]   ;;  %v5368_v25 = vld [vmem:[%s7610_s1 + $0x230] ss:$8 sps:$4 sm:$0xff]  }
  0x5b   : > { %1043 = vmatpush1.bf16.msra.mxu0 %v5284_v26  ;;  %v5371_v26 = vld [vmem:[%s7610_s1 + $0x630] ss:$8 sps:$4 sm:$0xff]  }
  0x5c   : > { %1988 = vmatpush1.bf16.msra.mxu1 %v5287_v27  ;;  %1044 = vmatprep.subr.bf16.mxu0 %v5292_v28  ;;  %v5376_v27 = vld [vmem:[%s7610_s1 + $0x244] ss:$8 sps:$4 sm:$0xff]  }
  0x5d   : > { %1989 = vmatprep.subr.bf16.mxu1 %v5295_v29  ;;  %v5379_v28 = vld [vmem:[%s7610_s1 + $0x644] ss:$8 sps:$4 sm:$0xff]   ;;  %v5374_v29 = vld [vmem:[%s7610_s1 + $0x240] ss:$8 sps:$4 sm:$0xff]  }
  0x5f   : > { %1045 = vmatpush1.bf16.msra.mxu0 %v5290_v32  ;;  %v5385_v32 = vld [vmem:[%s7610_s1 + $0x654] ss:$8 sps:$4 sm:$0xff]  }
  0x60   : > { %1990 = vmatpush1.bf16.msra.mxu1 %v5293_v33  ;;  %1046 = vmatprep.subr.bf16.mxu0 %v5298_v35  ;;  %v5380_v33 = vld [vmem:[%s7610_s1 + $0x250] ss:$8 sps:$4 sm:$0xff]   ;;  %v5388_v35 = vld [vmem:[%s7610_s1 + $0x264] ss:$8 sps:$4 sm:$0xff]  }
  0x61   : > { %1991 = vmatprep.subr.bf16.mxu1 %v5301_v36  ;;  %v5391_v36 = vld [vmem:[%s7610_s1 + $0x664] ss:$8 sps:$4 sm:$0xff]  }
  0x63   : > { %1047 = vmatpush1.bf16.msra.mxu0 %v5296_v37  ;;  %v5386_v37 = vld [vmem:[%s7610_s1 + $0x260] ss:$8 sps:$4 sm:$0xff]  }
  0x64   : > { %1992 = vmatpush1.bf16.msra.mxu1 %v5299_v38  ;;  %1048 = vmatprep.subr.bf16.mxu0 %v5304_v39  ;;  %v5389_v38 = vld [vmem:[%s7610_s1 + $0x660] ss:$8 sps:$4 sm:$0xff]   ;;  %v5394_v39 = vld [vmem:[%s7610_s1 + $0x274] ss:$8 sps:$4 sm:$0xff]  }
  0x65   : > { %1993 = vmatprep.subr.bf16.mxu1 %v5307_v40  ;;  %v5397_v40 = vld [vmem:[%s7610_s1 + $0x674] ss:$8 sps:$4 sm:$0xff]  }
  0x67   : > { %1049 = vmatpush1.bf16.msra.mxu0 %v5302_v41  ;;  %v5392_v41 = vld [vmem:[%s7610_s1 + $0x270] ss:$8 sps:$4 sm:$0xff]  }
  0x68   : > { %1994 = vmatpush1.bf16.msra.mxu1 %v5305_v42  ;;  %1050 = vmatprep.subr.bf16.mxu0 %v5310_v43  ;;  %v5395_v42 = vld [vmem:[%s7610_s1 + $0x670] ss:$8 sps:$4 sm:$0xff]   ;;  %v5400_v43 = vld [vmem:[%s7610_s1 + $0x284] ss:$8 sps:$4 sm:$0xff]  }
  0x69   : > { %1995 = vmatprep.subr.bf16.mxu1 %v5313_v44  ;;  %v5403_v44 = vld [vmem:[%s7610_s1 + $0x684] ss:$8 sps:$4 sm:$0xff]  }
  0x6b   : > { %1051 = vmatpush1.bf16.msra.mxu0 %v5308_v45  ;;  %v5398_v45 = vld [vmem:[%s7610_s1 + $0x280] ss:$8 sps:$4 sm:$0xff]  }
  0x6c   : > { %1996 = vmatpush1.bf16.msra.mxu1 %v5311_v46  ;;  %1052 = vmatprep.subr.bf16.mxu0 %v5316_v47  ;;  %v5401_v46 = vld [vmem:[%s7610_s1 + $0x680] ss:$8 sps:$4 sm:$0xff]   ;;  %v5406_v47 = vld [vmem:[%s7610_s1 + $0x294] ss:$8 sps:$4 sm:$0xff]  }
  0x6d   : > { %1997 = vmatprep.subr.bf16.mxu1 %v5319_v48  ;;  %v5409_v48 = vld [vmem:[%s7610_s1 + $0x694] ss:$8 sps:$4 sm:$0xff]  }
  0x6f   : > { %1053 = vmatpush1.bf16.msra.mxu0 %v5314_v49  ;;  %v5404_v49 = vld [vmem:[%s7610_s1 + $0x290] ss:$8 sps:$4 sm:$0xff]  }
  0x70   : > { %1998 = vmatpush1.bf16.msra.mxu1 %v5317_v50  ;;  %1054 = vmatprep.subr.bf16.mxu0 %v5322_v51  ;;  %v5407_v50 = vld [vmem:[%s7610_s1 + $0x690] ss:$8 sps:$4 sm:$0xff]   ;;  %v5412_v51 = vld [vmem:[%s7610_s1 + $0x2a4] ss:$8 sps:$4 sm:$0xff]  }
  0x71   : > { %1999 = vmatprep.subr.bf16.mxu1 %v5325_v52  ;;  %v5415_v52 = vld [vmem:[%s7610_s1 + $0x6a4] ss:$8 sps:$4 sm:$0xff]  }
  0x73   : > { %1055 = vmatpush1.bf16.msra.mxu0 %v5320_v53  ;;  %v5410_v53 = vld [vmem:[%s7610_s1 + $0x2a0] ss:$8 sps:$4 sm:$0xff]  }
  0x74   : > { %2000 = vmatpush1.bf16.msra.mxu1 %v5323_v54  ;;  %1056 = vmatprep.subr.bf16.mxu0 %v5328_v55  ;;  %v5413_v54 = vld [vmem:[%s7610_s1 + $0x6a0] ss:$8 sps:$4 sm:$0xff]   ;;  %v5418_v55 = vld [vmem:[%s7610_s1 + $0x2b4] ss:$8 sps:$4 sm:$0xff]  }
  0x75   : > { %2001 = vmatprep.subr.bf16.mxu1 %v5331_v56  ;;  %v5421_v56 = vld [vmem:[%s7610_s1 + $0x6b4] ss:$8 sps:$4 sm:$0xff]  }
  0x77   : > { %1057 = vmatpush1.bf16.msra.mxu0 %v5326_v57  ;;  %v5416_v57 = vld [vmem:[%s7610_s1 + $0x2b0] ss:$8 sps:$4 sm:$0xff]  }
  0x78   : > { %2002 = vmatpush1.bf16.msra.mxu1 %v5329_v58  ;;  %1058 = vmatprep.subr.bf16.mxu0 %v5334_v59  ;;  %v5419_v58 = vld [vmem:[%s7610_s1 + $0x6b0] ss:$8 sps:$4 sm:$0xff]   ;;  %v5424_v59 = vld [vmem:[%s7610_s1 + $0x2c4] ss:$8 sps:$4 sm:$0xff]  }
  0x79   : > { %2003 = vmatprep.subr.bf16.mxu1 %v5337_v60  ;;  %v5427_v60 = vld [vmem:[%s7610_s1 + $0x6c4] ss:$8 sps:$4 sm:$0xff]  }
  0x7b   : > { %1059 = vmatpush1.bf16.msra.mxu0 %v5332_v61  ;;  %v5422_v61 = vld [vmem:[%s7610_s1 + $0x2c0] ss:$8 sps:$4 sm:$0xff]  }
  0x7c   : > { %2004 = vmatpush1.bf16.msra.mxu1 %v5335_v62  ;;  %1060 = vmatprep.subr.bf16.mxu0 %v5340_v63  ;;  %v5425_v62 = vld [vmem:[%s7610_s1 + $0x6c0] ss:$8 sps:$4 sm:$0xff]   ;;  %v5430_v63 = vld [vmem:[%s7610_s1 + $0x2d4] ss:$8 sps:$4 sm:$0xff]  }
  0x7d   : > { %2005 = vmatprep.subr.bf16.mxu1 %v5343_v0  ;;  %v5433_v0 = vld [vmem:[%s7610_s1 + $0x6d4] ss:$8 sps:$4 sm:$0xff]  }
  0x7f   : > { %1061 = vmatpush1.bf16.msra.mxu0 %v5338_v1  ;;  %v5428_v1 = vld [vmem:[%s7610_s1 + $0x2d0] ss:$8 sps:$4 sm:$0xff]  }
  0x80   : > { %2006 = vmatpush1.bf16.msra.mxu1 %v5341_v2  ;;  %1062 = vmatprep.subr.bf16.mxu0 %v5346_v3  ;;  %v5431_v2 = vld [vmem:[%s7610_s1 + $0x6d0] ss:$8 sps:$4 sm:$0xff]   ;;  %v5436_v3 = vld [vmem:[%s7610_s1 + $0x2e4] ss:$8 sps:$4 sm:$0xff]  }
  0x81   : > { %2007 = vmatprep.subr.bf16.mxu1 %v5349_v4  ;;  %v5439_v4 = vld [vmem:[%s7610_s1 + $0x6e4] ss:$8 sps:$4 sm:$0xff]  }
  0x83   : > { %1063 = vmatpush1.bf16.msra.mxu0 %v5344_v5  ;;  %v5434_v5 = vld [vmem:[%s7610_s1 + $0x2e0] ss:$8 sps:$4 sm:$0xff]  }
  0x84   : > { %2008 = vmatpush1.bf16.msra.mxu1 %v5347_v6  ;;  %1075 = vmatprep.subr.bf16.mxu0 %v5352_v7  ;;  %v5437_v6 = vld [vmem:[%s7610_s1 + $0x6e0] ss:$8 sps:$4 sm:$0xff]   ;;  %v5442_v7 = vld [vmem:[%s7610_s1 + $0x2f4] ss:$8 sps:$4 sm:$0xff]  }
  0x85   : > { %2020 = vmatprep.subr.bf16.mxu1 %v5355_v8  ;;  %v5445_v8 = vld [vmem:[%s7610_s1 + $0x6f4] ss:$8 sps:$4 sm:$0xff]  }
  0x86   : > { %1065 = vmatmul.mubr.bf16.vlgmr.msra.gmra.mrb[0].mxu0 %v4176_v9 }
  0x87   : > { %2010 = vmatmul.mubr.bf16.vlgmr.msra.gmra.mrb[0].mxu1 %v4176_v9  ;;  %1076 = vmatpush1.bf16.msra.mxu0 %v5350_v10  ;;  %v5440_v9 = vld [vmem:[%s7610_s1 + $0x2f0] ss:$8 sps:$4 sm:$0xff]  }
  0x88   : > { %2021 = vmatpush1.bf16.msra.mxu1 %v5353_v11  ;;  %1077 = vmatprep.subr.bf16.mxu0 %v5358_v12  ;;  %v5443_v10 = vld [vmem:[%s7610_s1 + $0x6f0] ss:$8 sps:$4 sm:$0xff]   ;;  %v5448_v11 = vld [vmem:[%s7610_s1 + $0x304] ss:$8 sps:$4 sm:$0xff]  }
  0x89   : > { %2022 = vmatprep.subr.bf16.mxu1 %v5361_v13  ;;  %1107 = vmatprep.mubr.bf16.mxu0 %v4179_v16  ;;  %v5451_v12 = vld [vmem:[%s7610_s1 + $0x704] ss:$8 sps:$4 sm:$0xff]   ;;  %v5446_v13 = vld [vmem:[%s7610_s1 + $0x300] ss:$8 sps:$4 sm:$0xff]  }
  0x8a   : > { %2052 = vmatprep.mubr.bf16.mxu1 %v4179_v16  ;;  %v5449_v16 = vld [vmem:[%s7610_s1 + $0x700] ss:$8 sps:$4 sm:$0xff]  }
  0x8b   : > { %1078 = vmatpush1.bf16.msra.mxu0 %v5356_v17  ;;  %v4178_v17 = vcombine.low %v6394_v14, %v6397_v15  ;;  %v5452_v14 = vld [vmem:[%s7610_s1 + $0x310] ss:$8 sps:$4 sm:$0xff]  }
  0x8c   : > { %2023 = vmatpush1.bf16.msra.mxu1 %v5359_v18  ;;  %1079 = vmatprep.subr.bf16.mxu0 %v5364_v19  ;;  %v6590_v18 = vld [vmem:[%s6109_s30 + $0x18] sm:$0xff] }
  0x8d   : > { %2024 = vmatprep.subr.bf16.mxu1 %v5367_v20  ;;  %v6593_v19 = vld [vmem:[%s6109_s30 + $0x38] sm:$0xff] }
  0x8e   : > { %v5454_v20 = vld [vmem:[%s7610_s1 + $0x314] ss:$8 sps:$4 sm:$0xff]   ;;  %v5455_v15 = vld [vmem:[%s7610_s1 + $0x710] ss:$8 sps:$4 sm:$0xff]  }
  0x8f   : > { %1080 = vmatpush1.bf16.msra.mxu0 %v5362_v21  ;;  %v5457_v21 = vld [vmem:[%s7610_s1 + $0x714] ss:$8 sps:$4 sm:$0xff]  }
  0x90   : > { %2025 = vmatpush1.bf16.msra.mxu1 %v5365_v22  ;;  %1081 = vmatprep.subr.bf16.mxu0 %v5370_v23  ;;  %v4181_v22 = vcombine.high %v6590_v18, %v6593_v19  ;;  %v5460_v23 = vld [vmem:[%s7610_s1 + $0x324] ss:$8 sps:$4 sm:$0xff]  }
  0x91   : > { %2026 = vmatprep.subr.bf16.mxu1 %v5373_v24  ;;  %v5463_v24 = vld [vmem:[%s7610_s1 + $0x724] ss:$8 sps:$4 sm:$0xff]  }
  0x93   : > { %1082 = vmatpush1.bf16.msra.mxu0 %v5368_v25  ;;  %v5458_v25 = vld [vmem:[%s7610_s1 + $0x320] ss:$8 sps:$4 sm:$0xff]  }
  0x94   : > { %2027 = vmatpush1.bf16.msra.mxu1 %v5371_v26  ;;  %1083 = vmatprep.subr.bf16.mxu0 %v5376_v27  ;;  %v5461_v26 = vld [vmem:[%s7610_s1 + $0x720] ss:$8 sps:$4 sm:$0xff]   ;;  %v5466_v27 = vld [vmem:[%s7610_s1 + $0x334] ss:$8 sps:$4 sm:$0xff]  }
  0x95   : > { %2028 = vmatprep.subr.bf16.mxu1 %v5379_v28  ;;  %v5469_v28 = vld [vmem:[%s7610_s1 + $0x734] ss:$8 sps:$4 sm:$0xff]  }
  0x97   : > { %1084 = vmatpush1.bf16.msra.mxu0 %v5374_v29  ;;  %v5464_v29 = vld [vmem:[%s7610_s1 + $0x330] ss:$8 sps:$4 sm:$0xff]  }
  0x98   : > { %2029 = vmatpush1.bf16.msra.mxu1 %v5377_v30  ;;  %1085 = vmatprep.subr.bf16.mxu0 %v5382_v31  ;;  %v5467_v30 = vld [vmem:[%s7610_s1 + $0x730] ss:$8 sps:$4 sm:$0xff]   ;;  %v5472_v31 = vld [vmem:[%s7610_s1 + $0x344] ss:$8 sps:$4 sm:$0xff]  }
  0x99   : > { %2030 = vmatprep.subr.bf16.mxu1 %v5385_v32  ;;  %v5475_v32 = vld [vmem:[%s7610_s1 + $0x744] ss:$8 sps:$4 sm:$0xff]  }
  0x9b   : > { %1086 = vmatpush1.bf16.msra.mxu0 %v5380_v33  ;;  %v5470_v33 = vld [vmem:[%s7610_s1 + $0x340] ss:$8 sps:$4 sm:$0xff]  }
  0x9c   : > { %2031 = vmatpush1.bf16.msra.mxu1 %v5383_v34  ;;  %1087 = vmatprep.subr.bf16.mxu0 %v5388_v35  ;;  %v5473_v34 = vld [vmem:[%s7610_s1 + $0x740] ss:$8 sps:$4 sm:$0xff]   ;;  %v5478_v35 = vld [vmem:[%s7610_s1 + $0x354] ss:$8 sps:$4 sm:$0xff]  }
  0x9d   : > { %2032 = vmatprep.subr.bf16.mxu1 %v5391_v36  ;;  %v5481_v36 = vld [vmem:[%s7610_s1 + $0x754] ss:$8 sps:$4 sm:$0xff]  }
  0x9f   : > { %1088 = vmatpush1.bf16.msra.mxu0 %v5386_v37  ;;  %v5476_v37 = vld [vmem:[%s7610_s1 + $0x350] ss:$8 sps:$4 sm:$0xff]  }
  0xa0   : > { %2033 = vmatpush1.bf16.msra.mxu1 %v5389_v38  ;;  %1089 = vmatprep.subr.bf16.mxu0 %v5394_v39  ;;  %v5479_v38 = vld [vmem:[%s7610_s1 + $0x750] ss:$8 sps:$4 sm:$0xff]   ;;  %v5484_v39 = vld [vmem:[%s7610_s1 + $0x364] ss:$8 sps:$4 sm:$0xff]  }
  0xa1   : > { %2034 = vmatprep.subr.bf16.mxu1 %v5397_v40  ;;  %v5487_v40 = vld [vmem:[%s7610_s1 + $0x764] ss:$8 sps:$4 sm:$0xff]  }
  0xa3   : > { %1090 = vmatpush1.bf16.msra.mxu0 %v5392_v41  ;;  %v5482_v41 = vld [vmem:[%s7610_s1 + $0x360] ss:$8 sps:$4 sm:$0xff]  }
  0xa4   : > { %2035 = vmatpush1.bf16.msra.mxu1 %v5395_v42  ;;  %1091 = vmatprep.subr.bf16.mxu0 %v5400_v43  ;;  %v5485_v42 = vld [vmem:[%s7610_s1 + $0x760] ss:$8 sps:$4 sm:$0xff]   ;;  %v5490_v43 = vld [vmem:[%s7610_s1 + $0x374] ss:$8 sps:$4 sm:$0xff]  }
  0xa5   : > { %2036 = vmatprep.subr.bf16.mxu1 %v5403_v44  ;;  %v5493_v44 = vld [vmem:[%s7610_s1 + $0x774] ss:$8 sps:$4 sm:$0xff]  }
  0xa7   : > { %1092 = vmatpush1.bf16.msra.mxu0 %v5398_v45  ;;  %v5488_v45 = vld [vmem:[%s7610_s1 + $0x370] ss:$8 sps:$4 sm:$0xff]  }
  0xa8   : > { %2037 = vmatpush1.bf16.msra.mxu1 %v5401_v46  ;;  %1093 = vmatprep.subr.bf16.mxu0 %v5406_v47  ;;  %v5491_v46 = vld [vmem:[%s7610_s1 + $0x770] ss:$8 sps:$4 sm:$0xff]   ;;  %v5496_v47 = vld [vmem:[%s7610_s1 + $0x384] ss:$8 sps:$4 sm:$0xff]  }
  0xa9   : > { %2038 = vmatprep.subr.bf16.mxu1 %v5409_v48  ;;  %v5499_v48 = vld [vmem:[%s7610_s1 + $0x784] ss:$8 sps:$4 sm:$0xff]  }
  0xab   : > { %1094 = vmatpush1.bf16.msra.mxu0 %v5404_v49  ;;  %v5494_v49 = vld [vmem:[%s7610_s1 + $0x380] ss:$8 sps:$4 sm:$0xff]  }
  0xac   : > { %2039 = vmatpush1.bf16.msra.mxu1 %v5407_v50  ;;  %1095 = vmatprep.subr.bf16.mxu0 %v5412_v51  ;;  %v5497_v50 = vld [vmem:[%s7610_s1 + $0x780] ss:$8 sps:$4 sm:$0xff]   ;;  %v5502_v51 = vld [vmem:[%s7610_s1 + $0x394] ss:$8 sps:$4 sm:$0xff]  }
  0xad   : > { %2040 = vmatprep.subr.bf16.mxu1 %v5415_v52  ;;  %v5505_v52 = vld [vmem:[%s7610_s1 + $0x794] ss:$8 sps:$4 sm:$0xff]  }
  0xaf   : > { %1096 = vmatpush1.bf16.msra.mxu0 %v5410_v53  ;;  %v5500_v53 = vld [vmem:[%s7610_s1 + $0x390] ss:$8 sps:$4 sm:$0xff]  }
  0xb0   : > { %2041 = vmatpush1.bf16.msra.mxu1 %v5413_v54  ;;  %1097 = vmatprep.subr.bf16.mxu0 %v5418_v55  ;;  %v5503_v54 = vld [vmem:[%s7610_s1 + $0x790] ss:$8 sps:$4 sm:$0xff]   ;;  %v5508_v55 = vld [vmem:[%s7610_s1 + $0x3a4] ss:$8 sps:$4 sm:$0xff]  }
  0xb1   : > { %2042 = vmatprep.subr.bf16.mxu1 %v5421_v56  ;;  %v5511_v56 = vld [vmem:[%s7610_s1 + $0x7a4] ss:$8 sps:$4 sm:$0xff]  }
  0xb3   : > { %1098 = vmatpush1.bf16.msra.mxu0 %v5416_v57  ;;  %v5506_v57 = vld [vmem:[%s7610_s1 + $0x3a0] ss:$8 sps:$4 sm:$0xff]  }
  0xb4   : > { %2043 = vmatpush1.bf16.msra.mxu1 %v5419_v58  ;;  %1099 = vmatprep.subr.bf16.mxu0 %v5424_v59  ;;  %v5509_v58 = vld [vmem:[%s7610_s1 + $0x7a0] ss:$8 sps:$4 sm:$0xff]   ;;  %v5514_v59 = vld [vmem:[%s7610_s1 + $0x3b4] ss:$8 sps:$4 sm:$0xff]  }
  0xb5   : > { %2044 = vmatprep.subr.bf16.mxu1 %v5427_v60  ;;  %v5517_v60 = vld [vmem:[%s7610_s1 + $0x7b4] ss:$8 sps:$4 sm:$0xff]  }
  0xb7   : > { %1100 = vmatpush1.bf16.msra.mxu0 %v5422_v61  ;;  %v5512_v61 = vld [vmem:[%s7610_s1 + $0x3b0] ss:$8 sps:$4 sm:$0xff]  }
  0xb8   : > { %2045 = vmatpush1.bf16.msra.mxu1 %v5425_v62  ;;  %1101 = vmatprep.subr.bf16.mxu0 %v5430_v63  ;;  %v5515_v62 = vld [vmem:[%s7610_s1 + $0x7b0] ss:$8 sps:$4 sm:$0xff]   ;;  %v5520_v63 = vld [vmem:[%s7610_s1 + $0x3c4] ss:$8 sps:$4 sm:$0xff]  }
  0xb9   : > { %2046 = vmatprep.subr.bf16.mxu1 %v5433_v0  ;;  %v5523_v0 = vld [vmem:[%s7610_s1 + $0x7c4] ss:$8 sps:$4 sm:$0xff]  }
  0xbb   : > { %1102 = vmatpush1.bf16.msra.mxu0 %v5428_v1  ;;  %v5518_v1 = vld [vmem:[%s7610_s1 + $0x3c0] ss:$8 sps:$4 sm:$0xff]  }
  0xbc   : > { %2047 = vmatpush1.bf16.msra.mxu1 %v5431_v2  ;;  %1103 = vmatprep.subr.bf16.mxu0 %v5436_v3  ;;  %v5521_v2 = vld [vmem:[%s7610_s1 + $0x7c0] ss:$8 sps:$4 sm:$0xff]   ;;  %v5526_v3 = vld [vmem:[%s7610_s1 + $0x3d4] ss:$8 sps:$4 sm:$0xff]  }
  0xbd   : > { %2048 = vmatprep.subr.bf16.mxu1 %v5439_v4  ;;  %v5529_v4 = vld [vmem:[%s7610_s1 + $0x7d4] ss:$8 sps:$4 sm:$0xff]  }
  0xbf   : > { %1104 = vmatpush1.bf16.msra.mxu0 %v5434_v5  ;;  %v5524_v5 = vld [vmem:[%s7610_s1 + $0x3d0] ss:$8 sps:$4 sm:$0xff]  }
  0xc0   : > { %2049 = vmatpush1.bf16.msra.mxu1 %v5437_v6  ;;  %1105 = vmatprep.subr.bf16.mxu0 %v5442_v7  ;;  %v5527_v6 = vld [vmem:[%s7610_s1 + $0x7d0] ss:$8 sps:$4 sm:$0xff]   ;;  %v5532_v7 = vld [vmem:[%s7610_s1 + $0x3e4] ss:$8 sps:$4 sm:$0xff]  }
  0xc1   : > { %2050 = vmatprep.subr.bf16.mxu1 %v5445_v8  ;;  %v5535_v8 = vld [vmem:[%s7610_s1 + $0x7e4] ss:$8 sps:$4 sm:$0xff]  }
  0xc3   : > { %1106 = vmatpush1.bf16.msra.mxu0 %v5440_v9  ;;  %v5530_v9 = vld [vmem:[%s7610_s1 + $0x3e0] ss:$8 sps:$4 sm:$0xff]  }
  0xc4   : > { %2051 = vmatpush1.bf16.msra.mxu1 %v5443_v10  ;;  %1118 = vmatprep.subr.bf16.mxu0 %v5448_v11  ;;  %v5533_v10 = vld [vmem:[%s7610_s1 + $0x7e0] ss:$8 sps:$4 sm:$0xff]   ;;  %v5538_v11 = vld [vmem:[%s7610_s1 + $0x3f4] ss:$8 sps:$4 sm:$0xff]  }
  0xc5   : > { %2063 = vmatprep.subr.bf16.mxu1 %v5451_v12  ;;  %v5541_v12 = vld [vmem:[%s7610_s1 + $0x7f4] ss:$8 sps:$4 sm:$0xff]  }
  0xc6   : > { %1108 = vmatmul.mubr.bf16.vlgmr.msra.gmra.mrb[0].mxu0 %v4178_v17 }
  0xc7   : > { %2053 = vmatmul.mubr.bf16.vlgmr.msra.gmra.mrb[0].mxu1 %v4178_v17  ;;  %1119 = vmatpush1.bf16.msra.mxu0 %v5446_v13  ;;  %v5536_v13 = vld [vmem:[%s7610_s1 + $0x3f0] ss:$8 sps:$4 sm:$0xff]   ;;  %v5544_v17 = vld [vmem:[%s7610_s1 + $0x804] ss:$8 sps:$4 sm:$0xff]  }
  0xc8   : > { %2064 = vmatpush1.bf16.msra.mxu1 %v5449_v16  ;;  %1120 = vmatprep.subr.bf16.mxu0 %v5454_v20  ;;  %v5539_v16 = vld [vmem:[%s7610_s1 + $0x7f0] ss:$8 sps:$4 sm:$0xff]   ;;  %v5547_v20 = vld [vmem:[%s7610_s1 + $0xc04] ss:$8 sps:$4 sm:$0xff]  }
  0xc9   : > { %2065 = vmatprep.subr.bf16.mxu1 %v5457_v21  ;;  %2095 = vmatprep.mubr.bf16.mxu1 %v4181_v22  ;;  %v5542_v21 = vld [vmem:[%s7610_s1 + $0x800] ss:$8 sps:$4 sm:$0xff]  }
  0xca   : > { %1150 = vmatprep.mubr.bf16.mxu0 %v4181_v22  ;;  %v4180_v22 = vcombine.low %v6590_v18, %v6593_v19  ;;  %v5548_v19 = vld [vmem:[%s7610_s1 + $0x810] ss:$8 sps:$4 sm:$0xff]  }
  0xcb   : > { %1121 = vmatpush1.bf16.msra.mxu0 %v5452_v14  ;;  %v6789_v14 = vld [vmem:[%s6109_s30 + $0x40] sm:$0xff] }
  0xcc   : > { %2066 = vmatpush1.bf16.msra.mxu1 %v5455_v15  ;;  %1122 = vmatprep.subr.bf16.mxu0 %v5460_v23  ;;  %v5545_v15 = vld [vmem:[%s7610_s1 + $0xc00] ss:$8 sps:$4 sm:$0xff]   ;;  %v5550_v23 = vld [vmem:[%s7610_s1 + $0x814] ss:$8 sps:$4 sm:$0xff]  }
  0xcd   : > { %2067 = vmatprep.subr.bf16.mxu1 %v5463_v24  ;;  %v5553_v24 = vld [vmem:[%s7610_s1 + $0xc14] ss:$8 sps:$4 sm:$0xff]  }
  0xcf   : > { %1123 = vmatpush1.bf16.msra.mxu0 %v5458_v25  ;;  %v6801_v25 = vld [vmem:[%s6109_s30 + $0x20] sm:$0xff] }
  0xd0   : > { %2068 = vmatpush1.bf16.msra.mxu1 %v5461_v26  ;;  %1124 = vmatprep.subr.bf16.mxu0 %v5466_v27  ;;  %v4695_v18 = vcombine.high %v6801_v25, %v6789_v14  ;;  %v5551_v26 = vld [vmem:[%s7610_s1 + $0xc10] ss:$8 sps:$4 sm:$0xff]   ;;  %v5556_v27 = vld [vmem:[%s7610_s1 + $0x824] ss:$8 sps:$4 sm:$0xff]  }
  0xd1   : > { %2069 = vmatprep.subr.bf16.mxu1 %v5469_v28  ;;  %v5559_v28 = vld [vmem:[%s7610_s1 + $0xc24] ss:$8 sps:$4 sm:$0xff]  }
  0xd3   : > { %1125 = vmatpush1.bf16.msra.mxu0 %v5464_v29  ;;  %v5554_v29 = vld [vmem:[%s7610_s1 + $0x820] ss:$8 sps:$4 sm:$0xff]  }
  0xd4   : > { %2070 = vmatpush1.bf16.msra.mxu1 %v5467_v30  ;;  %1126 = vmatprep.subr.bf16.mxu0 %v5472_v31  ;;  %v5557_v30 = vld [vmem:[%s7610_s1 + $0xc20] ss:$8 sps:$4 sm:$0xff]   ;;  %v5562_v31 = vld [vmem:[%s7610_s1 + $0x834] ss:$8 sps:$4 sm:$0xff]  }
  0xd5   : > { %2071 = vmatprep.subr.bf16.mxu1 %v5475_v32  ;;  %v5565_v32 = vld [vmem:[%s7610_s1 + $0xc34] ss:$8 sps:$4 sm:$0xff]  }
  0xd7   : > { %1127 = vmatpush1.bf16.msra.mxu0 %v5470_v33  ;;  %v5560_v33 = vld [vmem:[%s7610_s1 + $0x830] ss:$8 sps:$4 sm:$0xff]  }
  0xd8   : > { %2072 = vmatpush1.bf16.msra.mxu1 %v5473_v34  ;;  %1128 = vmatprep.subr.bf16.mxu0 %v5478_v35  ;;  %v5563_v34 = vld [vmem:[%s7610_s1 + $0xc30] ss:$8 sps:$4 sm:$0xff]   ;;  %v5568_v35 = vld [vmem:[%s7610_s1 + $0x844] ss:$8 sps:$4 sm:$0xff]  }
  0xd9   : > { %2073 = vmatprep.subr.bf16.mxu1 %v5481_v36  ;;  %v5571_v36 = vld [vmem:[%s7610_s1 + $0xc44] ss:$8 sps:$4 sm:$0xff]  }
  0xdb   : > { %1129 = vmatpush1.bf16.msra.mxu0 %v5476_v37  ;;  %v5566_v37 = vld [vmem:[%s7610_s1 + $0x840] ss:$8 sps:$4 sm:$0xff]  }
  0xdc   : > { %2074 = vmatpush1.bf16.msra.mxu1 %v5479_v38  ;;  %1130 = vmatprep.subr.bf16.mxu0 %v5484_v39  ;;  %v5569_v38 = vld [vmem:[%s7610_s1 + $0xc40] ss:$8 sps:$4 sm:$0xff]   ;;  %v5574_v39 = vld [vmem:[%s7610_s1 + $0x854] ss:$8 sps:$4 sm:$0xff]  }
  0xdd   : > { %2075 = vmatprep.subr.bf16.mxu1 %v5487_v40  ;;  %v5577_v40 = vld [vmem:[%s7610_s1 + $0xc54] ss:$8 sps:$4 sm:$0xff]  }
  0xdf   : > { %1131 = vmatpush1.bf16.msra.mxu0 %v5482_v41  ;;  %v5572_v41 = vld [vmem:[%s7610_s1 + $0x850] ss:$8 sps:$4 sm:$0xff]  }
  0xe0   : > { %2076 = vmatpush1.bf16.msra.mxu1 %v5485_v42  ;;  %1132 = vmatprep.subr.bf16.mxu0 %v5490_v43  ;;  %v5575_v42 = vld [vmem:[%s7610_s1 + $0xc50] ss:$8 sps:$4 sm:$0xff]   ;;  %v5580_v43 = vld [vmem:[%s7610_s1 + $0x864] ss:$8 sps:$4 sm:$0xff]  }
  0xe1   : > { %2077 = vmatprep.subr.bf16.mxu1 %v5493_v44  ;;  %v5583_v44 = vld [vmem:[%s7610_s1 + $0xc64] ss:$8 sps:$4 sm:$0xff]  }
  0xe3   : > { %1133 = vmatpush1.bf16.msra.mxu0 %v5488_v45  ;;  %v5578_v45 = vld [vmem:[%s7610_s1 + $0x860] ss:$8 sps:$4 sm:$0xff]  }
  0xe4   : > { %2078 = vmatpush1.bf16.msra.mxu1 %v5491_v46  ;;  %1134 = vmatprep.subr.bf16.mxu0 %v5496_v47  ;;  %v5581_v46 = vld [vmem:[%s7610_s1 + $0xc60] ss:$8 sps:$4 sm:$0xff]   ;;  %v5586_v47 = vld [vmem:[%s7610_s1 + $0x874] ss:$8 sps:$4 sm:$0xff]  }
  0xe5   : > { %2079 = vmatprep.subr.bf16.mxu1 %v5499_v48  ;;  %v5589_v48 = vld [vmem:[%s7610_s1 + $0xc74] ss:$8 sps:$4 sm:$0xff]  }
  0xe7   : > { %1135 = vmatpush1.bf16.msra.mxu0 %v5494_v49  ;;  %v5584_v49 = vld [vmem:[%s7610_s1 + $0x870] ss:$8 sps:$4 sm:$0xff]  }
  0xe8   : > { %2080 = vmatpush1.bf16.msra.mxu1 %v5497_v50  ;;  %1136 = vmatprep.subr.bf16.mxu0 %v5502_v51  ;;  %v5587_v50 = vld [vmem:[%s7610_s1 + $0xc70] ss:$8 sps:$4 sm:$0xff]   ;;  %v5592_v51 = vld [vmem:[%s7610_s1 + $0x884] ss:$8 sps:$4 sm:$0xff]  }
  0xe9   : > { %2081 = vmatprep.subr.bf16.mxu1 %v5505_v52  ;;  %v5595_v52 = vld [vmem:[%s7610_s1 + $0xc84] ss:$8 sps:$4 sm:$0xff]  }
  0xeb   : > { %1137 = vmatpush1.bf16.msra.mxu0 %v5500_v53  ;;  %v5590_v53 = vld [vmem:[%s7610_s1 + $0x880] ss:$8 sps:$4 sm:$0xff]  }
  0xec   : > { %2082 = vmatpush1.bf16.msra.mxu1 %v5503_v54  ;;  %1138 = vmatprep.subr.bf16.mxu0 %v5508_v55  ;;  %v5593_v54 = vld [vmem:[%s7610_s1 + $0xc80] ss:$8 sps:$4 sm:$0xff]   ;;  %v5598_v55 = vld [vmem:[%s7610_s1 + $0x894] ss:$8 sps:$4 sm:$0xff]  }
  0xed   : > { %2083 = vmatprep.subr.bf16.mxu1 %v5511_v56  ;;  %v5601_v56 = vld [vmem:[%s7610_s1 + $0xc94] ss:$8 sps:$4 sm:$0xff]  }
  0xef   : > { %1139 = vmatpush1.bf16.msra.mxu0 %v5506_v57  ;;  %v5596_v57 = vld [vmem:[%s7610_s1 + $0x890] ss:$8 sps:$4 sm:$0xff]  }
  0xf0   : > { %2084 = vmatpush1.bf16.msra.mxu1 %v5509_v58  ;;  %1140 = vmatprep.subr.bf16.mxu0 %v5514_v59  ;;  %v5599_v58 = vld [vmem:[%s7610_s1 + $0xc90] ss:$8 sps:$4 sm:$0xff]   ;;  %v5604_v59 = vld [vmem:[%s7610_s1 + $0x8a4] ss:$8 sps:$4 sm:$0xff]  }
  0xf1   : > { %2085 = vmatprep.subr.bf16.mxu1 %v5517_v60  ;;  %v5607_v60 = vld [vmem:[%s7610_s1 + $0xca4] ss:$8 sps:$4 sm:$0xff]  }
  0xf3   : > { %1141 = vmatpush1.bf16.msra.mxu0 %v5512_v61  ;;  %v5602_v61 = vld [vmem:[%s7610_s1 + $0x8a0] ss:$8 sps:$4 sm:$0xff]  }
  0xf4   : > { %2086 = vmatpush1.bf16.msra.mxu1 %v5515_v62  ;;  %1142 = vmatprep.subr.bf16.mxu0 %v5520_v63  ;;  %v5605_v62 = vld [vmem:[%s7610_s1 + $0xca0] ss:$8 sps:$4 sm:$0xff]   ;;  %v5610_v63 = vld [vmem:[%s7610_s1 + $0x8b4] ss:$8 sps:$4 sm:$0xff]  }
  0xf5   : > { %2087 = vmatprep.subr.bf16.mxu1 %v5523_v0  ;;  %v5613_v0 = vld [vmem:[%s7610_s1 + $0xcb4] ss:$8 sps:$4 sm:$0xff]  }
  0xf7   : > { %1143 = vmatpush1.bf16.msra.mxu0 %v5518_v1  ;;  %v5608_v1 = vld [vmem:[%s7610_s1 + $0x8b0] ss:$8 sps:$4 sm:$0xff]  }
  0xf8   : > { %2088 = vmatpush1.bf16.msra.mxu1 %v5521_v2  ;;  %1144 = vmatprep.subr.bf16.mxu0 %v5526_v3  ;;  %v5611_v2 = vld [vmem:[%s7610_s1 + $0xcb0] ss:$8 sps:$4 sm:$0xff]   ;;  %v5616_v3 = vld [vmem:[%s7610_s1 + $0x8c4] ss:$8 sps:$4 sm:$0xff]  }
  0xf9   : > { %2089 = vmatprep.subr.bf16.mxu1 %v5529_v4  ;;  %v5619_v4 = vld [vmem:[%s7610_s1 + $0xcc4] ss:$8 sps:$4 sm:$0xff]  }
  0xfb   : > { %1145 = vmatpush1.bf16.msra.mxu0 %v5524_v5  ;;  %v5614_v5 = vld [vmem:[%s7610_s1 + $0x8c0] ss:$8 sps:$4 sm:$0xff]  }
  0xfc   : > { %2090 = vmatpush1.bf16.msra.mxu1 %v5527_v6  ;;  %1146 = vmatprep.subr.bf16.mxu0 %v5532_v7  ;;  %v5617_v6 = vld [vmem:[%s7610_s1 + $0xcc0] ss:$8 sps:$4 sm:$0xff]   ;;  %v5622_v7 = vld [vmem:[%s7610_s1 + $0x8d4] ss:$8 sps:$4 sm:$0xff]  }
  0xfd   : > { %2091 = vmatprep.subr.bf16.mxu1 %v5535_v8  ;;  %v5625_v8 = vld [vmem:[%s7610_s1 + $0xcd4] ss:$8 sps:$4 sm:$0xff]  }
  0xff   : > { %1147 = vmatpush1.bf16.msra.mxu0 %v5530_v9  ;;  %v5620_v9 = vld [vmem:[%s7610_s1 + $0x8d0] ss:$8 sps:$4 sm:$0xff]  }
 0x100   : > { %2092 = vmatpush1.bf16.msra.mxu1 %v5533_v10  ;;  %1148 = vmatprep.subr.bf16.mxu0 %v5538_v11  ;;  %v5623_v10 = vld [vmem:[%s7610_s1 + $0xcd0] ss:$8 sps:$4 sm:$0xff]   ;;  %v5628_v11 = vld [vmem:[%s7610_s1 + $0x8e4] ss:$8 sps:$4 sm:$0xff]  }
 0x101   : > { %2093 = vmatprep.subr.bf16.mxu1 %v5541_v12  ;;  %v5631_v12 = vld [vmem:[%s7610_s1 + $0xce4] ss:$8 sps:$4 sm:$0xff]  }
 0x103   : > { %1149 = vmatpush1.bf16.msra.mxu0 %v5536_v13  ;;  %v5626_v13 = vld [vmem:[%s7610_s1 + $0x8e0] ss:$8 sps:$4 sm:$0xff]  }
 0x104   : > { %2094 = vmatpush1.bf16.msra.mxu1 %v5539_v16  ;;  %2919 = vmatprep.subr.bf16.mxu0 %v5544_v17  ;;  %v5629_v16 = vld [vmem:[%s7610_s1 + $0xce0] ss:$8 sps:$4 sm:$0xff]   ;;  %v5634_v17 = vld [vmem:[%s7610_s1 + $0x8f4] ss:$8 sps:$4 sm:$0xff]  }
 0x105   : > { %3864 = vmatprep.subr.bf16.mxu1 %v5547_v20  ;;  %v5637_v20 = vld [vmem:[%s7610_s1 + $0xcf4] ss:$8 sps:$4 sm:$0xff]  }
 0x106   : > { %1151 = vmatmul.mubr.bf16.vlgmr.msra.gmra.mrb[0].mxu0 %v4180_v22 }
 0x107   : > { %2096 = vmatmul.mubr.bf16.vlgmr.msra.gmra.mrb[0].mxu1 %v4180_v22  ;;  %2920 = vmatpush1.bf16.msra.mxu0 %v5542_v21  ;;  %v5632_v21 = vld [vmem:[%s7610_s1 + $0x8f0] ss:$8 sps:$4 sm:$0xff]  }
 0x108   : > { %3865 = vmatpush1.bf16.msra.mxu1 %v5545_v15  ;;  %2921 = vmatprep.subr.bf16.mxu0 %v5550_v23  ;;  %v5635_v22 = vld [vmem:[%s7610_s1 + $0xcf0] ss:$8 sps:$4 sm:$0xff]   ;;  %v5640_v15 = vld [vmem:[%s7610_s1 + $0x904] ss:$8 sps:$4 sm:$0xff]  }
 0x109   : > { %3866 = vmatprep.subr.bf16.mxu1 %v5553_v24  ;;  %2951 = vmatprep.mubr.bf16.mxu0 %v4695_v18  ;;  %v5643_v23 = vld [vmem:[%s7610_s1 + $0xd04] ss:$8 sps:$4 sm:$0xff]  }
 0x10a   : > { %3896 = vmatprep.mubr.bf16.mxu1 %v4695_v18  ;;  %v6986_v24 = vld [vmem:[%s6109_s30 + $0x48] sm:$0xff]  ;;  %v4694_v18 = vcombine.low %v6801_v25, %v6789_v14  ;;  %v5649_v14 = vld [vmem:[%s7610_s1 + $0xd14] ss:$8 sps:$4 sm:$0xff]  }
 0x10b   : > { %2922 = vmatpush1.bf16.msra.mxu0 %v5548_v19  ;;  %v5638_v19 = vld [vmem:[%s7610_s1 + $0x900] ss:$8 sps:$4 sm:$0xff]  }
 0x10c   : > { %3867 = vmatpush1.bf16.msra.mxu1 %v5551_v26  ;;  %2923 = vmatprep.subr.bf16.mxu0 %v5556_v27  ;;  %v5641_v26 = vld [vmem:[%s7610_s1 + $0xd00] ss:$8 sps:$4 sm:$0xff]   ;;  %v5646_v27 = vld [vmem:[%s7610_s1 + $0x914] ss:$8 sps:$4 sm:$0xff]  }
 0x10d   : > { %3868 = vmatprep.subr.bf16.mxu1 %v5559_v28  ;;  %v7003_v25 = vld [vmem:[%s6109_s30 + $0x28] sm:$0xff] }
 0x10e   : > { %v4697_v28 = vcombine.high %v7003_v25, %v6986_v24 }
 0x10f   : > { %2924 = vmatpush1.bf16.msra.mxu0 %v5554_v29  ;;  %v5644_v29 = vld [vmem:[%s7610_s1 + $0x910] ss:$8 sps:$4 sm:$0xff]  }
 0x110   : > { %3869 = vmatpush1.bf16.msra.mxu1 %v5557_v30  ;;  %2925 = vmatprep.subr.bf16.mxu0 %v5562_v31  ;;  %v5647_v30 = vld [vmem:[%s7610_s1 + $0xd10] ss:$8 sps:$4 sm:$0xff]   ;;  %v5652_v31 = vld [vmem:[%s7610_s1 + $0x924] ss:$8 sps:$4 sm:$0xff]  }
 0x111   : > { %3870 = vmatprep.subr.bf16.mxu1 %v5565_v32  ;;  %v5655_v32 = vld [vmem:[%s7610_s1 + $0xd24] ss:$8 sps:$4 sm:$0xff]  }
 0x113   : > { %2926 = vmatpush1.bf16.msra.mxu0 %v5560_v33  ;;  %v5650_v33 = vld [vmem:[%s7610_s1 + $0x920] ss:$8 sps:$4 sm:$0xff]  }
 0x114   : > { %3871 = vmatpush1.bf16.msra.mxu1 %v5563_v34  ;;  %2927 = vmatprep.subr.bf16.mxu0 %v5568_v35  ;;  %v5653_v34 = vld [vmem:[%s7610_s1 + $0xd20] ss:$8 sps:$4 sm:$0xff]   ;;  %v5658_v35 = vld [vmem:[%s7610_s1 + $0x934] ss:$8 sps:$4 sm:$0xff]  }
 0x115   : > { %3872 = vmatprep.subr.bf16.mxu1 %v5571_v36  ;;  %v5661_v36 = vld [vmem:[%s7610_s1 + $0xd34] ss:$8 sps:$4 sm:$0xff]  }
 0x117   : > { %2928 = vmatpush1.bf16.msra.mxu0 %v5566_v37  ;;  %v5656_v37 = vld [vmem:[%s7610_s1 + $0x930] ss:$8 sps:$4 sm:$0xff]  }
 0x118   : > { %3873 = vmatpush1.bf16.msra.mxu1 %v5569_v38  ;;  %2929 = vmatprep.subr.bf16.mxu0 %v5574_v39  ;;  %v5659_v38 = vld [vmem:[%s7610_s1 + $0xd30] ss:$8 sps:$4 sm:$0xff]   ;;  %v5664_v39 = vld [vmem:[%s7610_s1 + $0x944] ss:$8 sps:$4 sm:$0xff]  }
 0x119   : > { %3874 = vmatprep.subr.bf16.mxu1 %v5577_v40  ;;  %v5667_v40 = vld [vmem:[%s7610_s1 + $0xd44] ss:$8 sps:$4 sm:$0xff]  }
 0x11b   : > { %2930 = vmatpush1.bf16.msra.mxu0 %v5572_v41  ;;  %v5662_v41 = vld [vmem:[%s7610_s1 + $0x940] ss:$8 sps:$4 sm:$0xff]  }
 0x11c   : > { %3875 = vmatpush1.bf16.msra.mxu1 %v5575_v42  ;;  %2931 = vmatprep.subr.bf16.mxu0 %v5580_v43  ;;  %v5665_v42 = vld [vmem:[%s7610_s1 + $0xd40] ss:$8 sps:$4 sm:$0xff]   ;;  %v5670_v43 = vld [vmem:[%s7610_s1 + $0x954] ss:$8 sps:$4 sm:$0xff]  }
 0x11d   : > { %3876 = vmatprep.subr.bf16.mxu1 %v5583_v44  ;;  %v5673_v44 = vld [vmem:[%s7610_s1 + $0xd54] ss:$8 sps:$4 sm:$0xff]  }
 0x11f   : > { %2932 = vmatpush1.bf16.msra.mxu0 %v5578_v45  ;;  %v5668_v45 = vld [vmem:[%s7610_s1 + $0x950] ss:$8 sps:$4 sm:$0xff]  }
 0x120   : > { %3877 = vmatpush1.bf16.msra.mxu1 %v5581_v46  ;;  %2933 = vmatprep.subr.bf16.mxu0 %v5586_v47  ;;  %v5671_v46 = vld [vmem:[%s7610_s1 + $0xd50] ss:$8 sps:$4 sm:$0xff]   ;;  %v5676_v47 = vld [vmem:[%s7610_s1 + $0x964] ss:$8 sps:$4 sm:$0xff]  }
 0x121   : > { %3878 = vmatprep.subr.bf16.mxu1 %v5589_v48  ;;  %v5679_v48 = vld [vmem:[%s7610_s1 + $0xd64] ss:$8 sps:$4 sm:$0xff]  }
 0x123   : > { %2934 = vmatpush1.bf16.msra.mxu0 %v5584_v49  ;;  %v5674_v49 = vld [vmem:[%s7610_s1 + $0x960] ss:$8 sps:$4 sm:$0xff]  }
 0x124   : > { %3879 = vmatpush1.bf16.msra.mxu1 %v5587_v50  ;;  %2935 = vmatprep.subr.bf16.mxu0 %v5592_v51  ;;  %v5677_v50 = vld [vmem:[%s7610_s1 + $0xd60] ss:$8 sps:$4 sm:$0xff]   ;;  %v5682_v51 = vld [vmem:[%s7610_s1 + $0x974] ss:$8 sps:$4 sm:$0xff]  }
 0x125   : > { %3880 = vmatprep.subr.bf16.mxu1 %v5595_v52  ;;  %v5685_v52 = vld [vmem:[%s7610_s1 + $0xd74] ss:$8 sps:$4 sm:$0xff]  }
 0x127   : > { %2936 = vmatpush1.bf16.msra.mxu0 %v5590_v53  ;;  %v5680_v53 = vld [vmem:[%s7610_s1 + $0x970] ss:$8 sps:$4 sm:$0xff]  }
 0x128   : > { %3881 = vmatpush1.bf16.msra.mxu1 %v5593_v54  ;;  %2937 = vmatprep.subr.bf16.mxu0 %v5598_v55  ;;  %v5683_v54 = vld [vmem:[%s7610_s1 + $0xd70] ss:$8 sps:$4 sm:$0xff]   ;;  %v5688_v55 = vld [vmem:[%s7610_s1 + $0x984] ss:$8 sps:$4 sm:$0xff]  }
 0x129   : > { %3882 = vmatprep.subr.bf16.mxu1 %v5601_v56  ;;  %v5691_v56 = vld [vmem:[%s7610_s1 + $0xd84] ss:$8 sps:$4 sm:$0xff]  }
 0x12b   : > { %2938 = vmatpush1.bf16.msra.mxu0 %v5596_v57  ;;  %v5686_v57 = vld [vmem:[%s7610_s1 + $0x980] ss:$8 sps:$4 sm:$0xff]  }
 0x12c   : > { %3883 = vmatpush1.bf16.msra.mxu1 %v5599_v58  ;;  %2939 = vmatprep.subr.bf16.mxu0 %v5604_v59  ;;  %v5689_v58 = vld [vmem:[%s7610_s1 + $0xd80] ss:$8 sps:$4 sm:$0xff]   ;;  %v5694_v59 = vld [vmem:[%s7610_s1 + $0x994] ss:$8 sps:$4 sm:$0xff]  }
 0x12d   : > { %3884 = vmatprep.subr.bf16.mxu1 %v5607_v60  ;;  %v5697_v60 = vld [vmem:[%s7610_s1 + $0xd94] ss:$8 sps:$4 sm:$0xff]  }
 0x12f   : > { %2940 = vmatpush1.bf16.msra.mxu0 %v5602_v61  ;;  %v5692_v61 = vld [vmem:[%s7610_s1 + $0x990] ss:$8 sps:$4 sm:$0xff]  }
 0x130   : > { %3885 = vmatpush1.bf16.msra.mxu1 %v5605_v62  ;;  %2941 = vmatprep.subr.bf16.mxu0 %v5610_v63  ;;  %v5695_v62 = vld [vmem:[%s7610_s1 + $0xd90] ss:$8 sps:$4 sm:$0xff]   ;;  %v5700_v63 = vld [vmem:[%s7610_s1 + $0x9a4] ss:$8 sps:$4 sm:$0xff]  }
 0x131   : > { %3886 = vmatprep.subr.bf16.mxu1 %v5613_v0  ;;  %v5703_v0 = vld [vmem:[%s7610_s1 + $0xda4] ss:$8 sps:$4 sm:$0xff]  }
 0x133   : > { %2942 = vmatpush1.bf16.msra.mxu0 %v5608_v1  ;;  %v5698_v1 = vld [vmem:[%s7610_s1 + $0x9a0] ss:$8 sps:$4 sm:$0xff]  }
 0x134   : > { %3887 = vmatpush1.bf16.msra.mxu1 %v5611_v2  ;;  %2943 = vmatprep.subr.bf16.mxu0 %v5616_v3  ;;  %v5701_v2 = vld [vmem:[%s7610_s1 + $0xda0] ss:$8 sps:$4 sm:$0xff]   ;;  %v5706_v3 = vld [vmem:[%s7610_s1 + $0x9b4] ss:$8 sps:$4 sm:$0xff]  }
 0x135   : > { %3888 = vmatprep.subr.bf16.mxu1 %v5619_v4  ;;  %v5709_v4 = vld [vmem:[%s7610_s1 + $0xdb4] ss:$8 sps:$4 sm:$0xff]  }
 0x137   : > { %2944 = vmatpush1.bf16.msra.mxu0 %v5614_v5  ;;  %v5704_v5 = vld [vmem:[%s7610_s1 + $0x9b0] ss:$8 sps:$4 sm:$0xff]  }
 0x138   : > { %3889 = vmatpush1.bf16.msra.mxu1 %v5617_v6  ;;  %2945 = vmatprep.subr.bf16.mxu0 %v5622_v7  ;;  %v5707_v6 = vld [vmem:[%s7610_s1 + $0xdb0] ss:$8 sps:$4 sm:$0xff]   ;;  %v5712_v7 = vld [vmem:[%s7610_s1 + $0x9c4] ss:$8 sps:$4 sm:$0xff]  }
 0x139   : > { %3890 = vmatprep.subr.bf16.mxu1 %v5625_v8  ;;  %v5715_v8 = vld [vmem:[%s7610_s1 + $0xdc4] ss:$8 sps:$4 sm:$0xff]  }
 0x13b   : > { %2946 = vmatpush1.bf16.msra.mxu0 %v5620_v9  ;;  %v5710_v9 = vld [vmem:[%s7610_s1 + $0x9c0] ss:$8 sps:$4 sm:$0xff]  }
 0x13c   : > { %3891 = vmatpush1.bf16.msra.mxu1 %v5623_v10  ;;  %2947 = vmatprep.subr.bf16.mxu0 %v5628_v11  ;;  %v5713_v10 = vld [vmem:[%s7610_s1 + $0xdc0] ss:$8 sps:$4 sm:$0xff]   ;;  %v5718_v11 = vld [vmem:[%s7610_s1 + $0x9d4] ss:$8 sps:$4 sm:$0xff]  }
 0x13d   : > { %3892 = vmatprep.subr.bf16.mxu1 %v5631_v12  ;;  %v5721_v12 = vld [vmem:[%s7610_s1 + $0xdd4] ss:$8 sps:$4 sm:$0xff]  }
 0x13f   : > { %2948 = vmatpush1.bf16.msra.mxu0 %v5626_v13  ;;  %v5716_v13 = vld [vmem:[%s7610_s1 + $0x9d0] ss:$8 sps:$4 sm:$0xff]  }
 0x140   : > { %3893 = vmatpush1.bf16.msra.mxu1 %v5629_v16  ;;  %2949 = vmatprep.subr.bf16.mxu0 %v5634_v17  ;;  %v5719_v16 = vld [vmem:[%s7610_s1 + $0xdd0] ss:$8 sps:$4 sm:$0xff]   ;;  %v5724_v17 = vld [vmem:[%s7610_s1 + $0x9e4] ss:$8 sps:$4 sm:$0xff]  }
 0x141   : > { %3894 = vmatprep.subr.bf16.mxu1 %v5637_v20  ;;  %v5727_v20 = vld [vmem:[%s7610_s1 + $0xde4] ss:$8 sps:$4 sm:$0xff]  }
 0x143   : > { %2950 = vmatpush1.bf16.msra.mxu0 %v5632_v21  ;;  %v5722_v21 = vld [vmem:[%s7610_s1 + $0x9e0] ss:$8 sps:$4 sm:$0xff]  }
 0x144   : > { %3895 = vmatpush1.bf16.msra.mxu1 %v5635_v22  ;;  %2962 = vmatprep.subr.bf16.mxu0 %v5640_v15  ;;  %v5725_v22 = vld [vmem:[%s7610_s1 + $0xde0] ss:$8 sps:$4 sm:$0xff]   ;;  %v5730_v15 = vld [vmem:[%s7610_s1 + $0x9f4] ss:$8 sps:$4 sm:$0xff]  }
 0x145   : > { %3907 = vmatprep.subr.bf16.mxu1 %v5643_v23  ;;  %v5733_v23 = vld [vmem:[%s7610_s1 + $0xdf4] ss:$8 sps:$4 sm:$0xff]  }
 0x146   : > { %2952 = vmatmul.mubr.bf16.vlgmr.msra.gmra.mrb[0].mxu0 %v4694_v18 }
 0x147   : > { %3897 = vmatmul.mubr.bf16.vlgmr.msra.gmra.mrb[4].mxu1 %v4694_v18  ;;  %2963 = vmatpush1.bf16.msra.mxu0 %v5638_v19  ;;  %v5728_v18 = vld [vmem:[%s7610_s1 + $0x9f0] ss:$8 sps:$4 sm:$0xff]  }
 0x148   : > { %3908 = vmatpush1.bf16.msra.mxu1 %v5641_v26  ;;  %2964 = vmatprep.subr.bf16.mxu0 %v5646_v27  ;;  %v5731_v19 = vld [vmem:[%s7610_s1 + $0xdf0] ss:$8 sps:$4 sm:$0xff]   ;;  %v5736_v26 = vld [vmem:[%s7610_s1 + $0xa04] ss:$8 sps:$4 sm:$0xff]  }
 0x149   : > { %3909 = vmatprep.subr.bf16.mxu1 %v5649_v14  ;;  %2994 = vmatprep.mubr.bf16.mxu0 %v4697_v28  ;;  %v5739_v27 = vld [vmem:[%s7610_s1 + $0xe04] ss:$8 sps:$4 sm:$0xff]   ;;  %v4696_v14 = vcombine.low %v7003_v25, %v6986_v24  ;;  %v5745_v24 = vld [vmem:[%s7610_s1 + $0xe14] ss:$8 sps:$4 sm:$0xff]  }
 0x14a   : > { %3939 = vmatprep.mubr.bf16.mxu1 %v4697_v28  ;;  %v7190_v28 = vld [vmem:[%s6109_s30 + $0x50] sm:$0xff] }
 0x14b   : > { %2965 = vmatpush1.bf16.msra.mxu0 %v5644_v29  ;;  %v5734_v29 = vld [vmem:[%s7610_s1 + $0xa00] ss:$8 sps:$4 sm:$0xff]   ;;  %v7205_v25 = vld [vmem:[%s6109_s30 + $0x30] sm:$0xff] }
 0x14c   : > { %3910 = vmatpush1.bf16.msra.mxu1 %v5647_v30  ;;  %2966 = vmatprep.subr.bf16.mxu0 %v5652_v31  ;;  %v5737_v30 = vld [vmem:[%s7610_s1 + $0xe00] ss:$8 sps:$4 sm:$0xff]   ;;  %v5742_v31 = vld [vmem:[%s7610_s1 + $0xa14] ss:$8 sps:$4 sm:$0xff]  }
 0x14d   : > { %3911 = vmatprep.subr.bf16.mxu1 %v5655_v32  ;;  %v4699_v32 = vcombine.high %v7205_v25, %v7190_v28 }
 0x14f   : > { %2967 = vmatpush1.bf16.msra.mxu0 %v5650_v33  ;;  %v5740_v33 = vld [vmem:[%s7610_s1 + $0xa10] ss:$8 sps:$4 sm:$0xff]  }
 0x150   : > { %3912 = vmatpush1.bf16.msra.mxu1 %v5653_v34  ;;  %2968 = vmatprep.subr.bf16.mxu0 %v5658_v35  ;;  %v5743_v34 = vld [vmem:[%s7610_s1 + $0xe10] ss:$8 sps:$4 sm:$0xff]   ;;  %v5748_v35 = vld [vmem:[%s7610_s1 + $0xa24] ss:$8 sps:$4 sm:$0xff]  }
 0x151   : > { %3913 = vmatprep.subr.bf16.mxu1 %v5661_v36  ;;  %v5751_v36 = vld [vmem:[%s7610_s1 + $0xe24] ss:$8 sps:$4 sm:$0xff]  }
 0x153   : > { %2969 = vmatpush1.bf16.msra.mxu0 %v5656_v37  ;;  %v5746_v37 = vld [vmem:[%s7610_s1 + $0xa20] ss:$8 sps:$4 sm:$0xff]  }
 0x154   : > { %3914 = vmatpush1.bf16.msra.mxu1 %v5659_v38  ;;  %2970 = vmatprep.subr.bf16.mxu0 %v5664_v39  ;;  %v5749_v38 = vld [vmem:[%s7610_s1 + $0xe20] ss:$8 sps:$4 sm:$0xff]   ;;  %v5754_v39 = vld [vmem:[%s7610_s1 + $0xa34] ss:$8 sps:$4 sm:$0xff]  }
 0x155   : > { %3915 = vmatprep.subr.bf16.mxu1 %v5667_v40  ;;  %v5757_v40 = vld [vmem:[%s7610_s1 + $0xe34] ss:$8 sps:$4 sm:$0xff]  }
 0x157   : > { %2971 = vmatpush1.bf16.msra.mxu0 %v5662_v41  ;;  %v5752_v41 = vld [vmem:[%s7610_s1 + $0xa30] ss:$8 sps:$4 sm:$0xff]  }
 0x158   : > { %3916 = vmatpush1.bf16.msra.mxu1 %v5665_v42  ;;  %2972 = vmatprep.subr.bf16.mxu0 %v5670_v43  ;;  %v5755_v42 = vld [vmem:[%s7610_s1 + $0xe30] ss:$8 sps:$4 sm:$0xff]   ;;  %v5760_v43 = vld [vmem:[%s7610_s1 + $0xa44] ss:$8 sps:$4 sm:$0xff]  }
 0x159   : > { %3917 = vmatprep.subr.bf16.mxu1 %v5673_v44  ;;  %v5763_v44 = vld [vmem:[%s7610_s1 + $0xe44] ss:$8 sps:$4 sm:$0xff]  }
 0x15b   : > { %2973 = vmatpush1.bf16.msra.mxu0 %v5668_v45  ;;  %v5758_v45 = vld [vmem:[%s7610_s1 + $0xa40] ss:$8 sps:$4 sm:$0xff]  }
 0x15c   : > { %3918 = vmatpush1.bf16.msra.mxu1 %v5671_v46  ;;  %2974 = vmatprep.subr.bf16.mxu0 %v5676_v47  ;;  %v5761_v46 = vld [vmem:[%s7610_s1 + $0xe40] ss:$8 sps:$4 sm:$0xff]   ;;  %v5766_v47 = vld [vmem:[%s7610_s1 + $0xa54] ss:$8 sps:$4 sm:$0xff]  }
 0x15d   : > { %3919 = vmatprep.subr.bf16.mxu1 %v5679_v48  ;;  %v5769_v48 = vld [vmem:[%s7610_s1 + $0xe54] ss:$8 sps:$4 sm:$0xff]  }
 0x15f   : > { %2975 = vmatpush1.bf16.msra.mxu0 %v5674_v49  ;;  %v5764_v49 = vld [vmem:[%s7610_s1 + $0xa50] ss:$8 sps:$4 sm:$0xff]  }
 0x160   : > { %3920 = vmatpush1.bf16.msra.mxu1 %v5677_v50  ;;  %2976 = vmatprep.subr.bf16.mxu0 %v5682_v51  ;;  %v5767_v50 = vld [vmem:[%s7610_s1 + $0xe50] ss:$8 sps:$4 sm:$0xff]   ;;  %v5772_v51 = vld [vmem:[%s7610_s1 + $0xa64] ss:$8 sps:$4 sm:$0xff]  }
 0x161   : > { %3921 = vmatprep.subr.bf16.mxu1 %v5685_v52  ;;  %v5775_v52 = vld [vmem:[%s7610_s1 + $0xe64] ss:$8 sps:$4 sm:$0xff]  }
 0x163   : > { %2977 = vmatpush1.bf16.msra.mxu0 %v5680_v53  ;;  %v5770_v53 = vld [vmem:[%s7610_s1 + $0xa60] ss:$8 sps:$4 sm:$0xff]  }
 0x164   : > { %3922 = vmatpush1.bf16.msra.mxu1 %v5683_v54  ;;  %2978 = vmatprep.subr.bf16.mxu0 %v5688_v55  ;;  %v5773_v54 = vld [vmem:[%s7610_s1 + $0xe60] ss:$8 sps:$4 sm:$0xff]   ;;  %v5778_v55 = vld [vmem:[%s7610_s1 + $0xa74] ss:$8 sps:$4 sm:$0xff]  }
 0x165   : > { %3923 = vmatprep.subr.bf16.mxu1 %v5691_v56  ;;  %v5781_v56 = vld [vmem:[%s7610_s1 + $0xe74] ss:$8 sps:$4 sm:$0xff]  }
 0x167   : > { %2979 = vmatpush1.bf16.msra.mxu0 %v5686_v57  ;;  %v5776_v57 = vld [vmem:[%s7610_s1 + $0xa70] ss:$8 sps:$4 sm:$0xff]  }
 0x168   : > { %3924 = vmatpush1.bf16.msra.mxu1 %v5689_v58  ;;  %2980 = vmatprep.subr.bf16.mxu0 %v5694_v59  ;;  %v5779_v58 = vld [vmem:[%s7610_s1 + $0xe70] ss:$8 sps:$4 sm:$0xff]   ;;  %v5784_v59 = vld [vmem:[%s7610_s1 + $0xa84] ss:$8 sps:$4 sm:$0xff]  }
 0x169   : > { %3925 = vmatprep.subr.bf16.mxu1 %v5697_v60  ;;  %v5787_v60 = vld [vmem:[%s7610_s1 + $0xe84] ss:$8 sps:$4 sm:$0xff]  }
 0x16b   : > { %2981 = vmatpush1.bf16.msra.mxu0 %v5692_v61  ;;  %v5782_v61 = vld [vmem:[%s7610_s1 + $0xa80] ss:$8 sps:$4 sm:$0xff]  }
 0x16c   : > { %3926 = vmatpush1.bf16.msra.mxu1 %v5695_v62  ;;  %2982 = vmatprep.subr.bf16.mxu0 %v5700_v63  ;;  %v5785_v62 = vld [vmem:[%s7610_s1 + $0xe80] ss:$8 sps:$4 sm:$0xff]   ;;  %v5790_v63 = vld [vmem:[%s7610_s1 + $0xa94] ss:$8 sps:$4 sm:$0xff]  }
 0x16d   : > { %3927 = vmatprep.subr.bf16.mxu1 %v5703_v0  ;;  %v5793_v0 = vld [vmem:[%s7610_s1 + $0xe94] ss:$8 sps:$4 sm:$0xff]  }
 0x16f   : > { %2983 = vmatpush1.bf16.msra.mxu0 %v5698_v1  ;;  %v5788_v1 = vld [vmem:[%s7610_s1 + $0xa90] ss:$8 sps:$4 sm:$0xff]  }
 0x170   : > { %3928 = vmatpush1.bf16.msra.mxu1 %v5701_v2  ;;  %2984 = vmatprep.subr.bf16.mxu0 %v5706_v3  ;;  %v5791_v2 = vld [vmem:[%s7610_s1 + $0xe90] ss:$8 sps:$4 sm:$0xff]   ;;  %v5796_v3 = vld [vmem:[%s7610_s1 + $0xaa4] ss:$8 sps:$4 sm:$0xff]  }
 0x171   : > { %3929 = vmatprep.subr.bf16.mxu1 %v5709_v4  ;;  %v5799_v4 = vld [vmem:[%s7610_s1 + $0xea4] ss:$8 sps:$4 sm:$0xff]  }
 0x173   : > { %2985 = vmatpush1.bf16.msra.mxu0 %v5704_v5  ;;  %v5794_v5 = vld [vmem:[%s7610_s1 + $0xaa0] ss:$8 sps:$4 sm:$0xff]  }
 0x174   : > { %3930 = vmatpush1.bf16.msra.mxu1 %v5707_v6  ;;  %2986 = vmatprep.subr.bf16.mxu0 %v5712_v7  ;;  %v5797_v6 = vld [vmem:[%s7610_s1 + $0xea0] ss:$8 sps:$4 sm:$0xff]   ;;  %v5802_v7 = vld [vmem:[%s7610_s1 + $0xab4] ss:$8 sps:$4 sm:$0xff]  }
 0x175   : > { %3931 = vmatprep.subr.bf16.mxu1 %v5715_v8  ;;  %v5805_v8 = vld [vmem:[%s7610_s1 + $0xeb4] ss:$8 sps:$4 sm:$0xff]  }
 0x177   : > { %2987 = vmatpush1.bf16.msra.mxu0 %v5710_v9  ;;  %v5800_v9 = vld [vmem:[%s7610_s1 + $0xab0] ss:$8 sps:$4 sm:$0xff]  }
 0x178   : > { %3932 = vmatpush1.bf16.msra.mxu1 %v5713_v10  ;;  %2988 = vmatprep.subr.bf16.mxu0 %v5718_v11  ;;  %v5803_v10 = vld [vmem:[%s7610_s1 + $0xeb0] ss:$8 sps:$4 sm:$0xff]   ;;  %v5808_v11 = vld [vmem:[%s7610_s1 + $0xac4] ss:$8 sps:$4 sm:$0xff]  }
 0x179   : > { %3933 = vmatprep.subr.bf16.mxu1 %v5721_v12  ;;  %v5811_v12 = vld [vmem:[%s7610_s1 + $0xec4] ss:$8 sps:$4 sm:$0xff]  }
 0x17b   : > { %2989 = vmatpush1.bf16.msra.mxu0 %v5716_v13  ;;  %v5806_v13 = vld [vmem:[%s7610_s1 + $0xac0] ss:$8 sps:$4 sm:$0xff]  }
 0x17c   : > { %3934 = vmatpush1.bf16.msra.mxu1 %v5719_v16  ;;  %2990 = vmatprep.subr.bf16.mxu0 %v5724_v17  ;;  %v5809_v16 = vld [vmem:[%s7610_s1 + $0xec0] ss:$8 sps:$4 sm:$0xff]   ;;  %v5814_v17 = vld [vmem:[%s7610_s1 + $0xad4] ss:$8 sps:$4 sm:$0xff]  }
 0x17d   : > { %3935 = vmatprep.subr.bf16.mxu1 %v5727_v20  ;;  %v5817_v20 = vld [vmem:[%s7610_s1 + $0xed4] ss:$8 sps:$4 sm:$0xff]  }
 0x17f   : > { %2991 = vmatpush1.bf16.msra.mxu0 %v5722_v21  ;;  %v5812_v21 = vld [vmem:[%s7610_s1 + $0xad0] ss:$8 sps:$4 sm:$0xff]  }
 0x180   : > { %3936 = vmatpush1.bf16.msra.mxu1 %v5725_v22  ;;  %2992 = vmatprep.subr.bf16.mxu0 %v5730_v15  ;;  %v5815_v22 = vld [vmem:[%s7610_s1 + $0xed0] ss:$8 sps:$4 sm:$0xff]   ;;  %v5820_v15 = vld [vmem:[%s7610_s1 + $0xae4] ss:$8 sps:$4 sm:$0xff]  }
 0x181   : > { %3937 = vmatprep.subr.bf16.mxu1 %v5733_v23  ;;  %v5823_v23 = vld [vmem:[%s7610_s1 + $0xee4] ss:$8 sps:$4 sm:$0xff]  }
 0x183   : > { %2993 = vmatpush1.bf16.msra.mxu0 %v5728_v18  ;;  %v5818_v18 = vld [vmem:[%s7610_s1 + $0xae0] ss:$8 sps:$4 sm:$0xff]  }
 0x184   : > { %3938 = vmatpush1.bf16.msra.mxu1 %v5731_v19  ;;  %3005 = vmatprep.subr.bf16.mxu0 %v5736_v26  ;;  %v5821_v19 = vld [vmem:[%s7610_s1 + $0xee0] ss:$8 sps:$4 sm:$0xff]   ;;  %v5826_v26 = vld [vmem:[%s7610_s1 + $0xaf4] ss:$8 sps:$4 sm:$0xff]  }
 0x185   : > { %3950 = vmatprep.subr.bf16.mxu1 %v5739_v27  ;;  %v5829_v27 = vld [vmem:[%s7610_s1 + $0xef4] ss:$8 sps:$4 sm:$0xff]  }
 0x186   : > { %2995 = vmatmul.mubr.bf16.vlgmr.msra.gmra.mrb[0].mxu0 %v4696_v14 }
 0x187   : > { %3940 = vmatmul.mubr.bf16.vlgmr.msra.gmra.mrb[4].mxu1 %v4696_v14  ;;  %3006 = vmatpush1.bf16.msra.mxu0 %v5734_v29  ;;  %v5824_v14 = vld [vmem:[%s7610_s1 + $0xaf0] ss:$8 sps:$4 sm:$0xff]  }
 0x188   : > { %3951 = vmatpush1.bf16.msra.mxu1 %v5737_v30  ;;  %3007 = vmatprep.subr.bf16.mxu0 %v5742_v31  ;;  %v5827_v29 = vld [vmem:[%s7610_s1 + $0xef0] ss:$8 sps:$4 sm:$0xff]   ;;  %v5832_v30 = vld [vmem:[%s7610_s1 + $0xb04] ss:$8 sps:$4 sm:$0xff]  }
 0x189   : > { %3952 = vmatprep.subr.bf16.mxu1 %v5745_v24  ;;  %3037 = vmatprep.mubr.bf16.mxu0 %v4699_v32  ;;  %v5835_v31 = vld [vmem:[%s7610_s1 + $0xf04] ss:$8 sps:$4 sm:$0xff]   ;;  %v4698_v24 = vcombine.low %v7205_v25, %v7190_v28  ;;  %v5841_v28 = vld [vmem:[%s7610_s1 + $0xf14] ss:$8 sps:$4 sm:$0xff]  }
 0x18a   : > { %3982 = vmatprep.mubr.bf16.mxu1 %v4699_v32  ;;  %v7392_v32 = vld [vmem:[%s6109_s30 + $0x58] sm:$0xff] }
 0x18b   : > { %3008 = vmatpush1.bf16.msra.mxu0 %v5740_v33  ;;  %v5830_v33 = vld [vmem:[%s7610_s1 + $0xb00] ss:$8 sps:$4 sm:$0xff]   ;;  %v7407_v25 = vld [vmem:[%s6109_s30 + $0x38] sm:$0xff] }
 0x18c   : > { %3953 = vmatpush1.bf16.msra.mxu1 %v5743_v34  ;;  %3009 = vmatprep.subr.bf16.mxu0 %v5748_v35  ;;  %v5833_v34 = vld [vmem:[%s7610_s1 + $0xf00] ss:$8 sps:$4 sm:$0xff]   ;;  %v5838_v35 = vld [vmem:[%s7610_s1 + $0xb14] ss:$8 sps:$4 sm:$0xff]  }
 0x18d   : > { %3954 = vmatprep.subr.bf16.mxu1 %v5751_v36  ;;  %v4701_v36 = vcombine.high %v7407_v25, %v7392_v32 }
 0x18f   : > { %3010 = vmatpush1.bf16.msra.mxu0 %v5746_v37  ;;  %v5836_v37 = vld [vmem:[%s7610_s1 + $0xb10] ss:$8 sps:$4 sm:$0xff]  }
 0x190   : > { %3955 = vmatpush1.bf16.msra.mxu1 %v5749_v38  ;;  %3011 = vmatprep.subr.bf16.mxu0 %v5754_v39  ;;  %v5839_v38 = vld [vmem:[%s7610_s1 + $0xf10] ss:$8 sps:$4 sm:$0xff]   ;;  %v5844_v39 = vld [vmem:[%s7610_s1 + $0xb24] ss:$8 sps:$4 sm:$0xff]  }
 0x191   : > { %3956 = vmatprep.subr.bf16.mxu1 %v5757_v40  ;;  %v5847_v40 = vld [vmem:[%s7610_s1 + $0xf24] ss:$8 sps:$4 sm:$0xff]  }
 0x193   : > { %3012 = vmatpush1.bf16.msra.mxu0 %v5752_v41  ;;  %v5842_v41 = vld [vmem:[%s7610_s1 + $0xb20] ss:$8 sps:$4 sm:$0xff]  }
 0x194   : > { %3957 = vmatpush1.bf16.msra.mxu1 %v5755_v42  ;;  %3013 = vmatprep.subr.bf16.mxu0 %v5760_v43  ;;  %v5845_v42 = vld [vmem:[%s7610_s1 + $0xf20] ss:$8 sps:$4 sm:$0xff]   ;;  %v5850_v43 = vld [vmem:[%s7610_s1 + $0xb34] ss:$8 sps:$4 sm:$0xff]  }
 0x195   : > { %3958 = vmatprep.subr.bf16.mxu1 %v5763_v44  ;;  %v5853_v44 = vld [vmem:[%s7610_s1 + $0xf34] ss:$8 sps:$4 sm:$0xff]  }
 0x197   : > { %3014 = vmatpush1.bf16.msra.mxu0 %v5758_v45  ;;  %v5848_v45 = vld [vmem:[%s7610_s1 + $0xb30] ss:$8 sps:$4 sm:$0xff]  }
 0x198   : > { %3959 = vmatpush1.bf16.msra.mxu1 %v5761_v46  ;;  %3015 = vmatprep.subr.bf16.mxu0 %v5766_v47  ;;  %v5851_v46 = vld [vmem:[%s7610_s1 + $0xf30] ss:$8 sps:$4 sm:$0xff]   ;;  %v5856_v47 = vld [vmem:[%s7610_s1 + $0xb44] ss:$8 sps:$4 sm:$0xff]  }
 0x199   : > { %3960 = vmatprep.subr.bf16.mxu1 %v5769_v48  ;;  %v5859_v48 = vld [vmem:[%s7610_s1 + $0xf44] ss:$8 sps:$4 sm:$0xff]  }
 0x19b   : > { %3016 = vmatpush1.bf16.msra.mxu0 %v5764_v49  ;;  %v5854_v49 = vld [vmem:[%s7610_s1 + $0xb40] ss:$8 sps:$4 sm:$0xff]  }
 0x19c   : > { %3961 = vmatpush1.bf16.msra.mxu1 %v5767_v50  ;;  %3017 = vmatprep.subr.bf16.mxu0 %v5772_v51  ;;  %v5857_v50 = vld [vmem:[%s7610_s1 + $0xf40] ss:$8 sps:$4 sm:$0xff]   ;;  %v5862_v51 = vld [vmem:[%s7610_s1 + $0xb54] ss:$8 sps:$4 sm:$0xff]  }
 0x19d   : > { %3962 = vmatprep.subr.bf16.mxu1 %v5775_v52  ;;  %v5865_v52 = vld [vmem:[%s7610_s1 + $0xf54] ss:$8 sps:$4 sm:$0xff]  }
 0x19f   : > { %3018 = vmatpush1.bf16.msra.mxu0 %v5770_v53  ;;  %v5860_v53 = vld [vmem:[%s7610_s1 + $0xb50] ss:$8 sps:$4 sm:$0xff]  }
 0x1a0   : > { %3963 = vmatpush1.bf16.msra.mxu1 %v5773_v54  ;;  %3019 = vmatprep.subr.bf16.mxu0 %v5778_v55  ;;  %v5863_v54 = vld [vmem:[%s7610_s1 + $0xf50] ss:$8 sps:$4 sm:$0xff]   ;;  %v5868_v55 = vld [vmem:[%s7610_s1 + $0xb64] ss:$8 sps:$4 sm:$0xff]  }
 0x1a1   : > { %3964 = vmatprep.subr.bf16.mxu1 %v5781_v56  ;;  %v5871_v56 = vld [vmem:[%s7610_s1 + $0xf64] ss:$8 sps:$4 sm:$0xff]  }
 0x1a3   : > { %3020 = vmatpush1.bf16.msra.mxu0 %v5776_v57 }
 0x1a4   : > { %3965 = vmatpush1.bf16.msra.mxu1 %v5779_v58  ;;  %3021 = vmatprep.subr.bf16.mxu0 %v5784_v59 }
 0x1a5   : > { %3966 = vmatprep.subr.bf16.mxu1 %v5787_v60  ;;  %v5866_v60 = vld [vmem:[%s7610_s1 + $0xb60] ss:$8 sps:$4 sm:$0xff]  }
 0x1a7   : > { %3022 = vmatpush1.bf16.msra.mxu0 %v5782_v61  ;;  %v5869_v61 = vld [vmem:[%s7610_s1 + $0xf60] ss:$8 sps:$4 sm:$0xff]  }
 0x1a8   : > { %3967 = vmatpush1.bf16.msra.mxu1 %v5785_v62  ;;  %3023 = vmatprep.subr.bf16.mxu0 %v5790_v63  ;;  %v5874_v63 = vld [vmem:[%s7610_s1 + $0xb74] ss:$8 sps:$4 sm:$0xff]  }
 0x1a9   : > { %3968 = vmatprep.subr.bf16.mxu1 %v5793_v0  ;;  %v5877_v0 = vld [vmem:[%s7610_s1 + $0xf74] ss:$8 sps:$4 sm:$0xff]  }
 0x1ab   : > { %3024 = vmatpush1.bf16.msra.mxu0 %v5788_v1  ;;  %v5872_v1 = vld [vmem:[%s7610_s1 + $0xb70] ss:$8 sps:$4 sm:$0xff]  }
 0x1ac   : > { %3969 = vmatpush1.bf16.msra.mxu1 %v5791_v2  ;;  %3025 = vmatprep.subr.bf16.mxu0 %v5796_v3  ;;  %v5875_v2 = vld [vmem:[%s7610_s1 + $0xf70] ss:$8 sps:$4 sm:$0xff]   ;;  %v5880_v3 = vld [vmem:[%s7610_s1 + $0xb84] ss:$8 sps:$4 sm:$0xff]  }
 0x1ad   : > { %3970 = vmatprep.subr.bf16.mxu1 %v5799_v4  ;;  %v5883_v4 = vld [vmem:[%s7610_s1 + $0xf84] ss:$8 sps:$4 sm:$0xff]  }
 0x1af   : > { %3026 = vmatpush1.bf16.msra.mxu0 %v5794_v5  ;;  %v5878_v5 = vld [vmem:[%s7610_s1 + $0xb80] ss:$8 sps:$4 sm:$0xff]  }
 0x1b0   : > { %3971 = vmatpush1.bf16.msra.mxu1 %v5797_v6  ;;  %3027 = vmatprep.subr.bf16.mxu0 %v5802_v7  ;;  %v5881_v6 = vld [vmem:[%s7610_s1 + $0xf80] ss:$8 sps:$4 sm:$0xff]   ;;  %v5886_v7 = vld [vmem:[%s7610_s1 + $0xb94] ss:$8 sps:$4 sm:$0xff]  }
 0x1b1   : > { %3972 = vmatprep.subr.bf16.mxu1 %v5805_v8  ;;  %v5889_v8 = vld [vmem:[%s7610_s1 + $0xf94] ss:$8 sps:$4 sm:$0xff]  }
 0x1b3   : > { %3028 = vmatpush1.bf16.msra.mxu0 %v5800_v9  ;;  %v5884_v9 = vld [vmem:[%s7610_s1 + $0xb90] ss:$8 sps:$4 sm:$0xff]  }
 0x1b4   : > { %3973 = vmatpush1.bf16.msra.mxu1 %v5803_v10  ;;  %3029 = vmatprep.subr.bf16.mxu0 %v5808_v11  ;;  %v5887_v10 = vld [vmem:[%s7610_s1 + $0xf90] ss:$8 sps:$4 sm:$0xff]   ;;  %v5892_v11 = vld [vmem:[%s7610_s1 + $0xba4] ss:$8 sps:$4 sm:$0xff]  }
 0x1b5   : > { %3974 = vmatprep.subr.bf16.mxu1 %v5811_v12  ;;  %v5895_v12 = vld [vmem:[%s7610_s1 + $0xfa4] ss:$8 sps:$4 sm:$0xff]  }
 0x1b7   : > { %3030 = vmatpush1.bf16.msra.mxu0 %v5806_v13  ;;  %v5890_v13 = vld [vmem:[%s7610_s1 + $0xba0] ss:$8 sps:$4 sm:$0xff]  }
 0x1b8   : > { %3975 = vmatpush1.bf16.msra.mxu1 %v5809_v16  ;;  %3031 = vmatprep.subr.bf16.mxu0 %v5814_v17  ;;  %v5893_v16 = vld [vmem:[%s7610_s1 + $0xfa0] ss:$8 sps:$4 sm:$0xff]   ;;  %v5898_v17 = vld [vmem:[%s7610_s1 + $0xbb4] ss:$8 sps:$4 sm:$0xff]  }
 0x1b9   : > { %3976 = vmatprep.subr.bf16.mxu1 %v5817_v20  ;;  %v5901_v20 = vld [vmem:[%s7610_s1 + $0xfb4] ss:$8 sps:$4 sm:$0xff]  }
 0x1bb   : > { %3032 = vmatpush1.bf16.msra.mxu0 %v5812_v21  ;;  %v5896_v21 = vld [vmem:[%s7610_s1 + $0xbb0] ss:$8 sps:$4 sm:$0xff]  }
 0x1bc   : > { %3977 = vmatpush1.bf16.msra.mxu1 %v5815_v22  ;;  %3033 = vmatprep.subr.bf16.mxu0 %v5820_v15  ;;  %v5899_v22 = vld [vmem:[%s7610_s1 + $0xfb0] ss:$8 sps:$4 sm:$0xff]   ;;  %v5904_v15 = vld [vmem:[%s7610_s1 + $0xbc4] ss:$8 sps:$4 sm:$0xff]  }
 0x1bd   : > { %3978 = vmatprep.subr.bf16.mxu1 %v5823_v23  ;;  %v5907_v23 = vld [vmem:[%s7610_s1 + $0xfc4] ss:$8 sps:$4 sm:$0xff]  }
 0x1bf   : > { %3034 = vmatpush1.bf16.msra.mxu0 %v5818_v18  ;;  %v5902_v18 = vld [vmem:[%s7610_s1 + $0xbc0] ss:$8 sps:$4 sm:$0xff]  }
 0x1c0   : > { %3979 = vmatpush1.bf16.msra.mxu1 %v5821_v19  ;;  %3035 = vmatprep.subr.bf16.mxu0 %v5826_v26  ;;  %v5905_v19 = vld [vmem:[%s7610_s1 + $0xfc0] ss:$8 sps:$4 sm:$0xff]   ;;  %v5910_v26 = vld [vmem:[%s7610_s1 + $0xbd4] ss:$8 sps:$4 sm:$0xff]  }
 0x1c1   : > { %3980 = vmatprep.subr.bf16.mxu1 %v5829_v27  ;;  %v5913_v27 = vld [vmem:[%s7610_s1 + $0xfd4] ss:$8 sps:$4 sm:$0xff]  }
 0x1c3   : > { %3036 = vmatpush1.bf16.msra.mxu0 %v5824_v14  ;;  %v5908_v14 = vld [vmem:[%s7610_s1 + $0xbd0] ss:$8 sps:$4 sm:$0xff]  }
 0x1c4   : > { %3981 = vmatpush1.bf16.msra.mxu1 %v5827_v29  ;;  %3048 = vmatprep.subr.bf16.mxu0 %v5832_v30  ;;  %v5911_v29 = vld [vmem:[%s7610_s1 + $0xfd0] ss:$8 sps:$4 sm:$0xff]   ;;  %v5916_v30 = vld [vmem:[%s7610_s1 + $0xbe4] ss:$8 sps:$4 sm:$0xff]  }
 0x1c5   : > { %3993 = vmatprep.subr.bf16.mxu1 %v5835_v31  ;;  %v5919_v31 = vld [vmem:[%s7610_s1 + $0xfe4] ss:$8 sps:$4 sm:$0xff]  }
 0x1c6   : > { %3038 = vmatmul.mubr.bf16.vlgmr.msra.gmra.mrb[0].mxu0 %v4698_v24 }
 0x1c7   : > { %3983 = vmatmul.mubr.bf16.vlgmr.msra.gmra.mrb[4].mxu1 %v4698_v24  ;;  %3049 = vmatpush1.bf16.msra.mxu0 %v5830_v33  ;;  %v5914_v24 = vld [vmem:[%s7610_s1 + $0xbe0] ss:$8 sps:$4 sm:$0xff]  }
 0x1c8   : > { %3994 = vmatpush1.bf16.msra.mxu1 %v5833_v34  ;;  %3050 = vmatprep.subr.bf16.mxu0 %v5838_v35  ;;  %v5917_v33 = vld [vmem:[%s7610_s1 + $0xfe0] ss:$8 sps:$4 sm:$0xff]   ;;  %v5922_v34 = vld [vmem:[%s7610_s1 + $0xbf4] ss:$8 sps:$4 sm:$0xff]  }
 0x1c9   : > { %3995 = vmatprep.subr.bf16.mxu1 %v5841_v28  ;;  %3080 = vmatprep.mubr.bf16.mxu0 %v4701_v36  ;;  %v5925_v35 = vld [vmem:[%s7610_s1 + $0xff4] ss:$8 sps:$4 sm:$0xff]   ;;  %v5920_v28 = vld [vmem:[%s7610_s1 + $0xbf0] ss:$8 sps:$4 sm:$0xff]  }
 0x1ca   : > { %4025 = vmatprep.mubr.bf16.mxu1 %v4701_v36  ;;  %v5923_v36 = vld [vmem:[%s7610_s1 + $0xff0] ss:$8 sps:$4 sm:$0xff]  }
 0x1cb   : > { %3051 = vmatpush1.bf16.msra.mxu0 %v5836_v37  ;;  %v4700_v37 = vcombine.low %v7407_v25, %v7392_v32 }
 0x1cc   : > { %3996 = vmatpush1.bf16.msra.mxu1 %v5839_v38  ;;  %3052 = vmatprep.subr.bf16.mxu0 %v5844_v39  ;;  %v4054_v38 = vlaneseq }
 0x1cd   : > { %3997 = vmatprep.subr.bf16.mxu1 %v5847_v40 }
 0x1ce   : > { %v4055_v39 = vshrl.u32 %v4054_v38, 7 }
 0x1cf   : > { %3053 = vmatpush1.bf16.msra.mxu0 %v5842_v41  ;;  %v4052_v41 = vld [vmem:[%s7611_s2] sm:$0x3] }
 0x1d0   : > { %3998 = vmatpush1.bf16.msra.mxu1 %v5845_v42  ;;  %3054 = vmatprep.subr.bf16.mxu0 %v5850_v43  ;;  %v4056_v40 = vsub.s32 0, %v4055_v39  ;;  %v4060_v42 = vsub.s32 1, %v4055_v39 }
 0x1d1   : > { %3999 = vmatprep.subr.bf16.mxu1 %v5853_v44 }
 0x1d3   : > { %3055 = vmatpush1.bf16.msra.mxu0 %v5848_v45 }
 0x1d4   : > { %4000 = vmatpush1.bf16.msra.mxu1 %v5851_v46  ;;  %3056 = vmatprep.subr.bf16.mxu0 %v5856_v47  ;;  %v5938_v47 = vmov 1966171168  }
 0x1d5   : > { %4001 = vmatprep.subr.bf16.mxu1 %v5859_v48  ;;  %v4082_v32 = vunpack.c.l.s4 %v5938_v47 }
 0x1d7   : > { %3057 = vmatpush1.bf16.msra.mxu0 %v5854_v49 }
 0x1d8   : > { %4002 = vmatpush1.bf16.msra.mxu1 %v5857_v50  ;;  %3058 = vmatprep.subr.bf16.mxu0 %v5862_v51  ;;  %v4057_v50 = vrot.slane %v4052_v41, %v4056_v40 }
 0x1d9   : > { %4003 = vmatprep.subr.bf16.mxu1 %v5865_v52 }
 0x1da   : > { %v7471_v57 = vpop.f32.mrb[0].mxu1 }
 0x1db   : > { %v7473_v58 = vpop.f32.mrb[1].mxu1  ;;  %3059 = vmatpush1.bf16.msra.mxu0 %v5860_v53  ;;  %v2110_v43 = vrot.slane %v7471_v57, 1 }
 0x1dc   : > { %v7475_v59 = vpop.f32.mrb[2].mxu1  ;;  %4004 = vmatpush1.bf16.msra.mxu1 %v5863_v54  ;;  %3060 = vmatprep.subr.bf16.mxu0 %v5868_v55  ;;  %v2111_v44 = vrot.slane %v7473_v58, 1 }
 0x1dd   : > { %v7483_v62 = vpop.f32.mrb[3].mxu1  ;;  %4005 = vmatprep.subr.bf16.mxu1 %v5871_v56  ;;  %v2112_v25 = vrot.slane %v7475_v59, 1  ;;  %v4061_v56 = vrot.slane %v4052_v41, %v4060_v42  ;;  %v4083_v59 = vunpack.c.0.s8 %v4082_v32 }
 0x1de   : > { %v2113_v53 = vrot.slane %v7483_v62, 1 }
 0x1df   : > { %3061 = vmatpush1.bf16.msra.mxu0 %v5866_v60 }
 0x1e0   : > { %4006 = vmatpush1.bf16.msra.mxu1 %v5869_v61  ;;  %3062 = vmatprep.subr.bf16.mxu0 %v5874_v63 }
 0x1e1   : > { %4007 = vmatprep.subr.bf16.mxu1 %v5877_v0 }
 0x1e3   : > { %3063 = vmatpush1.bf16.msra.mxu0 %v5872_v1 }
 0x1e4   : > { %4008 = vmatpush1.bf16.msra.mxu1 %v5875_v2  ;;  %3064 = vmatprep.subr.bf16.mxu0 %v5880_v3 }
 0x1e5   : > { %4009 = vmatprep.subr.bf16.mxu1 %v5883_v4 }
 0x1e7   : > { %3065 = vmatpush1.bf16.msra.mxu0 %v5878_v5 }
 0x1e8   : > { %4010 = vmatpush1.bf16.msra.mxu1 %v5881_v6  ;;  %3066 = vmatprep.subr.bf16.mxu0 %v5886_v7 }
 0x1e9   : > { %4011 = vmatprep.subr.bf16.mxu1 %v5889_v8 }
 0x1eb   : > { %3067 = vmatpush1.bf16.msra.mxu0 %v5884_v9 }
 0x1ec   : > { %4012 = vmatpush1.bf16.msra.mxu1 %v5887_v10  ;;  %3068 = vmatprep.subr.bf16.mxu0 %v5892_v11  ;;  %v4086_v11 = vsub.s32 %v4083_v59, %v4055_v39 }
 0x1ed   : > { %4013 = vmatprep.subr.bf16.mxu1 %v5895_v12 }
 0x1ef   : > { %3069 = vmatpush1.bf16.msra.mxu0 %v5890_v13 }
 0x1f0   : > { %4014 = vmatpush1.bf16.msra.mxu1 %v5893_v16  ;;  %3070 = vmatprep.subr.bf16.mxu0 %v5898_v17 }
 0x1f1   : > { %4015 = vmatprep.subr.bf16.mxu1 %v5901_v20 }
 0x1f3   : > { %3071 = vmatpush1.bf16.msra.mxu0 %v5896_v21 }
 0x1f4   : > { %4016 = vmatpush1.bf16.msra.mxu1 %v5899_v22  ;;  %3072 = vmatprep.subr.bf16.mxu0 %v5904_v15 }
 0x1f5   : > { %4017 = vmatprep.subr.bf16.mxu1 %v5907_v23 }
 0x1f7   : > { %3073 = vmatpush1.bf16.msra.mxu0 %v5902_v18 }
 0x1f8   : > { %4018 = vmatpush1.bf16.msra.mxu1 %v5905_v19  ;;  %3074 = vmatprep.subr.bf16.mxu0 %v5910_v26 }
 0x1f9   : > { %4019 = vmatprep.subr.bf16.mxu1 %v5913_v27 }
 0x1fb   : > { %3075 = vmatpush1.bf16.msra.mxu0 %v5908_v14 }
 0x1fc   : > { %4020 = vmatpush1.bf16.msra.mxu1 %v5911_v29  ;;  %3076 = vmatprep.subr.bf16.mxu0 %v5916_v30 }
 0x1fd   : > { %4021 = vmatprep.subr.bf16.mxu1 %v5919_v31 }
 0x1ff   : > { %3077 = vmatpush1.bf16.msra.mxu0 %v5914_v24 }
 0x200   : > { %4022 = vmatpush1.bf16.msra.mxu1 %v5917_v33  ;;  %3078 = vmatprep.subr.bf16.mxu0 %v5922_v34 }
 0x201   : > { %4023 = vmatprep.subr.bf16.mxu1 %v5925_v35 }
 0x203   : > { %3079 = vmatpush1.bf16.msra.mxu0 %v5920_v28 }
 0x204   : > { %4024 = vmatpush1.bf16.msra.mxu1 %v5923_v36 }
 0x206   : > { %3081 = vmatmul.mubr.bf16.vlgmr.msra.gmra.mrb[0].mxu0 %v4700_v37 }
 0x207   : > { %4026 = vmatmul.mubr.bf16.vlgmr.msra.gmra.mrb[4].mxu1 %v4700_v37 }
 0x2d9   : > { %v3082_v45 = vpop.f32.mrb[0].mxu0 }
 0x2da   : > { %v4027_v46 = vpop.f32.mrb[4].mxu1  ;;  %v5092_v48 = vadd.f32 %v3082_v45, %v2110_v43  ;;  %v3084_v51 = vpop.f32.mrb[1].mxu0 }
 0x2db   : > { %v4040_v49 = vrot.slane %v4027_v46, 1  ;;  %v4029_v52 = vpop.f32.mrb[5].mxu1  ;;  %v5093_v54 = vadd.f32 %v3084_v51, %v2111_v44  ;;  %v3086_v60 = vpop.f32.mrb[2].mxu0 }
 0x2dc   : > { %v4041_v55 = vrot.slane %v4029_v52, 1  ;;  %v4031_v57 = vpop.f32.mrb[6].mxu1  ;;  %v5094_v61 = vadd.f32 %v3086_v60, %v2112_v25  ;;  %v3088_v0 = vpop.f32.mrb[3].mxu0 }
 0x2dd   : > { %v4048_v58 = vadd.f32 %v5092_v48, %v4040_v49  ;;  %v4042_v63 = vrot.slane %v4031_v57, 1  ;;  %v4033_v1 = vpop.f32.mrb[7].mxu1  ;;  %v5095_v3 = vadd.f32 %v3088_v0, %v2113_v53 }
 0x2de   : > { %v4049_v2 = vadd.f32 %v5093_v54, %v4041_v55  ;;  %v4043_v4 = vrot.slane %v4033_v1, 1 }
 0x2df   : > { %v4064_v5 = vadd.f32 %v4057_v50, %v4048_v58  ;;  %v4050_v6 = vadd.f32 %v5094_v61, %v4042_v63 }
 0x2e0   : > { %v4065_v7 = vadd.f32 %v4061_v56, %v4049_v2  ;;  %v4051_v8 = vadd.f32 %v5095_v3, %v4043_v4 }
 0x2e1   : > { %v4068_v62 = vmax.f32 %v4064_v5, 0.0  ;;  %v4066_v9 = vadd.f32 %v4057_v50, %v4050_v6 }
 0x2e2   : > { %v4069_v10 = vmax.f32 %v4065_v7, 0.0  ;;  %v4067_v12 = vadd.f32 %v4061_v56, %v4051_v8 }
 0x2e3   : > { %v4070_v13 = vmax.f32 %v4066_v9, 0.0 }
 0x2e4   : > { %v5086_v16 = vpack.c.bf16 %v4069_v10, %v4068_v62  ;;  %v4071_v17 = vmax.f32 %v4067_v12, 0.0 }
 0x2e6   : > { %v4087_v20 = vrot.slane %v5086_v16, %v4086_v11  ;;  %v5087_v21 = vpack.c.bf16 %v4071_v17, %v4070_v13 }
 0x2e8   : > { %5088 = vst.sshfl [vmem:[%s168_s4] sm:$0x5 pattern:$0x73625140] %v4087_v20  ;;  %v4102_v22 = vrot.slane %v5087_v21, %v4086_v11 }
 0x2ea   : > { %5089 = vst.sshfl [vmem:[%s168_s4 + $0x2] sm:$0x5 pattern:$0x73625140] %v4102_v22 }
 0x2eb PF: > { %s13_s12 = sadd.s32 1, %s5936_s12  }
 0x2ec   : > { %p10_p4 = scmp.ge.s32.totalorder %s13_s12, 4  }
 0x2ee   :  { %12 = sbr.rel (!%p10_p4) target bundleno = 1 (0x1), region = 65 }

// kernel: e_attr_forward.19
= control target key start
LH: loop header
LB: loop body
LE: loop exit
PB: predicated region body
PF: predicated region fallthrough
CT: control target
= control target key end

     0   :  { %s5853_s12 = smov 0   ;;  %s7493_s0 = inlined_call_operand.vmem [shape: bf16[2,16,1024], index: 0, kind: input, shape index: {}]   ;;  %s7494_s1 = inlined_call_operand.vmem [shape: bf16[4,1024,256], index: 1, kind: input, shape index: {}]   ;;  %s7495_s2 = inlined_call_operand.vmem [shape: f32[1,256], index: 2, kind: input, shape index: {}]   ;;  %s7496_s3 = inlined_call_operand.vmem [shape: bf16[2,1,1,256], index: 3, kind: output, shape index: {}]  }
   0x1 LB: > { %s4083_s13 = sadd.s32 4294967295, %s5830_s12   ;;  %p4087_p0 = scmp.ge.s32.totalorder %s5830_s12, 1  ;;  %s5830_s12 = sphi %s5853_s12, %s13_s12  }
   0x2   : > { %p137_p1 = scmp.lt.s32.totalorder %s5830_s12, 3 }
   0x4   : > { %p138_p2 = pnand %p4087_p0, %p137_p1 }
   0x5   : > { %v5040_v0 = vld [vmem:[%s7494_s1 + $0x4] ss:$8 sps:$4 sm:$0xff] (!%p138_p2)   ;;  %v5044_v2 = vld [vmem:[%s7494_s1] ss:$8 sps:$4 sm:$0xff] (!%p138_p2)   ;;  %v5046_v4 = vld [vmem:[%s7494_s1 + $0x14] ss:$8 sps:$4 sm:$0xff] (!%p138_p2)  }
   0x6   : > { %141 = sbr.rel (%p138_p2) target bundleno = 749 (0x2ed), region = 32  ;;  %v5042_v1 = vld [vmem:[%s7494_s1 + $0x404] ss:$8 sps:$4 sm:$0xff] (!%p138_p2)   ;;  %973 = vmatprep.subr.bf16.mxu1 (!%p138_p2), %v5040_v0  ;;  %v5045_v3 = vld [vmem:[%s7494_s1 + $0x400] ss:$8 sps:$4 sm:$0xff] (!%p138_p2)   ;;  %p160_p3 = scmp.lt.s32.totalorder (!%p138_p2), %s4083_s13, 1 }
   0x7   : > { %1908 = vmatprep.subr.bf16.mxu0 (!%p138_p2), %v5042_v1  ;;  %974 = vmatpush1.bf16.msra.mxu1 (!%p138_p2), %v5044_v2  ;;  %v5048_v5 = vld [vmem:[%s7494_s1 + $0x414] ss:$8 sps:$4 sm:$0xff] (!%p138_p2)   ;;  %v5050_v6 = vld [vmem:[%s7494_s1 + $0x10] ss:$8 sps:$4 sm:$0xff] (!%p138_p2)   ;;  %v5052_v8 = vld [vmem:[%s7494_s1 + $0x24] ss:$8 sps:$4 sm:$0xff] (!%p138_p2)  }
   0x8   : > { %1909 = vmatpush1.bf16.msra.mxu0 (!%p138_p2), %v5045_v3  ;;  %975 = vmatprep.subr.bf16.mxu1 (!%p138_p2), %v5046_v4  ;;  %v5051_v7 = vld [vmem:[%s7494_s1 + $0x410] ss:$8 sps:$4 sm:$0xff] (!%p138_p2)   ;;  %v5054_v9 = vld [vmem:[%s7494_s1 + $0x424] ss:$8 sps:$4 sm:$0xff] (!%p138_p2)   ;;  %v5056_v10 = vld [vmem:[%s7494_s1 + $0x20] ss:$8 sps:$4 sm:$0xff] (!%p138_p2)  }
   0x9   : > { %1910 = vmatprep.subr.bf16.mxu0 (!%p138_p2), %v5048_v5  ;;  %v5057_v11 = vld [vmem:[%s7494_s1 + $0x420] ss:$8 sps:$4 sm:$0xff] (!%p138_p2)   ;;  %v5058_v12 = vld [vmem:[%s7494_s1 + $0x34] ss:$8 sps:$4 sm:$0xff] (!%p138_p2)   ;;  %v5062_v14 = vld [vmem:[%s7494_s1 + $0x30] ss:$8 sps:$4 sm:$0xff] (!%p138_p2)  }
   0xa   : > { %v5060_v13 = vld [vmem:[%s7494_s1 + $0x434] ss:$8 sps:$4 sm:$0xff] (!%p138_p2)   ;;  %v5063_v15 = vld [vmem:[%s7494_s1 + $0x430] ss:$8 sps:$4 sm:$0xff] (!%p138_p2)   ;;  %v5064_v16 = vld [vmem:[%s7494_s1 + $0x44] ss:$8 sps:$4 sm:$0xff] (!%p138_p2)  }
   0xb   : > { %976 = vmatpush1.bf16.msra.mxu1 (!%p138_p2), %v5050_v6  ;;  %v5066_v17 = vld [vmem:[%s7494_s1 + $0x444] ss:$8 sps:$4 sm:$0xff] (!%p138_p2)   ;;  %v5068_v18 = vld [vmem:[%s7494_s1 + $0x40] ss:$8 sps:$4 sm:$0xff] (!%p138_p2)   ;;  %v5070_v20 = vld [vmem:[%s7494_s1 + $0x54] ss:$8 sps:$4 sm:$0xff] (!%p138_p2)  }
   0xc   : > { %1911 = vmatpush1.bf16.msra.mxu0 (!%p138_p2), %v5051_v7  ;;  %977 = vmatprep.subr.bf16.mxu1 (!%p138_p2), %v5052_v8  ;;  %v5069_v19 = vld [vmem:[%s7494_s1 + $0x440] ss:$8 sps:$4 sm:$0xff] (!%p138_p2)   ;;  %v5072_v21 = vld [vmem:[%s7494_s1 + $0x454] ss:$8 sps:$4 sm:$0xff] (!%p138_p2)   ;;  %v5074_v22 = vld [vmem:[%s7494_s1 + $0x50] ss:$8 sps:$4 sm:$0xff] (!%p138_p2)  }
   0xd   : > { %1912 = vmatprep.subr.bf16.mxu0 %v5054_v9  ;;  %v5075_v23 = vld [vmem:[%s7494_s1 + $0x450] ss:$8 sps:$4 sm:$0xff]   ;;  %v5076_v24 = vld [vmem:[%s7494_s1 + $0x64] ss:$8 sps:$4 sm:$0xff]   ;;  %v5080_v26 = vld [vmem:[%s7494_s1 + $0x60] ss:$8 sps:$4 sm:$0xff]  }
   0xe   : > { %v5078_v25 = vld [vmem:[%s7494_s1 + $0x464] ss:$8 sps:$4 sm:$0xff]   ;;  %v5081_v27 = vld [vmem:[%s7494_s1 + $0x460] ss:$8 sps:$4 sm:$0xff]   ;;  %v5082_v28 = vld [vmem:[%s7494_s1 + $0x74] ss:$8 sps:$4 sm:$0xff]  }
   0xf   : > { %978 = vmatpush1.bf16.msra.mxu1 %v5056_v10  ;;  %v5084_v29 = vld [vmem:[%s7494_s1 + $0x474] ss:$8 sps:$4 sm:$0xff]   ;;  %v5086_v30 = vld [vmem:[%s7494_s1 + $0x70] ss:$8 sps:$4 sm:$0xff]   ;;  %v5088_v32 = vld [vmem:[%s7494_s1 + $0x84] ss:$8 sps:$4 sm:$0xff]  }
  0x10   : > { %1913 = vmatpush1.bf16.msra.mxu0 %v5057_v11  ;;  %979 = vmatprep.subr.bf16.mxu1 %v5058_v12  ;;  %v5087_v31 = vld [vmem:[%s7494_s1 + $0x470] ss:$8 sps:$4 sm:$0xff]   ;;  %v5090_v33 = vld [vmem:[%s7494_s1 + $0x484] ss:$8 sps:$4 sm:$0xff]   ;;  %v5092_v34 = vld [vmem:[%s7494_s1 + $0x80] ss:$8 sps:$4 sm:$0xff]  }
  0x11   : > { %1914 = vmatprep.subr.bf16.mxu0 %v5060_v13  ;;  %v5093_v35 = vld [vmem:[%s7494_s1 + $0x480] ss:$8 sps:$4 sm:$0xff]   ;;  %v5094_v36 = vld [vmem:[%s7494_s1 + $0x94] ss:$8 sps:$4 sm:$0xff]   ;;  %s7498_s13 = smov (!%p160_p3, %s4083_s13), 1  ;;  %vm4020_vm0 = vcmask 1040384  }
  0x12   : > { %v5096_v37 = vld [vmem:[%s7494_s1 + $0x494] ss:$8 sps:$4 sm:$0xff]   ;;  %v5098_v38 = vld [vmem:[%s7494_s1 + $0x90] ss:$8 sps:$4 sm:$0xff]   ;;  %v5100_v40 = vld [vmem:[%s7494_s1 + $0xa4] ss:$8 sps:$4 sm:$0xff]  }
  0x13   : > { %980 = vmatpush1.bf16.msra.mxu1 %v5062_v14  ;;  %v5099_v39 = vld [vmem:[%s7494_s1 + $0x490] ss:$8 sps:$4 sm:$0xff]   ;;  %s5006_s21 = sshll.u32 %s7498_s13, 6  ;;  %v5102_v41 = vld [vmem:[%s7494_s1 + $0x4a4] ss:$8 sps:$4 sm:$0xff]   ;;  %s4090_s27 = sshll.u32 %s7498_s13, 1 }
  0x14   : > { %1915 = vmatpush1.bf16.msra.mxu0 %v5063_v15  ;;  %981 = vmatprep.subr.bf16.mxu1 %v5064_v16  ;;  %v5104_v42 = vld [vmem:[%s7494_s1 + $0xa0] ss:$8 sps:$4 sm:$0xff]   ;;  %s6003_s30 = scalar_lea.vmem %s7493_s0, %s5006_s21  ;;  %v5106_v44 = vld [vmem:[%s7494_s1 + $0xb4] ss:$8 sps:$4 sm:$0xff]   ;;  %v5110_v47 = vld [vmem:[%s7494_s1 + $0xb0] ss:$8 sps:$4 sm:$0xff]   ;;  %s168_s4 = scalar_lea.vmem %s7496_s3, %s4090_s27 }
  0x15   : > { %1916 = vmatprep.subr.bf16.mxu0 %v5066_v17  ;;  %v5105_v43 = vld [vmem:[%s7494_s1 + $0x4a0] ss:$8 sps:$4 sm:$0xff]   ;;  %v5108_v45 = vld [vmem:[%s7494_s1 + $0x4b4] ss:$8 sps:$4 sm:$0xff]   ;;  %v5111_v49 = vld [vmem:[%s7494_s1 + $0x4b0] ss:$8 sps:$4 sm:$0xff]  }
  0x16   : > { %v169_v46 = vld [vmem:[%s6003_s30] sm:$0xff]  ;;  %v5118_v54 = vld [vmem:[%s7494_s1 + $0xd4] ss:$8 sps:$4 sm:$0xff]   ;;  %v5122_v56 = vld [vmem:[%s7494_s1 + $0xd0] ss:$8 sps:$4 sm:$0xff]   ;;  %vm4023_vm2 = vcmask 1041409  }
  0x17   : > { %982 = vmatpush1.bf16.msra.mxu1 %v5068_v18  ;;  %v4092_v48 = vcombine.high %v169_v46, %v169_v46  ;;  %v5112_v50 = vld [vmem:[%s7494_s1 + $0xc4] ss:$8 sps:$4 sm:$0xff]   ;;  %v5116_v52 = vld [vmem:[%s7494_s1 + $0xc0] ss:$8 sps:$4 sm:$0xff]   ;;  %v5120_v55 = vld [vmem:[%s7494_s1 + $0x4d4] ss:$8 sps:$4 sm:$0xff]   ;;  %v4091_v4 = vcombine.low %v169_v46, %v169_v46 }
  0x18   : > { %1917 = vmatpush1.bf16.msra.mxu0 %v5069_v19  ;;  %983 = vmatprep.subr.bf16.mxu1 %v5070_v20  ;;  %v5114_v51 = vld [vmem:[%s7494_s1 + $0x4c4] ss:$8 sps:$4 sm:$0xff]   ;;  %v5117_v53 = vld [vmem:[%s7494_s1 + $0x4c0] ss:$8 sps:$4 sm:$0xff]   ;;  %v5123_v57 = vld [vmem:[%s7494_s1 + $0x4d0] ss:$8 sps:$4 sm:$0xff]  }
  0x19   : > { %1918 = vmatprep.subr.bf16.mxu0 %v5072_v21  ;;  %1005 = vmatprep.mubr.bf16.mxu1 %v4092_v48  ;;  %v5124_v58 = vld [vmem:[%s7494_s1 + $0xe4] ss:$8 sps:$4 sm:$0xff]   ;;  %v5128_v60 = vld [vmem:[%s7494_s1 + $0xe0] ss:$8 sps:$4 sm:$0xff]   ;;  %v5130_v62 = vld [vmem:[%s7494_s1 + $0xf4] ss:$8 sps:$4 sm:$0xff]  }
  0x1a   : > { %1940 = vmatprep.mubr.bf16.mxu0 %v4092_v48  ;;  %v5126_v59 = vld [vmem:[%s7494_s1 + $0x4e4] ss:$8 sps:$4 sm:$0xff]   ;;  %v5129_v61 = vld [vmem:[%s7494_s1 + $0x4e0] ss:$8 sps:$4 sm:$0xff]   ;;  %v5132_v63 = vld [vmem:[%s7494_s1 + $0x4f4] ss:$8 sps:$4 sm:$0xff]  }
  0x1b   : > { %984 = vmatpush1.bf16.msra.mxu1 %v5074_v22  ;;  %v5134_v0 = vld [vmem:[%s7494_s1 + $0xf0] ss:$8 sps:$4 sm:$0xff]   ;;  %v5140_v2 = vld [vmem:[%s7494_s1 + $0x104] ss:$8 sps:$4 sm:$0xff]   ;;  %v5138_v5 = vld [vmem:[%s7494_s1 + $0x100] ss:$8 sps:$4 sm:$0xff]  }
  0x1c   : > { %1919 = vmatpush1.bf16.msra.mxu0 %v5075_v23  ;;  %985 = vmatprep.subr.bf16.mxu1 %v5076_v24  ;;  %v5135_v1 = vld [vmem:[%s7494_s1 + $0x4f0] ss:$8 sps:$4 sm:$0xff]   ;;  %v5143_v3 = vld [vmem:[%s7494_s1 + $0x504] ss:$8 sps:$4 sm:$0xff]   ;;  %v5141_v6 = vld [vmem:[%s7494_s1 + $0x500] ss:$8 sps:$4 sm:$0xff]  }
  0x1d   : > { %1920 = vmatprep.subr.bf16.mxu0 %v5078_v25  ;;  %v5146_v7 = vld [vmem:[%s7494_s1 + $0x114] ss:$8 sps:$4 sm:$0xff]   ;;  %v5144_v9 = vld [vmem:[%s7494_s1 + $0x110] ss:$8 sps:$4 sm:$0xff]   ;;  %v5152_v11 = vld [vmem:[%s7494_s1 + $0x124] ss:$8 sps:$4 sm:$0xff]  }
  0x1e   : > { %v5149_v8 = vld [vmem:[%s7494_s1 + $0x514] ss:$8 sps:$4 sm:$0xff]   ;;  %v5147_v10 = vld [vmem:[%s7494_s1 + $0x510] ss:$8 sps:$4 sm:$0xff]   ;;  %v5155_v12 = vld [vmem:[%s7494_s1 + $0x524] ss:$8 sps:$4 sm:$0xff]  }
  0x1f   : > { %986 = vmatpush1.bf16.msra.mxu1 %v5080_v26  ;;  %v5150_v13 = vld [vmem:[%s7494_s1 + $0x120] ss:$8 sps:$4 sm:$0xff]   ;;  %v5158_v15 = vld [vmem:[%s7494_s1 + $0x134] ss:$8 sps:$4 sm:$0xff]   ;;  %v5156_v17 = vld [vmem:[%s7494_s1 + $0x130] ss:$8 sps:$4 sm:$0xff]  }
  0x20   : > { %1921 = vmatpush1.bf16.msra.mxu0 %v5081_v27  ;;  %987 = vmatprep.subr.bf16.mxu1 %v5082_v28  ;;  %v5153_v14 = vld [vmem:[%s7494_s1 + $0x520] ss:$8 sps:$4 sm:$0xff]   ;;  %v5161_v16 = vld [vmem:[%s7494_s1 + $0x534] ss:$8 sps:$4 sm:$0xff]   ;;  %v5159_v18 = vld [vmem:[%s7494_s1 + $0x530] ss:$8 sps:$4 sm:$0xff]  }
  0x21   : > { %1922 = vmatprep.subr.bf16.mxu0 %v5084_v29  ;;  %v5164_v19 = vld [vmem:[%s7494_s1 + $0x144] ss:$8 sps:$4 sm:$0xff]   ;;  %v5162_v21 = vld [vmem:[%s7494_s1 + $0x140] ss:$8 sps:$4 sm:$0xff]   ;;  %v5170_v23 = vld [vmem:[%s7494_s1 + $0x154] ss:$8 sps:$4 sm:$0xff]  }
  0x22   : > { %v5167_v20 = vld [vmem:[%s7494_s1 + $0x544] ss:$8 sps:$4 sm:$0xff]   ;;  %v5165_v22 = vld [vmem:[%s7494_s1 + $0x540] ss:$8 sps:$4 sm:$0xff]   ;;  %v5173_v24 = vld [vmem:[%s7494_s1 + $0x554] ss:$8 sps:$4 sm:$0xff]  }
  0x23   : > { %988 = vmatpush1.bf16.msra.mxu1 %v5086_v30  ;;  %v5168_v25 = vld [vmem:[%s7494_s1 + $0x150] ss:$8 sps:$4 sm:$0xff]   ;;  %v5176_v27 = vld [vmem:[%s7494_s1 + $0x164] ss:$8 sps:$4 sm:$0xff]   ;;  %v5201_v48 = vld [vmem:[%s7494_s1 + $0x5a0] ss:$8 sps:$4 sm:$0xff]  }
  0x24   : > { %1923 = vmatpush1.bf16.msra.mxu0 %v5087_v31  ;;  %989 = vmatprep.subr.bf16.mxu1 %v5088_v32  ;;  %v5171_v26 = vld [vmem:[%s7494_s1 + $0x550] ss:$8 sps:$4 sm:$0xff]   ;;  %v5179_v28 = vld [vmem:[%s7494_s1 + $0x564] ss:$8 sps:$4 sm:$0xff]   ;;  %v5174_v31 = vld [vmem:[%s7494_s1 + $0x160] ss:$8 sps:$4 sm:$0xff]  }
  0x25   : > { %1924 = vmatprep.subr.bf16.mxu0 %v5090_v33  ;;  %v6145_v29 = vld [vmem:[%s6003_s30 + $0x8] sm:$0xff]  ;;  %v5182_v33 = vld [vmem:[%s7494_s1 + $0x174] ss:$8 sps:$4 sm:$0xff]   ;;  %vm4021_vm1 = vsmask.f32 256 }
  0x26   : > { %v4094_v30 = vcombine.high %v6145_v29, %v6145_v29  ;;  %v5177_v32 = vld [vmem:[%s7494_s1 + $0x560] ss:$8 sps:$4 sm:$0xff]   ;;  %v5203_v46 = vld [vmem:[%s7494_s1 + $0x5a4] ss:$8 sps:$4 sm:$0xff]   ;;  %vm4024_vm3 = vsmask.f32 1280  ;;  %vm4022_vm4 = vmand %vm4020_vm0, %vm4021_vm1 }
  0x27   : > { %990 = vmatpush1.bf16.msra.mxu1 %v5092_v34  ;;  %v5185_v34 = vld [vmem:[%s7494_s1 + $0x574] ss:$8 sps:$4 sm:$0xff]   ;;  %vm4025_vm5 = vmand %vm4023_vm2, %vm4024_vm3 }
  0x28   : > { %1925 = vmatpush1.bf16.msra.mxu0 %v5093_v35  ;;  %991 = vmatprep.subr.bf16.mxu1 %v5094_v36  ;;  %v5180_v35 = vld [vmem:[%s7494_s1 + $0x170] ss:$8 sps:$4 sm:$0xff]   ;;  %vm4026_vm6 = vmor %vm4025_vm5, %vm4022_vm4 }
  0x29   : > { %1926 = vmatprep.subr.bf16.mxu0 %v5096_v37  ;;  %v5183_v36 = vld [vmem:[%s7494_s1 + $0x570] ss:$8 sps:$4 sm:$0xff]   ;;  %v5188_v37 = vld [vmem:[%s7494_s1 + $0x184] ss:$8 sps:$4 sm:$0xff]  }
  0x2b   : > { %992 = vmatpush1.bf16.msra.mxu1 %v5098_v38  ;;  %v5191_v38 = vld [vmem:[%s7494_s1 + $0x584] ss:$8 sps:$4 sm:$0xff]  }
  0x2c   : > { %1927 = vmatpush1.bf16.msra.mxu0 %v5099_v39  ;;  %993 = vmatprep.subr.bf16.mxu1 %v5100_v40  ;;  %v5186_v39 = vld [vmem:[%s7494_s1 + $0x180] ss:$8 sps:$4 sm:$0xff]  }
  0x2d   : > { %1928 = vmatprep.subr.bf16.mxu0 %v5102_v41  ;;  %v5189_v40 = vld [vmem:[%s7494_s1 + $0x580] ss:$8 sps:$4 sm:$0xff]   ;;  %v5194_v41 = vld [vmem:[%s7494_s1 + $0x194] ss:$8 sps:$4 sm:$0xff]  }
  0x2f   : > { %994 = vmatpush1.bf16.msra.mxu1 %v5104_v42  ;;  %v5197_v42 = vld [vmem:[%s7494_s1 + $0x594] ss:$8 sps:$4 sm:$0xff]  }
  0x30   : > { %1929 = vmatpush1.bf16.msra.mxu0 %v5105_v43  ;;  %995 = vmatprep.subr.bf16.mxu1 %v5106_v44  ;;  %v5192_v43 = vld [vmem:[%s7494_s1 + $0x190] ss:$8 sps:$4 sm:$0xff]  }
  0x31   : > { %1930 = vmatprep.subr.bf16.mxu0 %v5108_v45  ;;  %v5195_v44 = vld [vmem:[%s7494_s1 + $0x590] ss:$8 sps:$4 sm:$0xff]   ;;  %v5200_v45 = vld [vmem:[%s7494_s1 + $0x1a4] ss:$8 sps:$4 sm:$0xff]  }
  0x33   : > { %996 = vmatpush1.bf16.msra.mxu1 %v5110_v47  ;;  %v5198_v47 = vld [vmem:[%s7494_s1 + $0x1a0] ss:$8 sps:$4 sm:$0xff]  }
  0x34   : > { %1931 = vmatpush1.bf16.msra.mxu0 %v5111_v49  ;;  %997 = vmatprep.subr.bf16.mxu1 %v5112_v50  ;;  %v5206_v49 = vld [vmem:[%s7494_s1 + $0x1b4] ss:$8 sps:$4 sm:$0xff]  }
  0x35   : > { %1932 = vmatprep.subr.bf16.mxu0 %v5114_v51  ;;  %v5209_v50 = vld [vmem:[%s7494_s1 + $0x5b4] ss:$8 sps:$4 sm:$0xff]   ;;  %v5204_v51 = vld [vmem:[%s7494_s1 + $0x1b0] ss:$8 sps:$4 sm:$0xff]  }
  0x37   : > { %998 = vmatpush1.bf16.msra.mxu1 %v5116_v52  ;;  %v5207_v52 = vld [vmem:[%s7494_s1 + $0x5b0] ss:$8 sps:$4 sm:$0xff]  }
  0x38   : > { %1933 = vmatpush1.bf16.msra.mxu0 %v5117_v53  ;;  %999 = vmatprep.subr.bf16.mxu1 %v5118_v54  ;;  %v5212_v53 = vld [vmem:[%s7494_s1 + $0x1c4] ss:$8 sps:$4 sm:$0xff]  }
  0x39   : > { %1934 = vmatprep.subr.bf16.mxu0 %v5120_v55  ;;  %v5215_v54 = vld [vmem:[%s7494_s1 + $0x5c4] ss:$8 sps:$4 sm:$0xff]   ;;  %v5210_v55 = vld [vmem:[%s7494_s1 + $0x1c0] ss:$8 sps:$4 sm:$0xff]  }
  0x3b   : > { %1000 = vmatpush1.bf16.msra.mxu1 %v5122_v56  ;;  %v5213_v56 = vld [vmem:[%s7494_s1 + $0x5c0] ss:$8 sps:$4 sm:$0xff]  }
  0x3c   : > { %1935 = vmatpush1.bf16.msra.mxu0 %v5123_v57  ;;  %1001 = vmatprep.subr.bf16.mxu1 %v5124_v58  ;;  %v5218_v57 = vld [vmem:[%s7494_s1 + $0x1d4] ss:$8 sps:$4 sm:$0xff]  }
  0x3d   : > { %1936 = vmatprep.subr.bf16.mxu0 %v5126_v59  ;;  %v5221_v58 = vld [vmem:[%s7494_s1 + $0x5d4] ss:$8 sps:$4 sm:$0xff]   ;;  %v5216_v59 = vld [vmem:[%s7494_s1 + $0x1d0] ss:$8 sps:$4 sm:$0xff]  }
  0x3f   : > { %1002 = vmatpush1.bf16.msra.mxu1 %v5128_v60  ;;  %v5219_v60 = vld [vmem:[%s7494_s1 + $0x5d0] ss:$8 sps:$4 sm:$0xff]  }
  0x40   : > { %1937 = vmatpush1.bf16.msra.mxu0 %v5129_v61  ;;  %1003 = vmatprep.subr.bf16.mxu1 %v5130_v62  ;;  %v5224_v61 = vld [vmem:[%s7494_s1 + $0x1e4] ss:$8 sps:$4 sm:$0xff]  }
  0x41   : > { %1938 = vmatprep.subr.bf16.mxu0 %v5132_v63  ;;  %v5227_v62 = vld [vmem:[%s7494_s1 + $0x5e4] ss:$8 sps:$4 sm:$0xff]   ;;  %v5222_v63 = vld [vmem:[%s7494_s1 + $0x1e0] ss:$8 sps:$4 sm:$0xff]  }
  0x43   : > { %1004 = vmatpush1.bf16.msra.mxu1 %v5134_v0  ;;  %v5225_v0 = vld [vmem:[%s7494_s1 + $0x5e0] ss:$8 sps:$4 sm:$0xff]  }
  0x44   : > { %1939 = vmatpush1.bf16.msra.mxu0 %v5135_v1  ;;  %1014 = vmatprep.subr.bf16.mxu1 %v5140_v2  ;;  %v5230_v1 = vld [vmem:[%s7494_s1 + $0x1f4] ss:$8 sps:$4 sm:$0xff]  }
  0x45   : > { %1949 = vmatprep.subr.bf16.mxu0 %v5143_v3  ;;  %v5233_v2 = vld [vmem:[%s7494_s1 + $0x5f4] ss:$8 sps:$4 sm:$0xff]   ;;  %v5228_v3 = vld [vmem:[%s7494_s1 + $0x1f0] ss:$8 sps:$4 sm:$0xff]  }
  0x46   : > { %1006 = vmatmul.mubr.bf16.vlgmr.msra.gmra.mrb[0].mxu1 %v4091_v4 }
  0x47   : > { %1941 = vmatmul.mubr.bf16.vlgmr.msra.gmra.mrb[0].mxu0 %v4091_v4  ;;  %1015 = vmatpush1.bf16.msra.mxu1 %v5138_v5  ;;  %v5231_v4 = vld [vmem:[%s7494_s1 + $0x5f0] ss:$8 sps:$4 sm:$0xff]   ;;  %v5238_v5 = vld [vmem:[%s7494_s1 + $0x204] ss:$8 sps:$4 sm:$0xff]  }
  0x48   : > { %1950 = vmatpush1.bf16.msra.mxu0 %v5141_v6  ;;  %1016 = vmatprep.subr.bf16.mxu1 %v5146_v7  ;;  %v5241_v6 = vld [vmem:[%s7494_s1 + $0x604] ss:$8 sps:$4 sm:$0xff]   ;;  %v4093_v7 = vcombine.low %v6145_v29, %v6145_v29  ;;  %v5271_v29 = vld [vmem:[%s7494_s1 + $0x654] ss:$8 sps:$4 sm:$0xff]  }
  0x49   : > { %1951 = vmatprep.subr.bf16.mxu0 %v5149_v8  ;;  %1046 = vmatprep.mubr.bf16.mxu1 %v4094_v30  ;;  %v5236_v8 = vld [vmem:[%s7494_s1 + $0x200] ss:$8 sps:$4 sm:$0xff]  }
  0x4a   : > { %1981 = vmatprep.mubr.bf16.mxu0 %v4094_v30  ;;  %v5266_v30 = vld [vmem:[%s7494_s1 + $0x250] ss:$8 sps:$4 sm:$0xff]  }
  0x4b   : > { %1017 = vmatpush1.bf16.msra.mxu1 %v5144_v9  ;;  %v5239_v9 = vld [vmem:[%s7494_s1 + $0x600] ss:$8 sps:$4 sm:$0xff]  }
  0x4c   : > { %1952 = vmatpush1.bf16.msra.mxu0 %v5147_v10  ;;  %1018 = vmatprep.subr.bf16.mxu1 %v5152_v11  ;;  %v5244_v10 = vld [vmem:[%s7494_s1 + $0x214] ss:$8 sps:$4 sm:$0xff]  }
  0x4d   : > { %1953 = vmatprep.subr.bf16.mxu0 %v5155_v12  ;;  %v6281_v11 = vld [vmem:[%s6003_s30 + $0x10] sm:$0xff] }
  0x4e   : > { %v5247_v12 = vld [vmem:[%s7494_s1 + $0x614] ss:$8 sps:$4 sm:$0xff]  }
  0x4f   : > { %1019 = vmatpush1.bf16.msra.mxu1 %v5150_v13  ;;  %v4096_v13 = vcombine.high %v6281_v11, %v6281_v11 }
  0x50   : > { %1954 = vmatpush1.bf16.msra.mxu0 %v5153_v14  ;;  %1020 = vmatprep.subr.bf16.mxu1 %v5158_v15  ;;  %v5242_v14 = vld [vmem:[%s7494_s1 + $0x210] ss:$8 sps:$4 sm:$0xff]  }
  0x51   : > { %1955 = vmatprep.subr.bf16.mxu0 %v5161_v16  ;;  %v5245_v15 = vld [vmem:[%s7494_s1 + $0x610] ss:$8 sps:$4 sm:$0xff]   ;;  %v5250_v16 = vld [vmem:[%s7494_s1 + $0x224] ss:$8 sps:$4 sm:$0xff]  }
  0x53   : > { %1021 = vmatpush1.bf16.msra.mxu1 %v5156_v17  ;;  %v5253_v17 = vld [vmem:[%s7494_s1 + $0x624] ss:$8 sps:$4 sm:$0xff]  }
  0x54   : > { %1956 = vmatpush1.bf16.msra.mxu0 %v5159_v18  ;;  %1022 = vmatprep.subr.bf16.mxu1 %v5164_v19  ;;  %v5248_v18 = vld [vmem:[%s7494_s1 + $0x220] ss:$8 sps:$4 sm:$0xff]  }
  0x55   : > { %1957 = vmatprep.subr.bf16.mxu0 %v5167_v20  ;;  %v5251_v19 = vld [vmem:[%s7494_s1 + $0x620] ss:$8 sps:$4 sm:$0xff]   ;;  %v5256_v20 = vld [vmem:[%s7494_s1 + $0x234] ss:$8 sps:$4 sm:$0xff]  }
  0x57   : > { %1023 = vmatpush1.bf16.msra.mxu1 %v5162_v21  ;;  %v5259_v21 = vld [vmem:[%s7494_s1 + $0x634] ss:$8 sps:$4 sm:$0xff]  }
  0x58   : > { %1958 = vmatpush1.bf16.msra.mxu0 %v5165_v22  ;;  %1024 = vmatprep.subr.bf16.mxu1 %v5170_v23  ;;  %v5254_v22 = vld [vmem:[%s7494_s1 + $0x230] ss:$8 sps:$4 sm:$0xff]  }
  0x59   : > { %1959 = vmatprep.subr.bf16.mxu0 %v5173_v24  ;;  %v5257_v23 = vld [vmem:[%s7494_s1 + $0x630] ss:$8 sps:$4 sm:$0xff]   ;;  %v5262_v24 = vld [vmem:[%s7494_s1 + $0x244] ss:$8 sps:$4 sm:$0xff]  }
  0x5b   : > { %1025 = vmatpush1.bf16.msra.mxu1 %v5168_v25  ;;  %v5265_v25 = vld [vmem:[%s7494_s1 + $0x644] ss:$8 sps:$4 sm:$0xff]  }
  0x5c   : > { %1960 = vmatpush1.bf16.msra.mxu0 %v5171_v26  ;;  %1026 = vmatprep.subr.bf16.mxu1 %v5176_v27  ;;  %v5260_v26 = vld [vmem:[%s7494_s1 + $0x240] ss:$8 sps:$4 sm:$0xff]  }
  0x5d   : > { %1961 = vmatprep.subr.bf16.mxu0 %v5179_v28  ;;  %v5263_v27 = vld [vmem:[%s7494_s1 + $0x640] ss:$8 sps:$4 sm:$0xff]   ;;  %v5268_v28 = vld [vmem:[%s7494_s1 + $0x254] ss:$8 sps:$4 sm:$0xff]  }
  0x5f   : > { %1027 = vmatpush1.bf16.msra.mxu1 %v5174_v31  ;;  %v5269_v31 = vld [vmem:[%s7494_s1 + $0x650] ss:$8 sps:$4 sm:$0xff]  }
  0x60   : > { %1962 = vmatpush1.bf16.msra.mxu0 %v5177_v32  ;;  %1028 = vmatprep.subr.bf16.mxu1 %v5182_v33  ;;  %v5274_v32 = vld [vmem:[%s7494_s1 + $0x264] ss:$8 sps:$4 sm:$0xff]  }
  0x61   : > { %1963 = vmatprep.subr.bf16.mxu0 %v5185_v34  ;;  %v5277_v33 = vld [vmem:[%s7494_s1 + $0x664] ss:$8 sps:$4 sm:$0xff]   ;;  %v5272_v34 = vld [vmem:[%s7494_s1 + $0x260] ss:$8 sps:$4 sm:$0xff]  }
  0x63   : > { %1029 = vmatpush1.bf16.msra.mxu1 %v5180_v35  ;;  %v5275_v35 = vld [vmem:[%s7494_s1 + $0x660] ss:$8 sps:$4 sm:$0xff]  }
  0x64   : > { %1964 = vmatpush1.bf16.msra.mxu0 %v5183_v36  ;;  %1030 = vmatprep.subr.bf16.mxu1 %v5188_v37  ;;  %v5280_v36 = vld [vmem:[%s7494_s1 + $0x274] ss:$8 sps:$4 sm:$0xff]  }
  0x65   : > { %1965 = vmatprep.subr.bf16.mxu0 %v5191_v38  ;;  %v5283_v37 = vld [vmem:[%s7494_s1 + $0x674] ss:$8 sps:$4 sm:$0xff]   ;;  %v5278_v38 = vld [vmem:[%s7494_s1 + $0x270] ss:$8 sps:$4 sm:$0xff]  }
  0x67   : > { %1031 = vmatpush1.bf16.msra.mxu1 %v5186_v39  ;;  %v5281_v39 = vld [vmem:[%s7494_s1 + $0x670] ss:$8 sps:$4 sm:$0xff]  }
  0x68   : > { %1966 = vmatpush1.bf16.msra.mxu0 %v5189_v40  ;;  %1032 = vmatprep.subr.bf16.mxu1 %v5194_v41  ;;  %v5286_v40 = vld [vmem:[%s7494_s1 + $0x284] ss:$8 sps:$4 sm:$0xff]  }
  0x69   : > { %1967 = vmatprep.subr.bf16.mxu0 %v5197_v42  ;;  %v5289_v41 = vld [vmem:[%s7494_s1 + $0x684] ss:$8 sps:$4 sm:$0xff]   ;;  %v5284_v42 = vld [vmem:[%s7494_s1 + $0x280] ss:$8 sps:$4 sm:$0xff]  }
  0x6b   : > { %1033 = vmatpush1.bf16.msra.mxu1 %v5192_v43  ;;  %v5287_v43 = vld [vmem:[%s7494_s1 + $0x680] ss:$8 sps:$4 sm:$0xff]  }
  0x6c   : > { %1968 = vmatpush1.bf16.msra.mxu0 %v5195_v44  ;;  %1034 = vmatprep.subr.bf16.mxu1 %v5200_v45  ;;  %v5292_v44 = vld [vmem:[%s7494_s1 + $0x294] ss:$8 sps:$4 sm:$0xff]  }
  0x6d   : > { %1969 = vmatprep.subr.bf16.mxu0 %v5203_v46  ;;  %v5295_v45 = vld [vmem:[%s7494_s1 + $0x694] ss:$8 sps:$4 sm:$0xff]   ;;  %v5290_v46 = vld [vmem:[%s7494_s1 + $0x290] ss:$8 sps:$4 sm:$0xff]  }
  0x6f   : > { %1035 = vmatpush1.bf16.msra.mxu1 %v5198_v47  ;;  %v5293_v47 = vld [vmem:[%s7494_s1 + $0x690] ss:$8 sps:$4 sm:$0xff]  }
  0x70   : > { %1970 = vmatpush1.bf16.msra.mxu0 %v5201_v48  ;;  %1036 = vmatprep.subr.bf16.mxu1 %v5206_v49  ;;  %v5298_v48 = vld [vmem:[%s7494_s1 + $0x2a4] ss:$8 sps:$4 sm:$0xff]  }
  0x71   : > { %1971 = vmatprep.subr.bf16.mxu0 %v5209_v50  ;;  %v5301_v49 = vld [vmem:[%s7494_s1 + $0x6a4] ss:$8 sps:$4 sm:$0xff]   ;;  %v5296_v50 = vld [vmem:[%s7494_s1 + $0x2a0] ss:$8 sps:$4 sm:$0xff]  }
  0x73   : > { %1037 = vmatpush1.bf16.msra.mxu1 %v5204_v51  ;;  %v5299_v51 = vld [vmem:[%s7494_s1 + $0x6a0] ss:$8 sps:$4 sm:$0xff]  }
  0x74   : > { %1972 = vmatpush1.bf16.msra.mxu0 %v5207_v52  ;;  %1038 = vmatprep.subr.bf16.mxu1 %v5212_v53  ;;  %v5304_v52 = vld [vmem:[%s7494_s1 + $0x2b4] ss:$8 sps:$4 sm:$0xff]  }
  0x75   : > { %1973 = vmatprep.subr.bf16.mxu0 %v5215_v54  ;;  %v5307_v53 = vld [vmem:[%s7494_s1 + $0x6b4] ss:$8 sps:$4 sm:$0xff]   ;;  %v5302_v54 = vld [vmem:[%s7494_s1 + $0x2b0] ss:$8 sps:$4 sm:$0xff]  }
  0x77   : > { %1039 = vmatpush1.bf16.msra.mxu1 %v5210_v55  ;;  %v5305_v55 = vld [vmem:[%s7494_s1 + $0x6b0] ss:$8 sps:$4 sm:$0xff]  }
  0x78   : > { %1974 = vmatpush1.bf16.msra.mxu0 %v5213_v56  ;;  %1040 = vmatprep.subr.bf16.mxu1 %v5218_v57  ;;  %v5310_v56 = vld [vmem:[%s7494_s1 + $0x2c4] ss:$8 sps:$4 sm:$0xff]  }
  0x79   : > { %1975 = vmatprep.subr.bf16.mxu0 %v5221_v58  ;;  %v5313_v57 = vld [vmem:[%s7494_s1 + $0x6c4] ss:$8 sps:$4 sm:$0xff]   ;;  %v5308_v58 = vld [vmem:[%s7494_s1 + $0x2c0] ss:$8 sps:$4 sm:$0xff]  }
  0x7b   : > { %1041 = vmatpush1.bf16.msra.mxu1 %v5216_v59  ;;  %v5311_v59 = vld [vmem:[%s7494_s1 + $0x6c0] ss:$8 sps:$4 sm:$0xff]  }
  0x7c   : > { %1976 = vmatpush1.bf16.msra.mxu0 %v5219_v60  ;;  %1042 = vmatprep.subr.bf16.mxu1 %v5224_v61  ;;  %v5316_v60 = vld [vmem:[%s7494_s1 + $0x2d4] ss:$8 sps:$4 sm:$0xff]  }
  0x7d   : > { %1977 = vmatprep.subr.bf16.mxu0 %v5227_v62  ;;  %v5319_v61 = vld [vmem:[%s7494_s1 + $0x6d4] ss:$8 sps:$4 sm:$0xff]   ;;  %v5314_v62 = vld [vmem:[%s7494_s1 + $0x2d0] ss:$8 sps:$4 sm:$0xff]  }
  0x7f   : > { %1043 = vmatpush1.bf16.msra.mxu1 %v5222_v63  ;;  %v5317_v63 = vld [vmem:[%s7494_s1 + $0x6d0] ss:$8 sps:$4 sm:$0xff]  }
  0x80   : > { %1978 = vmatpush1.bf16.msra.mxu0 %v5225_v0  ;;  %1044 = vmatprep.subr.bf16.mxu1 %v5230_v1  ;;  %v5322_v0 = vld [vmem:[%s7494_s1 + $0x2e4] ss:$8 sps:$4 sm:$0xff]  }
  0x81   : > { %1979 = vmatprep.subr.bf16.mxu0 %v5233_v2  ;;  %v5325_v1 = vld [vmem:[%s7494_s1 + $0x6e4] ss:$8 sps:$4 sm:$0xff]   ;;  %v5320_v2 = vld [vmem:[%s7494_s1 + $0x2e0] ss:$8 sps:$4 sm:$0xff]  }
  0x83   : > { %1045 = vmatpush1.bf16.msra.mxu1 %v5228_v3  ;;  %v5323_v3 = vld [vmem:[%s7494_s1 + $0x6e0] ss:$8 sps:$4 sm:$0xff]  }
  0x84   : > { %1980 = vmatpush1.bf16.msra.mxu0 %v5231_v4  ;;  %1055 = vmatprep.subr.bf16.mxu1 %v5238_v5  ;;  %v5328_v4 = vld [vmem:[%s7494_s1 + $0x2f4] ss:$8 sps:$4 sm:$0xff]  }
  0x85   : > { %1990 = vmatprep.subr.bf16.mxu0 %v5241_v6  ;;  %v5331_v5 = vld [vmem:[%s7494_s1 + $0x6f4] ss:$8 sps:$4 sm:$0xff]   ;;  %v5326_v6 = vld [vmem:[%s7494_s1 + $0x2f0] ss:$8 sps:$4 sm:$0xff]  }
  0x86   : > { %1047 = vmatmul.mubr.bf16.vlgmr.msra.gmra.mrb[4].mxu1 %v4093_v7 }
  0x87   : > { %1982 = vmatmul.mubr.bf16.vlgmr.msra.gmra.mrb[0].mxu0 %v4093_v7  ;;  %1056 = vmatpush1.bf16.msra.mxu1 %v5236_v8  ;;  %v5329_v7 = vld [vmem:[%s7494_s1 + $0x6f0] ss:$8 sps:$4 sm:$0xff]   ;;  %v5336_v8 = vld [vmem:[%s7494_s1 + $0x304] ss:$8 sps:$4 sm:$0xff]  }
  0x88   : > { %1991 = vmatpush1.bf16.msra.mxu0 %v5239_v9  ;;  %1057 = vmatprep.subr.bf16.mxu1 %v5244_v10  ;;  %v5339_v9 = vld [vmem:[%s7494_s1 + $0x704] ss:$8 sps:$4 sm:$0xff]   ;;  %v5334_v10 = vld [vmem:[%s7494_s1 + $0x300] ss:$8 sps:$4 sm:$0xff]  }
  0x89   : > { %1992 = vmatprep.subr.bf16.mxu0 %v5247_v12  ;;  %1087 = vmatprep.mubr.bf16.mxu1 %v4096_v13  ;;  %v4095_v12 = vcombine.low %v6281_v11, %v6281_v11 }
  0x8a   : > { %2022 = vmatprep.mubr.bf16.mxu0 %v4096_v13  ;;  %v5337_v13 = vld [vmem:[%s7494_s1 + $0x700] ss:$8 sps:$4 sm:$0xff]  }
  0x8b   : > { %1058 = vmatpush1.bf16.msra.mxu1 %v5242_v14  ;;  %v6477_v14 = vld [vmem:[%s6003_s30 + $0x18] sm:$0xff] }
  0x8c   : > { %1993 = vmatpush1.bf16.msra.mxu0 %v5245_v15  ;;  %1059 = vmatprep.subr.bf16.mxu1 %v5250_v16  ;;  %v5342_v15 = vld [vmem:[%s7494_s1 + $0x314] ss:$8 sps:$4 sm:$0xff]   ;;  %v4098_v11 = vcombine.high %v6477_v14, %v6477_v14 }
  0x8d   : > { %1994 = vmatprep.subr.bf16.mxu0 %v5253_v17  ;;  %v5345_v16 = vld [vmem:[%s7494_s1 + $0x714] ss:$8 sps:$4 sm:$0xff]   ;;  %v5340_v17 = vld [vmem:[%s7494_s1 + $0x310] ss:$8 sps:$4 sm:$0xff]  }
  0x8f   : > { %1060 = vmatpush1.bf16.msra.mxu1 %v5248_v18  ;;  %v5343_v18 = vld [vmem:[%s7494_s1 + $0x710] ss:$8 sps:$4 sm:$0xff]  }
  0x90   : > { %1995 = vmatpush1.bf16.msra.mxu0 %v5251_v19  ;;  %1061 = vmatprep.subr.bf16.mxu1 %v5256_v20  ;;  %v5348_v19 = vld [vmem:[%s7494_s1 + $0x324] ss:$8 sps:$4 sm:$0xff]  }
  0x91   : > { %1996 = vmatprep.subr.bf16.mxu0 %v5259_v21  ;;  %v5351_v20 = vld [vmem:[%s7494_s1 + $0x724] ss:$8 sps:$4 sm:$0xff]   ;;  %v5346_v21 = vld [vmem:[%s7494_s1 + $0x320] ss:$8 sps:$4 sm:$0xff]  }
  0x93   : > { %1062 = vmatpush1.bf16.msra.mxu1 %v5254_v22  ;;  %v5349_v22 = vld [vmem:[%s7494_s1 + $0x720] ss:$8 sps:$4 sm:$0xff]  }
  0x94   : > { %1997 = vmatpush1.bf16.msra.mxu0 %v5257_v23  ;;  %1063 = vmatprep.subr.bf16.mxu1 %v5262_v24  ;;  %v5354_v23 = vld [vmem:[%s7494_s1 + $0x334] ss:$8 sps:$4 sm:$0xff]  }
  0x95   : > { %1998 = vmatprep.subr.bf16.mxu0 %v5265_v25  ;;  %v5357_v24 = vld [vmem:[%s7494_s1 + $0x734] ss:$8 sps:$4 sm:$0xff]   ;;  %v5352_v25 = vld [vmem:[%s7494_s1 + $0x330] ss:$8 sps:$4 sm:$0xff]  }
  0x97   : > { %1064 = vmatpush1.bf16.msra.mxu1 %v5260_v26  ;;  %v5355_v26 = vld [vmem:[%s7494_s1 + $0x730] ss:$8 sps:$4 sm:$0xff]  }
  0x98   : > { %1999 = vmatpush1.bf16.msra.mxu0 %v5263_v27  ;;  %1065 = vmatprep.subr.bf16.mxu1 %v5268_v28  ;;  %v5360_v27 = vld [vmem:[%s7494_s1 + $0x344] ss:$8 sps:$4 sm:$0xff]  }
  0x99   : > { %2000 = vmatprep.subr.bf16.mxu0 %v5271_v29  ;;  %v5363_v28 = vld [vmem:[%s7494_s1 + $0x744] ss:$8 sps:$4 sm:$0xff]   ;;  %v5358_v29 = vld [vmem:[%s7494_s1 + $0x340] ss:$8 sps:$4 sm:$0xff]  }
  0x9b   : > { %1066 = vmatpush1.bf16.msra.mxu1 %v5266_v30  ;;  %v5361_v30 = vld [vmem:[%s7494_s1 + $0x740] ss:$8 sps:$4 sm:$0xff]  }
  0x9c   : > { %2001 = vmatpush1.bf16.msra.mxu0 %v5269_v31  ;;  %1067 = vmatprep.subr.bf16.mxu1 %v5274_v32  ;;  %v5366_v31 = vld [vmem:[%s7494_s1 + $0x354] ss:$8 sps:$4 sm:$0xff]  }
  0x9d   : > { %2002 = vmatprep.subr.bf16.mxu0 %v5277_v33  ;;  %v5369_v32 = vld [vmem:[%s7494_s1 + $0x754] ss:$8 sps:$4 sm:$0xff]   ;;  %v5364_v33 = vld [vmem:[%s7494_s1 + $0x350] ss:$8 sps:$4 sm:$0xff]  }
  0x9f   : > { %1068 = vmatpush1.bf16.msra.mxu1 %v5272_v34  ;;  %v5367_v34 = vld [vmem:[%s7494_s1 + $0x750] ss:$8 sps:$4 sm:$0xff]  }
  0xa0   : > { %2003 = vmatpush1.bf16.msra.mxu0 %v5275_v35  ;;  %1069 = vmatprep.subr.bf16.mxu1 %v5280_v36  ;;  %v5372_v35 = vld [vmem:[%s7494_s1 + $0x364] ss:$8 sps:$4 sm:$0xff]  }
  0xa1   : > { %2004 = vmatprep.subr.bf16.mxu0 %v5283_v37  ;;  %v5375_v36 = vld [vmem:[%s7494_s1 + $0x764] ss:$8 sps:$4 sm:$0xff]   ;;  %v5370_v37 = vld [vmem:[%s7494_s1 + $0x360] ss:$8 sps:$4 sm:$0xff]  }
  0xa3   : > { %1070 = vmatpush1.bf16.msra.mxu1 %v5278_v38  ;;  %v5373_v38 = vld [vmem:[%s7494_s1 + $0x760] ss:$8 sps:$4 sm:$0xff]  }
  0xa4   : > { %2005 = vmatpush1.bf16.msra.mxu0 %v5281_v39  ;;  %1071 = vmatprep.subr.bf16.mxu1 %v5286_v40  ;;  %v5378_v39 = vld [vmem:[%s7494_s1 + $0x374] ss:$8 sps:$4 sm:$0xff]  }
  0xa5   : > { %2006 = vmatprep.subr.bf16.mxu0 %v5289_v41  ;;  %v5381_v40 = vld [vmem:[%s7494_s1 + $0x774] ss:$8 sps:$4 sm:$0xff]   ;;  %v5376_v41 = vld [vmem:[%s7494_s1 + $0x370] ss:$8 sps:$4 sm:$0xff]  }
  0xa7   : > { %1072 = vmatpush1.bf16.msra.mxu1 %v5284_v42  ;;  %v5379_v42 = vld [vmem:[%s7494_s1 + $0x770] ss:$8 sps:$4 sm:$0xff]  }
  0xa8   : > { %2007 = vmatpush1.bf16.msra.mxu0 %v5287_v43  ;;  %1073 = vmatprep.subr.bf16.mxu1 %v5292_v44  ;;  %v5384_v43 = vld [vmem:[%s7494_s1 + $0x384] ss:$8 sps:$4 sm:$0xff]  }
  0xa9   : > { %2008 = vmatprep.subr.bf16.mxu0 %v5295_v45  ;;  %v5387_v44 = vld [vmem:[%s7494_s1 + $0x784] ss:$8 sps:$4 sm:$0xff]   ;;  %v5382_v45 = vld [vmem:[%s7494_s1 + $0x380] ss:$8 sps:$4 sm:$0xff]  }
  0xab   : > { %1074 = vmatpush1.bf16.msra.mxu1 %v5290_v46  ;;  %v5385_v46 = vld [vmem:[%s7494_s1 + $0x780] ss:$8 sps:$4 sm:$0xff]  }
  0xac   : > { %2009 = vmatpush1.bf16.msra.mxu0 %v5293_v47  ;;  %1075 = vmatprep.subr.bf16.mxu1 %v5298_v48  ;;  %v5390_v47 = vld [vmem:[%s7494_s1 + $0x394] ss:$8 sps:$4 sm:$0xff]  }
  0xad   : > { %2010 = vmatprep.subr.bf16.mxu0 %v5301_v49  ;;  %v5393_v48 = vld [vmem:[%s7494_s1 + $0x794] ss:$8 sps:$4 sm:$0xff]   ;;  %v5388_v49 = vld [vmem:[%s7494_s1 + $0x390] ss:$8 sps:$4 sm:$0xff]  }
  0xaf   : > { %1076 = vmatpush1.bf16.msra.mxu1 %v5296_v50  ;;  %v5391_v50 = vld [vmem:[%s7494_s1 + $0x790] ss:$8 sps:$4 sm:$0xff]  }
  0xb0   : > { %2011 = vmatpush1.bf16.msra.mxu0 %v5299_v51  ;;  %1077 = vmatprep.subr.bf16.mxu1 %v5304_v52  ;;  %v5396_v51 = vld [vmem:[%s7494_s1 + $0x3a4] ss:$8 sps:$4 sm:$0xff]  }
  0xb1   : > { %2012 = vmatprep.subr.bf16.mxu0 %v5307_v53  ;;  %v5399_v52 = vld [vmem:[%s7494_s1 + $0x7a4] ss:$8 sps:$4 sm:$0xff]   ;;  %v5394_v53 = vld [vmem:[%s7494_s1 + $0x3a0] ss:$8 sps:$4 sm:$0xff]  }
  0xb3   : > { %1078 = vmatpush1.bf16.msra.mxu1 %v5302_v54  ;;  %v5397_v54 = vld [vmem:[%s7494_s1 + $0x7a0] ss:$8 sps:$4 sm:$0xff]  }
  0xb4   : > { %2013 = vmatpush1.bf16.msra.mxu0 %v5305_v55  ;;  %1079 = vmatprep.subr.bf16.mxu1 %v5310_v56  ;;  %v5402_v55 = vld [vmem:[%s7494_s1 + $0x3b4] ss:$8 sps:$4 sm:$0xff]  }
  0xb5   : > { %2014 = vmatprep.subr.bf16.mxu0 %v5313_v57  ;;  %v5405_v56 = vld [vmem:[%s7494_s1 + $0x7b4] ss:$8 sps:$4 sm:$0xff]   ;;  %v5400_v57 = vld [vmem:[%s7494_s1 + $0x3b0] ss:$8 sps:$4 sm:$0xff]  }
  0xb7   : > { %1080 = vmatpush1.bf16.msra.mxu1 %v5308_v58  ;;  %v5403_v58 = vld [vmem:[%s7494_s1 + $0x7b0] ss:$8 sps:$4 sm:$0xff]  }
  0xb8   : > { %2015 = vmatpush1.bf16.msra.mxu0 %v5311_v59  ;;  %1081 = vmatprep.subr.bf16.mxu1 %v5316_v60  ;;  %v5408_v59 = vld [vmem:[%s7494_s1 + $0x3c4] ss:$8 sps:$4 sm:$0xff]  }
  0xb9   : > { %2016 = vmatprep.subr.bf16.mxu0 %v5319_v61  ;;  %v5411_v60 = vld [vmem:[%s7494_s1 + $0x7c4] ss:$8 sps:$4 sm:$0xff]   ;;  %v5406_v61 = vld [vmem:[%s7494_s1 + $0x3c0] ss:$8 sps:$4 sm:$0xff]  }
  0xbb   : > { %1082 = vmatpush1.bf16.msra.mxu1 %v5314_v62  ;;  %v5409_v62 = vld [vmem:[%s7494_s1 + $0x7c0] ss:$8 sps:$4 sm:$0xff]  }
  0xbc   : > { %2017 = vmatpush1.bf16.msra.mxu0 %v5317_v63  ;;  %1083 = vmatprep.subr.bf16.mxu1 %v5322_v0  ;;  %v5414_v63 = vld [vmem:[%s7494_s1 + $0x3d4] ss:$8 sps:$4 sm:$0xff]  }
  0xbd   : > { %2018 = vmatprep.subr.bf16.mxu0 %v5325_v1  ;;  %v5417_v0 = vld [vmem:[%s7494_s1 + $0x7d4] ss:$8 sps:$4 sm:$0xff]   ;;  %v5412_v1 = vld [vmem:[%s7494_s1 + $0x3d0] ss:$8 sps:$4 sm:$0xff]  }
  0xbf   : > { %1084 = vmatpush1.bf16.msra.mxu1 %v5320_v2  ;;  %v5415_v2 = vld [vmem:[%s7494_s1 + $0x7d0] ss:$8 sps:$4 sm:$0xff]  }
  0xc0   : > { %2019 = vmatpush1.bf16.msra.mxu0 %v5323_v3  ;;  %1085 = vmatprep.subr.bf16.mxu1 %v5328_v4  ;;  %v5420_v3 = vld [vmem:[%s7494_s1 + $0x3e4] ss:$8 sps:$4 sm:$0xff]  }
  0xc1   : > { %2020 = vmatprep.subr.bf16.mxu0 %v5331_v5  ;;  %v5423_v4 = vld [vmem:[%s7494_s1 + $0x7e4] ss:$8 sps:$4 sm:$0xff]   ;;  %v5418_v5 = vld [vmem:[%s7494_s1 + $0x3e0] ss:$8 sps:$4 sm:$0xff]  }
  0xc3   : > { %1086 = vmatpush1.bf16.msra.mxu1 %v5326_v6  ;;  %v5421_v6 = vld [vmem:[%s7494_s1 + $0x7e0] ss:$8 sps:$4 sm:$0xff]  }
  0xc4   : > { %2021 = vmatpush1.bf16.msra.mxu0 %v5329_v7  ;;  %1096 = vmatprep.subr.bf16.mxu1 %v5336_v8  ;;  %v5426_v7 = vld [vmem:[%s7494_s1 + $0x3f4] ss:$8 sps:$4 sm:$0xff]  }
  0xc5   : > { %2031 = vmatprep.subr.bf16.mxu0 %v5339_v9  ;;  %v5429_v8 = vld [vmem:[%s7494_s1 + $0x7f4] ss:$8 sps:$4 sm:$0xff]   ;;  %v5424_v9 = vld [vmem:[%s7494_s1 + $0x3f0] ss:$8 sps:$4 sm:$0xff]  }
  0xc6   : > { %1088 = vmatmul.mubr.bf16.vlgmr.msra.gmra.mrb[8].mxu1 %v4095_v12 }
  0xc7   : > { %2023 = vmatmul.mubr.bf16.vlgmr.msra.gmra.mrb[0].mxu0 %v4095_v12  ;;  %1097 = vmatpush1.bf16.msra.mxu1 %v5334_v10  ;;  %v5427_v10 = vld [vmem:[%s7494_s1 + $0x7f0] ss:$8 sps:$4 sm:$0xff]   ;;  %v5434_v12 = vld [vmem:[%s7494_s1 + $0x804] ss:$8 sps:$4 sm:$0xff]  }
  0xc8   : > { %2032 = vmatpush1.bf16.msra.mxu0 %v5337_v13  ;;  %1098 = vmatprep.subr.bf16.mxu1 %v5342_v15  ;;  %v5437_v13 = vld [vmem:[%s7494_s1 + $0xc04] ss:$8 sps:$4 sm:$0xff]   ;;  %v5432_v15 = vld [vmem:[%s7494_s1 + $0x800] ss:$8 sps:$4 sm:$0xff]  }
  0xc9   : > { %2033 = vmatprep.subr.bf16.mxu0 %v5345_v16  ;;  %1128 = vmatprep.mubr.bf16.mxu1 %v4098_v11  ;;  %v4097_v16 = vcombine.low %v6477_v14, %v6477_v14 }
  0xca   : > { %2063 = vmatprep.mubr.bf16.mxu0 %v4098_v11  ;;  %v6673_v11 = vld [vmem:[%s6003_s30 + $0x20] sm:$0xff] }
  0xcb   : > { %1099 = vmatpush1.bf16.msra.mxu1 %v5340_v17  ;;  %v5435_v17 = vld [vmem:[%s7494_s1 + $0xc00] ss:$8 sps:$4 sm:$0xff]   ;;  %v4612_v14 = vcombine.high %v6673_v11, %v6673_v11 }
  0xcc   : > { %2034 = vmatpush1.bf16.msra.mxu0 %v5343_v18  ;;  %1100 = vmatprep.subr.bf16.mxu1 %v5348_v19  ;;  %v5440_v18 = vld [vmem:[%s7494_s1 + $0x814] ss:$8 sps:$4 sm:$0xff]  }
  0xcd   : > { %2035 = vmatprep.subr.bf16.mxu0 %v5351_v20  ;;  %v5443_v19 = vld [vmem:[%s7494_s1 + $0xc14] ss:$8 sps:$4 sm:$0xff]   ;;  %v5438_v20 = vld [vmem:[%s7494_s1 + $0x810] ss:$8 sps:$4 sm:$0xff]  }
  0xcf   : > { %1101 = vmatpush1.bf16.msra.mxu1 %v5346_v21  ;;  %v5441_v21 = vld [vmem:[%s7494_s1 + $0xc10] ss:$8 sps:$4 sm:$0xff]  }
  0xd0   : > { %2036 = vmatpush1.bf16.msra.mxu0 %v5349_v22  ;;  %1102 = vmatprep.subr.bf16.mxu1 %v5354_v23  ;;  %v5446_v22 = vld [vmem:[%s7494_s1 + $0x824] ss:$8 sps:$4 sm:$0xff]  }
  0xd1   : > { %2037 = vmatprep.subr.bf16.mxu0 %v5357_v24  ;;  %v5449_v23 = vld [vmem:[%s7494_s1 + $0xc24] ss:$8 sps:$4 sm:$0xff]   ;;  %v5444_v24 = vld [vmem:[%s7494_s1 + $0x820] ss:$8 sps:$4 sm:$0xff]  }
  0xd3   : > { %1103 = vmatpush1.bf16.msra.mxu1 %v5352_v25  ;;  %v5447_v25 = vld [vmem:[%s7494_s1 + $0xc20] ss:$8 sps:$4 sm:$0xff]  }
  0xd4   : > { %2038 = vmatpush1.bf16.msra.mxu0 %v5355_v26  ;;  %1104 = vmatprep.subr.bf16.mxu1 %v5360_v27  ;;  %v5452_v26 = vld [vmem:[%s7494_s1 + $0x834] ss:$8 sps:$4 sm:$0xff]  }
  0xd5   : > { %2039 = vmatprep.subr.bf16.mxu0 %v5363_v28  ;;  %v5455_v27 = vld [vmem:[%s7494_s1 + $0xc34] ss:$8 sps:$4 sm:$0xff]   ;;  %v5450_v28 = vld [vmem:[%s7494_s1 + $0x830] ss:$8 sps:$4 sm:$0xff]  }
  0xd7   : > { %1105 = vmatpush1.bf16.msra.mxu1 %v5358_v29  ;;  %v5453_v29 = vld [vmem:[%s7494_s1 + $0xc30] ss:$8 sps:$4 sm:$0xff]  }
  0xd8   : > { %2040 = vmatpush1.bf16.msra.mxu0 %v5361_v30  ;;  %1106 = vmatprep.subr.bf16.mxu1 %v5366_v31  ;;  %v5458_v30 = vld [vmem:[%s7494_s1 + $0x844] ss:$8 sps:$4 sm:$0xff]  }
  0xd9   : > { %2041 = vmatprep.subr.bf16.mxu0 %v5369_v32  ;;  %v5461_v31 = vld [vmem:[%s7494_s1 + $0xc44] ss:$8 sps:$4 sm:$0xff]   ;;  %v5456_v32 = vld [vmem:[%s7494_s1 + $0x840] ss:$8 sps:$4 sm:$0xff]  }
  0xdb   : > { %1107 = vmatpush1.bf16.msra.mxu1 %v5364_v33  ;;  %v5459_v33 = vld [vmem:[%s7494_s1 + $0xc40] ss:$8 sps:$4 sm:$0xff]  }
  0xdc   : > { %2042 = vmatpush1.bf16.msra.mxu0 %v5367_v34  ;;  %1108 = vmatprep.subr.bf16.mxu1 %v5372_v35  ;;  %v5464_v34 = vld [vmem:[%s7494_s1 + $0x854] ss:$8 sps:$4 sm:$0xff]  }
  0xdd   : > { %2043 = vmatprep.subr.bf16.mxu0 %v5375_v36  ;;  %v5467_v35 = vld [vmem:[%s7494_s1 + $0xc54] ss:$8 sps:$4 sm:$0xff]   ;;  %v5462_v36 = vld [vmem:[%s7494_s1 + $0x850] ss:$8 sps:$4 sm:$0xff]  }
  0xdf   : > { %1109 = vmatpush1.bf16.msra.mxu1 %v5370_v37  ;;  %v5465_v37 = vld [vmem:[%s7494_s1 + $0xc50] ss:$8 sps:$4 sm:$0xff]  }
  0xe0   : > { %2044 = vmatpush1.bf16.msra.mxu0 %v5373_v38  ;;  %1110 = vmatprep.subr.bf16.mxu1 %v5378_v39  ;;  %v5470_v38 = vld [vmem:[%s7494_s1 + $0x864] ss:$8 sps:$4 sm:$0xff]  }
  0xe1   : > { %2045 = vmatprep.subr.bf16.mxu0 %v5381_v40  ;;  %v5473_v39 = vld [vmem:[%s7494_s1 + $0xc64] ss:$8 sps:$4 sm:$0xff]  }
  0xe3   : > { %1111 = vmatpush1.bf16.msra.mxu1 %v5376_v41  ;;  %v5468_v41 = vld [vmem:[%s7494_s1 + $0x860] ss:$8 sps:$4 sm:$0xff]  }
  0xe4   : > { %2046 = vmatpush1.bf16.msra.mxu0 %v5379_v42  ;;  %1112 = vmatprep.subr.bf16.mxu1 %v5384_v43  ;;  %v5471_v42 = vld [vmem:[%s7494_s1 + $0xc60] ss:$8 sps:$4 sm:$0xff]  }
  0xe5   : > { %2047 = vmatprep.subr.bf16.mxu0 %v5387_v44 }
  0xe7   : > { %1113 = vmatpush1.bf16.msra.mxu1 %v5382_v45 }
  0xe8   : > { %2048 = vmatpush1.bf16.msra.mxu0 %v5385_v46  ;;  %1114 = vmatprep.subr.bf16.mxu1 %v5390_v47  ;;  %v5476_v46 = vld [vmem:[%s7494_s1 + $0x874] ss:$8 sps:$4 sm:$0xff]  }
  0xe9   : > { %2049 = vmatprep.subr.bf16.mxu0 %v5393_v48  ;;  %v5479_v47 = vld [vmem:[%s7494_s1 + $0xc74] ss:$8 sps:$4 sm:$0xff]   ;;  %v5474_v48 = vld [vmem:[%s7494_s1 + $0x870] ss:$8 sps:$4 sm:$0xff]  }
  0xeb   : > { %1115 = vmatpush1.bf16.msra.mxu1 %v5388_v49  ;;  %v5477_v49 = vld [vmem:[%s7494_s1 + $0xc70] ss:$8 sps:$4 sm:$0xff]  }
  0xec   : > { %2050 = vmatpush1.bf16.msra.mxu0 %v5391_v50  ;;  %1116 = vmatprep.subr.bf16.mxu1 %v5396_v51  ;;  %v5482_v50 = vld [vmem:[%s7494_s1 + $0x884] ss:$8 sps:$4 sm:$0xff]  }
  0xed   : > { %2051 = vmatprep.subr.bf16.mxu0 %v5399_v52  ;;  %v5485_v51 = vld [vmem:[%s7494_s1 + $0xc84] ss:$8 sps:$4 sm:$0xff]   ;;  %v5480_v52 = vld [vmem:[%s7494_s1 + $0x880] ss:$8 sps:$4 sm:$0xff]  }
  0xef   : > { %1117 = vmatpush1.bf16.msra.mxu1 %v5394_v53  ;;  %v5483_v53 = vld [vmem:[%s7494_s1 + $0xc80] ss:$8 sps:$4 sm:$0xff]  }
  0xf0   : > { %2052 = vmatpush1.bf16.msra.mxu0 %v5397_v54  ;;  %1118 = vmatprep.subr.bf16.mxu1 %v5402_v55  ;;  %v5488_v54 = vld [vmem:[%s7494_s1 + $0x894] ss:$8 sps:$4 sm:$0xff]  }
  0xf1   : > { %2053 = vmatprep.subr.bf16.mxu0 %v5405_v56  ;;  %v5491_v55 = vld [vmem:[%s7494_s1 + $0xc94] ss:$8 sps:$4 sm:$0xff]   ;;  %v5486_v56 = vld [vmem:[%s7494_s1 + $0x890] ss:$8 sps:$4 sm:$0xff]  }
  0xf3   : > { %1119 = vmatpush1.bf16.msra.mxu1 %v5400_v57  ;;  %v5489_v57 = vld [vmem:[%s7494_s1 + $0xc90] ss:$8 sps:$4 sm:$0xff]  }
  0xf4   : > { %2054 = vmatpush1.bf16.msra.mxu0 %v5403_v58  ;;  %1120 = vmatprep.subr.bf16.mxu1 %v5408_v59  ;;  %v5494_v58 = vld [vmem:[%s7494_s1 + $0x8a4] ss:$8 sps:$4 sm:$0xff]  }
  0xf5   : > { %2055 = vmatprep.subr.bf16.mxu0 %v5411_v60  ;;  %v5497_v59 = vld [vmem:[%s7494_s1 + $0xca4] ss:$8 sps:$4 sm:$0xff]   ;;  %v5492_v60 = vld [vmem:[%s7494_s1 + $0x8a0] ss:$8 sps:$4 sm:$0xff]  }
  0xf7   : > { %1121 = vmatpush1.bf16.msra.mxu1 %v5406_v61  ;;  %v5495_v61 = vld [vmem:[%s7494_s1 + $0xca0] ss:$8 sps:$4 sm:$0xff]  }
  0xf8   : > { %2056 = vmatpush1.bf16.msra.mxu0 %v5409_v62  ;;  %1122 = vmatprep.subr.bf16.mxu1 %v5414_v63  ;;  %v5500_v62 = vld [vmem:[%s7494_s1 + $0x8b4] ss:$8 sps:$4 sm:$0xff]  }
  0xf9   : > { %2057 = vmatprep.subr.bf16.mxu0 %v5417_v0  ;;  %v5503_v63 = vld [vmem:[%s7494_s1 + $0xcb4] ss:$8 sps:$4 sm:$0xff]   ;;  %v5498_v0 = vld [vmem:[%s7494_s1 + $0x8b0] ss:$8 sps:$4 sm:$0xff]  }
  0xfb   : > { %1123 = vmatpush1.bf16.msra.mxu1 %v5412_v1  ;;  %v5501_v1 = vld [vmem:[%s7494_s1 + $0xcb0] ss:$8 sps:$4 sm:$0xff]  }
  0xfc   : > { %2058 = vmatpush1.bf16.msra.mxu0 %v5415_v2  ;;  %1124 = vmatprep.subr.bf16.mxu1 %v5420_v3  ;;  %v5506_v2 = vld [vmem:[%s7494_s1 + $0x8c4] ss:$8 sps:$4 sm:$0xff]  }
  0xfd   : > { %2059 = vmatprep.subr.bf16.mxu0 %v5423_v4  ;;  %v5509_v3 = vld [vmem:[%s7494_s1 + $0xcc4] ss:$8 sps:$4 sm:$0xff]   ;;  %v5504_v4 = vld [vmem:[%s7494_s1 + $0x8c0] ss:$8 sps:$4 sm:$0xff]  }
  0xff   : > { %1125 = vmatpush1.bf16.msra.mxu1 %v5418_v5  ;;  %v5507_v5 = vld [vmem:[%s7494_s1 + $0xcc0] ss:$8 sps:$4 sm:$0xff]  }
 0x100   : > { %2060 = vmatpush1.bf16.msra.mxu0 %v5421_v6  ;;  %1126 = vmatprep.subr.bf16.mxu1 %v5426_v7  ;;  %v5512_v6 = vld [vmem:[%s7494_s1 + $0x8d4] ss:$8 sps:$4 sm:$0xff]  }
 0x101   : > { %2061 = vmatprep.subr.bf16.mxu0 %v5429_v8  ;;  %v5515_v7 = vld [vmem:[%s7494_s1 + $0xcd4] ss:$8 sps:$4 sm:$0xff]   ;;  %v5510_v8 = vld [vmem:[%s7494_s1 + $0x8d0] ss:$8 sps:$4 sm:$0xff]  }
 0x103   : > { %1127 = vmatpush1.bf16.msra.mxu1 %v5424_v9  ;;  %v5513_v9 = vld [vmem:[%s7494_s1 + $0xcd0] ss:$8 sps:$4 sm:$0xff]  }
 0x104   : > { %2062 = vmatpush1.bf16.msra.mxu0 %v5427_v10  ;;  %2877 = vmatprep.subr.bf16.mxu1 %v5434_v12  ;;  %v5518_v10 = vld [vmem:[%s7494_s1 + $0x8e4] ss:$8 sps:$4 sm:$0xff]  }
 0x105   : > { %3812 = vmatprep.subr.bf16.mxu0 %v5437_v13  ;;  %v5521_v12 = vld [vmem:[%s7494_s1 + $0xce4] ss:$8 sps:$4 sm:$0xff]   ;;  %v5516_v13 = vld [vmem:[%s7494_s1 + $0x8e0] ss:$8 sps:$4 sm:$0xff]  }
 0x106   : > { %1129 = vmatmul.mubr.bf16.vlgmr.msra.gmra.mrb[12].mxu1 %v4097_v16 }
 0x107   : > { %2064 = vmatmul.mubr.bf16.vlgmr.msra.gmra.mrb[0].mxu0 %v4097_v16  ;;  %2878 = vmatpush1.bf16.msra.mxu1 %v5432_v15  ;;  %v5519_v15 = vld [vmem:[%s7494_s1 + $0xce0] ss:$8 sps:$4 sm:$0xff]   ;;  %v5524_v16 = vld [vmem:[%s7494_s1 + $0x8f4] ss:$8 sps:$4 sm:$0xff]  }
 0x108   : > { %3813 = vmatpush1.bf16.msra.mxu0 %v5435_v17  ;;  %2879 = vmatprep.subr.bf16.mxu1 %v5440_v18  ;;  %v5527_v17 = vld [vmem:[%s7494_s1 + $0xcf4] ss:$8 sps:$4 sm:$0xff]   ;;  %v5522_v18 = vld [vmem:[%s7494_s1 + $0x8f0] ss:$8 sps:$4 sm:$0xff]  }
 0x109   : > { %3814 = vmatprep.subr.bf16.mxu0 %v5443_v19  ;;  %2909 = vmatprep.mubr.bf16.mxu1 %v4612_v14  ;;  %v5525_v19 = vld [vmem:[%s7494_s1 + $0xcf0] ss:$8 sps:$4 sm:$0xff]  }
 0x10a   : > { %3844 = vmatprep.mubr.bf16.mxu0 %v4612_v14  ;;  %v5532_v14 = vld [vmem:[%s7494_s1 + $0x904] ss:$8 sps:$4 sm:$0xff]  }
 0x10b   : > { %2880 = vmatpush1.bf16.msra.mxu1 %v5438_v20  ;;  %v5535_v20 = vld [vmem:[%s7494_s1 + $0xd04] ss:$8 sps:$4 sm:$0xff]  }
 0x10c   : > { %3815 = vmatpush1.bf16.msra.mxu0 %v5441_v21  ;;  %2881 = vmatprep.subr.bf16.mxu1 %v5446_v22  ;;  %v5530_v21 = vld [vmem:[%s7494_s1 + $0x900] ss:$8 sps:$4 sm:$0xff]  }
 0x10d   : > { %3816 = vmatprep.subr.bf16.mxu0 %v5449_v23  ;;  %v5533_v22 = vld [vmem:[%s7494_s1 + $0xd00] ss:$8 sps:$4 sm:$0xff]   ;;  %v4611_v23 = vcombine.low %v6673_v11, %v6673_v11  ;;  %v5536_v11 = vld [vmem:[%s7494_s1 + $0x910] ss:$8 sps:$4 sm:$0xff]  }
 0x10f   : > { %2882 = vmatpush1.bf16.msra.mxu1 %v5444_v24  ;;  %v6879_v24 = vld [vmem:[%s6003_s30 + $0x28] sm:$0xff] }
 0x110   : > { %3817 = vmatpush1.bf16.msra.mxu0 %v5447_v25  ;;  %2883 = vmatprep.subr.bf16.mxu1 %v5452_v26  ;;  %v5538_v25 = vld [vmem:[%s7494_s1 + $0x914] ss:$8 sps:$4 sm:$0xff]  }
 0x111   : > { %3818 = vmatprep.subr.bf16.mxu0 %v5455_v27  ;;  %v5541_v26 = vld [vmem:[%s7494_s1 + $0xd14] ss:$8 sps:$4 sm:$0xff]   ;;  %v4614_v27 = vcombine.high %v6879_v24, %v6879_v24 }
 0x113   : > { %2884 = vmatpush1.bf16.msra.mxu1 %v5450_v28  ;;  %v5539_v28 = vld [vmem:[%s7494_s1 + $0xd10] ss:$8 sps:$4 sm:$0xff]  }
 0x114   : > { %3819 = vmatpush1.bf16.msra.mxu0 %v5453_v29  ;;  %2885 = vmatprep.subr.bf16.mxu1 %v5458_v30  ;;  %v5544_v29 = vld [vmem:[%s7494_s1 + $0x924] ss:$8 sps:$4 sm:$0xff]  }
 0x115   : > { %3820 = vmatprep.subr.bf16.mxu0 %v5461_v31  ;;  %v5547_v30 = vld [vmem:[%s7494_s1 + $0xd24] ss:$8 sps:$4 sm:$0xff]   ;;  %v5542_v31 = vld [vmem:[%s7494_s1 + $0x920] ss:$8 sps:$4 sm:$0xff]  }
 0x117   : > { %2886 = vmatpush1.bf16.msra.mxu1 %v5456_v32  ;;  %v5545_v32 = vld [vmem:[%s7494_s1 + $0xd20] ss:$8 sps:$4 sm:$0xff]  }
 0x118   : > { %3821 = vmatpush1.bf16.msra.mxu0 %v5459_v33  ;;  %2887 = vmatprep.subr.bf16.mxu1 %v5464_v34  ;;  %v5550_v33 = vld [vmem:[%s7494_s1 + $0x934] ss:$8 sps:$4 sm:$0xff]  }
 0x119   : > { %3822 = vmatprep.subr.bf16.mxu0 %v5467_v35  ;;  %v6746_v40 = vpop.f32.mrb[0].mxu1  ;;  %v5553_v34 = vld [vmem:[%s7494_s1 + $0xd34] ss:$8 sps:$4 sm:$0xff]   ;;  %v5548_v35 = vld [vmem:[%s7494_s1 + $0x930] ss:$8 sps:$4 sm:$0xff]  }
 0x11a   : > { %v6754_v43 = vpop.f32.mrb[1].mxu1 }
 0x11b   : > { %v1011_v44 = vpop.f32.mrb[2].mxu1  ;;  %2888 = vmatpush1.bf16.msra.mxu1 %v5462_v36  ;;  %v5551_v36 = vld [vmem:[%s7494_s1 + $0xd30] ss:$8 sps:$4 sm:$0xff]  }
 0x11c   : > { %3823 = vmatpush1.bf16.msra.mxu0 %v5465_v37  ;;  %v1012_v45 = vpop.f32.mrb[3].mxu1  ;;  %2889 = vmatprep.subr.bf16.mxu1 %v5470_v38  ;;  %v5556_v37 = vld [vmem:[%s7494_s1 + $0x944] ss:$8 sps:$4 sm:$0xff]   ;;  %v5565_v44 = vld [vmem:[%s7494_s1 + $0xd54] ss:$8 sps:$4 sm:$0xff]  }
 0x11d   : > { %3824 = vmatprep.subr.bf16.mxu0 %v5473_v39  ;;  %v5559_v38 = vld [vmem:[%s7494_s1 + $0xd44] ss:$8 sps:$4 sm:$0xff]   ;;  %v5554_v39 = vld [vmem:[%s7494_s1 + $0x940] ss:$8 sps:$4 sm:$0xff]   ;;  %v5560_v45 = vld [vmem:[%s7494_s1 + $0x950] ss:$8 sps:$4 sm:$0xff]  }
 0x11f   : > { %2890 = vmatpush1.bf16.msra.mxu1 %v5468_v41  ;;  %v5557_v41 = vld [vmem:[%s7494_s1 + $0xd40] ss:$8 sps:$4 sm:$0xff]  }
 0x120   : > { %3825 = vmatpush1.bf16.msra.mxu0 %v5471_v42  ;;  %2891 = vmatprep.subr.bf16.mxu1 %v5476_v46  ;;  %v5562_v42 = vld [vmem:[%s7494_s1 + $0x954] ss:$8 sps:$4 sm:$0xff]   ;;  %v5563_v46 = vld [vmem:[%s7494_s1 + $0xd50] ss:$8 sps:$4 sm:$0xff]  }
 0x121   : > { %3826 = vmatprep.subr.bf16.mxu0 %v5479_v47  ;;  %v5568_v47 = vld [vmem:[%s7494_s1 + $0x964] ss:$8 sps:$4 sm:$0xff]  }
 0x123   : > { %2892 = vmatpush1.bf16.msra.mxu1 %v5474_v48  ;;  %v5571_v48 = vld [vmem:[%s7494_s1 + $0xd64] ss:$8 sps:$4 sm:$0xff]  }
 0x124   : > { %3827 = vmatpush1.bf16.msra.mxu0 %v5477_v49  ;;  %2893 = vmatprep.subr.bf16.mxu1 %v5482_v50 }
 0x125   : > { %3828 = vmatprep.subr.bf16.mxu0 %v5485_v51 }
 0x127   : > { %2894 = vmatpush1.bf16.msra.mxu1 %v5480_v52 }
 0x128   : > { %3829 = vmatpush1.bf16.msra.mxu0 %v5483_v53  ;;  %2895 = vmatprep.subr.bf16.mxu1 %v5488_v54  ;;  %v5566_v54 = vld [vmem:[%s7494_s1 + $0x960] ss:$8 sps:$4 sm:$0xff]  }
 0x129   : > { %3830 = vmatprep.subr.bf16.mxu0 %v5491_v55  ;;  %v5569_v55 = vld [vmem:[%s7494_s1 + $0xd60] ss:$8 sps:$4 sm:$0xff]  }
 0x12b   : > { %2896 = vmatpush1.bf16.msra.mxu1 %v5486_v56 }
 0x12c   : > { %3831 = vmatpush1.bf16.msra.mxu0 %v5489_v57  ;;  %2897 = vmatprep.subr.bf16.mxu1 %v5494_v58  ;;  %v5572_v57 = vld [vmem:[%s7494_s1 + $0x970] ss:$8 sps:$4 sm:$0xff]  }
 0x12d   : > { %3832 = vmatprep.subr.bf16.mxu0 %v5497_v59  ;;  %v5575_v58 = vld [vmem:[%s7494_s1 + $0xd70] ss:$8 sps:$4 sm:$0xff]   ;;  %v5580_v59 = vld [vmem:[%s7494_s1 + $0x984] ss:$8 sps:$4 sm:$0xff]  }
 0x12f   : > { %2898 = vmatpush1.bf16.msra.mxu1 %v5492_v60  ;;  %v5583_v60 = vld [vmem:[%s7494_s1 + $0xd84] ss:$8 sps:$4 sm:$0xff]  }
 0x130   : > { %3833 = vmatpush1.bf16.msra.mxu0 %v5495_v61  ;;  %2899 = vmatprep.subr.bf16.mxu1 %v5500_v62  ;;  %v5578_v61 = vld [vmem:[%s7494_s1 + $0x980] ss:$8 sps:$4 sm:$0xff]  }
 0x131   : > { %3834 = vmatprep.subr.bf16.mxu0 %v5503_v63  ;;  %v5581_v62 = vld [vmem:[%s7494_s1 + $0xd80] ss:$8 sps:$4 sm:$0xff]   ;;  %v5586_v63 = vld [vmem:[%s7494_s1 + $0x994] ss:$8 sps:$4 sm:$0xff]  }
 0x133   : > { %2900 = vmatpush1.bf16.msra.mxu1 %v5498_v0  ;;  %v5589_v0 = vld [vmem:[%s7494_s1 + $0xd94] ss:$8 sps:$4 sm:$0xff]  }
 0x134   : > { %3835 = vmatpush1.bf16.msra.mxu0 %v5501_v1  ;;  %2901 = vmatprep.subr.bf16.mxu1 %v5506_v2  ;;  %v5584_v1 = vld [vmem:[%s7494_s1 + $0x990] ss:$8 sps:$4 sm:$0xff]  }
 0x135   : > { %3836 = vmatprep.subr.bf16.mxu0 %v5509_v3  ;;  %v5587_v2 = vld [vmem:[%s7494_s1 + $0xd90] ss:$8 sps:$4 sm:$0xff]   ;;  %v5592_v3 = vld [vmem:[%s7494_s1 + $0x9a4] ss:$8 sps:$4 sm:$0xff]  }
 0x137   : > { %2902 = vmatpush1.bf16.msra.mxu1 %v5504_v4  ;;  %v5595_v4 = vld [vmem:[%s7494_s1 + $0xda4] ss:$8 sps:$4 sm:$0xff]  }
 0x138   : > { %3837 = vmatpush1.bf16.msra.mxu0 %v5507_v5  ;;  %2903 = vmatprep.subr.bf16.mxu1 %v5512_v6  ;;  %v5590_v5 = vld [vmem:[%s7494_s1 + $0x9a0] ss:$8 sps:$4 sm:$0xff]  }
 0x139   : > { %3838 = vmatprep.subr.bf16.mxu0 %v5515_v7  ;;  %v5593_v6 = vld [vmem:[%s7494_s1 + $0xda0] ss:$8 sps:$4 sm:$0xff]   ;;  %v5598_v7 = vld [vmem:[%s7494_s1 + $0x9b4] ss:$8 sps:$4 sm:$0xff]  }
 0x13b   : > { %2904 = vmatpush1.bf16.msra.mxu1 %v5510_v8  ;;  %v5601_v8 = vld [vmem:[%s7494_s1 + $0xdb4] ss:$8 sps:$4 sm:$0xff]  }
 0x13c   : > { %3839 = vmatpush1.bf16.msra.mxu0 %v5513_v9  ;;  %2905 = vmatprep.subr.bf16.mxu1 %v5518_v10  ;;  %v5596_v9 = vld [vmem:[%s7494_s1 + $0x9b0] ss:$8 sps:$4 sm:$0xff]  }
 0x13d   : > { %3840 = vmatprep.subr.bf16.mxu0 %v5521_v12  ;;  %v5599_v10 = vld [vmem:[%s7494_s1 + $0xdb0] ss:$8 sps:$4 sm:$0xff]   ;;  %v5604_v12 = vld [vmem:[%s7494_s1 + $0x9c4] ss:$8 sps:$4 sm:$0xff]  }
 0x13f   : > { %2906 = vmatpush1.bf16.msra.mxu1 %v5516_v13  ;;  %v5607_v13 = vld [vmem:[%s7494_s1 + $0xdc4] ss:$8 sps:$4 sm:$0xff]  }
 0x140   : > { %3841 = vmatpush1.bf16.msra.mxu0 %v5519_v15  ;;  %2907 = vmatprep.subr.bf16.mxu1 %v5524_v16  ;;  %v5602_v15 = vld [vmem:[%s7494_s1 + $0x9c0] ss:$8 sps:$4 sm:$0xff]  }
 0x141   : > { %3842 = vmatprep.subr.bf16.mxu0 %v5527_v17  ;;  %v5605_v16 = vld [vmem:[%s7494_s1 + $0xdc0] ss:$8 sps:$4 sm:$0xff]   ;;  %v5610_v17 = vld [vmem:[%s7494_s1 + $0x9d4] ss:$8 sps:$4 sm:$0xff]  }
 0x143   : > { %2908 = vmatpush1.bf16.msra.mxu1 %v5522_v18  ;;  %v5613_v18 = vld [vmem:[%s7494_s1 + $0xdd4] ss:$8 sps:$4 sm:$0xff]  }
 0x144   : > { %3843 = vmatpush1.bf16.msra.mxu0 %v5525_v19  ;;  %2918 = vmatprep.subr.bf16.mxu1 %v5532_v14  ;;  %v5608_v19 = vld [vmem:[%s7494_s1 + $0x9d0] ss:$8 sps:$4 sm:$0xff]  }
 0x145   : > { %3853 = vmatprep.subr.bf16.mxu0 %v5535_v20  ;;  %v5611_v14 = vld [vmem:[%s7494_s1 + $0xdd0] ss:$8 sps:$4 sm:$0xff]   ;;  %v5616_v20 = vld [vmem:[%s7494_s1 + $0x9e4] ss:$8 sps:$4 sm:$0xff]  }
 0x146   : > { %2910 = vmatmul.mubr.bf16.vlgmr.msra.gmra.mrb[16].mxu1 %v4611_v23 }
 0x147   : > { %3845 = vmatmul.mubr.bf16.vlgmr.msra.gmra.mrb[4].mxu0 %v4611_v23  ;;  %2919 = vmatpush1.bf16.msra.mxu1 %v5530_v21  ;;  %v5619_v21 = vld [vmem:[%s7494_s1 + $0xde4] ss:$8 sps:$4 sm:$0xff]   ;;  %v5617_v23 = vld [vmem:[%s7494_s1 + $0xde0] ss:$8 sps:$4 sm:$0xff]  }
 0x148   : > { %3854 = vmatpush1.bf16.msra.mxu0 %v5533_v22  ;;  %2920 = vmatprep.subr.bf16.mxu1 %v5538_v25  ;;  %v5614_v22 = vld [vmem:[%s7494_s1 + $0x9e0] ss:$8 sps:$4 sm:$0xff]   ;;  %v5622_v25 = vld [vmem:[%s7494_s1 + $0x9f4] ss:$8 sps:$4 sm:$0xff]  }
 0x149   : > { %3855 = vmatprep.subr.bf16.mxu0 %v5541_v26  ;;  %2950 = vmatprep.mubr.bf16.mxu1 %v4614_v27  ;;  %v5625_v26 = vld [vmem:[%s7494_s1 + $0xdf4] ss:$8 sps:$4 sm:$0xff]  }
 0x14a   : > { %3885 = vmatprep.mubr.bf16.mxu0 %v4614_v27  ;;  %v5620_v27 = vld [vmem:[%s7494_s1 + $0x9f0] ss:$8 sps:$4 sm:$0xff]  }
 0x14b   : > { %2921 = vmatpush1.bf16.msra.mxu1 %v5536_v11  ;;  %v5623_v11 = vld [vmem:[%s7494_s1 + $0xdf0] ss:$8 sps:$4 sm:$0xff]  }
 0x14c   : > { %3856 = vmatpush1.bf16.msra.mxu0 %v5539_v28  ;;  %2922 = vmatprep.subr.bf16.mxu1 %v5544_v29  ;;  %v5630_v28 = vld [vmem:[%s7494_s1 + $0xa04] ss:$8 sps:$4 sm:$0xff]  }
 0x14d   : > { %3857 = vmatprep.subr.bf16.mxu0 %v5547_v30  ;;  %v5633_v29 = vld [vmem:[%s7494_s1 + $0xe04] ss:$8 sps:$4 sm:$0xff]   ;;  %v4613_v30 = vcombine.low %v6879_v24, %v6879_v24  ;;  %v5639_v24 = vld [vmem:[%s7494_s1 + $0xe14] ss:$8 sps:$4 sm:$0xff]  }
 0x14f   : > { %2923 = vmatpush1.bf16.msra.mxu1 %v5542_v31  ;;  %v7078_v31 = vld [vmem:[%s6003_s30 + $0x30] sm:$0xff] }
 0x150   : > { %3858 = vmatpush1.bf16.msra.mxu0 %v5545_v32  ;;  %2924 = vmatprep.subr.bf16.mxu1 %v5550_v33  ;;  %v5628_v32 = vld [vmem:[%s7494_s1 + $0xa00] ss:$8 sps:$4 sm:$0xff]  }
 0x151   : > { %3859 = vmatprep.subr.bf16.mxu0 %v5553_v34  ;;  %v5631_v33 = vld [vmem:[%s7494_s1 + $0xe00] ss:$8 sps:$4 sm:$0xff]   ;;  %v5636_v34 = vld [vmem:[%s7494_s1 + $0xa14] ss:$8 sps:$4 sm:$0xff]  }
 0x153   : > { %2925 = vmatpush1.bf16.msra.mxu1 %v5548_v35  ;;  %v4616_v35 = vcombine.high %v7078_v31, %v7078_v31 }
 0x154   : > { %3860 = vmatpush1.bf16.msra.mxu0 %v5551_v36  ;;  %2926 = vmatprep.subr.bf16.mxu1 %v5556_v37  ;;  %v5634_v36 = vld [vmem:[%s7494_s1 + $0xa10] ss:$8 sps:$4 sm:$0xff]  }
 0x155   : > { %3861 = vmatprep.subr.bf16.mxu0 %v5559_v38  ;;  %v5637_v37 = vld [vmem:[%s7494_s1 + $0xe10] ss:$8 sps:$4 sm:$0xff]   ;;  %v5642_v38 = vld [vmem:[%s7494_s1 + $0xa24] ss:$8 sps:$4 sm:$0xff]  }
 0x157   : > { %2927 = vmatpush1.bf16.msra.mxu1 %v5554_v39  ;;  %v5645_v39 = vld [vmem:[%s7494_s1 + $0xe24] ss:$8 sps:$4 sm:$0xff]  }
 0x158   : > { %3862 = vmatpush1.bf16.msra.mxu0 %v5557_v41  ;;  %2928 = vmatprep.subr.bf16.mxu1 %v5562_v42  ;;  %v5640_v41 = vld [vmem:[%s7494_s1 + $0xa20] ss:$8 sps:$4 sm:$0xff]  }
 0x159   : > { %3863 = vmatprep.subr.bf16.mxu0 %v5565_v44  ;;  %v1048_v49 = vpop.f32.mrb[4].mxu1  ;;  %v5643_v42 = vld [vmem:[%s7494_s1 + $0xe20] ss:$8 sps:$4 sm:$0xff]   ;;  %v5648_v44 = vld [vmem:[%s7494_s1 + $0xa34] ss:$8 sps:$4 sm:$0xff]  }
 0x15a   : > { %v6950_v50 = vadd.f32 %v1048_v49, %v6746_v40  ;;  %v1050_v51 = vpop.f32.mrb[5].mxu1  ;;  %v5574_v40 = vld [vmem:[%s7494_s1 + $0x974] ss:$8 sps:$4 sm:$0xff]   ;;  %v5657_v49 = vld [vmem:[%s7494_s1 + $0xe44] ss:$8 sps:$4 sm:$0xff]  }
 0x15b   : > { %v6953_v52 = vadd.f32 %v1050_v51, %v6754_v43  ;;  %v1052_v53 = vpop.f32.mrb[6].mxu1  ;;  %2929 = vmatpush1.bf16.msra.mxu1 %v5560_v45  ;;  %v5577_v43 = vld [vmem:[%s7494_s1 + $0xd74] ss:$8 sps:$4 sm:$0xff]   ;;  %v5652_v51 = vld [vmem:[%s7494_s1 + $0xa40] ss:$8 sps:$4 sm:$0xff]  }
 0x15c   : > { %3864 = vmatpush1.bf16.msra.mxu0 %v5563_v46  ;;  %v1053_v56 = vpop.f32.mrb[7].mxu1  ;;  %2930 = vmatprep.subr.bf16.mxu1 %v5568_v47  ;;  %v5651_v45 = vld [vmem:[%s7494_s1 + $0xe34] ss:$8 sps:$4 sm:$0xff]   ;;  %v5646_v46 = vld [vmem:[%s7494_s1 + $0xa30] ss:$8 sps:$4 sm:$0xff]  }
 0x15d   : > { %3865 = vmatprep.subr.bf16.mxu0 %v5571_v48  ;;  %v5649_v47 = vld [vmem:[%s7494_s1 + $0xe30] ss:$8 sps:$4 sm:$0xff]   ;;  %v5654_v48 = vld [vmem:[%s7494_s1 + $0xa44] ss:$8 sps:$4 sm:$0xff]   ;;  %v5655_v53 = vld [vmem:[%s7494_s1 + $0xe40] ss:$8 sps:$4 sm:$0xff]  }
 0x15e   : > { %v5658_v56 = vld [vmem:[%s7494_s1 + $0xa50] ss:$8 sps:$4 sm:$0xff]  }
 0x15f   : > { %2931 = vmatpush1.bf16.msra.mxu1 %v5566_v54  ;;  %v5660_v54 = vld [vmem:[%s7494_s1 + $0xa54] ss:$8 sps:$4 sm:$0xff]  }
 0x160   : > { %3866 = vmatpush1.bf16.msra.mxu0 %v5569_v55  ;;  %2932 = vmatprep.subr.bf16.mxu1 %v5574_v40  ;;  %v5663_v55 = vld [vmem:[%s7494_s1 + $0xe54] ss:$8 sps:$4 sm:$0xff]   ;;  %v5661_v40 = vld [vmem:[%s7494_s1 + $0xe50] ss:$8 sps:$4 sm:$0xff]  }
 0x161   : > { %3867 = vmatprep.subr.bf16.mxu0 %v5577_v43  ;;  %v5666_v43 = vld [vmem:[%s7494_s1 + $0xa64] ss:$8 sps:$4 sm:$0xff]  }
 0x163   : > { %2933 = vmatpush1.bf16.msra.mxu1 %v5572_v57  ;;  %v5669_v57 = vld [vmem:[%s7494_s1 + $0xe64] ss:$8 sps:$4 sm:$0xff]  }
 0x164   : > { %3868 = vmatpush1.bf16.msra.mxu0 %v5575_v58  ;;  %2934 = vmatprep.subr.bf16.mxu1 %v5580_v59 }
 0x165   : > { %3869 = vmatprep.subr.bf16.mxu0 %v5583_v60 }
 0x167   : > { %2935 = vmatpush1.bf16.msra.mxu1 %v5578_v61 }
 0x168   : > { %3870 = vmatpush1.bf16.msra.mxu0 %v5581_v62  ;;  %2936 = vmatprep.subr.bf16.mxu1 %v5586_v63  ;;  %v5664_v63 = vld [vmem:[%s7494_s1 + $0xa60] ss:$8 sps:$4 sm:$0xff]  }
 0x169   : > { %3871 = vmatprep.subr.bf16.mxu0 %v5589_v0  ;;  %v5667_v0 = vld [vmem:[%s7494_s1 + $0xe60] ss:$8 sps:$4 sm:$0xff]  }
 0x16b   : > { %2937 = vmatpush1.bf16.msra.mxu1 %v5584_v1 }
 0x16c   : > { %3872 = vmatpush1.bf16.msra.mxu0 %v5587_v2  ;;  %2938 = vmatprep.subr.bf16.mxu1 %v5592_v3  ;;  %v5670_v2 = vld [vmem:[%s7494_s1 + $0xa70] ss:$8 sps:$4 sm:$0xff]  }
 0x16d   : > { %3873 = vmatprep.subr.bf16.mxu0 %v5595_v4  ;;  %v5673_v3 = vld [vmem:[%s7494_s1 + $0xe70] ss:$8 sps:$4 sm:$0xff]   ;;  %v5678_v4 = vld [vmem:[%s7494_s1 + $0xa84] ss:$8 sps:$4 sm:$0xff]  }
 0x16f   : > { %2939 = vmatpush1.bf16.msra.mxu1 %v5590_v5  ;;  %v5681_v5 = vld [vmem:[%s7494_s1 + $0xe84] ss:$8 sps:$4 sm:$0xff]  }
 0x170   : > { %3874 = vmatpush1.bf16.msra.mxu0 %v5593_v6  ;;  %2940 = vmatprep.subr.bf16.mxu1 %v5598_v7  ;;  %v5676_v6 = vld [vmem:[%s7494_s1 + $0xa80] ss:$8 sps:$4 sm:$0xff]  }
 0x171   : > { %3875 = vmatprep.subr.bf16.mxu0 %v5601_v8  ;;  %v5679_v7 = vld [vmem:[%s7494_s1 + $0xe80] ss:$8 sps:$4 sm:$0xff]   ;;  %v5684_v8 = vld [vmem:[%s7494_s1 + $0xa94] ss:$8 sps:$4 sm:$0xff]  }
 0x173   : > { %2941 = vmatpush1.bf16.msra.mxu1 %v5596_v9  ;;  %v5687_v9 = vld [vmem:[%s7494_s1 + $0xe94] ss:$8 sps:$4 sm:$0xff]  }
 0x174   : > { %3876 = vmatpush1.bf16.msra.mxu0 %v5599_v10  ;;  %2942 = vmatprep.subr.bf16.mxu1 %v5604_v12  ;;  %v5682_v10 = vld [vmem:[%s7494_s1 + $0xa90] ss:$8 sps:$4 sm:$0xff]  }
 0x175   : > { %3877 = vmatprep.subr.bf16.mxu0 %v5607_v13  ;;  %v5685_v12 = vld [vmem:[%s7494_s1 + $0xe90] ss:$8 sps:$4 sm:$0xff]   ;;  %v5690_v13 = vld [vmem:[%s7494_s1 + $0xaa4] ss:$8 sps:$4 sm:$0xff]  }
 0x177   : > { %2943 = vmatpush1.bf16.msra.mxu1 %v5602_v15  ;;  %v5693_v15 = vld [vmem:[%s7494_s1 + $0xea4] ss:$8 sps:$4 sm:$0xff]  }
 0x178   : > { %3878 = vmatpush1.bf16.msra.mxu0 %v5605_v16  ;;  %2944 = vmatprep.subr.bf16.mxu1 %v5610_v17  ;;  %v5688_v16 = vld [vmem:[%s7494_s1 + $0xaa0] ss:$8 sps:$4 sm:$0xff]  }
 0x179   : > { %3879 = vmatprep.subr.bf16.mxu0 %v5613_v18  ;;  %v5691_v17 = vld [vmem:[%s7494_s1 + $0xea0] ss:$8 sps:$4 sm:$0xff]   ;;  %v5696_v18 = vld [vmem:[%s7494_s1 + $0xab4] ss:$8 sps:$4 sm:$0xff]  }
 0x17b   : > { %2945 = vmatpush1.bf16.msra.mxu1 %v5608_v19  ;;  %v5699_v19 = vld [vmem:[%s7494_s1 + $0xeb4] ss:$8 sps:$4 sm:$0xff]  }
 0x17c   : > { %3880 = vmatpush1.bf16.msra.mxu0 %v5611_v14  ;;  %2946 = vmatprep.subr.bf16.mxu1 %v5616_v20  ;;  %v5694_v14 = vld [vmem:[%s7494_s1 + $0xab0] ss:$8 sps:$4 sm:$0xff]  }
 0x17d   : > { %3881 = vmatprep.subr.bf16.mxu0 %v5619_v21  ;;  %v5697_v20 = vld [vmem:[%s7494_s1 + $0xeb0] ss:$8 sps:$4 sm:$0xff]   ;;  %v5702_v21 = vld [vmem:[%s7494_s1 + $0xac4] ss:$8 sps:$4 sm:$0xff]  }
 0x17f   : > { %2947 = vmatpush1.bf16.msra.mxu1 %v5614_v22  ;;  %v5705_v22 = vld [vmem:[%s7494_s1 + $0xec4] ss:$8 sps:$4 sm:$0xff]  }
 0x180   : > { %3882 = vmatpush1.bf16.msra.mxu0 %v5617_v23  ;;  %2948 = vmatprep.subr.bf16.mxu1 %v5622_v25  ;;  %v5700_v23 = vld [vmem:[%s7494_s1 + $0xac0] ss:$8 sps:$4 sm:$0xff]  }
 0x181   : > { %3883 = vmatprep.subr.bf16.mxu0 %v5625_v26  ;;  %v5703_v25 = vld [vmem:[%s7494_s1 + $0xec0] ss:$8 sps:$4 sm:$0xff]   ;;  %v5708_v26 = vld [vmem:[%s7494_s1 + $0xad4] ss:$8 sps:$4 sm:$0xff]  }
 0x183   : > { %2949 = vmatpush1.bf16.msra.mxu1 %v5620_v27  ;;  %v5711_v27 = vld [vmem:[%s7494_s1 + $0xed4] ss:$8 sps:$4 sm:$0xff]  }
 0x184   : > { %3884 = vmatpush1.bf16.msra.mxu0 %v5623_v11  ;;  %2959 = vmatprep.subr.bf16.mxu1 %v5630_v28  ;;  %v5706_v11 = vld [vmem:[%s7494_s1 + $0xad0] ss:$8 sps:$4 sm:$0xff]  }
 0x185   : > { %3894 = vmatprep.subr.bf16.mxu0 %v5633_v29  ;;  %v5709_v28 = vld [vmem:[%s7494_s1 + $0xed0] ss:$8 sps:$4 sm:$0xff]   ;;  %v5714_v29 = vld [vmem:[%s7494_s1 + $0xae4] ss:$8 sps:$4 sm:$0xff]  }
 0x186   : > { %2951 = vmatmul.mubr.bf16.vlgmr.msra.gmra.mrb[20].mxu1 %v4613_v30 }
 0x187   : > { %3886 = vmatmul.mubr.bf16.vlgmr.msra.gmra.mrb[4].mxu0 %v4613_v30  ;;  %2960 = vmatpush1.bf16.msra.mxu1 %v5628_v32  ;;  %v5717_v30 = vld [vmem:[%s7494_s1 + $0xee4] ss:$8 sps:$4 sm:$0xff]   ;;  %v5712_v32 = vld [vmem:[%s7494_s1 + $0xae0] ss:$8 sps:$4 sm:$0xff]  }
 0x188   : > { %3895 = vmatpush1.bf16.msra.mxu0 %v5631_v33  ;;  %2961 = vmatprep.subr.bf16.mxu1 %v5636_v34  ;;  %v5715_v33 = vld [vmem:[%s7494_s1 + $0xee0] ss:$8 sps:$4 sm:$0xff]   ;;  %v5720_v34 = vld [vmem:[%s7494_s1 + $0xaf4] ss:$8 sps:$4 sm:$0xff]  }
 0x189   : > { %3896 = vmatprep.subr.bf16.mxu0 %v5639_v24  ;;  %2991 = vmatprep.mubr.bf16.mxu1 %v4616_v35  ;;  %v5723_v24 = vld [vmem:[%s7494_s1 + $0xef4] ss:$8 sps:$4 sm:$0xff]  }
 0x18a   : > { %3926 = vmatprep.mubr.bf16.mxu0 %v4616_v35  ;;  %v5718_v35 = vld [vmem:[%s7494_s1 + $0xaf0] ss:$8 sps:$4 sm:$0xff]  }
 0x18b   : > { %2962 = vmatpush1.bf16.msra.mxu1 %v5634_v36  ;;  %v5721_v36 = vld [vmem:[%s7494_s1 + $0xef0] ss:$8 sps:$4 sm:$0xff]  }
 0x18c   : > { %3897 = vmatpush1.bf16.msra.mxu0 %v5637_v37  ;;  %2963 = vmatprep.subr.bf16.mxu1 %v5642_v38  ;;  %v5728_v37 = vld [vmem:[%s7494_s1 + $0xb04] ss:$8 sps:$4 sm:$0xff]  }
 0x18d   : > { %3898 = vmatprep.subr.bf16.mxu0 %v5645_v39  ;;  %v5731_v38 = vld [vmem:[%s7494_s1 + $0xf04] ss:$8 sps:$4 sm:$0xff]   ;;  %v4615_v39 = vcombine.low %v7078_v31, %v7078_v31  ;;  %v5737_v31 = vld [vmem:[%s7494_s1 + $0xf14] ss:$8 sps:$4 sm:$0xff]  }
 0x18f   : > { %2964 = vmatpush1.bf16.msra.mxu1 %v5640_v41  ;;  %v7283_v41 = vld [vmem:[%s6003_s30 + $0x38] sm:$0xff] }
 0x190   : > { %3899 = vmatpush1.bf16.msra.mxu0 %v5643_v42  ;;  %2965 = vmatprep.subr.bf16.mxu1 %v5648_v44  ;;  %v5726_v42 = vld [vmem:[%s7494_s1 + $0xb00] ss:$8 sps:$4 sm:$0xff]  }
 0x191   : > { %3900 = vmatprep.subr.bf16.mxu0 %v5651_v45  ;;  %v5729_v44 = vld [vmem:[%s7494_s1 + $0xf00] ss:$8 sps:$4 sm:$0xff]   ;;  %v5734_v45 = vld [vmem:[%s7494_s1 + $0xb14] ss:$8 sps:$4 sm:$0xff]  }
 0x193   : > { %2966 = vmatpush1.bf16.msra.mxu1 %v5646_v46  ;;  %v4618_v46 = vcombine.high %v7283_v41, %v7283_v41 }
 0x194   : > { %3901 = vmatpush1.bf16.msra.mxu0 %v5649_v47  ;;  %2967 = vmatprep.subr.bf16.mxu1 %v5654_v48  ;;  %v5732_v47 = vld [vmem:[%s7494_s1 + $0xb10] ss:$8 sps:$4 sm:$0xff]  }
 0x195   : > { %3902 = vmatprep.subr.bf16.mxu0 %v5657_v49  ;;  %v5735_v48 = vld [vmem:[%s7494_s1 + $0xf10] ss:$8 sps:$4 sm:$0xff]   ;;  %v5740_v49 = vld [vmem:[%s7494_s1 + $0xb24] ss:$8 sps:$4 sm:$0xff]  }
 0x197   : > { %2968 = vmatpush1.bf16.msra.mxu1 %v5652_v51  ;;  %v5743_v51 = vld [vmem:[%s7494_s1 + $0xf24] ss:$8 sps:$4 sm:$0xff]  }
 0x198   : > { %3903 = vmatpush1.bf16.msra.mxu0 %v5655_v53  ;;  %2969 = vmatprep.subr.bf16.mxu1 %v5660_v54  ;;  %v5738_v53 = vld [vmem:[%s7494_s1 + $0xb20] ss:$8 sps:$4 sm:$0xff]  }
 0x199   : > { %3904 = vmatprep.subr.bf16.mxu0 %v5663_v55  ;;  %v1089_v58 = vpop.f32.mrb[8].mxu1  ;;  %v5741_v54 = vld [vmem:[%s7494_s1 + $0xf20] ss:$8 sps:$4 sm:$0xff]   ;;  %v5746_v55 = vld [vmem:[%s7494_s1 + $0xb34] ss:$8 sps:$4 sm:$0xff]  }
 0x19a   : > { %v7155_v59 = vadd.f32 %v1089_v58, %v6950_v50  ;;  %v1091_v60 = vpop.f32.mrb[9].mxu1  ;;  %v5672_v50 = vld [vmem:[%s7494_s1 + $0xa74] ss:$8 sps:$4 sm:$0xff]   ;;  %v5755_v58 = vld [vmem:[%s7494_s1 + $0xf44] ss:$8 sps:$4 sm:$0xff]  }
 0x19b   : > { %v7158_v61 = vadd.f32 %v1091_v60, %v6953_v52  ;;  %v1093_v62 = vpop.f32.mrb[10].mxu1  ;;  %2970 = vmatpush1.bf16.msra.mxu1 %v5658_v56  ;;  %v5675_v52 = vld [vmem:[%s7494_s1 + $0xe74] ss:$8 sps:$4 sm:$0xff]   ;;  %v5750_v60 = vld [vmem:[%s7494_s1 + $0xb40] ss:$8 sps:$4 sm:$0xff]  }
 0x19c   : > { %3905 = vmatpush1.bf16.msra.mxu0 %v5661_v40  ;;  %v1094_v1 = vpop.f32.mrb[11].mxu1  ;;  %2971 = vmatprep.subr.bf16.mxu1 %v5666_v43  ;;  %v5749_v56 = vld [vmem:[%s7494_s1 + $0xf34] ss:$8 sps:$4 sm:$0xff]   ;;  %v5744_v40 = vld [vmem:[%s7494_s1 + $0xb30] ss:$8 sps:$4 sm:$0xff]  }
 0x19d   : > { %3906 = vmatprep.subr.bf16.mxu0 %v5669_v57  ;;  %v5747_v43 = vld [vmem:[%s7494_s1 + $0xf30] ss:$8 sps:$4 sm:$0xff]   ;;  %v5752_v57 = vld [vmem:[%s7494_s1 + $0xb44] ss:$8 sps:$4 sm:$0xff]   ;;  %v5753_v62 = vld [vmem:[%s7494_s1 + $0xf40] ss:$8 sps:$4 sm:$0xff]  }
 0x19e   : > { %v5756_v1 = vld [vmem:[%s7494_s1 + $0xb50] ss:$8 sps:$4 sm:$0xff]  }
 0x19f   : > { %2972 = vmatpush1.bf16.msra.mxu1 %v5664_v63  ;;  %v5758_v63 = vld [vmem:[%s7494_s1 + $0xb54] ss:$8 sps:$4 sm:$0xff]  }
 0x1a0   : > { %3907 = vmatpush1.bf16.msra.mxu0 %v5667_v0  ;;  %2973 = vmatprep.subr.bf16.mxu1 %v5672_v50  ;;  %v5761_v0 = vld [vmem:[%s7494_s1 + $0xf54] ss:$8 sps:$4 sm:$0xff]   ;;  %v5759_v50 = vld [vmem:[%s7494_s1 + $0xf50] ss:$8 sps:$4 sm:$0xff]  }
 0x1a1   : > { %3908 = vmatprep.subr.bf16.mxu0 %v5675_v52  ;;  %v5764_v52 = vld [vmem:[%s7494_s1 + $0xb64] ss:$8 sps:$4 sm:$0xff]  }
 0x1a3   : > { %2974 = vmatpush1.bf16.msra.mxu1 %v5670_v2  ;;  %v5767_v2 = vld [vmem:[%s7494_s1 + $0xf64] ss:$8 sps:$4 sm:$0xff]  }
 0x1a4   : > { %3909 = vmatpush1.bf16.msra.mxu0 %v5673_v3  ;;  %2975 = vmatprep.subr.bf16.mxu1 %v5678_v4 }
 0x1a5   : > { %3910 = vmatprep.subr.bf16.mxu0 %v5681_v5 }
 0x1a7   : > { %2976 = vmatpush1.bf16.msra.mxu1 %v5676_v6 }
 0x1a8   : > { %3911 = vmatpush1.bf16.msra.mxu0 %v5679_v7  ;;  %2977 = vmatprep.subr.bf16.mxu1 %v5684_v8 }
 0x1a9   : > { %3912 = vmatprep.subr.bf16.mxu0 %v5687_v9  ;;  %v5762_v9 = vld [vmem:[%s7494_s1 + $0xb60] ss:$8 sps:$4 sm:$0xff]  }
 0x1ab   : > { %2978 = vmatpush1.bf16.msra.mxu1 %v5682_v10 }
 0x1ac   : > { %3913 = vmatpush1.bf16.msra.mxu0 %v5685_v12  ;;  %2979 = vmatprep.subr.bf16.mxu1 %v5690_v13 }
 0x1ad   : > { %3914 = vmatprep.subr.bf16.mxu0 %v5693_v15 }
 0x1af   : > { %2980 = vmatpush1.bf16.msra.mxu1 %v5688_v16  ;;  %v5765_v16 = vld [vmem:[%s7494_s1 + $0xf60] ss:$8 sps:$4 sm:$0xff]  }
 0x1b0   : > { %3915 = vmatpush1.bf16.msra.mxu0 %v5691_v17  ;;  %2981 = vmatprep.subr.bf16.mxu1 %v5696_v18 }
 0x1b1   : > { %3916 = vmatprep.subr.bf16.mxu0 %v5699_v19  ;;  %v5770_v19 = vld [vmem:[%s7494_s1 + $0xb74] ss:$8 sps:$4 sm:$0xff]  }
 0x1b3   : > { %2982 = vmatpush1.bf16.msra.mxu1 %v5694_v14 }
 0x1b4   : > { %3917 = vmatpush1.bf16.msra.mxu0 %v5697_v20  ;;  %2983 = vmatprep.subr.bf16.mxu1 %v5702_v21  ;;  %v5768_v20 = vld [vmem:[%s7494_s1 + $0xb70] ss:$8 sps:$4 sm:$0xff]  }
 0x1b5   : > { %3918 = vmatprep.subr.bf16.mxu0 %v5705_v22  ;;  %v5771_v21 = vld [vmem:[%s7494_s1 + $0xf70] ss:$8 sps:$4 sm:$0xff]   ;;  %v5776_v22 = vld [vmem:[%s7494_s1 + $0xb84] ss:$8 sps:$4 sm:$0xff]  }
 0x1b7   : > { %2984 = vmatpush1.bf16.msra.mxu1 %v5700_v23  ;;  %v5779_v23 = vld [vmem:[%s7494_s1 + $0xf84] ss:$8 sps:$4 sm:$0xff]  }
 0x1b8   : > { %3919 = vmatpush1.bf16.msra.mxu0 %v5703_v25  ;;  %2985 = vmatprep.subr.bf16.mxu1 %v5708_v26  ;;  %v5774_v25 = vld [vmem:[%s7494_s1 + $0xb80] ss:$8 sps:$4 sm:$0xff]  }
 0x1b9   : > { %3920 = vmatprep.subr.bf16.mxu0 %v5711_v27  ;;  %v5777_v26 = vld [vmem:[%s7494_s1 + $0xf80] ss:$8 sps:$4 sm:$0xff]   ;;  %v5782_v27 = vld [vmem:[%s7494_s1 + $0xb94] ss:$8 sps:$4 sm:$0xff]  }
 0x1bb   : > { %2986 = vmatpush1.bf16.msra.mxu1 %v5706_v11  ;;  %v5785_v11 = vld [vmem:[%s7494_s1 + $0xf94] ss:$8 sps:$4 sm:$0xff]  }
 0x1bc   : > { %3921 = vmatpush1.bf16.msra.mxu0 %v5709_v28  ;;  %2987 = vmatprep.subr.bf16.mxu1 %v5714_v29  ;;  %v5780_v28 = vld [vmem:[%s7494_s1 + $0xb90] ss:$8 sps:$4 sm:$0xff]  }
 0x1bd   : > { %3922 = vmatprep.subr.bf16.mxu0 %v5717_v30  ;;  %v5783_v29 = vld [vmem:[%s7494_s1 + $0xf90] ss:$8 sps:$4 sm:$0xff]   ;;  %v5788_v30 = vld [vmem:[%s7494_s1 + $0xba4] ss:$8 sps:$4 sm:$0xff]  }
 0x1bf   : > { %2988 = vmatpush1.bf16.msra.mxu1 %v5712_v32  ;;  %v5791_v32 = vld [vmem:[%s7494_s1 + $0xfa4] ss:$8 sps:$4 sm:$0xff]  }
 0x1c0   : > { %3923 = vmatpush1.bf16.msra.mxu0 %v5715_v33  ;;  %2989 = vmatprep.subr.bf16.mxu1 %v5720_v34  ;;  %v5786_v33 = vld [vmem:[%s7494_s1 + $0xba0] ss:$8 sps:$4 sm:$0xff]  }
 0x1c1   : > { %3924 = vmatprep.subr.bf16.mxu0 %v5723_v24  ;;  %v5789_v34 = vld [vmem:[%s7494_s1 + $0xfa0] ss:$8 sps:$4 sm:$0xff]   ;;  %v5794_v24 = vld [vmem:[%s7494_s1 + $0xbb4] ss:$8 sps:$4 sm:$0xff]  }
 0x1c3   : > { %2990 = vmatpush1.bf16.msra.mxu1 %v5718_v35  ;;  %v5797_v35 = vld [vmem:[%s7494_s1 + $0xfb4] ss:$8 sps:$4 sm:$0xff]  }
 0x1c4   : > { %3925 = vmatpush1.bf16.msra.mxu0 %v5721_v36  ;;  %3000 = vmatprep.subr.bf16.mxu1 %v5728_v37  ;;  %v5792_v36 = vld [vmem:[%s7494_s1 + $0xbb0] ss:$8 sps:$4 sm:$0xff]  }
 0x1c5   : > { %3935 = vmatprep.subr.bf16.mxu0 %v5731_v38  ;;  %v5795_v37 = vld [vmem:[%s7494_s1 + $0xfb0] ss:$8 sps:$4 sm:$0xff]   ;;  %v5800_v38 = vld [vmem:[%s7494_s1 + $0xbc4] ss:$8 sps:$4 sm:$0xff]  }
 0x1c6   : > { %2992 = vmatmul.mubr.bf16.vlgmr.msra.gmra.mrb[24].mxu1 %v4615_v39 }
 0x1c7   : > { %3927 = vmatmul.mubr.bf16.vlgmr.msra.gmra.mrb[4].mxu0 %v4615_v39  ;;  %3001 = vmatpush1.bf16.msra.mxu1 %v5726_v42  ;;  %v5803_v39 = vld [vmem:[%s7494_s1 + $0xfc4] ss:$8 sps:$4 sm:$0xff]   ;;  %v5798_v42 = vld [vmem:[%s7494_s1 + $0xbc0] ss:$8 sps:$4 sm:$0xff]  }
 0x1c8   : > { %3936 = vmatpush1.bf16.msra.mxu0 %v5729_v44  ;;  %3002 = vmatprep.subr.bf16.mxu1 %v5734_v45  ;;  %v5801_v44 = vld [vmem:[%s7494_s1 + $0xfc0] ss:$8 sps:$4 sm:$0xff]   ;;  %v5806_v45 = vld [vmem:[%s7494_s1 + $0xbd4] ss:$8 sps:$4 sm:$0xff]  }
 0x1c9   : > { %3937 = vmatprep.subr.bf16.mxu0 %v5737_v31  ;;  %3032 = vmatprep.mubr.bf16.mxu1 %v4618_v46  ;;  %v5809_v31 = vld [vmem:[%s7494_s1 + $0xfd4] ss:$8 sps:$4 sm:$0xff]  }
 0x1ca   : > { %3967 = vmatprep.mubr.bf16.mxu0 %v4618_v46  ;;  %v5804_v46 = vld [vmem:[%s7494_s1 + $0xbd0] ss:$8 sps:$4 sm:$0xff]  }
 0x1cb   : > { %3003 = vmatpush1.bf16.msra.mxu1 %v5732_v47  ;;  %v5807_v47 = vld [vmem:[%s7494_s1 + $0xfd0] ss:$8 sps:$4 sm:$0xff]  }
 0x1cc   : > { %3938 = vmatpush1.bf16.msra.mxu0 %v5735_v48  ;;  %3004 = vmatprep.subr.bf16.mxu1 %v5740_v49  ;;  %v5812_v48 = vld [vmem:[%s7494_s1 + $0xbe4] ss:$8 sps:$4 sm:$0xff]  }
 0x1cd   : > { %3939 = vmatprep.subr.bf16.mxu0 %v5743_v51  ;;  %v5815_v49 = vld [vmem:[%s7494_s1 + $0xfe4] ss:$8 sps:$4 sm:$0xff]   ;;  %v5810_v51 = vld [vmem:[%s7494_s1 + $0xbe0] ss:$8 sps:$4 sm:$0xff]  }
 0x1cf   : > { %3005 = vmatpush1.bf16.msra.mxu1 %v5738_v53  ;;  %v5813_v53 = vld [vmem:[%s7494_s1 + $0xfe0] ss:$8 sps:$4 sm:$0xff]  }
 0x1d0   : > { %3940 = vmatpush1.bf16.msra.mxu0 %v5741_v54  ;;  %3006 = vmatprep.subr.bf16.mxu1 %v5746_v55  ;;  %v5818_v54 = vld [vmem:[%s7494_s1 + $0xbf4] ss:$8 sps:$4 sm:$0xff]  }
 0x1d1   : > { %3941 = vmatprep.subr.bf16.mxu0 %v5749_v56  ;;  %v5821_v55 = vld [vmem:[%s7494_s1 + $0xff4] ss:$8 sps:$4 sm:$0xff]   ;;  %v5816_v56 = vld [vmem:[%s7494_s1 + $0xbf0] ss:$8 sps:$4 sm:$0xff]  }
 0x1d3   : > { %3007 = vmatpush1.bf16.msra.mxu1 %v5744_v40  ;;  %v5819_v40 = vld [vmem:[%s7494_s1 + $0xff0] ss:$8 sps:$4 sm:$0xff]  }
 0x1d4   : > { %3942 = vmatpush1.bf16.msra.mxu0 %v5747_v43  ;;  %3008 = vmatprep.subr.bf16.mxu1 %v5752_v57  ;;  %v4617_v43 = vcombine.low %v7283_v41, %v7283_v41 }
 0x1d5   : > { %3943 = vmatprep.subr.bf16.mxu0 %v5755_v58 }
 0x1d7   : > { %3009 = vmatpush1.bf16.msra.mxu1 %v5750_v60 }
 0x1d8   : > { %3944 = vmatpush1.bf16.msra.mxu0 %v5753_v62  ;;  %3010 = vmatprep.subr.bf16.mxu1 %v5758_v63 }
 0x1d9   : > { %3945 = vmatprep.subr.bf16.mxu0 %v5761_v0  ;;  %v1130_v3 = vpop.f32.mrb[12].mxu1 }
 0x1da   : > { %v2065_v4 = vpop.f32.mrb[0].mxu0  ;;  %v1131_v5 = vadd.f32 %v1130_v3, %v7155_v59  ;;  %v1132_v7 = vpop.f32.mrb[13].mxu1 }
 0x1db   : > { %v2074_v6 = vrot.slane %v2065_v4, 1  ;;  %v2067_v8 = vpop.f32.mrb[1].mxu0  ;;  %v1133_v10 = vadd.f32 %v1132_v7, %v7158_v61  ;;  %v1134_v13 = vpop.f32.mrb[14].mxu1  ;;  %3011 = vmatpush1.bf16.msra.mxu1 %v5756_v1  ;;  %v5773_v61 = vld [vmem:[%s7494_s1 + $0xf74] ss:$8 sps:$4 sm:$0xff]  }
 0x1dc   : > { %v2075_v12 = vrot.slane %v2067_v8, 1  ;;  %v2069_v15 = vpop.f32.mrb[2].mxu0  ;;  %3946 = vmatpush1.bf16.msra.mxu0 %v5759_v50  ;;  %v1135_v59 = vpop.f32.mrb[15].mxu1  ;;  %3012 = vmatprep.subr.bf16.mxu1 %v5764_v52  ;;  %v3986_v8 = vlaneseq }
 0x1dd   : > { %v7367_v17 = vadd.f32 %v2074_v6, %v1131_v5  ;;  %v2070_v18 = vpop.f32.mrb[3].mxu0  ;;  %3947 = vmatprep.subr.bf16.mxu0 %v5767_v2  ;;  %v3984_v15 = vld [vmem:[%s7495_s2] sm:$0x3] }
 0x1de   : > { %v7375_v14 = vadd.f32 %v2075_v12, %v1133_v10 }
 0x1df   : > { %3013 = vmatpush1.bf16.msra.mxu1 %v5762_v9  ;;  %v3987_v9 = vshrl.u32 %v3986_v8, 7 }
 0x1e0   : > { %3948 = vmatpush1.bf16.msra.mxu0 %v5765_v16  ;;  %3014 = vmatprep.subr.bf16.mxu1 %v5770_v19 }
 0x1e1   : > { %3949 = vmatprep.subr.bf16.mxu0 %v5773_v61  ;;  %v3988_v10 = vsub.s32 0, %v3987_v9  ;;  %v3992_v16 = vsub.s32 1, %v3987_v9 }
 0x1e3   : > { %3015 = vmatpush1.bf16.msra.mxu1 %v5768_v20  ;;  %v5832_v20 = vmov 1966171168  }
 0x1e4   : > { %3950 = vmatpush1.bf16.msra.mxu0 %v5771_v21  ;;  %3016 = vmatprep.subr.bf16.mxu1 %v5776_v22  ;;  %v4006_v21 = vunpack.c.l.s4 %v5832_v20 }
 0x1e5   : > { %3951 = vmatprep.subr.bf16.mxu0 %v5779_v23 }
 0x1e7   : > { %3017 = vmatpush1.bf16.msra.mxu1 %v5774_v25 }
 0x1e8   : > { %3952 = vmatpush1.bf16.msra.mxu0 %v5777_v26  ;;  %3018 = vmatprep.subr.bf16.mxu1 %v5782_v27  ;;  %v3989_v27 = vrot.slane %v3984_v15, %v3988_v10 }
 0x1e9   : > { %3953 = vmatprep.subr.bf16.mxu0 %v5785_v11 }
 0x1eb   : > { %3019 = vmatpush1.bf16.msra.mxu1 %v5780_v28 }
 0x1ec   : > { %3954 = vmatpush1.bf16.msra.mxu0 %v5783_v29  ;;  %3020 = vmatprep.subr.bf16.mxu1 %v5788_v30 }
 0x1ed   : > { %3955 = vmatprep.subr.bf16.mxu0 %v5791_v32  ;;  %v3993_v32 = vrot.slane %v3984_v15, %v3992_v16 }
 0x1ef   : > { %3021 = vmatpush1.bf16.msra.mxu1 %v5786_v33 }
 0x1f0   : > { %3956 = vmatpush1.bf16.msra.mxu0 %v5789_v34  ;;  %3022 = vmatprep.subr.bf16.mxu1 %v5794_v24  ;;  %v4007_v24 = vunpack.c.0.s8 %v4006_v21 }
 0x1f1   : > { %3957 = vmatprep.subr.bf16.mxu0 %v5797_v35 }
 0x1f3   : > { %3023 = vmatpush1.bf16.msra.mxu1 %v5792_v36 }
 0x1f4   : > { %3958 = vmatpush1.bf16.msra.mxu0 %v5795_v37  ;;  %3024 = vmatprep.subr.bf16.mxu1 %v5800_v38  ;;  %v4010_v38 = vsub.s32 %v4007_v24, %v3987_v9 }
 0x1f5   : > { %3959 = vmatprep.subr.bf16.mxu0 %v5803_v39 }
 0x1f7   : > { %3025 = vmatpush1.bf16.msra.mxu1 %v5798_v42  ;;  %v4027_v42 = vld [vmem:[%s168_s4] sm:$0x3] }
 0x1f8   : > { %3960 = vmatpush1.bf16.msra.mxu0 %v5801_v44  ;;  %3026 = vmatprep.subr.bf16.mxu1 %v5806_v45 }
 0x1f9   : > { %3961 = vmatprep.subr.bf16.mxu0 %v5809_v31 }
 0x1fb   : > { %3027 = vmatpush1.bf16.msra.mxu1 %v5804_v46 }
 0x1fc   : > { %3962 = vmatpush1.bf16.msra.mxu0 %v5807_v47  ;;  %3028 = vmatprep.subr.bf16.mxu1 %v5812_v48 }
 0x1fd   : > { %3963 = vmatprep.subr.bf16.mxu0 %v5815_v49 }
 0x1ff   : > { %3029 = vmatpush1.bf16.msra.mxu1 %v5810_v51 }
 0x200   : > { %3964 = vmatpush1.bf16.msra.mxu0 %v5813_v53  ;;  %3030 = vmatprep.subr.bf16.mxu1 %v5818_v54 }
 0x201   : > { %3965 = vmatprep.subr.bf16.mxu0 %v5821_v55 }
 0x203   : > { %3031 = vmatpush1.bf16.msra.mxu1 %v5816_v56 }
 0x204   : > { %3966 = vmatpush1.bf16.msra.mxu0 %v5819_v40 }
 0x206   : > { %3033 = vmatmul.mubr.bf16.vlgmr.msra.gmra.mrb[28].mxu1 %v4617_v43 }
 0x207   : > { %3968 = vmatmul.mubr.bf16.vlgmr.msra.gmra.mrb[4].mxu0 %v4617_v43 }
 0x219   : > { %v2911_v57 = vpop.f32.mrb[16].mxu1 }
 0x21a   : > { %v2913_v58 = vpop.f32.mrb[17].mxu1 }
 0x21b   : > { %v2915_v60 = vpop.f32.mrb[18].mxu1 }
 0x21c   : > { %v2916_v62 = vpop.f32.mrb[19].mxu1 }
 0x259   : > { %v2952_v63 = vpop.f32.mrb[20].mxu1 }
 0x25a   : > { %v2953_v0 = vadd.f32 %v2952_v63, %v2911_v57  ;;  %v2954_v1 = vpop.f32.mrb[21].mxu1 }
 0x25b   : > { %v2955_v50 = vadd.f32 %v2954_v1, %v2913_v58  ;;  %v2956_v52 = vpop.f32.mrb[22].mxu1 }
 0x25c   : > { %v2957_v2 = vpop.f32.mrb[23].mxu1 }
 0x299   : > { %v2993_v3 = vpop.f32.mrb[24].mxu1 }
 0x29a   : > { %v2994_v4 = vadd.f32 %v2993_v3, %v2953_v0  ;;  %v2995_v5 = vpop.f32.mrb[25].mxu1 }
 0x29b   : > { %v2996_v6 = vadd.f32 %v2995_v5, %v2955_v50  ;;  %v2997_v7 = vpop.f32.mrb[26].mxu1 }
 0x29c   : > { %v2998_v41 = vpop.f32.mrb[27].mxu1 }
 0x2d9   : > { %v3034_v12 = vpop.f32.mrb[28].mxu1 }
 0x2da   : > { %v3969_v13 = vpop.f32.mrb[4].mxu0  ;;  %v3035_v59 = vadd.f32 %v3034_v12, %v2994_v4  ;;  %v3036_v18 = vpop.f32.mrb[29].mxu1 }
 0x2db   : > { %v3971_v19 = vpop.f32.mrb[5].mxu0  ;;  %v3037_v61 = vadd.f32 %v3036_v18, %v2996_v6  ;;  %v3038_v22 = vpop.f32.mrb[30].mxu1  ;;  %v3978_v26 = vrot.slane %v3969_v13, 1 }
 0x2dc   : > { %v3973_v23 = vpop.f32.mrb[6].mxu0  ;;  %v3041_v25 = vadd.f32 %v3035_v59, %v7367_v17  ;;  %v3039_v11 = vpop.f32.mrb[31].mxu1  ;;  %v3979_v30 = vrot.slane %v3971_v19, 1 }
 0x2dd   : > { %v3974_v28 = vpop.f32.mrb[7].mxu0  ;;  %v3042_v29 = vadd.f32 %v3037_v61, %v7375_v14 }
 0x2de   : > { %v3982_v33 = vadd.f32 %v3978_v26, %v3041_v25 }
 0x2df   : > { %v3983_v34 = vadd.f32 %v3979_v30, %v3042_v29 }
 0x2e0   : > { %v3996_v35 = vadd.f32 %v3989_v27, %v3982_v33 }
 0x2e1   : > { %v3997_v36 = vadd.f32 %v3993_v32, %v3983_v34 }
 0x2e2   : > { %v3998_v37 = vmax.f32 %v3996_v35, 0.0 }
 0x2e3   : > { %v3999_v17 = vmax.f32 %v3997_v36, 0.0 }
 0x2e5   : > { %v5003_v14 = vpack.c.bf16 %v3999_v17, %v3998_v37 }
 0x2e7   : > { %v4011_v39 = vrot.slane %v5003_v14, %v4010_v38 }
 0x2e9   : > { %v4018_v44 = vrot.slane %v4011_v39, %v4010_v38 }
 0x2eb   : > { %v4028_v45 = vsel %vm4026_vm6, %v4018_v44, %v4027_v42 }
 0x2ec   : > { %4029 = vst [vmem:[%s168_s4] sm:$0x3] %v4028_v45 }
 0x2ed PF: > { %s13_s12 = sadd.s32 1, %s5830_s12  }
 0x2ee   : > { %p10_p4 = scmp.ge.s32.totalorder %s13_s12, 4  }
 0x2f0   :  { %12 = sbr.rel (!%p10_p4) target bundleno = 1 (0x1), region = 65 }

</bundles_post_ra>
